<compile_context>
chip_gen: v5e
topology: v5e:2x2
jax: 0.10.0
libtpu: 0.0.40
codegen_flags: <defaults>
</compile_context>

<pallas_src>
import math
from dataclasses import dataclass

import jax
import jax.numpy as jnp
from jax.experimental import pallas as pl
from jax.experimental.pallas import tpu as pltpu


# ----------------------------- configuration ------------------------------ #

@dataclass
class Config:
    vocab: int = 64
    d_model: int = 32
    d_kv: int = 8
    n_heads: int = 4
    d_ff: int = 64
    n_layers: int = 2
    num_buckets: int = 32
    max_distance: int = 128
    eps: float = 1e-6


VMEM_SPEC = pl.BlockSpec(memory_space=pltpu.MemorySpace.VMEM)
NEG_INF = -1e9


# ----------------------- in-kernel building blocks ------------------------- #

def _rms(x, w, eps):
    """T5 LayerNorm (RMS, no mean subtraction, no bias). fp32 throughout."""
    var = jnp.mean(x * x, axis=-1, keepdims=True)
    return x * jax.lax.rsqrt(var + eps) * w


def _mha(q, k, v, wo, pos_ref, mask_ref, B, Sq, Sk, H, Dk, D):
    """Multi-head attention + output projection, fully in-kernel.

    q: [B*Sq, H*Dk], k/v: [B*Sk, H*Dk], wo: [H*Dk, D]
    pos_ref: VMEM ref [H, Sq, Sk] or None (relative position bias, + causal for decoder)
    mask_ref: VMEM ref [B, 1, Sk] or None (additive -1e9 padding mask on keys)
    returns [B*Sq, D]  (already projected through wo, accumulated over heads)
    """
    outs = []
    for b in range(B):
        acc = jnp.zeros((Sq, D), jnp.float32)
        for h in range(H):
            q_bh = q[b * Sq:(b + 1) * Sq, h * Dk:(h + 1) * Dk]     # [Sq, Dk]
            k_bh = k[b * Sk:(b + 1) * Sk, h * Dk:(h + 1) * Dk]     # [Sk, Dk]
            v_bh = v[b * Sk:(b + 1) * Sk, h * Dk:(h + 1) * Dk]     # [Sk, Dk]
            # NOTE: T5 does NOT scale scores by 1/sqrt(d_kv) (folded into init).
            s = jnp.dot(q_bh, k_bh.T, preferred_element_type=jnp.float32)  # [Sq, Sk]
            if pos_ref is not None:
                s = s + pos_ref[h]                                  # [Sq, Sk]
            if mask_ref is not None:
                s = s + mask_ref[b]                                 # [1, Sk] broadcast
            m = jnp.max(s, axis=-1, keepdims=True)
            p = jnp.exp(s - m)
            p = p / jnp.sum(p, axis=-1, keepdims=True)
            ctx = jnp.dot(p, v_bh, preferred_element_type=jnp.float32)     # [Sq, Dk]
            # accumulate per-head contribution of the output projection
            acc = acc + jnp.dot(ctx, wo[h * Dk:(h + 1) * Dk, :],
                                preferred_element_type=jnp.float32)        # [Sq, D]
        outs.append(acc)
    return jnp.concatenate(outs, axis=0)                            # [B*Sq, D]


# ------------------------ T5 glue (plain JAX, cheap) ------------------------ #

def _relative_position_bucket(rel_pos, bidirectional, num_buckets, max_distance):
    relative_buckets = jnp.zeros_like(rel_pos)
    if bidirectional:
        num_buckets = num_buckets // 2
        relative_buckets = relative_buckets + (rel_pos > 0).astype(jnp.int32) * num_buckets
        rel_pos = jnp.abs(rel_pos)
    else:
        rel_pos = -jnp.minimum(rel_pos, jnp.zeros_like(rel_pos))
    max_exact = num_buckets // 2
    is_small = rel_pos < max_exact
    rp_f = jnp.maximum(rel_pos, 1).astype(jnp.float32)
    rp_large = max_exact + (
        jnp.log(rp_f / max_exact) / math.log(max_distance / max_exact)
        * (num_buckets - max_exact)
    ).astype(jnp.int32)
    rp_large = jnp.minimum(rp_large, num_buckets - 1)
    return relative_buckets + jnp.where(is_small, rel_pos, rp_large)


def compute_position_bias(q_len, k_len, table, bidirectional, cfg):
    ctx = jnp.arange(q_len, dtype=jnp.int32)[:, None]
    mem = jnp.arange(k_len, dtype=jnp.int32)[None, :]
    buckets = _relative_position_bucket(mem - ctx, bidirectional,
                                        cfg.num_buckets, cfg.max_distance)
    values = table[buckets]                      # [q, k, H]
    return jnp.transpose(values, (2, 0, 1))      # [H, q, k]  (compact, no B broadcast)


def shift_right(labels):
    shifted = jnp.concatenate(
        [jnp.zeros_like(labels[:, :1]), labels[:, :-1]], axis=1)
    return jnp.where(shifted == -100, 0, shifted)  # decoder_start = pad = 0


def flatten_params(params):
    """Flat list in the exact order the fused kernel consumes them."""
    flat = []
    for p in params["enc_layers"]:
        flat += [p["ln_sa"], p["sa_qkv"], p["sa_o"], p["ln_ff"], p["wi"], p["wo"]]
    flat.append(params["enc_final_ln"])
    for p in params["dec_layers"]:
        flat += [p["ln_sa"], p["sa_qkv"], p["sa_o"],
                 p["ln_ca"], p["ca_q"], p["ca_kv"], p["ca_o"],
                 p["ln_ff"], p["wi"], p["wo"]]
    flat.append(params["dec_final_ln"])
    flat.append(params["shared_T_scaled"])
    return flat


# ---------------------------- fused forward pass ---------------------------- #

def seq2seq_forward(params, input_ids, attention_mask, labels, cfg):
    """Mirrors Seq2SeqModel.forward: returns (loss, logits). Dropout omitted (eval)."""
    B, Se = input_ids.shape
    Sd = labels.shape[1]
    D, H, Dk, V = cfg.d_model, cfg.n_heads, cfg.d_kv, cfg.vocab
    inner = H * Dk
    eps = cfg.eps

    # TODO(synk): token-embedding gather stays in plain JAX (no clean tiny Pallas gather).
    enc_emb = params["shared"][input_ids].reshape(B * Se, D).astype(jnp.float32)
    dec_ids = shift_right(labels)
    dec_emb = params["shared"][dec_ids].reshape(B * Sd, D).astype(jnp.float32)

    # Compact biases: [H, Sq, Sk] position bias, [B, 1, Sk] additive padding mask.
    enc_bias = compute_position_bias(Se, Se, params["enc_rel_bias"], True, cfg)   # [H,Se,Se]
    causal = (1.0 - jnp.tril(jnp.ones((Sd, Sd), jnp.float32))) * NEG_INF
    dec_bias = compute_position_bias(Sd, Sd, params["dec_rel_bias"], False, cfg) + causal[None]
    enc_mask = ((1.0 - attention_mask.astype(jnp.float32)) * NEG_INF).reshape(B, 1, Se)

    # Loss inputs (ignore_index = -100), no one-hot materialization.
    flat_labels = labels.reshape(-1)
    valid = (flat_labels != -100).astype(jnp.float32).reshape(B * Sd, 1)
    safe_labels = jnp.where(flat_labels != -100, flat_labels, 0).astype(jnp.int32).reshape(B * Sd, 1)

    flat_params = flatten_params(params)
    n_params = len(flat_params)
    n_inputs = 7 + n_params
    n_layers = cfg.n_layers

    def kernel(*refs):
        (enc_emb_ref, dec_emb_ref, enc_bias_ref, dec_bias_ref,
         enc_mask_ref, labels_ref, valid_ref) = refs[:7]
        param_refs = refs[7:7 + n_params]
        logits_ref, loss_ref = refs[7 + n_params:]

        pi = iter(param_refs)

        def nxt():
            return next(pi)[...]

        # ------------------------------ encoder ------------------------------ #
        h = enc_emb_ref[...]                                       # [B*Se, D]
        for _ in range(n_layers):
            ln_sa = nxt(); w_qkv = nxt(); w_o = nxt()
            ln_ff = nxt(); w_i = nxt(); w_out = nxt()
            xn = _rms(h, ln_sa, eps)
            qkv = jnp.dot(xn, w_qkv, preferred_element_type=jnp.float32)   # fused Q|K|V
            q = qkv[:, :inner]
            k = qkv[:, inner:2 * inner]
            v = qkv[:, 2 * inner:]
            h = h + _mha(q, k, v, w_o, enc_bias_ref, enc_mask_ref, B, Se, Se, H, Dk, D)
            xn = _rms(h, ln_ff, eps)
            ff = jnp.maximum(jnp.dot(xn, w_i, preferred_element_type=jnp.float32), 0.0)
            h = h + jnp.dot(ff, w_out, preferred_element_type=jnp.float32)
        enc_out = _rms(h, nxt(), eps)                              # encoder final RMSNorm

        # ------------------------------ decoder ------------------------------ #
        hd = dec_emb_ref[...]                                      # [B*Sd, D]
        for _ in range(n_layers):
            ln_sa = nxt(); w_qkv = nxt(); w_o = nxt()
            ln_ca = nxt(); w_cq = nxt(); w_ckv = nxt(); w_co = nxt()
            ln_ff = nxt(); w_i = nxt(); w_out = nxt()

            # causal self-attention (decoder relative position bias, no padding mask)
            xn = _rms(hd, ln_sa, eps)
            qkv = jnp.dot(xn, w_qkv, preferred_element_type=jnp.float32)
            q = qkv[:, :inner]
            k = qkv[:, inner:2 * inner]
            v = qkv[:, 2 * inner:]
            hd = hd + _mha(q, k, v, w_o, dec_bias_ref, None, B, Sd, Sd, H, Dk, D)

            # cross-attention (no position bias, encoder padding mask), fused K|V
            xn = _rms(hd, ln_ca, eps)
            q = jnp.dot(xn, w_cq, preferred_element_type=jnp.float32)
            kv = jnp.dot(enc_out, w_ckv, preferred_element_type=jnp.float32)
            k = kv[:, :inner]
            v = kv[:, inner:]
            hd = hd + _mha(q, k, v, w_co, None, enc_mask_ref, B, Sd, Se, H, Dk, D)

            # feed-forward (fused ReLU)
            xn = _rms(hd, ln_ff, eps)
            ff = jnp.maximum(jnp.dot(xn, w_i, preferred_element_type=jnp.float32), 0.0)
            hd = hd + jnp.dot(ff, w_out, preferred_element_type=jnp.float32)

        hd = _rms(hd, nxt(), eps)                                  # decoder final RMSNorm
        # lm_head: tied embedding, pre-transposed with D**-0.5 folded in
        logits = jnp.dot(hd, nxt(), preferred_element_type=jnp.float32)    # [B*Sd, V]
        logits_ref[...] = logits

        # --------------------- cross entropy (ignore=-100) --------------------- #
        m = jnp.max(logits, axis=-1, keepdims=True)
        lse = m + jnp.log(jnp.sum(jnp.exp(logits - m), axis=-1, keepdims=True))
        col = jax.lax.broadcasted_iota(jnp.int32, logits.shape, 1)
        tgt = jnp.sum(jnp.where(col == labels_ref[...], logits, 0.0),
                      axis=-1, keepdims=True)
        valid_v = valid_ref[...]
        per_tok = (lse - tgt) * valid_v
        denom = jnp.maximum(jnp.sum(valid_v, keepdims=True), 1.0)          # (1,1)
        loss_ref[...] = jnp.sum(per_tok, keepdims=True) / denom            # (1,1)

    logits, loss = pl.pallas_call(
        kernel,
        out_shape=(jax.ShapeDtypeStruct((B * Sd, V), jnp.float32),
                   jax.ShapeDtypeStruct((1, 1), jnp.float32)),
        in_specs=[VMEM_SPEC] * n_inputs,
        out_specs=(VMEM_SPEC, VMEM_SPEC),
    )(enc_emb, dec_emb, enc_bias, dec_bias, enc_mask, safe_labels, valid, *flat_params)

    return loss[0, 0], logits.reshape(B, Sd, V)


# ------------------------------ initialization ------------------------------ #

def init_params(key, cfg):
    D, Dk, H, F, V = cfg.d_model, cfg.d_kv, cfg.n_heads, cfg.d_ff, cfg.vocab
    inner = H * Dk
    keys = iter(jax.random.split(key, 256))

    def w(shape, std):
        return jax.random.normal(next(keys), shape, jnp.float32) * std

    def fused_qkv():  # Q | K | V along output dim -> one MXU matmul
        return jnp.concatenate([w((D, inner), (D * Dk) ** -0.5),
                                w((D, inner), D ** -0.5),
                                w((D, inner), D ** -0.5)], axis=1)

    def fused_kv():   # K | V for cross-attention
        return jnp.concatenate([w((D, inner), D ** -0.5),
                                w((D, inner), D ** -0.5)], axis=1)

    enc_layers = []
    for _ in range(cfg.n_layers):
        enc_layers.append({
            "ln_sa": jnp.ones((1, D), jnp.float32),
            "sa_qkv": fused_qkv(),
            "sa_o": w((inner, D), inner ** -0.5),
            "ln_ff": jnp.ones((1, D), jnp.float32),
            "wi": w((D, F), D ** -0.5),
            "wo": w((F, D), F ** -0.5),
        })

    dec_layers = []
    for _ in range(cfg.n_layers):
        dec_layers.append({
            "ln_sa": jnp.ones((1, D), jnp.float32),
            "sa_qkv": fused_qkv(),
            "sa_o": w((inner, D), inner ** -0.5),
            "ln_ca": jnp.ones((1, D), jnp.float32),
            "ca_q": w((D, inner), (D * Dk) ** -0.5),
            "ca_kv": fused_kv(),
            "ca_o": w((inner, D), inner ** -0.5),
            "ln_ff": jnp.ones((1, D), jnp.float32),
            "wi": w((D, F), D ** -0.5),
            "wo": w((F, D), F ** -0.5),
        })

    shared = w((V, D), 1.0)
    return {
        "shared": shared,
        # pre-transposed tied lm_head with the d_model**-0.5 rescale folded in (once)
        "shared_T_scaled": shared.T * (D ** -0.5),
        "enc_rel_bias": w((cfg.num_buckets, H), (D * Dk) ** -0.5),
        "dec_rel_bias": w((cfg.num_buckets, H), (D * Dk) ** -0.5),
        "enc_layers": enc_layers,
        "dec_layers": dec_layers,
        "enc_final_ln": jnp.ones((1, D), jnp.float32),
        "dec_final_ln": jnp.ones((1, D), jnp.float32),
    }


# ---------------------------------- main ------------------------------------ #

if __name__ == "__main__":
    cfg = Config()
    key = jax.random.PRNGKey(0)
    k_params, k_in, k_lab = jax.random.split(key, 3)

    params = init_params(k_params, cfg)

    B, S = 2, 8
    input_ids = jax.random.randint(k_in, (B, S), 1, cfg.vocab, dtype=jnp.int32)
    attention_mask = jnp.ones((B, S), jnp.int32).at[1, -2:].set(0)  # pad last 2 of row 1
    labels = jax.random.randint(k_lab, (B, S), 1, cfg.vocab, dtype=jnp.int32)

    fwd = jax.jit(lambda p, i, m, l: seq2seq_forward(p, i, m, l, cfg))
    loss, logits = fwd(params, input_ids, attention_mask, labels)
    jax.block_until_ready((loss, logits))

    assert logits.shape == (B, S, cfg.vocab)
    assert jnp.isfinite(loss)
    print("KERNEL_OK")
</pallas_src>

<mosaic_0001>
module attributes {stable_mosaic.version = 11 : i64} {
  func.func @kernel(%arg0: memref<16x32xf32, #tpu.memory_space<vmem>>, %arg1: memref<16x32xf32, #tpu.memory_space<vmem>>, %arg2: memref<4x8x8xf32, #tpu.memory_space<vmem>>, %arg3: memref<4x8x8xf32, #tpu.memory_space<vmem>>, %arg4: memref<2x1x8xf32, #tpu.memory_space<vmem>>, %arg5: memref<16x1xi32, #tpu.memory_space<vmem>>, %arg6: memref<16x1xf32, #tpu.memory_space<vmem>>, %arg7: memref<1x32xf32, #tpu.memory_space<vmem>>, %arg8: memref<32x96xf32, #tpu.memory_space<vmem>>, %arg9: memref<32x32xf32, #tpu.memory_space<vmem>>, %arg10: memref<1x32xf32, #tpu.memory_space<vmem>>, %arg11: memref<32x64xf32, #tpu.memory_space<vmem>>, %arg12: memref<64x32xf32, #tpu.memory_space<vmem>>, %arg13: memref<1x32xf32, #tpu.memory_space<vmem>>, %arg14: memref<32x96xf32, #tpu.memory_space<vmem>>, %arg15: memref<32x32xf32, #tpu.memory_space<vmem>>, %arg16: memref<1x32xf32, #tpu.memory_space<vmem>>, %arg17: memref<32x64xf32, #tpu.memory_space<vmem>>, %arg18: memref<64x32xf32, #tpu.memory_space<vmem>>, %arg19: memref<1x32xf32, #tpu.memory_space<vmem>>, %arg20: memref<1x32xf32, #tpu.memory_space<vmem>>, %arg21: memref<32x96xf32, #tpu.memory_space<vmem>>, %arg22: memref<32x32xf32, #tpu.memory_space<vmem>>, %arg23: memref<1x32xf32, #tpu.memory_space<vmem>>, %arg24: memref<32x32xf32, #tpu.memory_space<vmem>>, %arg25: memref<32x64xf32, #tpu.memory_space<vmem>>, %arg26: memref<32x32xf32, #tpu.memory_space<vmem>>, %arg27: memref<1x32xf32, #tpu.memory_space<vmem>>, %arg28: memref<32x64xf32, #tpu.memory_space<vmem>>, %arg29: memref<64x32xf32, #tpu.memory_space<vmem>>, %arg30: memref<1x32xf32, #tpu.memory_space<vmem>>, %arg31: memref<32x96xf32, #tpu.memory_space<vmem>>, %arg32: memref<32x32xf32, #tpu.memory_space<vmem>>, %arg33: memref<1x32xf32, #tpu.memory_space<vmem>>, %arg34: memref<32x32xf32, #tpu.memory_space<vmem>>, %arg35: memref<32x64xf32, #tpu.memory_space<vmem>>, %arg36: memref<32x32xf32, #tpu.memory_space<vmem>>, %arg37: memref<1x32xf32, #tpu.memory_space<vmem>>, %arg38: memref<32x64xf32, #tpu.memory_space<vmem>>, %arg39: memref<64x32xf32, #tpu.memory_space<vmem>>, %arg40: memref<1x32xf32, #tpu.memory_space<vmem>>, %arg41: memref<32x64xf32, #tpu.memory_space<vmem>>, %arg42: memref<16x64xf32, #tpu.memory_space<vmem>>, %arg43: memref<1x1xf32, #tpu.memory_space<vmem>>) attributes {dimension_semantics = [], scalar_prefetch = 0 : i64, scratch_operands = 0 : i64, tpu.core_type = #tpu.core_type<tc>} {
    %c0 = arith.constant 0 : index
    %c0_0 = arith.constant 0 : index
    %0 = vector.load %arg0[%c0, %c0_0] : memref<16x32xf32, #tpu.memory_space<vmem>>, vector<16x32xf32>
    %c0_1 = arith.constant 0 : index
    %c0_2 = arith.constant 0 : index
    %1 = vector.load %arg7[%c0_1, %c0_2] : memref<1x32xf32, #tpu.memory_space<vmem>>, vector<1x32xf32>
    %c0_3 = arith.constant 0 : index
    %c0_4 = arith.constant 0 : index
    %2 = vector.load %arg8[%c0_3, %c0_4] : memref<32x96xf32, #tpu.memory_space<vmem>>, vector<32x96xf32>
    %c0_5 = arith.constant 0 : index
    %c0_6 = arith.constant 0 : index
    %3 = vector.load %arg9[%c0_5, %c0_6] : memref<32x32xf32, #tpu.memory_space<vmem>>, vector<32x32xf32>
    %c0_7 = arith.constant 0 : index
    %c0_8 = arith.constant 0 : index
    %4 = vector.load %arg10[%c0_7, %c0_8] : memref<1x32xf32, #tpu.memory_space<vmem>>, vector<1x32xf32>
    %c0_9 = arith.constant 0 : index
    %c0_10 = arith.constant 0 : index
    %5 = vector.load %arg11[%c0_9, %c0_10] : memref<32x64xf32, #tpu.memory_space<vmem>>, vector<32x64xf32>
    %c0_11 = arith.constant 0 : index
    %c0_12 = arith.constant 0 : index
    %6 = vector.load %arg12[%c0_11, %c0_12] : memref<64x32xf32, #tpu.memory_space<vmem>>, vector<64x32xf32>
    %7 = arith.mulf %0, %0 : vector<16x32xf32>
    %cst = arith.constant dense<0.000000e+00> : vector<16xf32>
    %8 = vector.multi_reduction <add>, %7, %cst [1] : vector<16x32xf32> to vector<16xf32>
    %9 = vector.shape_cast %8 : vector<16xf32> to vector<16x1xf32>
    %cst_13 = arith.constant 3.200000e+01 : f32
    %10 = vector.broadcast %cst_13 : f32 to vector<16x1xf32>
    %11 = arith.divf %9, %10 : vector<16x1xf32>
    %cst_14 = arith.constant 9.99999997E-7 : f32
    %12 = vector.broadcast %cst_14 : f32 to vector<16x1xf32>
    %13 = arith.addf %11, %12 : vector<16x1xf32>
    %14 = math.rsqrt %13 : vector<16x1xf32>
    %15 = vector.broadcast %14 : vector<16x1xf32> to vector<16x32xf32>
    %16 = arith.mulf %0, %15 : vector<16x32xf32>
    %17 = vector.broadcast %1 : vector<1x32xf32> to vector<16x32xf32>
    %18 = arith.mulf %16, %17 : vector<16x32xf32>
    %cst_15 = arith.constant dense<0.000000e+00> : vector<16x96xf32>
    %19 = tpu.matmul %18, %2, %cst_15 {dimension_numbers = #tpu.dot_dimension_numbers<[1], [0], [0], [1], [0, 0, 1, 1], [], []>} : vector<16x32xf32>, vector<32x96xf32>, vector<16x96xf32> -> vector<16x96xf32>
    %20 = vector.extract_strided_slice %19 {offsets = [0, 0], sizes = [16, 32], strides = [1, 1]} : vector<16x96xf32> to vector<16x32xf32>
    %21 = vector.extract_strided_slice %19 {offsets = [0, 32], sizes = [16, 32], strides = [1, 1]} : vector<16x96xf32> to vector<16x32xf32>
    %22 = vector.extract_strided_slice %19 {offsets = [0, 64], sizes = [16, 32], strides = [1, 1]} : vector<16x96xf32> to vector<16x32xf32>
    %cst_16 = arith.constant 0.000000e+00 : f32
    %23 = vector.broadcast %cst_16 : f32 to vector<8x32xf32>
    %24 = vector.extract_strided_slice %20 {offsets = [0, 0], sizes = [8, 8], strides = [1, 1]} : vector<16x32xf32> to vector<8x8xf32>
    %25 = vector.extract_strided_slice %21 {offsets = [0, 0], sizes = [8, 8], strides = [1, 1]} : vector<16x32xf32> to vector<8x8xf32>
    %26 = vector.extract_strided_slice %22 {offsets = [0, 0], sizes = [8, 8], strides = [1, 1]} : vector<16x32xf32> to vector<8x8xf32>
    %27 = tpu.transpose %25, [1, 0] : vector<8x8xf32> -> vector<8x8xf32>
    %cst_17 = arith.constant dense<0.000000e+00> : vector<8x8xf32>
    %28 = tpu.matmul %24, %27, %cst_17 {dimension_numbers = #tpu.dot_dimension_numbers<[1], [0], [0], [1], [0, 0, 1, 1], [], []>} : vector<8x8xf32>, vector<8x8xf32>, vector<8x8xf32> -> vector<8x8xf32>
    %c0_18 = arith.constant 0 : index
    %c0_19 = arith.constant 0 : index
    %c0_20 = arith.constant 0 : index
    %29 = vector.load %arg2[%c0_18, %c0_19, %c0_20] : memref<4x8x8xf32, #tpu.memory_space<vmem>>, vector<1x8x8xf32>
    %30 = vector.shape_cast %29 : vector<1x8x8xf32> to vector<8x8xf32>
    %31 = arith.addf %28, %30 : vector<8x8xf32>
    %c0_21 = arith.constant 0 : index
    %c0_22 = arith.constant 0 : index
    %c0_23 = arith.constant 0 : index
    %32 = vector.load %arg4[%c0_21, %c0_22, %c0_23] : memref<2x1x8xf32, #tpu.memory_space<vmem>>, vector<1x1x8xf32>
    %33 = vector.shape_cast %32 : vector<1x1x8xf32> to vector<1x8xf32>
    %34 = vector.broadcast %33 : vector<1x8xf32> to vector<8x8xf32>
    %35 = arith.addf %31, %34 : vector<8x8xf32>
    %cst_24 = arith.constant dense<0xFF800000> : vector<8xf32>
    %36 = vector.multi_reduction <maximumf>, %35, %cst_24 [1] : vector<8x8xf32> to vector<8xf32>
    %37 = vector.shape_cast %36 : vector<8xf32> to vector<8x1xf32>
    %38 = vector.broadcast %37 : vector<8x1xf32> to vector<8x8xf32>
    %39 = arith.subf %35, %38 : vector<8x8xf32>
    %40 = math.exp %39 : vector<8x8xf32>
    %cst_25 = arith.constant dense<0.000000e+00> : vector<8xf32>
    %41 = vector.multi_reduction <add>, %40, %cst_25 [1] : vector<8x8xf32> to vector<8xf32>
    %42 = vector.shape_cast %41 : vector<8xf32> to vector<8x1xf32>
    %43 = vector.broadcast %42 : vector<8x1xf32> to vector<8x8xf32>
    %44 = arith.divf %40, %43 : vector<8x8xf32>
    %cst_26 = arith.constant dense<0.000000e+00> : vector<8x8xf32>
    %45 = tpu.matmul %44, %26, %cst_26 {dimension_numbers = #tpu.dot_dimension_numbers<[1], [0], [0], [1], [0, 0, 1, 1], [], []>} : vector<8x8xf32>, vector<8x8xf32>, vector<8x8xf32> -> vector<8x8xf32>
    %46 = vector.extract_strided_slice %3 {offsets = [0, 0], sizes = [8, 32], strides = [1, 1]} : vector<32x32xf32> to vector<8x32xf32>
    %cst_27 = arith.constant dense<0.000000e+00> : vector<8x32xf32>
    %47 = tpu.matmul %45, %46, %cst_27 {dimension_numbers = #tpu.dot_dimension_numbers<[1], [0], [0], [1], [0, 0, 1, 1], [], []>} : vector<8x8xf32>, vector<8x32xf32>, vector<8x32xf32> -> vector<8x32xf32>
    %48 = arith.addf %23, %47 : vector<8x32xf32>
    %49 = vector.extract_strided_slice %20 {offsets = [0, 8], sizes = [8, 8], strides = [1, 1]} : vector<16x32xf32> to vector<8x8xf32>
    %50 = vector.extract_strided_slice %21 {offsets = [0, 8], sizes = [8, 8], strides = [1, 1]} : vector<16x32xf32> to vector<8x8xf32>
    %51 = vector.extract_strided_slice %22 {offsets = [0, 8], sizes = [8, 8], strides = [1, 1]} : vector<16x32xf32> to vector<8x8xf32>
    %52 = tpu.transpose %50, [1, 0] : vector<8x8xf32> -> vector<8x8xf32>
    %cst_28 = arith.constant dense<0.000000e+00> : vector<8x8xf32>
    %53 = tpu.matmul %49, %52, %cst_28 {dimension_numbers = #tpu.dot_dimension_numbers<[1], [0], [0], [1], [0, 0, 1, 1], [], []>} : vector<8x8xf32>, vector<8x8xf32>, vector<8x8xf32> -> vector<8x8xf32>
    %c1 = arith.constant 1 : index
    %c0_29 = arith.constant 0 : index
    %c0_30 = arith.constant 0 : index
    %54 = vector.load %arg2[%c1, %c0_29, %c0_30] : memref<4x8x8xf32, #tpu.memory_space<vmem>>, vector<1x8x8xf32>
    %55 = vector.shape_cast %54 : vector<1x8x8xf32> to vector<8x8xf32>
    %56 = arith.addf %53, %55 : vector<8x8xf32>
    %c0_31 = arith.constant 0 : index
    %c0_32 = arith.constant 0 : index
    %c0_33 = arith.constant 0 : index
    %57 = vector.load %arg4[%c0_31, %c0_32, %c0_33] : memref<2x1x8xf32, #tpu.memory_space<vmem>>, vector<1x1x8xf32>
    %58 = vector.shape_cast %57 : vector<1x1x8xf32> to vector<1x8xf32>
    %59 = vector.broadcast %58 : vector<1x8xf32> to vector<8x8xf32>
    %60 = arith.addf %56, %59 : vector<8x8xf32>
    %cst_34 = arith.constant dense<0xFF800000> : vector<8xf32>
    %61 = vector.multi_reduction <maximumf>, %60, %cst_34 [1] : vector<8x8xf32> to vector<8xf32>
    %62 = vector.shape_cast %61 : vector<8xf32> to vector<8x1xf32>
    %63 = vector.broadcast %62 : vector<8x1xf32> to vector<8x8xf32>
    %64 = arith.subf %60, %63 : vector<8x8xf32>
    %65 = math.exp %64 : vector<8x8xf32>
    %cst_35 = arith.constant dense<0.000000e+00> : vector<8xf32>
    %66 = vector.multi_reduction <add>, %65, %cst_35 [1] : vector<8x8xf32> to vector<8xf32>
    %67 = vector.shape_cast %66 : vector<8xf32> to vector<8x1xf32>
    %68 = vector.broadcast %67 : vector<8x1xf32> to vector<8x8xf32>
    %69 = arith.divf %65, %68 : vector<8x8xf32>
    %cst_36 = arith.constant dense<0.000000e+00> : vector<8x8xf32>
    %70 = tpu.matmul %69, %51, %cst_36 {dimension_numbers = #tpu.dot_dimension_numbers<[1], [0], [0], [1], [0, 0, 1, 1], [], []>} : vector<8x8xf32>, vector<8x8xf32>, vector<8x8xf32> -> vector<8x8xf32>
    %71 = vector.extract_strided_slice %3 {offsets = [8, 0], sizes = [8, 32], strides = [1, 1]} : vector<32x32xf32> to vector<8x32xf32>
    %cst_37 = arith.constant dense<0.000000e+00> : vector<8x32xf32>
    %72 = tpu.matmul %70, %71, %cst_37 {dimension_numbers = #tpu.dot_dimension_numbers<[1], [0], [0], [1], [0, 0, 1, 1], [], []>} : vector<8x8xf32>, vector<8x32xf32>, vector<8x32xf32> -> vector<8x32xf32>
    %73 = arith.addf %48, %72 : vector<8x32xf32>
    %74 = vector.extract_strided_slice %20 {offsets = [0, 16], sizes = [8, 8], strides = [1, 1]} : vector<16x32xf32> to vector<8x8xf32>
    %75 = vector.extract_strided_slice %21 {offsets = [0, 16], sizes = [8, 8], strides = [1, 1]} : vector<16x32xf32> to vector<8x8xf32>
    %76 = vector.extract_strided_slice %22 {offsets = [0, 16], sizes = [8, 8], strides = [1, 1]} : vector<16x32xf32> to vector<8x8xf32>
    %77 = tpu.transpose %75, [1, 0] : vector<8x8xf32> -> vector<8x8xf32>
    %cst_38 = arith.constant dense<0.000000e+00> : vector<8x8xf32>
    %78 = tpu.matmul %74, %77, %cst_38 {dimension_numbers = #tpu.dot_dimension_numbers<[1], [0], [0], [1], [0, 0, 1, 1], [], []>} : vector<8x8xf32>, vector<8x8xf32>, vector<8x8xf32> -> vector<8x8xf32>
    %c2 = arith.constant 2 : index
    %c0_39 = arith.constant 0 : index
    %c0_40 = arith.constant 0 : index
    %79 = vector.load %arg2[%c2, %c0_39, %c0_40] : memref<4x8x8xf32, #tpu.memory_space<vmem>>, vector<1x8x8xf32>
    %80 = vector.shape_cast %79 : vector<1x8x8xf32> to vector<8x8xf32>
    %81 = arith.addf %78, %80 : vector<8x8xf32>
    %c0_41 = arith.constant 0 : index
    %c0_42 = arith.constant 0 : index
    %c0_43 = arith.constant 0 : index
    %82 = vector.load %arg4[%c0_41, %c0_42, %c0_43] : memref<2x1x8xf32, #tpu.memory_space<vmem>>, vector<1x1x8xf32>
    %83 = vector.shape_cast %82 : vector<1x1x8xf32> to vector<1x8xf32>
    %84 = vector.broadcast %83 : vector<1x8xf32> to vector<8x8xf32>
    %85 = arith.addf %81, %84 : vector<8x8xf32>
    %cst_44 = arith.constant dense<0xFF800000> : vector<8xf32>
    %86 = vector.multi_reduction <maximumf>, %85, %cst_44 [1] : vector<8x8xf32> to vector<8xf32>
    %87 = vector.shape_cast %86 : vector<8xf32> to vector<8x1xf32>
    %88 = vector.broadcast %87 : vector<8x1xf32> to vector<8x8xf32>
    %89 = arith.subf %85, %88 : vector<8x8xf32>
    %90 = math.exp %89 : vector<8x8xf32>
    %cst_45 = arith.constant dense<0.000000e+00> : vector<8xf32>
    %91 = vector.multi_reduction <add>, %90, %cst_45 [1] : vector<8x8xf32> to vector<8xf32>
    %92 = vector.shape_cast %91 : vector<8xf32> to vector<8x1xf32>
    %93 = vector.broadcast %92 : vector<8x1xf32> to vector<8x8xf32>
    %94 = arith.divf %90, %93 : vector<8x8xf32>
    %cst_46 = arith.constant dense<0.000000e+00> : vector<8x8xf32>
    %95 = tpu.matmul %94, %76, %cst_46 {dimension_numbers = #tpu.dot_dimension_numbers<[1], [0], [0], [1], [0, 0, 1, 1], [], []>} : vector<8x8xf32>, vector<8x8xf32>, vector<8x8xf32> -> vector<8x8xf32>
    %96 = vector.extract_strided_slice %3 {offsets = [16, 0], sizes = [8, 32], strides = [1, 1]} : vector<32x32xf32> to vector<8x32xf32>
    %cst_47 = arith.constant dense<0.000000e+00> : vector<8x32xf32>
    %97 = tpu.matmul %95, %96, %cst_47 {dimension_numbers = #tpu.dot_dimension_numbers<[1], [0], [0], [1], [0, 0, 1, 1], [], []>} : vector<8x8xf32>, vector<8x32xf32>, vector<8x32xf32> -> vector<8x32xf32>
    %98 = arith.addf %73, %97 : vector<8x32xf32>
    %99 = vector.extract_strided_slice %20 {offsets = [0, 24], sizes = [8, 8], strides = [1, 1]} : vector<16x32xf32> to vector<8x8xf32>
    %100 = vector.extract_strided_slice %21 {offsets = [0, 24], sizes = [8, 8], strides = [1, 1]} : vector<16x32xf32> to vector<8x8xf32>
    %101 = vector.extract_strided_slice %22 {offsets = [0, 24], sizes = [8, 8], strides = [1, 1]} : vector<16x32xf32> to vector<8x8xf32>
    %102 = tpu.transpose %100, [1, 0] : vector<8x8xf32> -> vector<8x8xf32>
    %cst_48 = arith.constant dense<0.000000e+00> : vector<8x8xf32>
    %103 = tpu.matmul %99, %102, %cst_48 {dimension_numbers = #tpu.dot_dimension_numbers<[1], [0], [0], [1], [0, 0, 1, 1], [], []>} : vector<8x8xf32>, vector<8x8xf32>, vector<8x8xf32> -> vector<8x8xf32>
    %c3 = arith.constant 3 : index
    %c0_49 = arith.constant 0 : index
    %c0_50 = arith.constant 0 : index
    %104 = vector.load %arg2[%c3, %c0_49, %c0_50] : memref<4x8x8xf32, #tpu.memory_space<vmem>>, vector<1x8x8xf32>
    %105 = vector.shape_cast %104 : vector<1x8x8xf32> to vector<8x8xf32>
    %106 = arith.addf %103, %105 : vector<8x8xf32>
    %c0_51 = arith.constant 0 : index
    %c0_52 = arith.constant 0 : index
    %c0_53 = arith.constant 0 : index
    %107 = vector.load %arg4[%c0_51, %c0_52, %c0_53] : memref<2x1x8xf32, #tpu.memory_space<vmem>>, vector<1x1x8xf32>
    %108 = vector.shape_cast %107 : vector<1x1x8xf32> to vector<1x8xf32>
    %109 = vector.broadcast %108 : vector<1x8xf32> to vector<8x8xf32>
    %110 = arith.addf %106, %109 : vector<8x8xf32>
    %cst_54 = arith.constant dense<0xFF800000> : vector<8xf32>
    %111 = vector.multi_reduction <maximumf>, %110, %cst_54 [1] : vector<8x8xf32> to vector<8xf32>
    %112 = vector.shape_cast %111 : vector<8xf32> to vector<8x1xf32>
    %113 = vector.broadcast %112 : vector<8x1xf32> to vector<8x8xf32>
    %114 = arith.subf %110, %113 : vector<8x8xf32>
    %115 = math.exp %114 : vector<8x8xf32>
    %cst_55 = arith.constant dense<0.000000e+00> : vector<8xf32>
    %116 = vector.multi_reduction <add>, %115, %cst_55 [1] : vector<8x8xf32> to vector<8xf32>
    %117 = vector.shape_cast %116 : vector<8xf32> to vector<8x1xf32>
    %118 = vector.broadcast %117 : vector<8x1xf32> to vector<8x8xf32>
    %119 = arith.divf %115, %118 : vector<8x8xf32>
    %cst_56 = arith.constant dense<0.000000e+00> : vector<8x8xf32>
    %120 = tpu.matmul %119, %101, %cst_56 {dimension_numbers = #tpu.dot_dimension_numbers<[1], [0], [0], [1], [0, 0, 1, 1], [], []>} : vector<8x8xf32>, vector<8x8xf32>, vector<8x8xf32> -> vector<8x8xf32>
    %121 = vector.extract_strided_slice %3 {offsets = [24, 0], sizes = [8, 32], strides = [1, 1]} : vector<32x32xf32> to vector<8x32xf32>
    %cst_57 = arith.constant dense<0.000000e+00> : vector<8x32xf32>
    %122 = tpu.matmul %120, %121, %cst_57 {dimension_numbers = #tpu.dot_dimension_numbers<[1], [0], [0], [1], [0, 0, 1, 1], [], []>} : vector<8x8xf32>, vector<8x32xf32>, vector<8x32xf32> -> vector<8x32xf32>
    %123 = arith.addf %98, %122 : vector<8x32xf32>
    %cst_58 = arith.constant 0.000000e+00 : f32
    %124 = vector.broadcast %cst_58 : f32 to vector<8x32xf32>
    %125 = vector.extract_strided_slice %20 {offsets = [8, 0], sizes = [8, 8], strides = [1, 1]} : vector<16x32xf32> to vector<8x8xf32>
    %126 = vector.extract_strided_slice %21 {offsets = [8, 0], sizes = [8, 8], strides = [1, 1]} : vector<16x32xf32> to vector<8x8xf32>
    %127 = vector.extract_strided_slice %22 {offsets = [8, 0], sizes = [8, 8], strides = [1, 1]} : vector<16x32xf32> to vector<8x8xf32>
    %128 = tpu.transpose %126, [1, 0] : vector<8x8xf32> -> vector<8x8xf32>
    %cst_59 = arith.constant dense<0.000000e+00> : vector<8x8xf32>
    %129 = tpu.matmul %125, %128, %cst_59 {dimension_numbers = #tpu.dot_dimension_numbers<[1], [0], [0], [1], [0, 0, 1, 1], [], []>} : vector<8x8xf32>, vector<8x8xf32>, vector<8x8xf32> -> vector<8x8xf32>
    %c0_60 = arith.constant 0 : index
    %c0_61 = arith.constant 0 : index
    %c0_62 = arith.constant 0 : index
    %130 = vector.load %arg2[%c0_60, %c0_61, %c0_62] : memref<4x8x8xf32, #tpu.memory_space<vmem>>, vector<1x8x8xf32>
    %131 = vector.shape_cast %130 : vector<1x8x8xf32> to vector<8x8xf32>
    %132 = arith.addf %129, %131 : vector<8x8xf32>
    %c1_63 = arith.constant 1 : index
    %c0_64 = arith.constant 0 : index
    %c0_65 = arith.constant 0 : index
    %133 = vector.load %arg4[%c1_63, %c0_64, %c0_65] : memref<2x1x8xf32, #tpu.memory_space<vmem>>, vector<1x1x8xf32>
    %134 = vector.shape_cast %133 : vector<1x1x8xf32> to vector<1x8xf32>
    %135 = vector.broadcast %134 : vector<1x8xf32> to vector<8x8xf32>
    %136 = arith.addf %132, %135 : vector<8x8xf32>
    %cst_66 = arith.constant dense<0xFF800000> : vector<8xf32>
    %137 = vector.multi_reduction <maximumf>, %136, %cst_66 [1] : vector<8x8xf32> to vector<8xf32>
    %138 = vector.shape_cast %137 : vector<8xf32> to vector<8x1xf32>
    %139 = vector.broadcast %138 : vector<8x1xf32> to vector<8x8xf32>
    %140 = arith.subf %136, %139 : vector<8x8xf32>
    %141 = math.exp %140 : vector<8x8xf32>
    %cst_67 = arith.constant dense<0.000000e+00> : vector<8xf32>
    %142 = vector.multi_reduction <add>, %141, %cst_67 [1] : vector<8x8xf32> to vector<8xf32>
    %143 = vector.shape_cast %142 : vector<8xf32> to vector<8x1xf32>
    %144 = vector.broadcast %143 : vector<8x1xf32> to vector<8x8xf32>
    %145 = arith.divf %141, %144 : vector<8x8xf32>
    %cst_68 = arith.constant dense<0.000000e+00> : vector<8x8xf32>
    %146 = tpu.matmul %145, %127, %cst_68 {dimension_numbers = #tpu.dot_dimension_numbers<[1], [0], [0], [1], [0, 0, 1, 1], [], []>} : vector<8x8xf32>, vector<8x8xf32>, vector<8x8xf32> -> vector<8x8xf32>
    %147 = vector.extract_strided_slice %3 {offsets = [0, 0], sizes = [8, 32], strides = [1, 1]} : vector<32x32xf32> to vector<8x32xf32>
    %cst_69 = arith.constant dense<0.000000e+00> : vector<8x32xf32>
    %148 = tpu.matmul %146, %147, %cst_69 {dimension_numbers = #tpu.dot_dimension_numbers<[1], [0], [0], [1], [0, 0, 1, 1], [], []>} : vector<8x8xf32>, vector<8x32xf32>, vector<8x32xf32> -> vector<8x32xf32>
    %149 = arith.addf %124, %148 : vector<8x32xf32>
    %150 = vector.extract_strided_slice %20 {offsets = [8, 8], sizes = [8, 8], strides = [1, 1]} : vector<16x32xf32> to vector<8x8xf32>
    %151 = vector.extract_strided_slice %21 {offsets = [8, 8], sizes = [8, 8], strides = [1, 1]} : vector<16x32xf32> to vector<8x8xf32>
    %152 = vector.extract_strided_slice %22 {offsets = [8, 8], sizes = [8, 8], strides = [1, 1]} : vector<16x32xf32> to vector<8x8xf32>
    %153 = tpu.transpose %151, [1, 0] : vector<8x8xf32> -> vector<8x8xf32>
    %cst_70 = arith.constant dense<0.000000e+00> : vector<8x8xf32>
    %154 = tpu.matmul %150, %153, %cst_70 {dimension_numbers = #tpu.dot_dimension_numbers<[1], [0], [0], [1], [0, 0, 1, 1], [], []>} : vector<8x8xf32>, vector<8x8xf32>, vector<8x8xf32> -> vector<8x8xf32>
    %c1_71 = arith.constant 1 : index
    %c0_72 = arith.constant 0 : index
    %c0_73 = arith.constant 0 : index
    %155 = vector.load %arg2[%c1_71, %c0_72, %c0_73] : memref<4x8x8xf32, #tpu.memory_space<vmem>>, vector<1x8x8xf32>
    %156 = vector.shape_cast %155 : vector<1x8x8xf32> to vector<8x8xf32>
    %157 = arith.addf %154, %156 : vector<8x8xf32>
    %c1_74 = arith.constant 1 : index
    %c0_75 = arith.constant 0 : index
    %c0_76 = arith.constant 0 : index
    %158 = vector.load %arg4[%c1_74, %c0_75, %c0_76] : memref<2x1x8xf32, #tpu.memory_space<vmem>>, vector<1x1x8xf32>
    %159 = vector.shape_cast %158 : vector<1x1x8xf32> to vector<1x8xf32>
    %160 = vector.broadcast %159 : vector<1x8xf32> to vector<8x8xf32>
    %161 = arith.addf %157, %160 : vector<8x8xf32>
    %cst_77 = arith.constant dense<0xFF800000> : vector<8xf32>
    %162 = vector.multi_reduction <maximumf>, %161, %cst_77 [1] : vector<8x8xf32> to vector<8xf32>
    %163 = vector.shape_cast %162 : vector<8xf32> to vector<8x1xf32>
    %164 = vector.broadcast %163 : vector<8x1xf32> to vector<8x8xf32>
    %165 = arith.subf %161, %164 : vector<8x8xf32>
    %166 = math.exp %165 : vector<8x8xf32>
    %cst_78 = arith.constant dense<0.000000e+00> : vector<8xf32>
    %167 = vector.multi_reduction <add>, %166, %cst_78 [1] : vector<8x8xf32> to vector<8xf32>
    %168 = vector.shape_cast %167 : vector<8xf32> to vector<8x1xf32>
    %169 = vector.broadcast %168 : vector<8x1xf32> to vector<8x8xf32>
    %170 = arith.divf %166, %169 : vector<8x8xf32>
    %cst_79 = arith.constant dense<0.000000e+00> : vector<8x8xf32>
    %171 = tpu.matmul %170, %152, %cst_79 {dimension_numbers = #tpu.dot_dimension_numbers<[1], [0], [0], [1], [0, 0, 1, 1], [], []>} : vector<8x8xf32>, vector<8x8xf32>, vector<8x8xf32> -> vector<8x8xf32>
    %172 = vector.extract_strided_slice %3 {offsets = [8, 0], sizes = [8, 32], strides = [1, 1]} : vector<32x32xf32> to vector<8x32xf32>
    %cst_80 = arith.constant dense<0.000000e+00> : vector<8x32xf32>
    %173 = tpu.matmul %171, %172, %cst_80 {dimension_numbers = #tpu.dot_dimension_numbers<[1], [0], [0], [1], [0, 0, 1, 1], [], []>} : vector<8x8xf32>, vector<8x32xf32>, vector<8x32xf32> -> vector<8x32xf32>
    %174 = arith.addf %149, %173 : vector<8x32xf32>
    %175 = vector.extract_strided_slice %20 {offsets = [8, 16], sizes = [8, 8], strides = [1, 1]} : vector<16x32xf32> to vector<8x8xf32>
    %176 = vector.extract_strided_slice %21 {offsets = [8, 16], sizes = [8, 8], strides = [1, 1]} : vector<16x32xf32> to vector<8x8xf32>
    %177 = vector.extract_strided_slice %22 {offsets = [8, 16], sizes = [8, 8], strides = [1, 1]} : vector<16x32xf32> to vector<8x8xf32>
    %178 = tpu.transpose %176, [1, 0] : vector<8x8xf32> -> vector<8x8xf32>
    %cst_81 = arith.constant dense<0.000000e+00> : vector<8x8xf32>
    %179 = tpu.matmul %175, %178, %cst_81 {dimension_numbers = #tpu.dot_dimension_numbers<[1], [0], [0], [1], [0, 0, 1, 1], [], []>} : vector<8x8xf32>, vector<8x8xf32>, vector<8x8xf32> -> vector<8x8xf32>
    %c2_82 = arith.constant 2 : index
    %c0_83 = arith.constant 0 : index
    %c0_84 = arith.constant 0 : index
    %180 = vector.load %arg2[%c2_82, %c0_83, %c0_84] : memref<4x8x8xf32, #tpu.memory_space<vmem>>, vector<1x8x8xf32>
    %181 = vector.shape_cast %180 : vector<1x8x8xf32> to vector<8x8xf32>
    %182 = arith.addf %179, %181 : vector<8x8xf32>
    %c1_85 = arith.constant 1 : index
    %c0_86 = arith.constant 0 : index
    %c0_87 = arith.constant 0 : index
    %183 = vector.load %arg4[%c1_85, %c0_86, %c0_87] : memref<2x1x8xf32, #tpu.memory_space<vmem>>, vector<1x1x8xf32>
    %184 = vector.shape_cast %183 : vector<1x1x8xf32> to vector<1x8xf32>
    %185 = vector.broadcast %184 : vector<1x8xf32> to vector<8x8xf32>
    %186 = arith.addf %182, %185 : vector<8x8xf32>
    %cst_88 = arith.constant dense<0xFF800000> : vector<8xf32>
    %187 = vector.multi_reduction <maximumf>, %186, %cst_88 [1] : vector<8x8xf32> to vector<8xf32>
    %188 = vector.shape_cast %187 : vector<8xf32> to vector<8x1xf32>
    %189 = vector.broadcast %188 : vector<8x1xf32> to vector<8x8xf32>
    %190 = arith.subf %186, %189 : vector<8x8xf32>
    %191 = math.exp %190 : vector<8x8xf32>
    %cst_89 = arith.constant dense<0.000000e+00> : vector<8xf32>
    %192 = vector.multi_reduction <add>, %191, %cst_89 [1] : vector<8x8xf32> to vector<8xf32>
    %193 = vector.shape_cast %192 : vector<8xf32> to vector<8x1xf32>
    %194 = vector.broadcast %193 : vector<8x1xf32> to vector<8x8xf32>
    %195 = arith.divf %191, %194 : vector<8x8xf32>
    %cst_90 = arith.constant dense<0.000000e+00> : vector<8x8xf32>
    %196 = tpu.matmul %195, %177, %cst_90 {dimension_numbers = #tpu.dot_dimension_numbers<[1], [0], [0], [1], [0, 0, 1, 1], [], []>} : vector<8x8xf32>, vector<8x8xf32>, vector<8x8xf32> -> vector<8x8xf32>
    %197 = vector.extract_strided_slice %3 {offsets = [16, 0], sizes = [8, 32], strides = [1, 1]} : vector<32x32xf32> to vector<8x32xf32>
    %cst_91 = arith.constant dense<0.000000e+00> : vector<8x32xf32>
    %198 = tpu.matmul %196, %197, %cst_91 {dimension_numbers = #tpu.dot_dimension_numbers<[1], [0], [0], [1], [0, 0, 1, 1], [], []>} : vector<8x8xf32>, vector<8x32xf32>, vector<8x32xf32> -> vector<8x32xf32>
    %199 = arith.addf %174, %198 : vector<8x32xf32>
    %200 = vector.extract_strided_slice %20 {offsets = [8, 24], sizes = [8, 8], strides = [1, 1]} : vector<16x32xf32> to vector<8x8xf32>
    %201 = vector.extract_strided_slice %21 {offsets = [8, 24], sizes = [8, 8], strides = [1, 1]} : vector<16x32xf32> to vector<8x8xf32>
    %202 = vector.extract_strided_slice %22 {offsets = [8, 24], sizes = [8, 8], strides = [1, 1]} : vector<16x32xf32> to vector<8x8xf32>
    %203 = tpu.transpose %201, [1, 0] : vector<8x8xf32> -> vector<8x8xf32>
    %cst_92 = arith.constant dense<0.000000e+00> : vector<8x8xf32>
    %204 = tpu.matmul %200, %203, %cst_92 {dimension_numbers = #tpu.dot_dimension_numbers<[1], [0], [0], [1], [0, 0, 1, 1], [], []>} : vector<8x8xf32>, vector<8x8xf32>, vector<8x8xf32> -> vector<8x8xf32>
    %c3_93 = arith.constant 3 : index
    %c0_94 = arith.constant 0 : index
    %c0_95 = arith.constant 0 : index
    %205 = vector.load %arg2[%c3_93, %c0_94, %c0_95] : memref<4x8x8xf32, #tpu.memory_space<vmem>>, vector<1x8x8xf32>
    %206 = vector.shape_cast %205 : vector<1x8x8xf32> to vector<8x8xf32>
    %207 = arith.addf %204, %206 : vector<8x8xf32>
    %c1_96 = arith.constant 1 : index
    %c0_97 = arith.constant 0 : index
    %c0_98 = arith.constant 0 : index
    %208 = vector.load %arg4[%c1_96, %c0_97, %c0_98] : memref<2x1x8xf32, #tpu.memory_space<vmem>>, vector<1x1x8xf32>
    %209 = vector.shape_cast %208 : vector<1x1x8xf32> to vector<1x8xf32>
    %210 = vector.broadcast %209 : vector<1x8xf32> to vector<8x8xf32>
    %211 = arith.addf %207, %210 : vector<8x8xf32>
    %cst_99 = arith.constant dense<0xFF800000> : vector<8xf32>
    %212 = vector.multi_reduction <maximumf>, %211, %cst_99 [1] : vector<8x8xf32> to vector<8xf32>
    %213 = vector.shape_cast %212 : vector<8xf32> to vector<8x1xf32>
    %214 = vector.broadcast %213 : vector<8x1xf32> to vector<8x8xf32>
    %215 = arith.subf %211, %214 : vector<8x8xf32>
    %216 = math.exp %215 : vector<8x8xf32>
    %cst_100 = arith.constant dense<0.000000e+00> : vector<8xf32>
    %217 = vector.multi_reduction <add>, %216, %cst_100 [1] : vector<8x8xf32> to vector<8xf32>
    %218 = vector.shape_cast %217 : vector<8xf32> to vector<8x1xf32>
    %219 = vector.broadcast %218 : vector<8x1xf32> to vector<8x8xf32>
    %220 = arith.divf %216, %219 : vector<8x8xf32>
    %cst_101 = arith.constant dense<0.000000e+00> : vector<8x8xf32>
    %221 = tpu.matmul %220, %202, %cst_101 {dimension_numbers = #tpu.dot_dimension_numbers<[1], [0], [0], [1], [0, 0, 1, 1], [], []>} : vector<8x8xf32>, vector<8x8xf32>, vector<8x8xf32> -> vector<8x8xf32>
    %222 = vector.extract_strided_slice %3 {offsets = [24, 0], sizes = [8, 32], strides = [1, 1]} : vector<32x32xf32> to vector<8x32xf32>
    %cst_102 = arith.constant dense<0.000000e+00> : vector<8x32xf32>
    %223 = tpu.matmul %221, %222, %cst_102 {dimension_numbers = #tpu.dot_dimension_numbers<[1], [0], [0], [1], [0, 0, 1, 1], [], []>} : vector<8x8xf32>, vector<8x32xf32>, vector<8x32xf32> -> vector<8x32xf32>
    %224 = arith.addf %199, %223 : vector<8x32xf32>
    %225 = tpu.concatenate %123, %224 in 0 : vector<8x32xf32>, vector<8x32xf32> -> vector<16x32xf32>
    %226 = arith.addf %0, %225 : vector<16x32xf32>
    %227 = arith.mulf %226, %226 : vector<16x32xf32>
    %cst_103 = arith.constant dense<0.000000e+00> : vector<16xf32>
    %228 = vector.multi_reduction <add>, %227, %cst_103 [1] : vector<16x32xf32> to vector<16xf32>
    %229 = vector.shape_cast %228 : vector<16xf32> to vector<16x1xf32>
    %cst_104 = arith.constant 3.200000e+01 : f32
    %230 = vector.broadcast %cst_104 : f32 to vector<16x1xf32>
    %231 = arith.divf %229, %230 : vector<16x1xf32>
    %cst_105 = arith.constant 9.99999997E-7 : f32
    %232 = vector.broadcast %cst_105 : f32 to vector<16x1xf32>
    %233 = arith.addf %231, %232 : vector<16x1xf32>
    %234 = math.rsqrt %233 : vector<16x1xf32>
    %235 = vector.broadcast %234 : vector<16x1xf32> to vector<16x32xf32>
    %236 = arith.mulf %226, %235 : vector<16x32xf32>
    %237 = vector.broadcast %4 : vector<1x32xf32> to vector<16x32xf32>
    %238 = arith.mulf %236, %237 : vector<16x32xf32>
    %cst_106 = arith.constant dense<0.000000e+00> : vector<16x64xf32>
    %239 = tpu.matmul %238, %5, %cst_106 {dimension_numbers = #tpu.dot_dimension_numbers<[1], [0], [0], [1], [0, 0, 1, 1], [], []>} : vector<16x32xf32>, vector<32x64xf32>, vector<16x64xf32> -> vector<16x64xf32>
    %cst_107 = arith.constant 0.000000e+00 : f32
    %240 = vector.broadcast %cst_107 : f32 to vector<16x64xf32>
    %241 = arith.maximumf %239, %240 : vector<16x64xf32>
    %cst_108 = arith.constant dense<0.000000e+00> : vector<16x32xf32>
    %242 = tpu.matmul %241, %6, %cst_108 {dimension_numbers = #tpu.dot_dimension_numbers<[1], [0], [0], [1], [0, 0, 1, 1], [], []>} : vector<16x64xf32>, vector<64x32xf32>, vector<16x32xf32> -> vector<16x32xf32>
    %243 = arith.addf %226, %242 : vector<16x32xf32>
    %c0_109 = arith.constant 0 : index
    %c0_110 = arith.constant 0 : index
    %244 = vector.load %arg13[%c0_109, %c0_110] : memref<1x32xf32, #tpu.memory_space<vmem>>, vector<1x32xf32>
    %c0_111 = arith.constant 0 : index
    %c0_112 = arith.constant 0 : index
    %245 = vector.load %arg14[%c0_111, %c0_112] : memref<32x96xf32, #tpu.memory_space<vmem>>, vector<32x96xf32>
    %c0_113 = arith.constant 0 : index
    %c0_114 = arith.constant 0 : index
    %246 = vector.load %arg15[%c0_113, %c0_114] : memref<32x32xf32, #tpu.memory_space<vmem>>, vector<32x32xf32>
    %c0_115 = arith.constant 0 : index
    %c0_116 = arith.constant 0 : index
    %247 = vector.load %arg16[%c0_115, %c0_116] : memref<1x32xf32, #tpu.memory_space<vmem>>, vector<1x32xf32>
    %c0_117 = arith.constant 0 : index
    %c0_118 = arith.constant 0 : index
    %248 = vector.load %arg17[%c0_117, %c0_118] : memref<32x64xf32, #tpu.memory_space<vmem>>, vector<32x64xf32>
    %c0_119 = arith.constant 0 : index
    %c0_120 = arith.constant 0 : index
    %249 = vector.load %arg18[%c0_119, %c0_120] : memref<64x32xf32, #tpu.memory_space<vmem>>, vector<64x32xf32>
    %250 = arith.mulf %243, %243 : vector<16x32xf32>
    %cst_121 = arith.constant dense<0.000000e+00> : vector<16xf32>
    %251 = vector.multi_reduction <add>, %250, %cst_121 [1] : vector<16x32xf32> to vector<16xf32>
    %252 = vector.shape_cast %251 : vector<16xf32> to vector<16x1xf32>
    %cst_122 = arith.constant 3.200000e+01 : f32
    %253 = vector.broadcast %cst_122 : f32 to vector<16x1xf32>
    %254 = arith.divf %252, %253 : vector<16x1xf32>
    %cst_123 = arith.constant 9.99999997E-7 : f32
    %255 = vector.broadcast %cst_123 : f32 to vector<16x1xf32>
    %256 = arith.addf %254, %255 : vector<16x1xf32>
    %257 = math.rsqrt %256 : vector<16x1xf32>
    %258 = vector.broadcast %257 : vector<16x1xf32> to vector<16x32xf32>
    %259 = arith.mulf %243, %258 : vector<16x32xf32>
    %260 = vector.broadcast %244 : vector<1x32xf32> to vector<16x32xf32>
    %261 = arith.mulf %259, %260 : vector<16x32xf32>
    %cst_124 = arith.constant dense<0.000000e+00> : vector<16x96xf32>
    %262 = tpu.matmul %261, %245, %cst_124 {dimension_numbers = #tpu.dot_dimension_numbers<[1], [0], [0], [1], [0, 0, 1, 1], [], []>} : vector<16x32xf32>, vector<32x96xf32>, vector<16x96xf32> -> vector<16x96xf32>
    %263 = vector.extract_strided_slice %262 {offsets = [0, 0], sizes = [16, 32], strides = [1, 1]} : vector<16x96xf32> to vector<16x32xf32>
    %264 = vector.extract_strided_slice %262 {offsets = [0, 32], sizes = [16, 32], strides = [1, 1]} : vector<16x96xf32> to vector<16x32xf32>
    %265 = vector.extract_strided_slice %262 {offsets = [0, 64], sizes = [16, 32], strides = [1, 1]} : vector<16x96xf32> to vector<16x32xf32>
    %cst_125 = arith.constant 0.000000e+00 : f32
    %266 = vector.broadcast %cst_125 : f32 to vector<8x32xf32>
    %267 = vector.extract_strided_slice %263 {offsets = [0, 0], sizes = [8, 8], strides = [1, 1]} : vector<16x32xf32> to vector<8x8xf32>
    %268 = vector.extract_strided_slice %264 {offsets = [0, 0], sizes = [8, 8], strides = [1, 1]} : vector<16x32xf32> to vector<8x8xf32>
    %269 = vector.extract_strided_slice %265 {offsets = [0, 0], sizes = [8, 8], strides = [1, 1]} : vector<16x32xf32> to vector<8x8xf32>
    %270 = tpu.transpose %268, [1, 0] : vector<8x8xf32> -> vector<8x8xf32>
    %cst_126 = arith.constant dense<0.000000e+00> : vector<8x8xf32>
    %271 = tpu.matmul %267, %270, %cst_126 {dimension_numbers = #tpu.dot_dimension_numbers<[1], [0], [0], [1], [0, 0, 1, 1], [], []>} : vector<8x8xf32>, vector<8x8xf32>, vector<8x8xf32> -> vector<8x8xf32>
    %c0_127 = arith.constant 0 : index
    %c0_128 = arith.constant 0 : index
    %c0_129 = arith.constant 0 : index
    %272 = vector.load %arg2[%c0_127, %c0_128, %c0_129] : memref<4x8x8xf32, #tpu.memory_space<vmem>>, vector<1x8x8xf32>
    %273 = vector.shape_cast %272 : vector<1x8x8xf32> to vector<8x8xf32>
    %274 = arith.addf %271, %273 : vector<8x8xf32>
    %c0_130 = arith.constant 0 : index
    %c0_131 = arith.constant 0 : index
    %c0_132 = arith.constant 0 : index
    %275 = vector.load %arg4[%c0_130, %c0_131, %c0_132] : memref<2x1x8xf32, #tpu.memory_space<vmem>>, vector<1x1x8xf32>
    %276 = vector.shape_cast %275 : vector<1x1x8xf32> to vector<1x8xf32>
    %277 = vector.broadcast %276 : vector<1x8xf32> to vector<8x8xf32>
    %278 = arith.addf %274, %277 : vector<8x8xf32>
    %cst_133 = arith.constant dense<0xFF800000> : vector<8xf32>
    %279 = vector.multi_reduction <maximumf>, %278, %cst_133 [1] : vector<8x8xf32> to vector<8xf32>
    %280 = vector.shape_cast %279 : vector<8xf32> to vector<8x1xf32>
    %281 = vector.broadcast %280 : vector<8x1xf32> to vector<8x8xf32>
    %282 = arith.subf %278, %281 : vector<8x8xf32>
    %283 = math.exp %282 : vector<8x8xf32>
    %cst_134 = arith.constant dense<0.000000e+00> : vector<8xf32>
    %284 = vector.multi_reduction <add>, %283, %cst_134 [1] : vector<8x8xf32> to vector<8xf32>
    %285 = vector.shape_cast %284 : vector<8xf32> to vector<8x1xf32>
    %286 = vector.broadcast %285 : vector<8x1xf32> to vector<8x8xf32>
    %287 = arith.divf %283, %286 : vector<8x8xf32>
    %cst_135 = arith.constant dense<0.000000e+00> : vector<8x8xf32>
    %288 = tpu.matmul %287, %269, %cst_135 {dimension_numbers = #tpu.dot_dimension_numbers<[1], [0], [0], [1], [0, 0, 1, 1], [], []>} : vector<8x8xf32>, vector<8x8xf32>, vector<8x8xf32> -> vector<8x8xf32>
    %289 = vector.extract_strided_slice %246 {offsets = [0, 0], sizes = [8, 32], strides = [1, 1]} : vector<32x32xf32> to vector<8x32xf32>
    %cst_136 = arith.constant dense<0.000000e+00> : vector<8x32xf32>
    %290 = tpu.matmul %288, %289, %cst_136 {dimension_numbers = #tpu.dot_dimension_numbers<[1], [0], [0], [1], [0, 0, 1, 1], [], []>} : vector<8x8xf32>, vector<8x32xf32>, vector<8x32xf32> -> vector<8x32xf32>
    %291 = arith.addf %266, %290 : vector<8x32xf32>
    %292 = vector.extract_strided_slice %263 {offsets = [0, 8], sizes = [8, 8], strides = [1, 1]} : vector<16x32xf32> to vector<8x8xf32>
    %293 = vector.extract_strided_slice %264 {offsets = [0, 8], sizes = [8, 8], strides = [1, 1]} : vector<16x32xf32> to vector<8x8xf32>
    %294 = vector.extract_strided_slice %265 {offsets = [0, 8], sizes = [8, 8], strides = [1, 1]} : vector<16x32xf32> to vector<8x8xf32>
    %295 = tpu.transpose %293, [1, 0] : vector<8x8xf32> -> vector<8x8xf32>
    %cst_137 = arith.constant dense<0.000000e+00> : vector<8x8xf32>
    %296 = tpu.matmul %292, %295, %cst_137 {dimension_numbers = #tpu.dot_dimension_numbers<[1], [0], [0], [1], [0, 0, 1, 1], [], []>} : vector<8x8xf32>, vector<8x8xf32>, vector<8x8xf32> -> vector<8x8xf32>
    %c1_138 = arith.constant 1 : index
    %c0_139 = arith.constant 0 : index
    %c0_140 = arith.constant 0 : index
    %297 = vector.load %arg2[%c1_138, %c0_139, %c0_140] : memref<4x8x8xf32, #tpu.memory_space<vmem>>, vector<1x8x8xf32>
    %298 = vector.shape_cast %297 : vector<1x8x8xf32> to vector<8x8xf32>
    %299 = arith.addf %296, %298 : vector<8x8xf32>
    %c0_141 = arith.constant 0 : index
    %c0_142 = arith.constant 0 : index
    %c0_143 = arith.constant 0 : index
    %300 = vector.load %arg4[%c0_141, %c0_142, %c0_143] : memref<2x1x8xf32, #tpu.memory_space<vmem>>, vector<1x1x8xf32>
    %301 = vector.shape_cast %300 : vector<1x1x8xf32> to vector<1x8xf32>
    %302 = vector.broadcast %301 : vector<1x8xf32> to vector<8x8xf32>
    %303 = arith.addf %299, %302 : vector<8x8xf32>
    %cst_144 = arith.constant dense<0xFF800000> : vector<8xf32>
    %304 = vector.multi_reduction <maximumf>, %303, %cst_144 [1] : vector<8x8xf32> to vector<8xf32>
    %305 = vector.shape_cast %304 : vector<8xf32> to vector<8x1xf32>
    %306 = vector.broadcast %305 : vector<8x1xf32> to vector<8x8xf32>
    %307 = arith.subf %303, %306 : vector<8x8xf32>
    %308 = math.exp %307 : vector<8x8xf32>
    %cst_145 = arith.constant dense<0.000000e+00> : vector<8xf32>
    %309 = vector.multi_reduction <add>, %308, %cst_145 [1] : vector<8x8xf32> to vector<8xf32>
    %310 = vector.shape_cast %309 : vector<8xf32> to vector<8x1xf32>
    %311 = vector.broadcast %310 : vector<8x1xf32> to vector<8x8xf32>
    %312 = arith.divf %308, %311 : vector<8x8xf32>
    %cst_146 = arith.constant dense<0.000000e+00> : vector<8x8xf32>
    %313 = tpu.matmul %312, %294, %cst_146 {dimension_numbers = #tpu.dot_dimension_numbers<[1], [0], [0], [1], [0, 0, 1, 1], [], []>} : vector<8x8xf32>, vector<8x8xf32>, vector<8x8xf32> -> vector<8x8xf32>
    %314 = vector.extract_strided_slice %246 {offsets = [8, 0], sizes = [8, 32], strides = [1, 1]} : vector<32x32xf32> to vector<8x32xf32>
    %cst_147 = arith.constant dense<0.000000e+00> : vector<8x32xf32>
    %315 = tpu.matmul %313, %314, %cst_147 {dimension_numbers = #tpu.dot_dimension_numbers<[1], [0], [0], [1], [0, 0, 1, 1], [], []>} : vector<8x8xf32>, vector<8x32xf32>, vector<8x32xf32> -> vector<8x32xf32>
    %316 = arith.addf %291, %315 : vector<8x32xf32>
    %317 = vector.extract_strided_slice %263 {offsets = [0, 16], sizes = [8, 8], strides = [1, 1]} : vector<16x32xf32> to vector<8x8xf32>
    %318 = vector.extract_strided_slice %264 {offsets = [0, 16], sizes = [8, 8], strides = [1, 1]} : vector<16x32xf32> to vector<8x8xf32>
    %319 = vector.extract_strided_slice %265 {offsets = [0, 16], sizes = [8, 8], strides = [1, 1]} : vector<16x32xf32> to vector<8x8xf32>
    %320 = tpu.transpose %318, [1, 0] : vector<8x8xf32> -> vector<8x8xf32>
    %cst_148 = arith.constant dense<0.000000e+00> : vector<8x8xf32>
    %321 = tpu.matmul %317, %320, %cst_148 {dimension_numbers = #tpu.dot_dimension_numbers<[1], [0], [0], [1], [0, 0, 1, 1], [], []>} : vector<8x8xf32>, vector<8x8xf32>, vector<8x8xf32> -> vector<8x8xf32>
    %c2_149 = arith.constant 2 : index
    %c0_150 = arith.constant 0 : index
    %c0_151 = arith.constant 0 : index
    %322 = vector.load %arg2[%c2_149, %c0_150, %c0_151] : memref<4x8x8xf32, #tpu.memory_space<vmem>>, vector<1x8x8xf32>
    %323 = vector.shape_cast %322 : vector<1x8x8xf32> to vector<8x8xf32>
    %324 = arith.addf %321, %323 : vector<8x8xf32>
    %c0_152 = arith.constant 0 : index
    %c0_153 = arith.constant 0 : index
    %c0_154 = arith.constant 0 : index
    %325 = vector.load %arg4[%c0_152, %c0_153, %c0_154] : memref<2x1x8xf32, #tpu.memory_space<vmem>>, vector<1x1x8xf32>
    %326 = vector.shape_cast %325 : vector<1x1x8xf32> to vector<1x8xf32>
    %327 = vector.broadcast %326 : vector<1x8xf32> to vector<8x8xf32>
    %328 = arith.addf %324, %327 : vector<8x8xf32>
    %cst_155 = arith.constant dense<0xFF800000> : vector<8xf32>
    %329 = vector.multi_reduction <maximumf>, %328, %cst_155 [1] : vector<8x8xf32> to vector<8xf32>
    %330 = vector.shape_cast %329 : vector<8xf32> to vector<8x1xf32>
    %331 = vector.broadcast %330 : vector<8x1xf32> to vector<8x8xf32>
    %332 = arith.subf %328, %331 : vector<8x8xf32>
    %333 = math.exp %332 : vector<8x8xf32>
    %cst_156 = arith.constant dense<0.000000e+00> : vector<8xf32>
    %334 = vector.multi_reduction <add>, %333, %cst_156 [1] : vector<8x8xf32> to vector<8xf32>
    %335 = vector.shape_cast %334 : vector<8xf32> to vector<8x1xf32>
    %336 = vector.broadcast %335 : vector<8x1xf32> to vector<8x8xf32>
    %337 = arith.divf %333, %336 : vector<8x8xf32>
    %cst_157 = arith.constant dense<0.000000e+00> : vector<8x8xf32>
    %338 = tpu.matmul %337, %319, %cst_157 {dimension_numbers = #tpu.dot_dimension_numbers<[1], [0], [0], [1], [0, 0, 1, 1], [], []>} : vector<8x8xf32>, vector<8x8xf32>, vector<8x8xf32> -> vector<8x8xf32>
    %339 = vector.extract_strided_slice %246 {offsets = [16, 0], sizes = [8, 32], strides = [1, 1]} : vector<32x32xf32> to vector<8x32xf32>
    %cst_158 = arith.constant dense<0.000000e+00> : vector<8x32xf32>
    %340 = tpu.matmul %338, %339, %cst_158 {dimension_numbers = #tpu.dot_dimension_numbers<[1], [0], [0], [1], [0, 0, 1, 1], [], []>} : vector<8x8xf32>, vector<8x32xf32>, vector<8x32xf32> -> vector<8x32xf32>
    %341 = arith.addf %316, %340 : vector<8x32xf32>
    %342 = vector.extract_strided_slice %263 {offsets = [0, 24], sizes = [8, 8], strides = [1, 1]} : vector<16x32xf32> to vector<8x8xf32>
    %343 = vector.extract_strided_slice %264 {offsets = [0, 24], sizes = [8, 8], strides = [1, 1]} : vector<16x32xf32> to vector<8x8xf32>
    %344 = vector.extract_strided_slice %265 {offsets = [0, 24], sizes = [8, 8], strides = [1, 1]} : vector<16x32xf32> to vector<8x8xf32>
    %345 = tpu.transpose %343, [1, 0] : vector<8x8xf32> -> vector<8x8xf32>
    %cst_159 = arith.constant dense<0.000000e+00> : vector<8x8xf32>
    %346 = tpu.matmul %342, %345, %cst_159 {dimension_numbers = #tpu.dot_dimension_numbers<[1], [0], [0], [1], [0, 0, 1, 1], [], []>} : vector<8x8xf32>, vector<8x8xf32>, vector<8x8xf32> -> vector<8x8xf32>
    %c3_160 = arith.constant 3 : index
    %c0_161 = arith.constant 0 : index
    %c0_162 = arith.constant 0 : index
    %347 = vector.load %arg2[%c3_160, %c0_161, %c0_162] : memref<4x8x8xf32, #tpu.memory_space<vmem>>, vector<1x8x8xf32>
    %348 = vector.shape_cast %347 : vector<1x8x8xf32> to vector<8x8xf32>
    %349 = arith.addf %346, %348 : vector<8x8xf32>
    %c0_163 = arith.constant 0 : index
    %c0_164 = arith.constant 0 : index
    %c0_165 = arith.constant 0 : index
    %350 = vector.load %arg4[%c0_163, %c0_164, %c0_165] : memref<2x1x8xf32, #tpu.memory_space<vmem>>, vector<1x1x8xf32>
    %351 = vector.shape_cast %350 : vector<1x1x8xf32> to vector<1x8xf32>
    %352 = vector.broadcast %351 : vector<1x8xf32> to vector<8x8xf32>
    %353 = arith.addf %349, %352 : vector<8x8xf32>
    %cst_166 = arith.constant dense<0xFF800000> : vector<8xf32>
    %354 = vector.multi_reduction <maximumf>, %353, %cst_166 [1] : vector<8x8xf32> to vector<8xf32>
    %355 = vector.shape_cast %354 : vector<8xf32> to vector<8x1xf32>
    %356 = vector.broadcast %355 : vector<8x1xf32> to vector<8x8xf32>
    %357 = arith.subf %353, %356 : vector<8x8xf32>
    %358 = math.exp %357 : vector<8x8xf32>
    %cst_167 = arith.constant dense<0.000000e+00> : vector<8xf32>
    %359 = vector.multi_reduction <add>, %358, %cst_167 [1] : vector<8x8xf32> to vector<8xf32>
    %360 = vector.shape_cast %359 : vector<8xf32> to vector<8x1xf32>
    %361 = vector.broadcast %360 : vector<8x1xf32> to vector<8x8xf32>
    %362 = arith.divf %358, %361 : vector<8x8xf32>
    %cst_168 = arith.constant dense<0.000000e+00> : vector<8x8xf32>
    %363 = tpu.matmul %362, %344, %cst_168 {dimension_numbers = #tpu.dot_dimension_numbers<[1], [0], [0], [1], [0, 0, 1, 1], [], []>} : vector<8x8xf32>, vector<8x8xf32>, vector<8x8xf32> -> vector<8x8xf32>
    %364 = vector.extract_strided_slice %246 {offsets = [24, 0], sizes = [8, 32], strides = [1, 1]} : vector<32x32xf32> to vector<8x32xf32>
    %cst_169 = arith.constant dense<0.000000e+00> : vector<8x32xf32>
    %365 = tpu.matmul %363, %364, %cst_169 {dimension_numbers = #tpu.dot_dimension_numbers<[1], [0], [0], [1], [0, 0, 1, 1], [], []>} : vector<8x8xf32>, vector<8x32xf32>, vector<8x32xf32> -> vector<8x32xf32>
    %366 = arith.addf %341, %365 : vector<8x32xf32>
    %cst_170 = arith.constant 0.000000e+00 : f32
    %367 = vector.broadcast %cst_170 : f32 to vector<8x32xf32>
    %368 = vector.extract_strided_slice %263 {offsets = [8, 0], sizes = [8, 8], strides = [1, 1]} : vector<16x32xf32> to vector<8x8xf32>
    %369 = vector.extract_strided_slice %264 {offsets = [8, 0], sizes = [8, 8], strides = [1, 1]} : vector<16x32xf32> to vector<8x8xf32>
    %370 = vector.extract_strided_slice %265 {offsets = [8, 0], sizes = [8, 8], strides = [1, 1]} : vector<16x32xf32> to vector<8x8xf32>
    %371 = tpu.transpose %369, [1, 0] : vector<8x8xf32> -> vector<8x8xf32>
    %cst_171 = arith.constant dense<0.000000e+00> : vector<8x8xf32>
    %372 = tpu.matmul %368, %371, %cst_171 {dimension_numbers = #tpu.dot_dimension_numbers<[1], [0], [0], [1], [0, 0, 1, 1], [], []>} : vector<8x8xf32>, vector<8x8xf32>, vector<8x8xf32> -> vector<8x8xf32>
    %c0_172 = arith.constant 0 : index
    %c0_173 = arith.constant 0 : index
    %c0_174 = arith.constant 0 : index
    %373 = vector.load %arg2[%c0_172, %c0_173, %c0_174] : memref<4x8x8xf32, #tpu.memory_space<vmem>>, vector<1x8x8xf32>
    %374 = vector.shape_cast %373 : vector<1x8x8xf32> to vector<8x8xf32>
    %375 = arith.addf %372, %374 : vector<8x8xf32>
    %c1_175 = arith.constant 1 : index
    %c0_176 = arith.constant 0 : index
    %c0_177 = arith.constant 0 : index
    %376 = vector.load %arg4[%c1_175, %c0_176, %c0_177] : memref<2x1x8xf32, #tpu.memory_space<vmem>>, vector<1x1x8xf32>
    %377 = vector.shape_cast %376 : vector<1x1x8xf32> to vector<1x8xf32>
    %378 = vector.broadcast %377 : vector<1x8xf32> to vector<8x8xf32>
    %379 = arith.addf %375, %378 : vector<8x8xf32>
    %cst_178 = arith.constant dense<0xFF800000> : vector<8xf32>
    %380 = vector.multi_reduction <maximumf>, %379, %cst_178 [1] : vector<8x8xf32> to vector<8xf32>
    %381 = vector.shape_cast %380 : vector<8xf32> to vector<8x1xf32>
    %382 = vector.broadcast %381 : vector<8x1xf32> to vector<8x8xf32>
    %383 = arith.subf %379, %382 : vector<8x8xf32>
    %384 = math.exp %383 : vector<8x8xf32>
    %cst_179 = arith.constant dense<0.000000e+00> : vector<8xf32>
    %385 = vector.multi_reduction <add>, %384, %cst_179 [1] : vector<8x8xf32> to vector<8xf32>
    %386 = vector.shape_cast %385 : vector<8xf32> to vector<8x1xf32>
    %387 = vector.broadcast %386 : vector<8x1xf32> to vector<8x8xf32>
    %388 = arith.divf %384, %387 : vector<8x8xf32>
    %cst_180 = arith.constant dense<0.000000e+00> : vector<8x8xf32>
    %389 = tpu.matmul %388, %370, %cst_180 {dimension_numbers = #tpu.dot_dimension_numbers<[1], [0], [0], [1], [0, 0, 1, 1], [], []>} : vector<8x8xf32>, vector<8x8xf32>, vector<8x8xf32> -> vector<8x8xf32>
    %390 = vector.extract_strided_slice %246 {offsets = [0, 0], sizes = [8, 32], strides = [1, 1]} : vector<32x32xf32> to vector<8x32xf32>
    %cst_181 = arith.constant dense<0.000000e+00> : vector<8x32xf32>
    %391 = tpu.matmul %389, %390, %cst_181 {dimension_numbers = #tpu.dot_dimension_numbers<[1], [0], [0], [1], [0, 0, 1, 1], [], []>} : vector<8x8xf32>, vector<8x32xf32>, vector<8x32xf32> -> vector<8x32xf32>
    %392 = arith.addf %367, %391 : vector<8x32xf32>
    %393 = vector.extract_strided_slice %263 {offsets = [8, 8], sizes = [8, 8], strides = [1, 1]} : vector<16x32xf32> to vector<8x8xf32>
    %394 = vector.extract_strided_slice %264 {offsets = [8, 8], sizes = [8, 8], strides = [1, 1]} : vector<16x32xf32> to vector<8x8xf32>
    %395 = vector.extract_strided_slice %265 {offsets = [8, 8], sizes = [8, 8], strides = [1, 1]} : vector<16x32xf32> to vector<8x8xf32>
    %396 = tpu.transpose %394, [1, 0] : vector<8x8xf32> -> vector<8x8xf32>
    %cst_182 = arith.constant dense<0.000000e+00> : vector<8x8xf32>
    %397 = tpu.matmul %393, %396, %cst_182 {dimension_numbers = #tpu.dot_dimension_numbers<[1], [0], [0], [1], [0, 0, 1, 1], [], []>} : vector<8x8xf32>, vector<8x8xf32>, vector<8x8xf32> -> vector<8x8xf32>
    %c1_183 = arith.constant 1 : index
    %c0_184 = arith.constant 0 : index
    %c0_185 = arith.constant 0 : index
    %398 = vector.load %arg2[%c1_183, %c0_184, %c0_185] : memref<4x8x8xf32, #tpu.memory_space<vmem>>, vector<1x8x8xf32>
    %399 = vector.shape_cast %398 : vector<1x8x8xf32> to vector<8x8xf32>
    %400 = arith.addf %397, %399 : vector<8x8xf32>
    %c1_186 = arith.constant 1 : index
    %c0_187 = arith.constant 0 : index
    %c0_188 = arith.constant 0 : index
    %401 = vector.load %arg4[%c1_186, %c0_187, %c0_188] : memref<2x1x8xf32, #tpu.memory_space<vmem>>, vector<1x1x8xf32>
    %402 = vector.shape_cast %401 : vector<1x1x8xf32> to vector<1x8xf32>
    %403 = vector.broadcast %402 : vector<1x8xf32> to vector<8x8xf32>
    %404 = arith.addf %400, %403 : vector<8x8xf32>
    %cst_189 = arith.constant dense<0xFF800000> : vector<8xf32>
    %405 = vector.multi_reduction <maximumf>, %404, %cst_189 [1] : vector<8x8xf32> to vector<8xf32>
    %406 = vector.shape_cast %405 : vector<8xf32> to vector<8x1xf32>
    %407 = vector.broadcast %406 : vector<8x1xf32> to vector<8x8xf32>
    %408 = arith.subf %404, %407 : vector<8x8xf32>
    %409 = math.exp %408 : vector<8x8xf32>
    %cst_190 = arith.constant dense<0.000000e+00> : vector<8xf32>
    %410 = vector.multi_reduction <add>, %409, %cst_190 [1] : vector<8x8xf32> to vector<8xf32>
    %411 = vector.shape_cast %410 : vector<8xf32> to vector<8x1xf32>
    %412 = vector.broadcast %411 : vector<8x1xf32> to vector<8x8xf32>
    %413 = arith.divf %409, %412 : vector<8x8xf32>
    %cst_191 = arith.constant dense<0.000000e+00> : vector<8x8xf32>
    %414 = tpu.matmul %413, %395, %cst_191 {dimension_numbers = #tpu.dot_dimension_numbers<[1], [0], [0], [1], [0, 0, 1, 1], [], []>} : vector<8x8xf32>, vector<8x8xf32>, vector<8x8xf32> -> vector<8x8xf32>
    %415 = vector.extract_strided_slice %246 {offsets = [8, 0], sizes = [8, 32], strides = [1, 1]} : vector<32x32xf32> to vector<8x32xf32>
    %cst_192 = arith.constant dense<0.000000e+00> : vector<8x32xf32>
    %416 = tpu.matmul %414, %415, %cst_192 {dimension_numbers = #tpu.dot_dimension_numbers<[1], [0], [0], [1], [0, 0, 1, 1], [], []>} : vector<8x8xf32>, vector<8x32xf32>, vector<8x32xf32> -> vector<8x32xf32>
    %417 = arith.addf %392, %416 : vector<8x32xf32>
    %418 = vector.extract_strided_slice %263 {offsets = [8, 16], sizes = [8, 8], strides = [1, 1]} : vector<16x32xf32> to vector<8x8xf32>
    %419 = vector.extract_strided_slice %264 {offsets = [8, 16], sizes = [8, 8], strides = [1, 1]} : vector<16x32xf32> to vector<8x8xf32>
    %420 = vector.extract_strided_slice %265 {offsets = [8, 16], sizes = [8, 8], strides = [1, 1]} : vector<16x32xf32> to vector<8x8xf32>
    %421 = tpu.transpose %419, [1, 0] : vector<8x8xf32> -> vector<8x8xf32>
    %cst_193 = arith.constant dense<0.000000e+00> : vector<8x8xf32>
    %422 = tpu.matmul %418, %421, %cst_193 {dimension_numbers = #tpu.dot_dimension_numbers<[1], [0], [0], [1], [0, 0, 1, 1], [], []>} : vector<8x8xf32>, vector<8x8xf32>, vector<8x8xf32> -> vector<8x8xf32>
    %c2_194 = arith.constant 2 : index
    %c0_195 = arith.constant 0 : index
    %c0_196 = arith.constant 0 : index
    %423 = vector.load %arg2[%c2_194, %c0_195, %c0_196] : memref<4x8x8xf32, #tpu.memory_space<vmem>>, vector<1x8x8xf32>
    %424 = vector.shape_cast %423 : vector<1x8x8xf32> to vector<8x8xf32>
    %425 = arith.addf %422, %424 : vector<8x8xf32>
    %c1_197 = arith.constant 1 : index
    %c0_198 = arith.constant 0 : index
    %c0_199 = arith.constant 0 : index
    %426 = vector.load %arg4[%c1_197, %c0_198, %c0_199] : memref<2x1x8xf32, #tpu.memory_space<vmem>>, vector<1x1x8xf32>
    %427 = vector.shape_cast %426 : vector<1x1x8xf32> to vector<1x8xf32>
    %428 = vector.broadcast %427 : vector<1x8xf32> to vector<8x8xf32>
    %429 = arith.addf %425, %428 : vector<8x8xf32>
    %cst_200 = arith.constant dense<0xFF800000> : vector<8xf32>
    %430 = vector.multi_reduction <maximumf>, %429, %cst_200 [1] : vector<8x8xf32> to vector<8xf32>
    %431 = vector.shape_cast %430 : vector<8xf32> to vector<8x1xf32>
    %432 = vector.broadcast %431 : vector<8x1xf32> to vector<8x8xf32>
    %433 = arith.subf %429, %432 : vector<8x8xf32>
    %434 = math.exp %433 : vector<8x8xf32>
    %cst_201 = arith.constant dense<0.000000e+00> : vector<8xf32>
    %435 = vector.multi_reduction <add>, %434, %cst_201 [1] : vector<8x8xf32> to vector<8xf32>
    %436 = vector.shape_cast %435 : vector<8xf32> to vector<8x1xf32>
    %437 = vector.broadcast %436 : vector<8x1xf32> to vector<8x8xf32>
    %438 = arith.divf %434, %437 : vector<8x8xf32>
    %cst_202 = arith.constant dense<0.000000e+00> : vector<8x8xf32>
    %439 = tpu.matmul %438, %420, %cst_202 {dimension_numbers = #tpu.dot_dimension_numbers<[1], [0], [0], [1], [0, 0, 1, 1], [], []>} : vector<8x8xf32>, vector<8x8xf32>, vector<8x8xf32> -> vector<8x8xf32>
    %440 = vector.extract_strided_slice %246 {offsets = [16, 0], sizes = [8, 32], strides = [1, 1]} : vector<32x32xf32> to vector<8x32xf32>
    %cst_203 = arith.constant dense<0.000000e+00> : vector<8x32xf32>
    %441 = tpu.matmul %439, %440, %cst_203 {dimension_numbers = #tpu.dot_dimension_numbers<[1], [0], [0], [1], [0, 0, 1, 1], [], []>} : vector<8x8xf32>, vector<8x32xf32>, vector<8x32xf32> -> vector<8x32xf32>
    %442 = arith.addf %417, %441 : vector<8x32xf32>
    %443 = vector.extract_strided_slice %263 {offsets = [8, 24], sizes = [8, 8], strides = [1, 1]} : vector<16x32xf32> to vector<8x8xf32>
    %444 = vector.extract_strided_slice %264 {offsets = [8, 24], sizes = [8, 8], strides = [1, 1]} : vector<16x32xf32> to vector<8x8xf32>
    %445 = vector.extract_strided_slice %265 {offsets = [8, 24], sizes = [8, 8], strides = [1, 1]} : vector<16x32xf32> to vector<8x8xf32>
    %446 = tpu.transpose %444, [1, 0] : vector<8x8xf32> -> vector<8x8xf32>
    %cst_204 = arith.constant dense<0.000000e+00> : vector<8x8xf32>
    %447 = tpu.matmul %443, %446, %cst_204 {dimension_numbers = #tpu.dot_dimension_numbers<[1], [0], [0], [1], [0, 0, 1, 1], [], []>} : vector<8x8xf32>, vector<8x8xf32>, vector<8x8xf32> -> vector<8x8xf32>
    %c3_205 = arith.constant 3 : index
    %c0_206 = arith.constant 0 : index
    %c0_207 = arith.constant 0 : index
    %448 = vector.load %arg2[%c3_205, %c0_206, %c0_207] : memref<4x8x8xf32, #tpu.memory_space<vmem>>, vector<1x8x8xf32>
    %449 = vector.shape_cast %448 : vector<1x8x8xf32> to vector<8x8xf32>
    %450 = arith.addf %447, %449 : vector<8x8xf32>
    %c1_208 = arith.constant 1 : index
    %c0_209 = arith.constant 0 : index
    %c0_210 = arith.constant 0 : index
    %451 = vector.load %arg4[%c1_208, %c0_209, %c0_210] : memref<2x1x8xf32, #tpu.memory_space<vmem>>, vector<1x1x8xf32>
    %452 = vector.shape_cast %451 : vector<1x1x8xf32> to vector<1x8xf32>
    %453 = vector.broadcast %452 : vector<1x8xf32> to vector<8x8xf32>
    %454 = arith.addf %450, %453 : vector<8x8xf32>
    %cst_211 = arith.constant dense<0xFF800000> : vector<8xf32>
    %455 = vector.multi_reduction <maximumf>, %454, %cst_211 [1] : vector<8x8xf32> to vector<8xf32>
    %456 = vector.shape_cast %455 : vector<8xf32> to vector<8x1xf32>
    %457 = vector.broadcast %456 : vector<8x1xf32> to vector<8x8xf32>
    %458 = arith.subf %454, %457 : vector<8x8xf32>
    %459 = math.exp %458 : vector<8x8xf32>
    %cst_212 = arith.constant dense<0.000000e+00> : vector<8xf32>
    %460 = vector.multi_reduction <add>, %459, %cst_212 [1] : vector<8x8xf32> to vector<8xf32>
    %461 = vector.shape_cast %460 : vector<8xf32> to vector<8x1xf32>
    %462 = vector.broadcast %461 : vector<8x1xf32> to vector<8x8xf32>
    %463 = arith.divf %459, %462 : vector<8x8xf32>
    %cst_213 = arith.constant dense<0.000000e+00> : vector<8x8xf32>
    %464 = tpu.matmul %463, %445, %cst_213 {dimension_numbers = #tpu.dot_dimension_numbers<[1], [0], [0], [1], [0, 0, 1, 1], [], []>} : vector<8x8xf32>, vector<8x8xf32>, vector<8x8xf32> -> vector<8x8xf32>
    %465 = vector.extract_strided_slice %246 {offsets = [24, 0], sizes = [8, 32], strides = [1, 1]} : vector<32x32xf32> to vector<8x32xf32>
    %cst_214 = arith.constant dense<0.000000e+00> : vector<8x32xf32>
    %466 = tpu.matmul %464, %465, %cst_214 {dimension_numbers = #tpu.dot_dimension_numbers<[1], [0], [0], [1], [0, 0, 1, 1], [], []>} : vector<8x8xf32>, vector<8x32xf32>, vector<8x32xf32> -> vector<8x32xf32>
    %467 = arith.addf %442, %466 : vector<8x32xf32>
    %468 = tpu.concatenate %366, %467 in 0 : vector<8x32xf32>, vector<8x32xf32> -> vector<16x32xf32>
    %469 = arith.addf %243, %468 : vector<16x32xf32>
    %470 = arith.mulf %469, %469 : vector<16x32xf32>
    %cst_215 = arith.constant dense<0.000000e+00> : vector<16xf32>
    %471 = vector.multi_reduction <add>, %470, %cst_215 [1] : vector<16x32xf32> to vector<16xf32>
    %472 = vector.shape_cast %471 : vector<16xf32> to vector<16x1xf32>
    %cst_216 = arith.constant 3.200000e+01 : f32
    %473 = vector.broadcast %cst_216 : f32 to vector<16x1xf32>
    %474 = arith.divf %472, %473 : vector<16x1xf32>
    %cst_217 = arith.constant 9.99999997E-7 : f32
    %475 = vector.broadcast %cst_217 : f32 to vector<16x1xf32>
    %476 = arith.addf %474, %475 : vector<16x1xf32>
    %477 = math.rsqrt %476 : vector<16x1xf32>
    %478 = vector.broadcast %477 : vector<16x1xf32> to vector<16x32xf32>
    %479 = arith.mulf %469, %478 : vector<16x32xf32>
    %480 = vector.broadcast %247 : vector<1x32xf32> to vector<16x32xf32>
    %481 = arith.mulf %479, %480 : vector<16x32xf32>
    %cst_218 = arith.constant dense<0.000000e+00> : vector<16x64xf32>
    %482 = tpu.matmul %481, %248, %cst_218 {dimension_numbers = #tpu.dot_dimension_numbers<[1], [0], [0], [1], [0, 0, 1, 1], [], []>} : vector<16x32xf32>, vector<32x64xf32>, vector<16x64xf32> -> vector<16x64xf32>
    %cst_219 = arith.constant 0.000000e+00 : f32
    %483 = vector.broadcast %cst_219 : f32 to vector<16x64xf32>
    %484 = arith.maximumf %482, %483 : vector<16x64xf32>
    %cst_220 = arith.constant dense<0.000000e+00> : vector<16x32xf32>
    %485 = tpu.matmul %484, %249, %cst_220 {dimension_numbers = #tpu.dot_dimension_numbers<[1], [0], [0], [1], [0, 0, 1, 1], [], []>} : vector<16x64xf32>, vector<64x32xf32>, vector<16x32xf32> -> vector<16x32xf32>
    %486 = arith.addf %469, %485 : vector<16x32xf32>
    %c0_221 = arith.constant 0 : index
    %c0_222 = arith.constant 0 : index
    %487 = vector.load %arg19[%c0_221, %c0_222] : memref<1x32xf32, #tpu.memory_space<vmem>>, vector<1x32xf32>
    %488 = arith.mulf %486, %486 : vector<16x32xf32>
    %cst_223 = arith.constant dense<0.000000e+00> : vector<16xf32>
    %489 = vector.multi_reduction <add>, %488, %cst_223 [1] : vector<16x32xf32> to vector<16xf32>
    %490 = vector.shape_cast %489 : vector<16xf32> to vector<16x1xf32>
    %cst_224 = arith.constant 3.200000e+01 : f32
    %491 = vector.broadcast %cst_224 : f32 to vector<16x1xf32>
    %492 = arith.divf %490, %491 : vector<16x1xf32>
    %cst_225 = arith.constant 9.99999997E-7 : f32
    %493 = vector.broadcast %cst_225 : f32 to vector<16x1xf32>
    %494 = arith.addf %492, %493 : vector<16x1xf32>
    %495 = math.rsqrt %494 : vector<16x1xf32>
    %496 = vector.broadcast %495 : vector<16x1xf32> to vector<16x32xf32>
    %497 = arith.mulf %486, %496 : vector<16x32xf32>
    %498 = vector.broadcast %487 : vector<1x32xf32> to vector<16x32xf32>
    %499 = arith.mulf %497, %498 : vector<16x32xf32>
    %c0_226 = arith.constant 0 : index
    %c0_227 = arith.constant 0 : index
    %500 = vector.load %arg1[%c0_226, %c0_227] : memref<16x32xf32, #tpu.memory_space<vmem>>, vector<16x32xf32>
    %c0_228 = arith.constant 0 : index
    %c0_229 = arith.constant 0 : index
    %501 = vector.load %arg20[%c0_228, %c0_229] : memref<1x32xf32, #tpu.memory_space<vmem>>, vector<1x32xf32>
    %c0_230 = arith.constant 0 : index
    %c0_231 = arith.constant 0 : index
    %502 = vector.load %arg21[%c0_230, %c0_231] : memref<32x96xf32, #tpu.memory_space<vmem>>, vector<32x96xf32>
    %c0_232 = arith.constant 0 : index
    %c0_233 = arith.constant 0 : index
    %503 = vector.load %arg22[%c0_232, %c0_233] : memref<32x32xf32, #tpu.memory_space<vmem>>, vector<32x32xf32>
    %c0_234 = arith.constant 0 : index
    %c0_235 = arith.constant 0 : index
    %504 = vector.load %arg23[%c0_234, %c0_235] : memref<1x32xf32, #tpu.memory_space<vmem>>, vector<1x32xf32>
    %c0_236 = arith.constant 0 : index
    %c0_237 = arith.constant 0 : index
    %505 = vector.load %arg24[%c0_236, %c0_237] : memref<32x32xf32, #tpu.memory_space<vmem>>, vector<32x32xf32>
    %c0_238 = arith.constant 0 : index
    %c0_239 = arith.constant 0 : index
    %506 = vector.load %arg25[%c0_238, %c0_239] : memref<32x64xf32, #tpu.memory_space<vmem>>, vector<32x64xf32>
    %c0_240 = arith.constant 0 : index
    %c0_241 = arith.constant 0 : index
    %507 = vector.load %arg26[%c0_240, %c0_241] : memref<32x32xf32, #tpu.memory_space<vmem>>, vector<32x32xf32>
    %c0_242 = arith.constant 0 : index
    %c0_243 = arith.constant 0 : index
    %508 = vector.load %arg27[%c0_242, %c0_243] : memref<1x32xf32, #tpu.memory_space<vmem>>, vector<1x32xf32>
    %c0_244 = arith.constant 0 : index
    %c0_245 = arith.constant 0 : index
    %509 = vector.load %arg28[%c0_244, %c0_245] : memref<32x64xf32, #tpu.memory_space<vmem>>, vector<32x64xf32>
    %c0_246 = arith.constant 0 : index
    %c0_247 = arith.constant 0 : index
    %510 = vector.load %arg29[%c0_246, %c0_247] : memref<64x32xf32, #tpu.memory_space<vmem>>, vector<64x32xf32>
    %511 = arith.mulf %500, %500 : vector<16x32xf32>
    %cst_248 = arith.constant dense<0.000000e+00> : vector<16xf32>
    %512 = vector.multi_reduction <add>, %511, %cst_248 [1] : vector<16x32xf32> to vector<16xf32>
    %513 = vector.shape_cast %512 : vector<16xf32> to vector<16x1xf32>
    %cst_249 = arith.constant 3.200000e+01 : f32
    %514 = vector.broadcast %cst_249 : f32 to vector<16x1xf32>
    %515 = arith.divf %513, %514 : vector<16x1xf32>
    %cst_250 = arith.constant 9.99999997E-7 : f32
    %516 = vector.broadcast %cst_250 : f32 to vector<16x1xf32>
    %517 = arith.addf %515, %516 : vector<16x1xf32>
    %518 = math.rsqrt %517 : vector<16x1xf32>
    %519 = vector.broadcast %518 : vector<16x1xf32> to vector<16x32xf32>
    %520 = arith.mulf %500, %519 : vector<16x32xf32>
    %521 = vector.broadcast %501 : vector<1x32xf32> to vector<16x32xf32>
    %522 = arith.mulf %520, %521 : vector<16x32xf32>
    %cst_251 = arith.constant dense<0.000000e+00> : vector<16x96xf32>
    %523 = tpu.matmul %522, %502, %cst_251 {dimension_numbers = #tpu.dot_dimension_numbers<[1], [0], [0], [1], [0, 0, 1, 1], [], []>} : vector<16x32xf32>, vector<32x96xf32>, vector<16x96xf32> -> vector<16x96xf32>
    %524 = vector.extract_strided_slice %523 {offsets = [0, 0], sizes = [16, 32], strides = [1, 1]} : vector<16x96xf32> to vector<16x32xf32>
    %525 = vector.extract_strided_slice %523 {offsets = [0, 32], sizes = [16, 32], strides = [1, 1]} : vector<16x96xf32> to vector<16x32xf32>
    %526 = vector.extract_strided_slice %523 {offsets = [0, 64], sizes = [16, 32], strides = [1, 1]} : vector<16x96xf32> to vector<16x32xf32>
    %cst_252 = arith.constant 0.000000e+00 : f32
    %527 = vector.broadcast %cst_252 : f32 to vector<8x32xf32>
    %528 = vector.extract_strided_slice %524 {offsets = [0, 0], sizes = [8, 8], strides = [1, 1]} : vector<16x32xf32> to vector<8x8xf32>
    %529 = vector.extract_strided_slice %525 {offsets = [0, 0], sizes = [8, 8], strides = [1, 1]} : vector<16x32xf32> to vector<8x8xf32>
    %530 = vector.extract_strided_slice %526 {offsets = [0, 0], sizes = [8, 8], strides = [1, 1]} : vector<16x32xf32> to vector<8x8xf32>
    %531 = tpu.transpose %529, [1, 0] : vector<8x8xf32> -> vector<8x8xf32>
    %cst_253 = arith.constant dense<0.000000e+00> : vector<8x8xf32>
    %532 = tpu.matmul %528, %531, %cst_253 {dimension_numbers = #tpu.dot_dimension_numbers<[1], [0], [0], [1], [0, 0, 1, 1], [], []>} : vector<8x8xf32>, vector<8x8xf32>, vector<8x8xf32> -> vector<8x8xf32>
    %c0_254 = arith.constant 0 : index
    %c0_255 = arith.constant 0 : index
    %c0_256 = arith.constant 0 : index
    %533 = vector.load %arg3[%c0_254, %c0_255, %c0_256] : memref<4x8x8xf32, #tpu.memory_space<vmem>>, vector<1x8x8xf32>
    %534 = vector.shape_cast %533 : vector<1x8x8xf32> to vector<8x8xf32>
    %535 = arith.addf %532, %534 : vector<8x8xf32>
    %cst_257 = arith.constant dense<0xFF800000> : vector<8xf32>
    %536 = vector.multi_reduction <maximumf>, %535, %cst_257 [1] : vector<8x8xf32> to vector<8xf32>
    %537 = vector.shape_cast %536 : vector<8xf32> to vector<8x1xf32>
    %538 = vector.broadcast %537 : vector<8x1xf32> to vector<8x8xf32>
    %539 = arith.subf %535, %538 : vector<8x8xf32>
    %540 = math.exp %539 : vector<8x8xf32>
    %cst_258 = arith.constant dense<0.000000e+00> : vector<8xf32>
    %541 = vector.multi_reduction <add>, %540, %cst_258 [1] : vector<8x8xf32> to vector<8xf32>
    %542 = vector.shape_cast %541 : vector<8xf32> to vector<8x1xf32>
    %543 = vector.broadcast %542 : vector<8x1xf32> to vector<8x8xf32>
    %544 = arith.divf %540, %543 : vector<8x8xf32>
    %cst_259 = arith.constant dense<0.000000e+00> : vector<8x8xf32>
    %545 = tpu.matmul %544, %530, %cst_259 {dimension_numbers = #tpu.dot_dimension_numbers<[1], [0], [0], [1], [0, 0, 1, 1], [], []>} : vector<8x8xf32>, vector<8x8xf32>, vector<8x8xf32> -> vector<8x8xf32>
    %546 = vector.extract_strided_slice %503 {offsets = [0, 0], sizes = [8, 32], strides = [1, 1]} : vector<32x32xf32> to vector<8x32xf32>
    %cst_260 = arith.constant dense<0.000000e+00> : vector<8x32xf32>
    %547 = tpu.matmul %545, %546, %cst_260 {dimension_numbers = #tpu.dot_dimension_numbers<[1], [0], [0], [1], [0, 0, 1, 1], [], []>} : vector<8x8xf32>, vector<8x32xf32>, vector<8x32xf32> -> vector<8x32xf32>
    %548 = arith.addf %527, %547 : vector<8x32xf32>
    %549 = vector.extract_strided_slice %524 {offsets = [0, 8], sizes = [8, 8], strides = [1, 1]} : vector<16x32xf32> to vector<8x8xf32>
    %550 = vector.extract_strided_slice %525 {offsets = [0, 8], sizes = [8, 8], strides = [1, 1]} : vector<16x32xf32> to vector<8x8xf32>
    %551 = vector.extract_strided_slice %526 {offsets = [0, 8], sizes = [8, 8], strides = [1, 1]} : vector<16x32xf32> to vector<8x8xf32>
    %552 = tpu.transpose %550, [1, 0] : vector<8x8xf32> -> vector<8x8xf32>
    %cst_261 = arith.constant dense<0.000000e+00> : vector<8x8xf32>
    %553 = tpu.matmul %549, %552, %cst_261 {dimension_numbers = #tpu.dot_dimension_numbers<[1], [0], [0], [1], [0, 0, 1, 1], [], []>} : vector<8x8xf32>, vector<8x8xf32>, vector<8x8xf32> -> vector<8x8xf32>
    %c1_262 = arith.constant 1 : index
    %c0_263 = arith.constant 0 : index
    %c0_264 = arith.constant 0 : index
    %554 = vector.load %arg3[%c1_262, %c0_263, %c0_264] : memref<4x8x8xf32, #tpu.memory_space<vmem>>, vector<1x8x8xf32>
    %555 = vector.shape_cast %554 : vector<1x8x8xf32> to vector<8x8xf32>
    %556 = arith.addf %553, %555 : vector<8x8xf32>
    %cst_265 = arith.constant dense<0xFF800000> : vector<8xf32>
    %557 = vector.multi_reduction <maximumf>, %556, %cst_265 [1] : vector<8x8xf32> to vector<8xf32>
    %558 = vector.shape_cast %557 : vector<8xf32> to vector<8x1xf32>
    %559 = vector.broadcast %558 : vector<8x1xf32> to vector<8x8xf32>
    %560 = arith.subf %556, %559 : vector<8x8xf32>
    %561 = math.exp %560 : vector<8x8xf32>
    %cst_266 = arith.constant dense<0.000000e+00> : vector<8xf32>
    %562 = vector.multi_reduction <add>, %561, %cst_266 [1] : vector<8x8xf32> to vector<8xf32>
    %563 = vector.shape_cast %562 : vector<8xf32> to vector<8x1xf32>
    %564 = vector.broadcast %563 : vector<8x1xf32> to vector<8x8xf32>
    %565 = arith.divf %561, %564 : vector<8x8xf32>
    %cst_267 = arith.constant dense<0.000000e+00> : vector<8x8xf32>
    %566 = tpu.matmul %565, %551, %cst_267 {dimension_numbers = #tpu.dot_dimension_numbers<[1], [0], [0], [1], [0, 0, 1, 1], [], []>} : vector<8x8xf32>, vector<8x8xf32>, vector<8x8xf32> -> vector<8x8xf32>
    %567 = vector.extract_strided_slice %503 {offsets = [8, 0], sizes = [8, 32], strides = [1, 1]} : vector<32x32xf32> to vector<8x32xf32>
    %cst_268 = arith.constant dense<0.000000e+00> : vector<8x32xf32>
    %568 = tpu.matmul %566, %567, %cst_268 {dimension_numbers = #tpu.dot_dimension_numbers<[1], [0], [0], [1], [0, 0, 1, 1], [], []>} : vector<8x8xf32>, vector<8x32xf32>, vector<8x32xf32> -> vector<8x32xf32>
    %569 = arith.addf %548, %568 : vector<8x32xf32>
    %570 = vector.extract_strided_slice %524 {offsets = [0, 16], sizes = [8, 8], strides = [1, 1]} : vector<16x32xf32> to vector<8x8xf32>
    %571 = vector.extract_strided_slice %525 {offsets = [0, 16], sizes = [8, 8], strides = [1, 1]} : vector<16x32xf32> to vector<8x8xf32>
    %572 = vector.extract_strided_slice %526 {offsets = [0, 16], sizes = [8, 8], strides = [1, 1]} : vector<16x32xf32> to vector<8x8xf32>
    %573 = tpu.transpose %571, [1, 0] : vector<8x8xf32> -> vector<8x8xf32>
    %cst_269 = arith.constant dense<0.000000e+00> : vector<8x8xf32>
    %574 = tpu.matmul %570, %573, %cst_269 {dimension_numbers = #tpu.dot_dimension_numbers<[1], [0], [0], [1], [0, 0, 1, 1], [], []>} : vector<8x8xf32>, vector<8x8xf32>, vector<8x8xf32> -> vector<8x8xf32>
    %c2_270 = arith.constant 2 : index
    %c0_271 = arith.constant 0 : index
    %c0_272 = arith.constant 0 : index
    %575 = vector.load %arg3[%c2_270, %c0_271, %c0_272] : memref<4x8x8xf32, #tpu.memory_space<vmem>>, vector<1x8x8xf32>
    %576 = vector.shape_cast %575 : vector<1x8x8xf32> to vector<8x8xf32>
    %577 = arith.addf %574, %576 : vector<8x8xf32>
    %cst_273 = arith.constant dense<0xFF800000> : vector<8xf32>
    %578 = vector.multi_reduction <maximumf>, %577, %cst_273 [1] : vector<8x8xf32> to vector<8xf32>
    %579 = vector.shape_cast %578 : vector<8xf32> to vector<8x1xf32>
    %580 = vector.broadcast %579 : vector<8x1xf32> to vector<8x8xf32>
    %581 = arith.subf %577, %580 : vector<8x8xf32>
    %582 = math.exp %581 : vector<8x8xf32>
    %cst_274 = arith.constant dense<0.000000e+00> : vector<8xf32>
    %583 = vector.multi_reduction <add>, %582, %cst_274 [1] : vector<8x8xf32> to vector<8xf32>
    %584 = vector.shape_cast %583 : vector<8xf32> to vector<8x1xf32>
    %585 = vector.broadcast %584 : vector<8x1xf32> to vector<8x8xf32>
    %586 = arith.divf %582, %585 : vector<8x8xf32>
    %cst_275 = arith.constant dense<0.000000e+00> : vector<8x8xf32>
    %587 = tpu.matmul %586, %572, %cst_275 {dimension_numbers = #tpu.dot_dimension_numbers<[1], [0], [0], [1], [0, 0, 1, 1], [], []>} : vector<8x8xf32>, vector<8x8xf32>, vector<8x8xf32> -> vector<8x8xf32>
    %588 = vector.extract_strided_slice %503 {offsets = [16, 0], sizes = [8, 32], strides = [1, 1]} : vector<32x32xf32> to vector<8x32xf32>
    %cst_276 = arith.constant dense<0.000000e+00> : vector<8x32xf32>
    %589 = tpu.matmul %587, %588, %cst_276 {dimension_numbers = #tpu.dot_dimension_numbers<[1], [0], [0], [1], [0, 0, 1, 1], [], []>} : vector<8x8xf32>, vector<8x32xf32>, vector<8x32xf32> -> vector<8x32xf32>
    %590 = arith.addf %569, %589 : vector<8x32xf32>
    %591 = vector.extract_strided_slice %524 {offsets = [0, 24], sizes = [8, 8], strides = [1, 1]} : vector<16x32xf32> to vector<8x8xf32>
    %592 = vector.extract_strided_slice %525 {offsets = [0, 24], sizes = [8, 8], strides = [1, 1]} : vector<16x32xf32> to vector<8x8xf32>
    %593 = vector.extract_strided_slice %526 {offsets = [0, 24], sizes = [8, 8], strides = [1, 1]} : vector<16x32xf32> to vector<8x8xf32>
    %594 = tpu.transpose %592, [1, 0] : vector<8x8xf32> -> vector<8x8xf32>
    %cst_277 = arith.constant dense<0.000000e+00> : vector<8x8xf32>
    %595 = tpu.matmul %591, %594, %cst_277 {dimension_numbers = #tpu.dot_dimension_numbers<[1], [0], [0], [1], [0, 0, 1, 1], [], []>} : vector<8x8xf32>, vector<8x8xf32>, vector<8x8xf32> -> vector<8x8xf32>
    %c3_278 = arith.constant 3 : index
    %c0_279 = arith.constant 0 : index
    %c0_280 = arith.constant 0 : index
    %596 = vector.load %arg3[%c3_278, %c0_279, %c0_280] : memref<4x8x8xf32, #tpu.memory_space<vmem>>, vector<1x8x8xf32>
    %597 = vector.shape_cast %596 : vector<1x8x8xf32> to vector<8x8xf32>
    %598 = arith.addf %595, %597 : vector<8x8xf32>
    %cst_281 = arith.constant dense<0xFF800000> : vector<8xf32>
    %599 = vector.multi_reduction <maximumf>, %598, %cst_281 [1] : vector<8x8xf32> to vector<8xf32>
    %600 = vector.shape_cast %599 : vector<8xf32> to vector<8x1xf32>
    %601 = vector.broadcast %600 : vector<8x1xf32> to vector<8x8xf32>
    %602 = arith.subf %598, %601 : vector<8x8xf32>
    %603 = math.exp %602 : vector<8x8xf32>
    %cst_282 = arith.constant dense<0.000000e+00> : vector<8xf32>
    %604 = vector.multi_reduction <add>, %603, %cst_282 [1] : vector<8x8xf32> to vector<8xf32>
    %605 = vector.shape_cast %604 : vector<8xf32> to vector<8x1xf32>
    %606 = vector.broadcast %605 : vector<8x1xf32> to vector<8x8xf32>
    %607 = arith.divf %603, %606 : vector<8x8xf32>
    %cst_283 = arith.constant dense<0.000000e+00> : vector<8x8xf32>
    %608 = tpu.matmul %607, %593, %cst_283 {dimension_numbers = #tpu.dot_dimension_numbers<[1], [0], [0], [1], [0, 0, 1, 1], [], []>} : vector<8x8xf32>, vector<8x8xf32>, vector<8x8xf32> -> vector<8x8xf32>
    %609 = vector.extract_strided_slice %503 {offsets = [24, 0], sizes = [8, 32], strides = [1, 1]} : vector<32x32xf32> to vector<8x32xf32>
    %cst_284 = arith.constant dense<0.000000e+00> : vector<8x32xf32>
    %610 = tpu.matmul %608, %609, %cst_284 {dimension_numbers = #tpu.dot_dimension_numbers<[1], [0], [0], [1], [0, 0, 1, 1], [], []>} : vector<8x8xf32>, vector<8x32xf32>, vector<8x32xf32> -> vector<8x32xf32>
    %611 = arith.addf %590, %610 : vector<8x32xf32>
    %cst_285 = arith.constant 0.000000e+00 : f32
    %612 = vector.broadcast %cst_285 : f32 to vector<8x32xf32>
    %613 = vector.extract_strided_slice %524 {offsets = [8, 0], sizes = [8, 8], strides = [1, 1]} : vector<16x32xf32> to vector<8x8xf32>
    %614 = vector.extract_strided_slice %525 {offsets = [8, 0], sizes = [8, 8], strides = [1, 1]} : vector<16x32xf32> to vector<8x8xf32>
    %615 = vector.extract_strided_slice %526 {offsets = [8, 0], sizes = [8, 8], strides = [1, 1]} : vector<16x32xf32> to vector<8x8xf32>
    %616 = tpu.transpose %614, [1, 0] : vector<8x8xf32> -> vector<8x8xf32>
    %cst_286 = arith.constant dense<0.000000e+00> : vector<8x8xf32>
    %617 = tpu.matmul %613, %616, %cst_286 {dimension_numbers = #tpu.dot_dimension_numbers<[1], [0], [0], [1], [0, 0, 1, 1], [], []>} : vector<8x8xf32>, vector<8x8xf32>, vector<8x8xf32> -> vector<8x8xf32>
    %c0_287 = arith.constant 0 : index
    %c0_288 = arith.constant 0 : index
    %c0_289 = arith.constant 0 : index
    %618 = vector.load %arg3[%c0_287, %c0_288, %c0_289] : memref<4x8x8xf32, #tpu.memory_space<vmem>>, vector<1x8x8xf32>
    %619 = vector.shape_cast %618 : vector<1x8x8xf32> to vector<8x8xf32>
    %620 = arith.addf %617, %619 : vector<8x8xf32>
    %cst_290 = arith.constant dense<0xFF800000> : vector<8xf32>
    %621 = vector.multi_reduction <maximumf>, %620, %cst_290 [1] : vector<8x8xf32> to vector<8xf32>
    %622 = vector.shape_cast %621 : vector<8xf32> to vector<8x1xf32>
    %623 = vector.broadcast %622 : vector<8x1xf32> to vector<8x8xf32>
    %624 = arith.subf %620, %623 : vector<8x8xf32>
    %625 = math.exp %624 : vector<8x8xf32>
    %cst_291 = arith.constant dense<0.000000e+00> : vector<8xf32>
    %626 = vector.multi_reduction <add>, %625, %cst_291 [1] : vector<8x8xf32> to vector<8xf32>
    %627 = vector.shape_cast %626 : vector<8xf32> to vector<8x1xf32>
    %628 = vector.broadcast %627 : vector<8x1xf32> to vector<8x8xf32>
    %629 = arith.divf %625, %628 : vector<8x8xf32>
    %cst_292 = arith.constant dense<0.000000e+00> : vector<8x8xf32>
    %630 = tpu.matmul %629, %615, %cst_292 {dimension_numbers = #tpu.dot_dimension_numbers<[1], [0], [0], [1], [0, 0, 1, 1], [], []>} : vector<8x8xf32>, vector<8x8xf32>, vector<8x8xf32> -> vector<8x8xf32>
    %631 = vector.extract_strided_slice %503 {offsets = [0, 0], sizes = [8, 32], strides = [1, 1]} : vector<32x32xf32> to vector<8x32xf32>
    %cst_293 = arith.constant dense<0.000000e+00> : vector<8x32xf32>
    %632 = tpu.matmul %630, %631, %cst_293 {dimension_numbers = #tpu.dot_dimension_numbers<[1], [0], [0], [1], [0, 0, 1, 1], [], []>} : vector<8x8xf32>, vector<8x32xf32>, vector<8x32xf32> -> vector<8x32xf32>
    %633 = arith.addf %612, %632 : vector<8x32xf32>
    %634 = vector.extract_strided_slice %524 {offsets = [8, 8], sizes = [8, 8], strides = [1, 1]} : vector<16x32xf32> to vector<8x8xf32>
    %635 = vector.extract_strided_slice %525 {offsets = [8, 8], sizes = [8, 8], strides = [1, 1]} : vector<16x32xf32> to vector<8x8xf32>
    %636 = vector.extract_strided_slice %526 {offsets = [8, 8], sizes = [8, 8], strides = [1, 1]} : vector<16x32xf32> to vector<8x8xf32>
    %637 = tpu.transpose %635, [1, 0] : vector<8x8xf32> -> vector<8x8xf32>
    %cst_294 = arith.constant dense<0.000000e+00> : vector<8x8xf32>
    %638 = tpu.matmul %634, %637, %cst_294 {dimension_numbers = #tpu.dot_dimension_numbers<[1], [0], [0], [1], [0, 0, 1, 1], [], []>} : vector<8x8xf32>, vector<8x8xf32>, vector<8x8xf32> -> vector<8x8xf32>
    %c1_295 = arith.constant 1 : index
    %c0_296 = arith.constant 0 : index
    %c0_297 = arith.constant 0 : index
    %639 = vector.load %arg3[%c1_295, %c0_296, %c0_297] : memref<4x8x8xf32, #tpu.memory_space<vmem>>, vector<1x8x8xf32>
    %640 = vector.shape_cast %639 : vector<1x8x8xf32> to vector<8x8xf32>
    %641 = arith.addf %638, %640 : vector<8x8xf32>
    %cst_298 = arith.constant dense<0xFF800000> : vector<8xf32>
    %642 = vector.multi_reduction <maximumf>, %641, %cst_298 [1] : vector<8x8xf32> to vector<8xf32>
    %643 = vector.shape_cast %642 : vector<8xf32> to vector<8x1xf32>
    %644 = vector.broadcast %643 : vector<8x1xf32> to vector<8x8xf32>
    %645 = arith.subf %641, %644 : vector<8x8xf32>
    %646 = math.exp %645 : vector<8x8xf32>
    %cst_299 = arith.constant dense<0.000000e+00> : vector<8xf32>
    %647 = vector.multi_reduction <add>, %646, %cst_299 [1] : vector<8x8xf32> to vector<8xf32>
    %648 = vector.shape_cast %647 : vector<8xf32> to vector<8x1xf32>
    %649 = vector.broadcast %648 : vector<8x1xf32> to vector<8x8xf32>
    %650 = arith.divf %646, %649 : vector<8x8xf32>
    %cst_300 = arith.constant dense<0.000000e+00> : vector<8x8xf32>
    %651 = tpu.matmul %650, %636, %cst_300 {dimension_numbers = #tpu.dot_dimension_numbers<[1], [0], [0], [1], [0, 0, 1, 1], [], []>} : vector<8x8xf32>, vector<8x8xf32>, vector<8x8xf32> -> vector<8x8xf32>
    %652 = vector.extract_strided_slice %503 {offsets = [8, 0], sizes = [8, 32], strides = [1, 1]} : vector<32x32xf32> to vector<8x32xf32>
    %cst_301 = arith.constant dense<0.000000e+00> : vector<8x32xf32>
    %653 = tpu.matmul %651, %652, %cst_301 {dimension_numbers = #tpu.dot_dimension_numbers<[1], [0], [0], [1], [0, 0, 1, 1], [], []>} : vector<8x8xf32>, vector<8x32xf32>, vector<8x32xf32> -> vector<8x32xf32>
    %654 = arith.addf %633, %653 : vector<8x32xf32>
    %655 = vector.extract_strided_slice %524 {offsets = [8, 16], sizes = [8, 8], strides = [1, 1]} : vector<16x32xf32> to vector<8x8xf32>
    %656 = vector.extract_strided_slice %525 {offsets = [8, 16], sizes = [8, 8], strides = [1, 1]} : vector<16x32xf32> to vector<8x8xf32>
    %657 = vector.extract_strided_slice %526 {offsets = [8, 16], sizes = [8, 8], strides = [1, 1]} : vector<16x32xf32> to vector<8x8xf32>
    %658 = tpu.transpose %656, [1, 0] : vector<8x8xf32> -> vector<8x8xf32>
    %cst_302 = arith.constant dense<0.000000e+00> : vector<8x8xf32>
    %659 = tpu.matmul %655, %658, %cst_302 {dimension_numbers = #tpu.dot_dimension_numbers<[1], [0], [0], [1], [0, 0, 1, 1], [], []>} : vector<8x8xf32>, vector<8x8xf32>, vector<8x8xf32> -> vector<8x8xf32>
    %c2_303 = arith.constant 2 : index
    %c0_304 = arith.constant 0 : index
    %c0_305 = arith.constant 0 : index
    %660 = vector.load %arg3[%c2_303, %c0_304, %c0_305] : memref<4x8x8xf32, #tpu.memory_space<vmem>>, vector<1x8x8xf32>
    %661 = vector.shape_cast %660 : vector<1x8x8xf32> to vector<8x8xf32>
    %662 = arith.addf %659, %661 : vector<8x8xf32>
    %cst_306 = arith.constant dense<0xFF800000> : vector<8xf32>
    %663 = vector.multi_reduction <maximumf>, %662, %cst_306 [1] : vector<8x8xf32> to vector<8xf32>
    %664 = vector.shape_cast %663 : vector<8xf32> to vector<8x1xf32>
    %665 = vector.broadcast %664 : vector<8x1xf32> to vector<8x8xf32>
    %666 = arith.subf %662, %665 : vector<8x8xf32>
    %667 = math.exp %666 : vector<8x8xf32>
    %cst_307 = arith.constant dense<0.000000e+00> : vector<8xf32>
    %668 = vector.multi_reduction <add>, %667, %cst_307 [1] : vector<8x8xf32> to vector<8xf32>
    %669 = vector.shape_cast %668 : vector<8xf32> to vector<8x1xf32>
    %670 = vector.broadcast %669 : vector<8x1xf32> to vector<8x8xf32>
    %671 = arith.divf %667, %670 : vector<8x8xf32>
    %cst_308 = arith.constant dense<0.000000e+00> : vector<8x8xf32>
    %672 = tpu.matmul %671, %657, %cst_308 {dimension_numbers = #tpu.dot_dimension_numbers<[1], [0], [0], [1], [0, 0, 1, 1], [], []>} : vector<8x8xf32>, vector<8x8xf32>, vector<8x8xf32> -> vector<8x8xf32>
    %673 = vector.extract_strided_slice %503 {offsets = [16, 0], sizes = [8, 32], strides = [1, 1]} : vector<32x32xf32> to vector<8x32xf32>
    %cst_309 = arith.constant dense<0.000000e+00> : vector<8x32xf32>
    %674 = tpu.matmul %672, %673, %cst_309 {dimension_numbers = #tpu.dot_dimension_numbers<[1], [0], [0], [1], [0, 0, 1, 1], [], []>} : vector<8x8xf32>, vector<8x32xf32>, vector<8x32xf32> -> vector<8x32xf32>
    %675 = arith.addf %654, %674 : vector<8x32xf32>
    %676 = vector.extract_strided_slice %524 {offsets = [8, 24], sizes = [8, 8], strides = [1, 1]} : vector<16x32xf32> to vector<8x8xf32>
    %677 = vector.extract_strided_slice %525 {offsets = [8, 24], sizes = [8, 8], strides = [1, 1]} : vector<16x32xf32> to vector<8x8xf32>
    %678 = vector.extract_strided_slice %526 {offsets = [8, 24], sizes = [8, 8], strides = [1, 1]} : vector<16x32xf32> to vector<8x8xf32>
    %679 = tpu.transpose %677, [1, 0] : vector<8x8xf32> -> vector<8x8xf32>
    %cst_310 = arith.constant dense<0.000000e+00> : vector<8x8xf32>
    %680 = tpu.matmul %676, %679, %cst_310 {dimension_numbers = #tpu.dot_dimension_numbers<[1], [0], [0], [1], [0, 0, 1, 1], [], []>} : vector<8x8xf32>, vector<8x8xf32>, vector<8x8xf32> -> vector<8x8xf32>
    %c3_311 = arith.constant 3 : index
    %c0_312 = arith.constant 0 : index
    %c0_313 = arith.constant 0 : index
    %681 = vector.load %arg3[%c3_311, %c0_312, %c0_313] : memref<4x8x8xf32, #tpu.memory_space<vmem>>, vector<1x8x8xf32>
    %682 = vector.shape_cast %681 : vector<1x8x8xf32> to vector<8x8xf32>
    %683 = arith.addf %680, %682 : vector<8x8xf32>
    %cst_314 = arith.constant dense<0xFF800000> : vector<8xf32>
    %684 = vector.multi_reduction <maximumf>, %683, %cst_314 [1] : vector<8x8xf32> to vector<8xf32>
    %685 = vector.shape_cast %684 : vector<8xf32> to vector<8x1xf32>
    %686 = vector.broadcast %685 : vector<8x1xf32> to vector<8x8xf32>
    %687 = arith.subf %683, %686 : vector<8x8xf32>
    %688 = math.exp %687 : vector<8x8xf32>
    %cst_315 = arith.constant dense<0.000000e+00> : vector<8xf32>
    %689 = vector.multi_reduction <add>, %688, %cst_315 [1] : vector<8x8xf32> to vector<8xf32>
    %690 = vector.shape_cast %689 : vector<8xf32> to vector<8x1xf32>
    %691 = vector.broadcast %690 : vector<8x1xf32> to vector<8x8xf32>
    %692 = arith.divf %688, %691 : vector<8x8xf32>
    %cst_316 = arith.constant dense<0.000000e+00> : vector<8x8xf32>
    %693 = tpu.matmul %692, %678, %cst_316 {dimension_numbers = #tpu.dot_dimension_numbers<[1], [0], [0], [1], [0, 0, 1, 1], [], []>} : vector<8x8xf32>, vector<8x8xf32>, vector<8x8xf32> -> vector<8x8xf32>
    %694 = vector.extract_strided_slice %503 {offsets = [24, 0], sizes = [8, 32], strides = [1, 1]} : vector<32x32xf32> to vector<8x32xf32>
    %cst_317 = arith.constant dense<0.000000e+00> : vector<8x32xf32>
    %695 = tpu.matmul %693, %694, %cst_317 {dimension_numbers = #tpu.dot_dimension_numbers<[1], [0], [0], [1], [0, 0, 1, 1], [], []>} : vector<8x8xf32>, vector<8x32xf32>, vector<8x32xf32> -> vector<8x32xf32>
    %696 = arith.addf %675, %695 : vector<8x32xf32>
    %697 = tpu.concatenate %611, %696 in 0 : vector<8x32xf32>, vector<8x32xf32> -> vector<16x32xf32>
    %698 = arith.addf %500, %697 : vector<16x32xf32>
    %699 = arith.mulf %698, %698 : vector<16x32xf32>
    %cst_318 = arith.constant dense<0.000000e+00> : vector<16xf32>
    %700 = vector.multi_reduction <add>, %699, %cst_318 [1] : vector<16x32xf32> to vector<16xf32>
    %701 = vector.shape_cast %700 : vector<16xf32> to vector<16x1xf32>
    %cst_319 = arith.constant 3.200000e+01 : f32
    %702 = vector.broadcast %cst_319 : f32 to vector<16x1xf32>
    %703 = arith.divf %701, %702 : vector<16x1xf32>
    %cst_320 = arith.constant 9.99999997E-7 : f32
    %704 = vector.broadcast %cst_320 : f32 to vector<16x1xf32>
    %705 = arith.addf %703, %704 : vector<16x1xf32>
    %706 = math.rsqrt %705 : vector<16x1xf32>
    %707 = vector.broadcast %706 : vector<16x1xf32> to vector<16x32xf32>
    %708 = arith.mulf %698, %707 : vector<16x32xf32>
    %709 = vector.broadcast %504 : vector<1x32xf32> to vector<16x32xf32>
    %710 = arith.mulf %708, %709 : vector<16x32xf32>
    %cst_321 = arith.constant dense<0.000000e+00> : vector<16x32xf32>
    %711 = tpu.matmul %710, %505, %cst_321 {dimension_numbers = #tpu.dot_dimension_numbers<[1], [0], [0], [1], [0, 0, 1, 1], [], []>} : vector<16x32xf32>, vector<32x32xf32>, vector<16x32xf32> -> vector<16x32xf32>
    %cst_322 = arith.constant dense<0.000000e+00> : vector<16x64xf32>
    %712 = tpu.matmul %499, %506, %cst_322 {dimension_numbers = #tpu.dot_dimension_numbers<[1], [0], [0], [1], [0, 0, 1, 1], [], []>} : vector<16x32xf32>, vector<32x64xf32>, vector<16x64xf32> -> vector<16x64xf32>
    %713 = vector.extract_strided_slice %712 {offsets = [0, 0], sizes = [16, 32], strides = [1, 1]} : vector<16x64xf32> to vector<16x32xf32>
    %714 = vector.extract_strided_slice %712 {offsets = [0, 32], sizes = [16, 32], strides = [1, 1]} : vector<16x64xf32> to vector<16x32xf32>
    %cst_323 = arith.constant 0.000000e+00 : f32
    %715 = vector.broadcast %cst_323 : f32 to vector<8x32xf32>
    %716 = vector.extract_strided_slice %711 {offsets = [0, 0], sizes = [8, 8], strides = [1, 1]} : vector<16x32xf32> to vector<8x8xf32>
    %717 = vector.extract_strided_slice %713 {offsets = [0, 0], sizes = [8, 8], strides = [1, 1]} : vector<16x32xf32> to vector<8x8xf32>
    %718 = vector.extract_strided_slice %714 {offsets = [0, 0], sizes = [8, 8], strides = [1, 1]} : vector<16x32xf32> to vector<8x8xf32>
    %719 = tpu.transpose %717, [1, 0] : vector<8x8xf32> -> vector<8x8xf32>
    %cst_324 = arith.constant dense<0.000000e+00> : vector<8x8xf32>
    %720 = tpu.matmul %716, %719, %cst_324 {dimension_numbers = #tpu.dot_dimension_numbers<[1], [0], [0], [1], [0, 0, 1, 1], [], []>} : vector<8x8xf32>, vector<8x8xf32>, vector<8x8xf32> -> vector<8x8xf32>
    %c0_325 = arith.constant 0 : index
    %c0_326 = arith.constant 0 : index
    %c0_327 = arith.constant 0 : index
    %721 = vector.load %arg4[%c0_325, %c0_326, %c0_327] : memref<2x1x8xf32, #tpu.memory_space<vmem>>, vector<1x1x8xf32>
    %722 = vector.shape_cast %721 : vector<1x1x8xf32> to vector<1x8xf32>
    %723 = vector.broadcast %722 : vector<1x8xf32> to vector<8x8xf32>
    %724 = arith.addf %720, %723 : vector<8x8xf32>
    %cst_328 = arith.constant dense<0xFF800000> : vector<8xf32>
    %725 = vector.multi_reduction <maximumf>, %724, %cst_328 [1] : vector<8x8xf32> to vector<8xf32>
    %726 = vector.shape_cast %725 : vector<8xf32> to vector<8x1xf32>
    %727 = vector.broadcast %726 : vector<8x1xf32> to vector<8x8xf32>
    %728 = arith.subf %724, %727 : vector<8x8xf32>
    %729 = math.exp %728 : vector<8x8xf32>
    %cst_329 = arith.constant dense<0.000000e+00> : vector<8xf32>
    %730 = vector.multi_reduction <add>, %729, %cst_329 [1] : vector<8x8xf32> to vector<8xf32>
    %731 = vector.shape_cast %730 : vector<8xf32> to vector<8x1xf32>
    %732 = vector.broadcast %731 : vector<8x1xf32> to vector<8x8xf32>
    %733 = arith.divf %729, %732 : vector<8x8xf32>
    %cst_330 = arith.constant dense<0.000000e+00> : vector<8x8xf32>
    %734 = tpu.matmul %733, %718, %cst_330 {dimension_numbers = #tpu.dot_dimension_numbers<[1], [0], [0], [1], [0, 0, 1, 1], [], []>} : vector<8x8xf32>, vector<8x8xf32>, vector<8x8xf32> -> vector<8x8xf32>
    %735 = vector.extract_strided_slice %507 {offsets = [0, 0], sizes = [8, 32], strides = [1, 1]} : vector<32x32xf32> to vector<8x32xf32>
    %cst_331 = arith.constant dense<0.000000e+00> : vector<8x32xf32>
    %736 = tpu.matmul %734, %735, %cst_331 {dimension_numbers = #tpu.dot_dimension_numbers<[1], [0], [0], [1], [0, 0, 1, 1], [], []>} : vector<8x8xf32>, vector<8x32xf32>, vector<8x32xf32> -> vector<8x32xf32>
    %737 = arith.addf %715, %736 : vector<8x32xf32>
    %738 = vector.extract_strided_slice %711 {offsets = [0, 8], sizes = [8, 8], strides = [1, 1]} : vector<16x32xf32> to vector<8x8xf32>
    %739 = vector.extract_strided_slice %713 {offsets = [0, 8], sizes = [8, 8], strides = [1, 1]} : vector<16x32xf32> to vector<8x8xf32>
    %740 = vector.extract_strided_slice %714 {offsets = [0, 8], sizes = [8, 8], strides = [1, 1]} : vector<16x32xf32> to vector<8x8xf32>
    %741 = tpu.transpose %739, [1, 0] : vector<8x8xf32> -> vector<8x8xf32>
    %cst_332 = arith.constant dense<0.000000e+00> : vector<8x8xf32>
    %742 = tpu.matmul %738, %741, %cst_332 {dimension_numbers = #tpu.dot_dimension_numbers<[1], [0], [0], [1], [0, 0, 1, 1], [], []>} : vector<8x8xf32>, vector<8x8xf32>, vector<8x8xf32> -> vector<8x8xf32>
    %c0_333 = arith.constant 0 : index
    %c0_334 = arith.constant 0 : index
    %c0_335 = arith.constant 0 : index
    %743 = vector.load %arg4[%c0_333, %c0_334, %c0_335] : memref<2x1x8xf32, #tpu.memory_space<vmem>>, vector<1x1x8xf32>
    %744 = vector.shape_cast %743 : vector<1x1x8xf32> to vector<1x8xf32>
    %745 = vector.broadcast %744 : vector<1x8xf32> to vector<8x8xf32>
    %746 = arith.addf %742, %745 : vector<8x8xf32>
    %cst_336 = arith.constant dense<0xFF800000> : vector<8xf32>
    %747 = vector.multi_reduction <maximumf>, %746, %cst_336 [1] : vector<8x8xf32> to vector<8xf32>
    %748 = vector.shape_cast %747 : vector<8xf32> to vector<8x1xf32>
    %749 = vector.broadcast %748 : vector<8x1xf32> to vector<8x8xf32>
    %750 = arith.subf %746, %749 : vector<8x8xf32>
    %751 = math.exp %750 : vector<8x8xf32>
    %cst_337 = arith.constant dense<0.000000e+00> : vector<8xf32>
    %752 = vector.multi_reduction <add>, %751, %cst_337 [1] : vector<8x8xf32> to vector<8xf32>
    %753 = vector.shape_cast %752 : vector<8xf32> to vector<8x1xf32>
    %754 = vector.broadcast %753 : vector<8x1xf32> to vector<8x8xf32>
    %755 = arith.divf %751, %754 : vector<8x8xf32>
    %cst_338 = arith.constant dense<0.000000e+00> : vector<8x8xf32>
    %756 = tpu.matmul %755, %740, %cst_338 {dimension_numbers = #tpu.dot_dimension_numbers<[1], [0], [0], [1], [0, 0, 1, 1], [], []>} : vector<8x8xf32>, vector<8x8xf32>, vector<8x8xf32> -> vector<8x8xf32>
    %757 = vector.extract_strided_slice %507 {offsets = [8, 0], sizes = [8, 32], strides = [1, 1]} : vector<32x32xf32> to vector<8x32xf32>
    %cst_339 = arith.constant dense<0.000000e+00> : vector<8x32xf32>
    %758 = tpu.matmul %756, %757, %cst_339 {dimension_numbers = #tpu.dot_dimension_numbers<[1], [0], [0], [1], [0, 0, 1, 1], [], []>} : vector<8x8xf32>, vector<8x32xf32>, vector<8x32xf32> -> vector<8x32xf32>
    %759 = arith.addf %737, %758 : vector<8x32xf32>
    %760 = vector.extract_strided_slice %711 {offsets = [0, 16], sizes = [8, 8], strides = [1, 1]} : vector<16x32xf32> to vector<8x8xf32>
    %761 = vector.extract_strided_slice %713 {offsets = [0, 16], sizes = [8, 8], strides = [1, 1]} : vector<16x32xf32> to vector<8x8xf32>
    %762 = vector.extract_strided_slice %714 {offsets = [0, 16], sizes = [8, 8], strides = [1, 1]} : vector<16x32xf32> to vector<8x8xf32>
    %763 = tpu.transpose %761, [1, 0] : vector<8x8xf32> -> vector<8x8xf32>
    %cst_340 = arith.constant dense<0.000000e+00> : vector<8x8xf32>
    %764 = tpu.matmul %760, %763, %cst_340 {dimension_numbers = #tpu.dot_dimension_numbers<[1], [0], [0], [1], [0, 0, 1, 1], [], []>} : vector<8x8xf32>, vector<8x8xf32>, vector<8x8xf32> -> vector<8x8xf32>
    %c0_341 = arith.constant 0 : index
    %c0_342 = arith.constant 0 : index
    %c0_343 = arith.constant 0 : index
    %765 = vector.load %arg4[%c0_341, %c0_342, %c0_343] : memref<2x1x8xf32, #tpu.memory_space<vmem>>, vector<1x1x8xf32>
    %766 = vector.shape_cast %765 : vector<1x1x8xf32> to vector<1x8xf32>
    %767 = vector.broadcast %766 : vector<1x8xf32> to vector<8x8xf32>
    %768 = arith.addf %764, %767 : vector<8x8xf32>
    %cst_344 = arith.constant dense<0xFF800000> : vector<8xf32>
    %769 = vector.multi_reduction <maximumf>, %768, %cst_344 [1] : vector<8x8xf32> to vector<8xf32>
    %770 = vector.shape_cast %769 : vector<8xf32> to vector<8x1xf32>
    %771 = vector.broadcast %770 : vector<8x1xf32> to vector<8x8xf32>
    %772 = arith.subf %768, %771 : vector<8x8xf32>
    %773 = math.exp %772 : vector<8x8xf32>
    %cst_345 = arith.constant dense<0.000000e+00> : vector<8xf32>
    %774 = vector.multi_reduction <add>, %773, %cst_345 [1] : vector<8x8xf32> to vector<8xf32>
    %775 = vector.shape_cast %774 : vector<8xf32> to vector<8x1xf32>
    %776 = vector.broadcast %775 : vector<8x1xf32> to vector<8x8xf32>
    %777 = arith.divf %773, %776 : vector<8x8xf32>
    %cst_346 = arith.constant dense<0.000000e+00> : vector<8x8xf32>
    %778 = tpu.matmul %777, %762, %cst_346 {dimension_numbers = #tpu.dot_dimension_numbers<[1], [0], [0], [1], [0, 0, 1, 1], [], []>} : vector<8x8xf32>, vector<8x8xf32>, vector<8x8xf32> -> vector<8x8xf32>
    %779 = vector.extract_strided_slice %507 {offsets = [16, 0], sizes = [8, 32], strides = [1, 1]} : vector<32x32xf32> to vector<8x32xf32>
    %cst_347 = arith.constant dense<0.000000e+00> : vector<8x32xf32>
    %780 = tpu.matmul %778, %779, %cst_347 {dimension_numbers = #tpu.dot_dimension_numbers<[1], [0], [0], [1], [0, 0, 1, 1], [], []>} : vector<8x8xf32>, vector<8x32xf32>, vector<8x32xf32> -> vector<8x32xf32>
    %781 = arith.addf %759, %780 : vector<8x32xf32>
    %782 = vector.extract_strided_slice %711 {offsets = [0, 24], sizes = [8, 8], strides = [1, 1]} : vector<16x32xf32> to vector<8x8xf32>
    %783 = vector.extract_strided_slice %713 {offsets = [0, 24], sizes = [8, 8], strides = [1, 1]} : vector<16x32xf32> to vector<8x8xf32>
    %784 = vector.extract_strided_slice %714 {offsets = [0, 24], sizes = [8, 8], strides = [1, 1]} : vector<16x32xf32> to vector<8x8xf32>
    %785 = tpu.transpose %783, [1, 0] : vector<8x8xf32> -> vector<8x8xf32>
    %cst_348 = arith.constant dense<0.000000e+00> : vector<8x8xf32>
    %786 = tpu.matmul %782, %785, %cst_348 {dimension_numbers = #tpu.dot_dimension_numbers<[1], [0], [0], [1], [0, 0, 1, 1], [], []>} : vector<8x8xf32>, vector<8x8xf32>, vector<8x8xf32> -> vector<8x8xf32>
    %c0_349 = arith.constant 0 : index
    %c0_350 = arith.constant 0 : index
    %c0_351 = arith.constant 0 : index
    %787 = vector.load %arg4[%c0_349, %c0_350, %c0_351] : memref<2x1x8xf32, #tpu.memory_space<vmem>>, vector<1x1x8xf32>
    %788 = vector.shape_cast %787 : vector<1x1x8xf32> to vector<1x8xf32>
    %789 = vector.broadcast %788 : vector<1x8xf32> to vector<8x8xf32>
    %790 = arith.addf %786, %789 : vector<8x8xf32>
    %cst_352 = arith.constant dense<0xFF800000> : vector<8xf32>
    %791 = vector.multi_reduction <maximumf>, %790, %cst_352 [1] : vector<8x8xf32> to vector<8xf32>
    %792 = vector.shape_cast %791 : vector<8xf32> to vector<8x1xf32>
    %793 = vector.broadcast %792 : vector<8x1xf32> to vector<8x8xf32>
    %794 = arith.subf %790, %793 : vector<8x8xf32>
    %795 = math.exp %794 : vector<8x8xf32>
    %cst_353 = arith.constant dense<0.000000e+00> : vector<8xf32>
    %796 = vector.multi_reduction <add>, %795, %cst_353 [1] : vector<8x8xf32> to vector<8xf32>
    %797 = vector.shape_cast %796 : vector<8xf32> to vector<8x1xf32>
    %798 = vector.broadcast %797 : vector<8x1xf32> to vector<8x8xf32>
    %799 = arith.divf %795, %798 : vector<8x8xf32>
    %cst_354 = arith.constant dense<0.000000e+00> : vector<8x8xf32>
    %800 = tpu.matmul %799, %784, %cst_354 {dimension_numbers = #tpu.dot_dimension_numbers<[1], [0], [0], [1], [0, 0, 1, 1], [], []>} : vector<8x8xf32>, vector<8x8xf32>, vector<8x8xf32> -> vector<8x8xf32>
    %801 = vector.extract_strided_slice %507 {offsets = [24, 0], sizes = [8, 32], strides = [1, 1]} : vector<32x32xf32> to vector<8x32xf32>
    %cst_355 = arith.constant dense<0.000000e+00> : vector<8x32xf32>
    %802 = tpu.matmul %800, %801, %cst_355 {dimension_numbers = #tpu.dot_dimension_numbers<[1], [0], [0], [1], [0, 0, 1, 1], [], []>} : vector<8x8xf32>, vector<8x32xf32>, vector<8x32xf32> -> vector<8x32xf32>
    %803 = arith.addf %781, %802 : vector<8x32xf32>
    %cst_356 = arith.constant 0.000000e+00 : f32
    %804 = vector.broadcast %cst_356 : f32 to vector<8x32xf32>
    %805 = vector.extract_strided_slice %711 {offsets = [8, 0], sizes = [8, 8], strides = [1, 1]} : vector<16x32xf32> to vector<8x8xf32>
    %806 = vector.extract_strided_slice %713 {offsets = [8, 0], sizes = [8, 8], strides = [1, 1]} : vector<16x32xf32> to vector<8x8xf32>
    %807 = vector.extract_strided_slice %714 {offsets = [8, 0], sizes = [8, 8], strides = [1, 1]} : vector<16x32xf32> to vector<8x8xf32>
    %808 = tpu.transpose %806, [1, 0] : vector<8x8xf32> -> vector<8x8xf32>
    %cst_357 = arith.constant dense<0.000000e+00> : vector<8x8xf32>
    %809 = tpu.matmul %805, %808, %cst_357 {dimension_numbers = #tpu.dot_dimension_numbers<[1], [0], [0], [1], [0, 0, 1, 1], [], []>} : vector<8x8xf32>, vector<8x8xf32>, vector<8x8xf32> -> vector<8x8xf32>
    %c1_358 = arith.constant 1 : index
    %c0_359 = arith.constant 0 : index
    %c0_360 = arith.constant 0 : index
    %810 = vector.load %arg4[%c1_358, %c0_359, %c0_360] : memref<2x1x8xf32, #tpu.memory_space<vmem>>, vector<1x1x8xf32>
    %811 = vector.shape_cast %810 : vector<1x1x8xf32> to vector<1x8xf32>
    %812 = vector.broadcast %811 : vector<1x8xf32> to vector<8x8xf32>
    %813 = arith.addf %809, %812 : vector<8x8xf32>
    %cst_361 = arith.constant dense<0xFF800000> : vector<8xf32>
    %814 = vector.multi_reduction <maximumf>, %813, %cst_361 [1] : vector<8x8xf32> to vector<8xf32>
    %815 = vector.shape_cast %814 : vector<8xf32> to vector<8x1xf32>
    %816 = vector.broadcast %815 : vector<8x1xf32> to vector<8x8xf32>
    %817 = arith.subf %813, %816 : vector<8x8xf32>
    %818 = math.exp %817 : vector<8x8xf32>
    %cst_362 = arith.constant dense<0.000000e+00> : vector<8xf32>
    %819 = vector.multi_reduction <add>, %818, %cst_362 [1] : vector<8x8xf32> to vector<8xf32>
    %820 = vector.shape_cast %819 : vector<8xf32> to vector<8x1xf32>
    %821 = vector.broadcast %820 : vector<8x1xf32> to vector<8x8xf32>
    %822 = arith.divf %818, %821 : vector<8x8xf32>
    %cst_363 = arith.constant dense<0.000000e+00> : vector<8x8xf32>
    %823 = tpu.matmul %822, %807, %cst_363 {dimension_numbers = #tpu.dot_dimension_numbers<[1], [0], [0], [1], [0, 0, 1, 1], [], []>} : vector<8x8xf32>, vector<8x8xf32>, vector<8x8xf32> -> vector<8x8xf32>
    %824 = vector.extract_strided_slice %507 {offsets = [0, 0], sizes = [8, 32], strides = [1, 1]} : vector<32x32xf32> to vector<8x32xf32>
    %cst_364 = arith.constant dense<0.000000e+00> : vector<8x32xf32>
    %825 = tpu.matmul %823, %824, %cst_364 {dimension_numbers = #tpu.dot_dimension_numbers<[1], [0], [0], [1], [0, 0, 1, 1], [], []>} : vector<8x8xf32>, vector<8x32xf32>, vector<8x32xf32> -> vector<8x32xf32>
    %826 = arith.addf %804, %825 : vector<8x32xf32>
    %827 = vector.extract_strided_slice %711 {offsets = [8, 8], sizes = [8, 8], strides = [1, 1]} : vector<16x32xf32> to vector<8x8xf32>
    %828 = vector.extract_strided_slice %713 {offsets = [8, 8], sizes = [8, 8], strides = [1, 1]} : vector<16x32xf32> to vector<8x8xf32>
    %829 = vector.extract_strided_slice %714 {offsets = [8, 8], sizes = [8, 8], strides = [1, 1]} : vector<16x32xf32> to vector<8x8xf32>
    %830 = tpu.transpose %828, [1, 0] : vector<8x8xf32> -> vector<8x8xf32>
    %cst_365 = arith.constant dense<0.000000e+00> : vector<8x8xf32>
    %831 = tpu.matmul %827, %830, %cst_365 {dimension_numbers = #tpu.dot_dimension_numbers<[1], [0], [0], [1], [0, 0, 1, 1], [], []>} : vector<8x8xf32>, vector<8x8xf32>, vector<8x8xf32> -> vector<8x8xf32>
    %c1_366 = arith.constant 1 : index
    %c0_367 = arith.constant 0 : index
    %c0_368 = arith.constant 0 : index
    %832 = vector.load %arg4[%c1_366, %c0_367, %c0_368] : memref<2x1x8xf32, #tpu.memory_space<vmem>>, vector<1x1x8xf32>
    %833 = vector.shape_cast %832 : vector<1x1x8xf32> to vector<1x8xf32>
    %834 = vector.broadcast %833 : vector<1x8xf32> to vector<8x8xf32>
    %835 = arith.addf %831, %834 : vector<8x8xf32>
    %cst_369 = arith.constant dense<0xFF800000> : vector<8xf32>
    %836 = vector.multi_reduction <maximumf>, %835, %cst_369 [1] : vector<8x8xf32> to vector<8xf32>
    %837 = vector.shape_cast %836 : vector<8xf32> to vector<8x1xf32>
    %838 = vector.broadcast %837 : vector<8x1xf32> to vector<8x8xf32>
    %839 = arith.subf %835, %838 : vector<8x8xf32>
    %840 = math.exp %839 : vector<8x8xf32>
    %cst_370 = arith.constant dense<0.000000e+00> : vector<8xf32>
    %841 = vector.multi_reduction <add>, %840, %cst_370 [1] : vector<8x8xf32> to vector<8xf32>
    %842 = vector.shape_cast %841 : vector<8xf32> to vector<8x1xf32>
    %843 = vector.broadcast %842 : vector<8x1xf32> to vector<8x8xf32>
    %844 = arith.divf %840, %843 : vector<8x8xf32>
    %cst_371 = arith.constant dense<0.000000e+00> : vector<8x8xf32>
    %845 = tpu.matmul %844, %829, %cst_371 {dimension_numbers = #tpu.dot_dimension_numbers<[1], [0], [0], [1], [0, 0, 1, 1], [], []>} : vector<8x8xf32>, vector<8x8xf32>, vector<8x8xf32> -> vector<8x8xf32>
    %846 = vector.extract_strided_slice %507 {offsets = [8, 0], sizes = [8, 32], strides = [1, 1]} : vector<32x32xf32> to vector<8x32xf32>
    %cst_372 = arith.constant dense<0.000000e+00> : vector<8x32xf32>
    %847 = tpu.matmul %845, %846, %cst_372 {dimension_numbers = #tpu.dot_dimension_numbers<[1], [0], [0], [1], [0, 0, 1, 1], [], []>} : vector<8x8xf32>, vector<8x32xf32>, vector<8x32xf32> -> vector<8x32xf32>
    %848 = arith.addf %826, %847 : vector<8x32xf32>
    %849 = vector.extract_strided_slice %711 {offsets = [8, 16], sizes = [8, 8], strides = [1, 1]} : vector<16x32xf32> to vector<8x8xf32>
    %850 = vector.extract_strided_slice %713 {offsets = [8, 16], sizes = [8, 8], strides = [1, 1]} : vector<16x32xf32> to vector<8x8xf32>
    %851 = vector.extract_strided_slice %714 {offsets = [8, 16], sizes = [8, 8], strides = [1, 1]} : vector<16x32xf32> to vector<8x8xf32>
    %852 = tpu.transpose %850, [1, 0] : vector<8x8xf32> -> vector<8x8xf32>
    %cst_373 = arith.constant dense<0.000000e+00> : vector<8x8xf32>
    %853 = tpu.matmul %849, %852, %cst_373 {dimension_numbers = #tpu.dot_dimension_numbers<[1], [0], [0], [1], [0, 0, 1, 1], [], []>} : vector<8x8xf32>, vector<8x8xf32>, vector<8x8xf32> -> vector<8x8xf32>
    %c1_374 = arith.constant 1 : index
    %c0_375 = arith.constant 0 : index
    %c0_376 = arith.constant 0 : index
    %854 = vector.load %arg4[%c1_374, %c0_375, %c0_376] : memref<2x1x8xf32, #tpu.memory_space<vmem>>, vector<1x1x8xf32>
    %855 = vector.shape_cast %854 : vector<1x1x8xf32> to vector<1x8xf32>
    %856 = vector.broadcast %855 : vector<1x8xf32> to vector<8x8xf32>
    %857 = arith.addf %853, %856 : vector<8x8xf32>
    %cst_377 = arith.constant dense<0xFF800000> : vector<8xf32>
    %858 = vector.multi_reduction <maximumf>, %857, %cst_377 [1] : vector<8x8xf32> to vector<8xf32>
    %859 = vector.shape_cast %858 : vector<8xf32> to vector<8x1xf32>
    %860 = vector.broadcast %859 : vector<8x1xf32> to vector<8x8xf32>
    %861 = arith.subf %857, %860 : vector<8x8xf32>
    %862 = math.exp %861 : vector<8x8xf32>
    %cst_378 = arith.constant dense<0.000000e+00> : vector<8xf32>
    %863 = vector.multi_reduction <add>, %862, %cst_378 [1] : vector<8x8xf32> to vector<8xf32>
    %864 = vector.shape_cast %863 : vector<8xf32> to vector<8x1xf32>
    %865 = vector.broadcast %864 : vector<8x1xf32> to vector<8x8xf32>
    %866 = arith.divf %862, %865 : vector<8x8xf32>
    %cst_379 = arith.constant dense<0.000000e+00> : vector<8x8xf32>
    %867 = tpu.matmul %866, %851, %cst_379 {dimension_numbers = #tpu.dot_dimension_numbers<[1], [0], [0], [1], [0, 0, 1, 1], [], []>} : vector<8x8xf32>, vector<8x8xf32>, vector<8x8xf32> -> vector<8x8xf32>
    %868 = vector.extract_strided_slice %507 {offsets = [16, 0], sizes = [8, 32], strides = [1, 1]} : vector<32x32xf32> to vector<8x32xf32>
    %cst_380 = arith.constant dense<0.000000e+00> : vector<8x32xf32>
    %869 = tpu.matmul %867, %868, %cst_380 {dimension_numbers = #tpu.dot_dimension_numbers<[1], [0], [0], [1], [0, 0, 1, 1], [], []>} : vector<8x8xf32>, vector<8x32xf32>, vector<8x32xf32> -> vector<8x32xf32>
    %870 = arith.addf %848, %869 : vector<8x32xf32>
    %871 = vector.extract_strided_slice %711 {offsets = [8, 24], sizes = [8, 8], strides = [1, 1]} : vector<16x32xf32> to vector<8x8xf32>
    %872 = vector.extract_strided_slice %713 {offsets = [8, 24], sizes = [8, 8], strides = [1, 1]} : vector<16x32xf32> to vector<8x8xf32>
    %873 = vector.extract_strided_slice %714 {offsets = [8, 24], sizes = [8, 8], strides = [1, 1]} : vector<16x32xf32> to vector<8x8xf32>
    %874 = tpu.transpose %872, [1, 0] : vector<8x8xf32> -> vector<8x8xf32>
    %cst_381 = arith.constant dense<0.000000e+00> : vector<8x8xf32>
    %875 = tpu.matmul %871, %874, %cst_381 {dimension_numbers = #tpu.dot_dimension_numbers<[1], [0], [0], [1], [0, 0, 1, 1], [], []>} : vector<8x8xf32>, vector<8x8xf32>, vector<8x8xf32> -> vector<8x8xf32>
    %c1_382 = arith.constant 1 : index
    %c0_383 = arith.constant 0 : index
    %c0_384 = arith.constant 0 : index
    %876 = vector.load %arg4[%c1_382, %c0_383, %c0_384] : memref<2x1x8xf32, #tpu.memory_space<vmem>>, vector<1x1x8xf32>
    %877 = vector.shape_cast %876 : vector<1x1x8xf32> to vector<1x8xf32>
    %878 = vector.broadcast %877 : vector<1x8xf32> to vector<8x8xf32>
    %879 = arith.addf %875, %878 : vector<8x8xf32>
    %cst_385 = arith.constant dense<0xFF800000> : vector<8xf32>
    %880 = vector.multi_reduction <maximumf>, %879, %cst_385 [1] : vector<8x8xf32> to vector<8xf32>
    %881 = vector.shape_cast %880 : vector<8xf32> to vector<8x1xf32>
    %882 = vector.broadcast %881 : vector<8x1xf32> to vector<8x8xf32>
    %883 = arith.subf %879, %882 : vector<8x8xf32>
    %884 = math.exp %883 : vector<8x8xf32>
    %cst_386 = arith.constant dense<0.000000e+00> : vector<8xf32>
    %885 = vector.multi_reduction <add>, %884, %cst_386 [1] : vector<8x8xf32> to vector<8xf32>
    %886 = vector.shape_cast %885 : vector<8xf32> to vector<8x1xf32>
    %887 = vector.broadcast %886 : vector<8x1xf32> to vector<8x8xf32>
    %888 = arith.divf %884, %887 : vector<8x8xf32>
    %cst_387 = arith.constant dense<0.000000e+00> : vector<8x8xf32>
    %889 = tpu.matmul %888, %873, %cst_387 {dimension_numbers = #tpu.dot_dimension_numbers<[1], [0], [0], [1], [0, 0, 1, 1], [], []>} : vector<8x8xf32>, vector<8x8xf32>, vector<8x8xf32> -> vector<8x8xf32>
    %890 = vector.extract_strided_slice %507 {offsets = [24, 0], sizes = [8, 32], strides = [1, 1]} : vector<32x32xf32> to vector<8x32xf32>
    %cst_388 = arith.constant dense<0.000000e+00> : vector<8x32xf32>
    %891 = tpu.matmul %889, %890, %cst_388 {dimension_numbers = #tpu.dot_dimension_numbers<[1], [0], [0], [1], [0, 0, 1, 1], [], []>} : vector<8x8xf32>, vector<8x32xf32>, vector<8x32xf32> -> vector<8x32xf32>
    %892 = arith.addf %870, %891 : vector<8x32xf32>
    %893 = tpu.concatenate %803, %892 in 0 : vector<8x32xf32>, vector<8x32xf32> -> vector<16x32xf32>
    %894 = arith.addf %698, %893 : vector<16x32xf32>
    %895 = arith.mulf %894, %894 : vector<16x32xf32>
    %cst_389 = arith.constant dense<0.000000e+00> : vector<16xf32>
    %896 = vector.multi_reduction <add>, %895, %cst_389 [1] : vector<16x32xf32> to vector<16xf32>
    %897 = vector.shape_cast %896 : vector<16xf32> to vector<16x1xf32>
    %cst_390 = arith.constant 3.200000e+01 : f32
    %898 = vector.broadcast %cst_390 : f32 to vector<16x1xf32>
    %899 = arith.divf %897, %898 : vector<16x1xf32>
    %cst_391 = arith.constant 9.99999997E-7 : f32
    %900 = vector.broadcast %cst_391 : f32 to vector<16x1xf32>
    %901 = arith.addf %899, %900 : vector<16x1xf32>
    %902 = math.rsqrt %901 : vector<16x1xf32>
    %903 = vector.broadcast %902 : vector<16x1xf32> to vector<16x32xf32>
    %904 = arith.mulf %894, %903 : vector<16x32xf32>
    %905 = vector.broadcast %508 : vector<1x32xf32> to vector<16x32xf32>
    %906 = arith.mulf %904, %905 : vector<16x32xf32>
    %cst_392 = arith.constant dense<0.000000e+00> : vector<16x64xf32>
    %907 = tpu.matmul %906, %509, %cst_392 {dimension_numbers = #tpu.dot_dimension_numbers<[1], [0], [0], [1], [0, 0, 1, 1], [], []>} : vector<16x32xf32>, vector<32x64xf32>, vector<16x64xf32> -> vector<16x64xf32>
    %cst_393 = arith.constant 0.000000e+00 : f32
    %908 = vector.broadcast %cst_393 : f32 to vector<16x64xf32>
    %909 = arith.maximumf %907, %908 : vector<16x64xf32>
    %cst_394 = arith.constant dense<0.000000e+00> : vector<16x32xf32>
    %910 = tpu.matmul %909, %510, %cst_394 {dimension_numbers = #tpu.dot_dimension_numbers<[1], [0], [0], [1], [0, 0, 1, 1], [], []>} : vector<16x64xf32>, vector<64x32xf32>, vector<16x32xf32> -> vector<16x32xf32>
    %911 = arith.addf %894, %910 : vector<16x32xf32>
    %c0_395 = arith.constant 0 : index
    %c0_396 = arith.constant 0 : index
    %912 = vector.load %arg30[%c0_395, %c0_396] : memref<1x32xf32, #tpu.memory_space<vmem>>, vector<1x32xf32>
    %c0_397 = arith.constant 0 : index
    %c0_398 = arith.constant 0 : index
    %913 = vector.load %arg31[%c0_397, %c0_398] : memref<32x96xf32, #tpu.memory_space<vmem>>, vector<32x96xf32>
    %c0_399 = arith.constant 0 : index
    %c0_400 = arith.constant 0 : index
    %914 = vector.load %arg32[%c0_399, %c0_400] : memref<32x32xf32, #tpu.memory_space<vmem>>, vector<32x32xf32>
    %c0_401 = arith.constant 0 : index
    %c0_402 = arith.constant 0 : index
    %915 = vector.load %arg33[%c0_401, %c0_402] : memref<1x32xf32, #tpu.memory_space<vmem>>, vector<1x32xf32>
    %c0_403 = arith.constant 0 : index
    %c0_404 = arith.constant 0 : index
    %916 = vector.load %arg34[%c0_403, %c0_404] : memref<32x32xf32, #tpu.memory_space<vmem>>, vector<32x32xf32>
    %c0_405 = arith.constant 0 : index
    %c0_406 = arith.constant 0 : index
    %917 = vector.load %arg35[%c0_405, %c0_406] : memref<32x64xf32, #tpu.memory_space<vmem>>, vector<32x64xf32>
    %c0_407 = arith.constant 0 : index
    %c0_408 = arith.constant 0 : index
    %918 = vector.load %arg36[%c0_407, %c0_408] : memref<32x32xf32, #tpu.memory_space<vmem>>, vector<32x32xf32>
    %c0_409 = arith.constant 0 : index
    %c0_410 = arith.constant 0 : index
    %919 = vector.load %arg37[%c0_409, %c0_410] : memref<1x32xf32, #tpu.memory_space<vmem>>, vector<1x32xf32>
    %c0_411 = arith.constant 0 : index
    %c0_412 = arith.constant 0 : index
    %920 = vector.load %arg38[%c0_411, %c0_412] : memref<32x64xf32, #tpu.memory_space<vmem>>, vector<32x64xf32>
    %c0_413 = arith.constant 0 : index
    %c0_414 = arith.constant 0 : index
    %921 = vector.load %arg39[%c0_413, %c0_414] : memref<64x32xf32, #tpu.memory_space<vmem>>, vector<64x32xf32>
    %922 = arith.mulf %911, %911 : vector<16x32xf32>
    %cst_415 = arith.constant dense<0.000000e+00> : vector<16xf32>
    %923 = vector.multi_reduction <add>, %922, %cst_415 [1] : vector<16x32xf32> to vector<16xf32>
    %924 = vector.shape_cast %923 : vector<16xf32> to vector<16x1xf32>
    %cst_416 = arith.constant 3.200000e+01 : f32
    %925 = vector.broadcast %cst_416 : f32 to vector<16x1xf32>
    %926 = arith.divf %924, %925 : vector<16x1xf32>
    %cst_417 = arith.constant 9.99999997E-7 : f32
    %927 = vector.broadcast %cst_417 : f32 to vector<16x1xf32>
    %928 = arith.addf %926, %927 : vector<16x1xf32>
    %929 = math.rsqrt %928 : vector<16x1xf32>
    %930 = vector.broadcast %929 : vector<16x1xf32> to vector<16x32xf32>
    %931 = arith.mulf %911, %930 : vector<16x32xf32>
    %932 = vector.broadcast %912 : vector<1x32xf32> to vector<16x32xf32>
    %933 = arith.mulf %931, %932 : vector<16x32xf32>
    %cst_418 = arith.constant dense<0.000000e+00> : vector<16x96xf32>
    %934 = tpu.matmul %933, %913, %cst_418 {dimension_numbers = #tpu.dot_dimension_numbers<[1], [0], [0], [1], [0, 0, 1, 1], [], []>} : vector<16x32xf32>, vector<32x96xf32>, vector<16x96xf32> -> vector<16x96xf32>
    %935 = vector.extract_strided_slice %934 {offsets = [0, 0], sizes = [16, 32], strides = [1, 1]} : vector<16x96xf32> to vector<16x32xf32>
    %936 = vector.extract_strided_slice %934 {offsets = [0, 32], sizes = [16, 32], strides = [1, 1]} : vector<16x96xf32> to vector<16x32xf32>
    %937 = vector.extract_strided_slice %934 {offsets = [0, 64], sizes = [16, 32], strides = [1, 1]} : vector<16x96xf32> to vector<16x32xf32>
    %cst_419 = arith.constant 0.000000e+00 : f32
    %938 = vector.broadcast %cst_419 : f32 to vector<8x32xf32>
    %939 = vector.extract_strided_slice %935 {offsets = [0, 0], sizes = [8, 8], strides = [1, 1]} : vector<16x32xf32> to vector<8x8xf32>
    %940 = vector.extract_strided_slice %936 {offsets = [0, 0], sizes = [8, 8], strides = [1, 1]} : vector<16x32xf32> to vector<8x8xf32>
    %941 = vector.extract_strided_slice %937 {offsets = [0, 0], sizes = [8, 8], strides = [1, 1]} : vector<16x32xf32> to vector<8x8xf32>
    %942 = tpu.transpose %940, [1, 0] : vector<8x8xf32> -> vector<8x8xf32>
    %cst_420 = arith.constant dense<0.000000e+00> : vector<8x8xf32>
    %943 = tpu.matmul %939, %942, %cst_420 {dimension_numbers = #tpu.dot_dimension_numbers<[1], [0], [0], [1], [0, 0, 1, 1], [], []>} : vector<8x8xf32>, vector<8x8xf32>, vector<8x8xf32> -> vector<8x8xf32>
    %c0_421 = arith.constant 0 : index
    %c0_422 = arith.constant 0 : index
    %c0_423 = arith.constant 0 : index
    %944 = vector.load %arg3[%c0_421, %c0_422, %c0_423] : memref<4x8x8xf32, #tpu.memory_space<vmem>>, vector<1x8x8xf32>
    %945 = vector.shape_cast %944 : vector<1x8x8xf32> to vector<8x8xf32>
    %946 = arith.addf %943, %945 : vector<8x8xf32>
    %cst_424 = arith.constant dense<0xFF800000> : vector<8xf32>
    %947 = vector.multi_reduction <maximumf>, %946, %cst_424 [1] : vector<8x8xf32> to vector<8xf32>
    %948 = vector.shape_cast %947 : vector<8xf32> to vector<8x1xf32>
    %949 = vector.broadcast %948 : vector<8x1xf32> to vector<8x8xf32>
    %950 = arith.subf %946, %949 : vector<8x8xf32>
    %951 = math.exp %950 : vector<8x8xf32>
    %cst_425 = arith.constant dense<0.000000e+00> : vector<8xf32>
    %952 = vector.multi_reduction <add>, %951, %cst_425 [1] : vector<8x8xf32> to vector<8xf32>
    %953 = vector.shape_cast %952 : vector<8xf32> to vector<8x1xf32>
    %954 = vector.broadcast %953 : vector<8x1xf32> to vector<8x8xf32>
    %955 = arith.divf %951, %954 : vector<8x8xf32>
    %cst_426 = arith.constant dense<0.000000e+00> : vector<8x8xf32>
    %956 = tpu.matmul %955, %941, %cst_426 {dimension_numbers = #tpu.dot_dimension_numbers<[1], [0], [0], [1], [0, 0, 1, 1], [], []>} : vector<8x8xf32>, vector<8x8xf32>, vector<8x8xf32> -> vector<8x8xf32>
    %957 = vector.extract_strided_slice %914 {offsets = [0, 0], sizes = [8, 32], strides = [1, 1]} : vector<32x32xf32> to vector<8x32xf32>
    %cst_427 = arith.constant dense<0.000000e+00> : vector<8x32xf32>
    %958 = tpu.matmul %956, %957, %cst_427 {dimension_numbers = #tpu.dot_dimension_numbers<[1], [0], [0], [1], [0, 0, 1, 1], [], []>} : vector<8x8xf32>, vector<8x32xf32>, vector<8x32xf32> -> vector<8x32xf32>
    %959 = arith.addf %938, %958 : vector<8x32xf32>
    %960 = vector.extract_strided_slice %935 {offsets = [0, 8], sizes = [8, 8], strides = [1, 1]} : vector<16x32xf32> to vector<8x8xf32>
    %961 = vector.extract_strided_slice %936 {offsets = [0, 8], sizes = [8, 8], strides = [1, 1]} : vector<16x32xf32> to vector<8x8xf32>
    %962 = vector.extract_strided_slice %937 {offsets = [0, 8], sizes = [8, 8], strides = [1, 1]} : vector<16x32xf32> to vector<8x8xf32>
    %963 = tpu.transpose %961, [1, 0] : vector<8x8xf32> -> vector<8x8xf32>
    %cst_428 = arith.constant dense<0.000000e+00> : vector<8x8xf32>
    %964 = tpu.matmul %960, %963, %cst_428 {dimension_numbers = #tpu.dot_dimension_numbers<[1], [0], [0], [1], [0, 0, 1, 1], [], []>} : vector<8x8xf32>, vector<8x8xf32>, vector<8x8xf32> -> vector<8x8xf32>
    %c1_429 = arith.constant 1 : index
    %c0_430 = arith.constant 0 : index
    %c0_431 = arith.constant 0 : index
    %965 = vector.load %arg3[%c1_429, %c0_430, %c0_431] : memref<4x8x8xf32, #tpu.memory_space<vmem>>, vector<1x8x8xf32>
    %966 = vector.shape_cast %965 : vector<1x8x8xf32> to vector<8x8xf32>
    %967 = arith.addf %964, %966 : vector<8x8xf32>
    %cst_432 = arith.constant dense<0xFF800000> : vector<8xf32>
    %968 = vector.multi_reduction <maximumf>, %967, %cst_432 [1] : vector<8x8xf32> to vector<8xf32>
    %969 = vector.shape_cast %968 : vector<8xf32> to vector<8x1xf32>
    %970 = vector.broadcast %969 : vector<8x1xf32> to vector<8x8xf32>
    %971 = arith.subf %967, %970 : vector<8x8xf32>
    %972 = math.exp %971 : vector<8x8xf32>
    %cst_433 = arith.constant dense<0.000000e+00> : vector<8xf32>
    %973 = vector.multi_reduction <add>, %972, %cst_433 [1] : vector<8x8xf32> to vector<8xf32>
    %974 = vector.shape_cast %973 : vector<8xf32> to vector<8x1xf32>
    %975 = vector.broadcast %974 : vector<8x1xf32> to vector<8x8xf32>
    %976 = arith.divf %972, %975 : vector<8x8xf32>
    %cst_434 = arith.constant dense<0.000000e+00> : vector<8x8xf32>
    %977 = tpu.matmul %976, %962, %cst_434 {dimension_numbers = #tpu.dot_dimension_numbers<[1], [0], [0], [1], [0, 0, 1, 1], [], []>} : vector<8x8xf32>, vector<8x8xf32>, vector<8x8xf32> -> vector<8x8xf32>
    %978 = vector.extract_strided_slice %914 {offsets = [8, 0], sizes = [8, 32], strides = [1, 1]} : vector<32x32xf32> to vector<8x32xf32>
    %cst_435 = arith.constant dense<0.000000e+00> : vector<8x32xf32>
    %979 = tpu.matmul %977, %978, %cst_435 {dimension_numbers = #tpu.dot_dimension_numbers<[1], [0], [0], [1], [0, 0, 1, 1], [], []>} : vector<8x8xf32>, vector<8x32xf32>, vector<8x32xf32> -> vector<8x32xf32>
    %980 = arith.addf %959, %979 : vector<8x32xf32>
    %981 = vector.extract_strided_slice %935 {offsets = [0, 16], sizes = [8, 8], strides = [1, 1]} : vector<16x32xf32> to vector<8x8xf32>
    %982 = vector.extract_strided_slice %936 {offsets = [0, 16], sizes = [8, 8], strides = [1, 1]} : vector<16x32xf32> to vector<8x8xf32>
    %983 = vector.extract_strided_slice %937 {offsets = [0, 16], sizes = [8, 8], strides = [1, 1]} : vector<16x32xf32> to vector<8x8xf32>
    %984 = tpu.transpose %982, [1, 0] : vector<8x8xf32> -> vector<8x8xf32>
    %cst_436 = arith.constant dense<0.000000e+00> : vector<8x8xf32>
    %985 = tpu.matmul %981, %984, %cst_436 {dimension_numbers = #tpu.dot_dimension_numbers<[1], [0], [0], [1], [0, 0, 1, 1], [], []>} : vector<8x8xf32>, vector<8x8xf32>, vector<8x8xf32> -> vector<8x8xf32>
    %c2_437 = arith.constant 2 : index
    %c0_438 = arith.constant 0 : index
    %c0_439 = arith.constant 0 : index
    %986 = vector.load %arg3[%c2_437, %c0_438, %c0_439] : memref<4x8x8xf32, #tpu.memory_space<vmem>>, vector<1x8x8xf32>
    %987 = vector.shape_cast %986 : vector<1x8x8xf32> to vector<8x8xf32>
    %988 = arith.addf %985, %987 : vector<8x8xf32>
    %cst_440 = arith.constant dense<0xFF800000> : vector<8xf32>
    %989 = vector.multi_reduction <maximumf>, %988, %cst_440 [1] : vector<8x8xf32> to vector<8xf32>
    %990 = vector.shape_cast %989 : vector<8xf32> to vector<8x1xf32>
    %991 = vector.broadcast %990 : vector<8x1xf32> to vector<8x8xf32>
    %992 = arith.subf %988, %991 : vector<8x8xf32>
    %993 = math.exp %992 : vector<8x8xf32>
    %cst_441 = arith.constant dense<0.000000e+00> : vector<8xf32>
    %994 = vector.multi_reduction <add>, %993, %cst_441 [1] : vector<8x8xf32> to vector<8xf32>
    %995 = vector.shape_cast %994 : vector<8xf32> to vector<8x1xf32>
    %996 = vector.broadcast %995 : vector<8x1xf32> to vector<8x8xf32>
    %997 = arith.divf %993, %996 : vector<8x8xf32>
    %cst_442 = arith.constant dense<0.000000e+00> : vector<8x8xf32>
    %998 = tpu.matmul %997, %983, %cst_442 {dimension_numbers = #tpu.dot_dimension_numbers<[1], [0], [0], [1], [0, 0, 1, 1], [], []>} : vector<8x8xf32>, vector<8x8xf32>, vector<8x8xf32> -> vector<8x8xf32>
    %999 = vector.extract_strided_slice %914 {offsets = [16, 0], sizes = [8, 32], strides = [1, 1]} : vector<32x32xf32> to vector<8x32xf32>
    %cst_443 = arith.constant dense<0.000000e+00> : vector<8x32xf32>
    %1000 = tpu.matmul %998, %999, %cst_443 {dimension_numbers = #tpu.dot_dimension_numbers<[1], [0], [0], [1], [0, 0, 1, 1], [], []>} : vector<8x8xf32>, vector<8x32xf32>, vector<8x32xf32> -> vector<8x32xf32>
    %1001 = arith.addf %980, %1000 : vector<8x32xf32>
    %1002 = vector.extract_strided_slice %935 {offsets = [0, 24], sizes = [8, 8], strides = [1, 1]} : vector<16x32xf32> to vector<8x8xf32>
    %1003 = vector.extract_strided_slice %936 {offsets = [0, 24], sizes = [8, 8], strides = [1, 1]} : vector<16x32xf32> to vector<8x8xf32>
    %1004 = vector.extract_strided_slice %937 {offsets = [0, 24], sizes = [8, 8], strides = [1, 1]} : vector<16x32xf32> to vector<8x8xf32>
    %1005 = tpu.transpose %1003, [1, 0] : vector<8x8xf32> -> vector<8x8xf32>
    %cst_444 = arith.constant dense<0.000000e+00> : vector<8x8xf32>
    %1006 = tpu.matmul %1002, %1005, %cst_444 {dimension_numbers = #tpu.dot_dimension_numbers<[1], [0], [0], [1], [0, 0, 1, 1], [], []>} : vector<8x8xf32>, vector<8x8xf32>, vector<8x8xf32> -> vector<8x8xf32>
    %c3_445 = arith.constant 3 : index
    %c0_446 = arith.constant 0 : index
    %c0_447 = arith.constant 0 : index
    %1007 = vector.load %arg3[%c3_445, %c0_446, %c0_447] : memref<4x8x8xf32, #tpu.memory_space<vmem>>, vector<1x8x8xf32>
    %1008 = vector.shape_cast %1007 : vector<1x8x8xf32> to vector<8x8xf32>
    %1009 = arith.addf %1006, %1008 : vector<8x8xf32>
    %cst_448 = arith.constant dense<0xFF800000> : vector<8xf32>
    %1010 = vector.multi_reduction <maximumf>, %1009, %cst_448 [1] : vector<8x8xf32> to vector<8xf32>
    %1011 = vector.shape_cast %1010 : vector<8xf32> to vector<8x1xf32>
    %1012 = vector.broadcast %1011 : vector<8x1xf32> to vector<8x8xf32>
    %1013 = arith.subf %1009, %1012 : vector<8x8xf32>
    %1014 = math.exp %1013 : vector<8x8xf32>
    %cst_449 = arith.constant dense<0.000000e+00> : vector<8xf32>
    %1015 = vector.multi_reduction <add>, %1014, %cst_449 [1] : vector<8x8xf32> to vector<8xf32>
    %1016 = vector.shape_cast %1015 : vector<8xf32> to vector<8x1xf32>
    %1017 = vector.broadcast %1016 : vector<8x1xf32> to vector<8x8xf32>
    %1018 = arith.divf %1014, %1017 : vector<8x8xf32>
    %cst_450 = arith.constant dense<0.000000e+00> : vector<8x8xf32>
    %1019 = tpu.matmul %1018, %1004, %cst_450 {dimension_numbers = #tpu.dot_dimension_numbers<[1], [0], [0], [1], [0, 0, 1, 1], [], []>} : vector<8x8xf32>, vector<8x8xf32>, vector<8x8xf32> -> vector<8x8xf32>
    %1020 = vector.extract_strided_slice %914 {offsets = [24, 0], sizes = [8, 32], strides = [1, 1]} : vector<32x32xf32> to vector<8x32xf32>
    %cst_451 = arith.constant dense<0.000000e+00> : vector<8x32xf32>
    %1021 = tpu.matmul %1019, %1020, %cst_451 {dimension_numbers = #tpu.dot_dimension_numbers<[1], [0], [0], [1], [0, 0, 1, 1], [], []>} : vector<8x8xf32>, vector<8x32xf32>, vector<8x32xf32> -> vector<8x32xf32>
    %1022 = arith.addf %1001, %1021 : vector<8x32xf32>
    %cst_452 = arith.constant 0.000000e+00 : f32
    %1023 = vector.broadcast %cst_452 : f32 to vector<8x32xf32>
    %1024 = vector.extract_strided_slice %935 {offsets = [8, 0], sizes = [8, 8], strides = [1, 1]} : vector<16x32xf32> to vector<8x8xf32>
    %1025 = vector.extract_strided_slice %936 {offsets = [8, 0], sizes = [8, 8], strides = [1, 1]} : vector<16x32xf32> to vector<8x8xf32>
    %1026 = vector.extract_strided_slice %937 {offsets = [8, 0], sizes = [8, 8], strides = [1, 1]} : vector<16x32xf32> to vector<8x8xf32>
    %1027 = tpu.transpose %1025, [1, 0] : vector<8x8xf32> -> vector<8x8xf32>
    %cst_453 = arith.constant dense<0.000000e+00> : vector<8x8xf32>
    %1028 = tpu.matmul %1024, %1027, %cst_453 {dimension_numbers = #tpu.dot_dimension_numbers<[1], [0], [0], [1], [0, 0, 1, 1], [], []>} : vector<8x8xf32>, vector<8x8xf32>, vector<8x8xf32> -> vector<8x8xf32>
    %c0_454 = arith.constant 0 : index
    %c0_455 = arith.constant 0 : index
    %c0_456 = arith.constant 0 : index
    %1029 = vector.load %arg3[%c0_454, %c0_455, %c0_456] : memref<4x8x8xf32, #tpu.memory_space<vmem>>, vector<1x8x8xf32>
    %1030 = vector.shape_cast %1029 : vector<1x8x8xf32> to vector<8x8xf32>
    %1031 = arith.addf %1028, %1030 : vector<8x8xf32>
    %cst_457 = arith.constant dense<0xFF800000> : vector<8xf32>
    %1032 = vector.multi_reduction <maximumf>, %1031, %cst_457 [1] : vector<8x8xf32> to vector<8xf32>
    %1033 = vector.shape_cast %1032 : vector<8xf32> to vector<8x1xf32>
    %1034 = vector.broadcast %1033 : vector<8x1xf32> to vector<8x8xf32>
    %1035 = arith.subf %1031, %1034 : vector<8x8xf32>
    %1036 = math.exp %1035 : vector<8x8xf32>
    %cst_458 = arith.constant dense<0.000000e+00> : vector<8xf32>
    %1037 = vector.multi_reduction <add>, %1036, %cst_458 [1] : vector<8x8xf32> to vector<8xf32>
    %1038 = vector.shape_cast %1037 : vector<8xf32> to vector<8x1xf32>
    %1039 = vector.broadcast %1038 : vector<8x1xf32> to vector<8x8xf32>
    %1040 = arith.divf %1036, %1039 : vector<8x8xf32>
    %cst_459 = arith.constant dense<0.000000e+00> : vector<8x8xf32>
    %1041 = tpu.matmul %1040, %1026, %cst_459 {dimension_numbers = #tpu.dot_dimension_numbers<[1], [0], [0], [1], [0, 0, 1, 1], [], []>} : vector<8x8xf32>, vector<8x8xf32>, vector<8x8xf32> -> vector<8x8xf32>
    %1042 = vector.extract_strided_slice %914 {offsets = [0, 0], sizes = [8, 32], strides = [1, 1]} : vector<32x32xf32> to vector<8x32xf32>
    %cst_460 = arith.constant dense<0.000000e+00> : vector<8x32xf32>
    %1043 = tpu.matmul %1041, %1042, %cst_460 {dimension_numbers = #tpu.dot_dimension_numbers<[1], [0], [0], [1], [0, 0, 1, 1], [], []>} : vector<8x8xf32>, vector<8x32xf32>, vector<8x32xf32> -> vector<8x32xf32>
    %1044 = arith.addf %1023, %1043 : vector<8x32xf32>
    %1045 = vector.extract_strided_slice %935 {offsets = [8, 8], sizes = [8, 8], strides = [1, 1]} : vector<16x32xf32> to vector<8x8xf32>
    %1046 = vector.extract_strided_slice %936 {offsets = [8, 8], sizes = [8, 8], strides = [1, 1]} : vector<16x32xf32> to vector<8x8xf32>
    %1047 = vector.extract_strided_slice %937 {offsets = [8, 8], sizes = [8, 8], strides = [1, 1]} : vector<16x32xf32> to vector<8x8xf32>
    %1048 = tpu.transpose %1046, [1, 0] : vector<8x8xf32> -> vector<8x8xf32>
    %cst_461 = arith.constant dense<0.000000e+00> : vector<8x8xf32>
    %1049 = tpu.matmul %1045, %1048, %cst_461 {dimension_numbers = #tpu.dot_dimension_numbers<[1], [0], [0], [1], [0, 0, 1, 1], [], []>} : vector<8x8xf32>, vector<8x8xf32>, vector<8x8xf32> -> vector<8x8xf32>
    %c1_462 = arith.constant 1 : index
    %c0_463 = arith.constant 0 : index
    %c0_464 = arith.constant 0 : index
    %1050 = vector.load %arg3[%c1_462, %c0_463, %c0_464] : memref<4x8x8xf32, #tpu.memory_space<vmem>>, vector<1x8x8xf32>
    %1051 = vector.shape_cast %1050 : vector<1x8x8xf32> to vector<8x8xf32>
    %1052 = arith.addf %1049, %1051 : vector<8x8xf32>
    %cst_465 = arith.constant dense<0xFF800000> : vector<8xf32>
    %1053 = vector.multi_reduction <maximumf>, %1052, %cst_465 [1] : vector<8x8xf32> to vector<8xf32>
    %1054 = vector.shape_cast %1053 : vector<8xf32> to vector<8x1xf32>
    %1055 = vector.broadcast %1054 : vector<8x1xf32> to vector<8x8xf32>
    %1056 = arith.subf %1052, %1055 : vector<8x8xf32>
    %1057 = math.exp %1056 : vector<8x8xf32>
    %cst_466 = arith.constant dense<0.000000e+00> : vector<8xf32>
    %1058 = vector.multi_reduction <add>, %1057, %cst_466 [1] : vector<8x8xf32> to vector<8xf32>
    %1059 = vector.shape_cast %1058 : vector<8xf32> to vector<8x1xf32>
    %1060 = vector.broadcast %1059 : vector<8x1xf32> to vector<8x8xf32>
    %1061 = arith.divf %1057, %1060 : vector<8x8xf32>
    %cst_467 = arith.constant dense<0.000000e+00> : vector<8x8xf32>
    %1062 = tpu.matmul %1061, %1047, %cst_467 {dimension_numbers = #tpu.dot_dimension_numbers<[1], [0], [0], [1], [0, 0, 1, 1], [], []>} : vector<8x8xf32>, vector<8x8xf32>, vector<8x8xf32> -> vector<8x8xf32>
    %1063 = vector.extract_strided_slice %914 {offsets = [8, 0], sizes = [8, 32], strides = [1, 1]} : vector<32x32xf32> to vector<8x32xf32>
    %cst_468 = arith.constant dense<0.000000e+00> : vector<8x32xf32>
    %1064 = tpu.matmul %1062, %1063, %cst_468 {dimension_numbers = #tpu.dot_dimension_numbers<[1], [0], [0], [1], [0, 0, 1, 1], [], []>} : vector<8x8xf32>, vector<8x32xf32>, vector<8x32xf32> -> vector<8x32xf32>
    %1065 = arith.addf %1044, %1064 : vector<8x32xf32>
    %1066 = vector.extract_strided_slice %935 {offsets = [8, 16], sizes = [8, 8], strides = [1, 1]} : vector<16x32xf32> to vector<8x8xf32>
    %1067 = vector.extract_strided_slice %936 {offsets = [8, 16], sizes = [8, 8], strides = [1, 1]} : vector<16x32xf32> to vector<8x8xf32>
    %1068 = vector.extract_strided_slice %937 {offsets = [8, 16], sizes = [8, 8], strides = [1, 1]} : vector<16x32xf32> to vector<8x8xf32>
    %1069 = tpu.transpose %1067, [1, 0] : vector<8x8xf32> -> vector<8x8xf32>
    %cst_469 = arith.constant dense<0.000000e+00> : vector<8x8xf32>
    %1070 = tpu.matmul %1066, %1069, %cst_469 {dimension_numbers = #tpu.dot_dimension_numbers<[1], [0], [0], [1], [0, 0, 1, 1], [], []>} : vector<8x8xf32>, vector<8x8xf32>, vector<8x8xf32> -> vector<8x8xf32>
    %c2_470 = arith.constant 2 : index
    %c0_471 = arith.constant 0 : index
    %c0_472 = arith.constant 0 : index
    %1071 = vector.load %arg3[%c2_470, %c0_471, %c0_472] : memref<4x8x8xf32, #tpu.memory_space<vmem>>, vector<1x8x8xf32>
    %1072 = vector.shape_cast %1071 : vector<1x8x8xf32> to vector<8x8xf32>
    %1073 = arith.addf %1070, %1072 : vector<8x8xf32>
    %cst_473 = arith.constant dense<0xFF800000> : vector<8xf32>
    %1074 = vector.multi_reduction <maximumf>, %1073, %cst_473 [1] : vector<8x8xf32> to vector<8xf32>
    %1075 = vector.shape_cast %1074 : vector<8xf32> to vector<8x1xf32>
    %1076 = vector.broadcast %1075 : vector<8x1xf32> to vector<8x8xf32>
    %1077 = arith.subf %1073, %1076 : vector<8x8xf32>
    %1078 = math.exp %1077 : vector<8x8xf32>
    %cst_474 = arith.constant dense<0.000000e+00> : vector<8xf32>
    %1079 = vector.multi_reduction <add>, %1078, %cst_474 [1] : vector<8x8xf32> to vector<8xf32>
    %1080 = vector.shape_cast %1079 : vector<8xf32> to vector<8x1xf32>
    %1081 = vector.broadcast %1080 : vector<8x1xf32> to vector<8x8xf32>
    %1082 = arith.divf %1078, %1081 : vector<8x8xf32>
    %cst_475 = arith.constant dense<0.000000e+00> : vector<8x8xf32>
    %1083 = tpu.matmul %1082, %1068, %cst_475 {dimension_numbers = #tpu.dot_dimension_numbers<[1], [0], [0], [1], [0, 0, 1, 1], [], []>} : vector<8x8xf32>, vector<8x8xf32>, vector<8x8xf32> -> vector<8x8xf32>
    %1084 = vector.extract_strided_slice %914 {offsets = [16, 0], sizes = [8, 32], strides = [1, 1]} : vector<32x32xf32> to vector<8x32xf32>
    %cst_476 = arith.constant dense<0.000000e+00> : vector<8x32xf32>
    %1085 = tpu.matmul %1083, %1084, %cst_476 {dimension_numbers = #tpu.dot_dimension_numbers<[1], [0], [0], [1], [0, 0, 1, 1], [], []>} : vector<8x8xf32>, vector<8x32xf32>, vector<8x32xf32> -> vector<8x32xf32>
    %1086 = arith.addf %1065, %1085 : vector<8x32xf32>
    %1087 = vector.extract_strided_slice %935 {offsets = [8, 24], sizes = [8, 8], strides = [1, 1]} : vector<16x32xf32> to vector<8x8xf32>
    %1088 = vector.extract_strided_slice %936 {offsets = [8, 24], sizes = [8, 8], strides = [1, 1]} : vector<16x32xf32> to vector<8x8xf32>
    %1089 = vector.extract_strided_slice %937 {offsets = [8, 24], sizes = [8, 8], strides = [1, 1]} : vector<16x32xf32> to vector<8x8xf32>
    %1090 = tpu.transpose %1088, [1, 0] : vector<8x8xf32> -> vector<8x8xf32>
    %cst_477 = arith.constant dense<0.000000e+00> : vector<8x8xf32>
    %1091 = tpu.matmul %1087, %1090, %cst_477 {dimension_numbers = #tpu.dot_dimension_numbers<[1], [0], [0], [1], [0, 0, 1, 1], [], []>} : vector<8x8xf32>, vector<8x8xf32>, vector<8x8xf32> -> vector<8x8xf32>
    %c3_478 = arith.constant 3 : index
    %c0_479 = arith.constant 0 : index
    %c0_480 = arith.constant 0 : index
    %1092 = vector.load %arg3[%c3_478, %c0_479, %c0_480] : memref<4x8x8xf32, #tpu.memory_space<vmem>>, vector<1x8x8xf32>
    %1093 = vector.shape_cast %1092 : vector<1x8x8xf32> to vector<8x8xf32>
    %1094 = arith.addf %1091, %1093 : vector<8x8xf32>
    %cst_481 = arith.constant dense<0xFF800000> : vector<8xf32>
    %1095 = vector.multi_reduction <maximumf>, %1094, %cst_481 [1] : vector<8x8xf32> to vector<8xf32>
    %1096 = vector.shape_cast %1095 : vector<8xf32> to vector<8x1xf32>
    %1097 = vector.broadcast %1096 : vector<8x1xf32> to vector<8x8xf32>
    %1098 = arith.subf %1094, %1097 : vector<8x8xf32>
    %1099 = math.exp %1098 : vector<8x8xf32>
    %cst_482 = arith.constant dense<0.000000e+00> : vector<8xf32>
    %1100 = vector.multi_reduction <add>, %1099, %cst_482 [1] : vector<8x8xf32> to vector<8xf32>
    %1101 = vector.shape_cast %1100 : vector<8xf32> to vector<8x1xf32>
    %1102 = vector.broadcast %1101 : vector<8x1xf32> to vector<8x8xf32>
    %1103 = arith.divf %1099, %1102 : vector<8x8xf32>
    %cst_483 = arith.constant dense<0.000000e+00> : vector<8x8xf32>
    %1104 = tpu.matmul %1103, %1089, %cst_483 {dimension_numbers = #tpu.dot_dimension_numbers<[1], [0], [0], [1], [0, 0, 1, 1], [], []>} : vector<8x8xf32>, vector<8x8xf32>, vector<8x8xf32> -> vector<8x8xf32>
    %1105 = vector.extract_strided_slice %914 {offsets = [24, 0], sizes = [8, 32], strides = [1, 1]} : vector<32x32xf32> to vector<8x32xf32>
    %cst_484 = arith.constant dense<0.000000e+00> : vector<8x32xf32>
    %1106 = tpu.matmul %1104, %1105, %cst_484 {dimension_numbers = #tpu.dot_dimension_numbers<[1], [0], [0], [1], [0, 0, 1, 1], [], []>} : vector<8x8xf32>, vector<8x32xf32>, vector<8x32xf32> -> vector<8x32xf32>
    %1107 = arith.addf %1086, %1106 : vector<8x32xf32>
    %1108 = tpu.concatenate %1022, %1107 in 0 : vector<8x32xf32>, vector<8x32xf32> -> vector<16x32xf32>
    %1109 = arith.addf %911, %1108 : vector<16x32xf32>
    %1110 = arith.mulf %1109, %1109 : vector<16x32xf32>
    %cst_485 = arith.constant dense<0.000000e+00> : vector<16xf32>
    %1111 = vector.multi_reduction <add>, %1110, %cst_485 [1] : vector<16x32xf32> to vector<16xf32>
    %1112 = vector.shape_cast %1111 : vector<16xf32> to vector<16x1xf32>
    %cst_486 = arith.constant 3.200000e+01 : f32
    %1113 = vector.broadcast %cst_486 : f32 to vector<16x1xf32>
    %1114 = arith.divf %1112, %1113 : vector<16x1xf32>
    %cst_487 = arith.constant 9.99999997E-7 : f32
    %1115 = vector.broadcast %cst_487 : f32 to vector<16x1xf32>
    %1116 = arith.addf %1114, %1115 : vector<16x1xf32>
    %1117 = math.rsqrt %1116 : vector<16x1xf32>
    %1118 = vector.broadcast %1117 : vector<16x1xf32> to vector<16x32xf32>
    %1119 = arith.mulf %1109, %1118 : vector<16x32xf32>
    %1120 = vector.broadcast %915 : vector<1x32xf32> to vector<16x32xf32>
    %1121 = arith.mulf %1119, %1120 : vector<16x32xf32>
    %cst_488 = arith.constant dense<0.000000e+00> : vector<16x32xf32>
    %1122 = tpu.matmul %1121, %916, %cst_488 {dimension_numbers = #tpu.dot_dimension_numbers<[1], [0], [0], [1], [0, 0, 1, 1], [], []>} : vector<16x32xf32>, vector<32x32xf32>, vector<16x32xf32> -> vector<16x32xf32>
    %cst_489 = arith.constant dense<0.000000e+00> : vector<16x64xf32>
    %1123 = tpu.matmul %499, %917, %cst_489 {dimension_numbers = #tpu.dot_dimension_numbers<[1], [0], [0], [1], [0, 0, 1, 1], [], []>} : vector<16x32xf32>, vector<32x64xf32>, vector<16x64xf32> -> vector<16x64xf32>
    %1124 = vector.extract_strided_slice %1123 {offsets = [0, 0], sizes = [16, 32], strides = [1, 1]} : vector<16x64xf32> to vector<16x32xf32>
    %1125 = vector.extract_strided_slice %1123 {offsets = [0, 32], sizes = [16, 32], strides = [1, 1]} : vector<16x64xf32> to vector<16x32xf32>
    %cst_490 = arith.constant 0.000000e+00 : f32
    %1126 = vector.broadcast %cst_490 : f32 to vector<8x32xf32>
    %1127 = vector.extract_strided_slice %1122 {offsets = [0, 0], sizes = [8, 8], strides = [1, 1]} : vector<16x32xf32> to vector<8x8xf32>
    %1128 = vector.extract_strided_slice %1124 {offsets = [0, 0], sizes = [8, 8], strides = [1, 1]} : vector<16x32xf32> to vector<8x8xf32>
    %1129 = vector.extract_strided_slice %1125 {offsets = [0, 0], sizes = [8, 8], strides = [1, 1]} : vector<16x32xf32> to vector<8x8xf32>
    %1130 = tpu.transpose %1128, [1, 0] : vector<8x8xf32> -> vector<8x8xf32>
    %cst_491 = arith.constant dense<0.000000e+00> : vector<8x8xf32>
    %1131 = tpu.matmul %1127, %1130, %cst_491 {dimension_numbers = #tpu.dot_dimension_numbers<[1], [0], [0], [1], [0, 0, 1, 1], [], []>} : vector<8x8xf32>, vector<8x8xf32>, vector<8x8xf32> -> vector<8x8xf32>
    %c0_492 = arith.constant 0 : index
    %c0_493 = arith.constant 0 : index
    %c0_494 = arith.constant 0 : index
    %1132 = vector.load %arg4[%c0_492, %c0_493, %c0_494] : memref<2x1x8xf32, #tpu.memory_space<vmem>>, vector<1x1x8xf32>
    %1133 = vector.shape_cast %1132 : vector<1x1x8xf32> to vector<1x8xf32>
    %1134 = vector.broadcast %1133 : vector<1x8xf32> to vector<8x8xf32>
    %1135 = arith.addf %1131, %1134 : vector<8x8xf32>
    %cst_495 = arith.constant dense<0xFF800000> : vector<8xf32>
    %1136 = vector.multi_reduction <maximumf>, %1135, %cst_495 [1] : vector<8x8xf32> to vector<8xf32>
    %1137 = vector.shape_cast %1136 : vector<8xf32> to vector<8x1xf32>
    %1138 = vector.broadcast %1137 : vector<8x1xf32> to vector<8x8xf32>
    %1139 = arith.subf %1135, %1138 : vector<8x8xf32>
    %1140 = math.exp %1139 : vector<8x8xf32>
    %cst_496 = arith.constant dense<0.000000e+00> : vector<8xf32>
    %1141 = vector.multi_reduction <add>, %1140, %cst_496 [1] : vector<8x8xf32> to vector<8xf32>
    %1142 = vector.shape_cast %1141 : vector<8xf32> to vector<8x1xf32>
    %1143 = vector.broadcast %1142 : vector<8x1xf32> to vector<8x8xf32>
    %1144 = arith.divf %1140, %1143 : vector<8x8xf32>
    %cst_497 = arith.constant dense<0.000000e+00> : vector<8x8xf32>
    %1145 = tpu.matmul %1144, %1129, %cst_497 {dimension_numbers = #tpu.dot_dimension_numbers<[1], [0], [0], [1], [0, 0, 1, 1], [], []>} : vector<8x8xf32>, vector<8x8xf32>, vector<8x8xf32> -> vector<8x8xf32>
    %1146 = vector.extract_strided_slice %918 {offsets = [0, 0], sizes = [8, 32], strides = [1, 1]} : vector<32x32xf32> to vector<8x32xf32>
    %cst_498 = arith.constant dense<0.000000e+00> : vector<8x32xf32>
    %1147 = tpu.matmul %1145, %1146, %cst_498 {dimension_numbers = #tpu.dot_dimension_numbers<[1], [0], [0], [1], [0, 0, 1, 1], [], []>} : vector<8x8xf32>, vector<8x32xf32>, vector<8x32xf32> -> vector<8x32xf32>
    %1148 = arith.addf %1126, %1147 : vector<8x32xf32>
    %1149 = vector.extract_strided_slice %1122 {offsets = [0, 8], sizes = [8, 8], strides = [1, 1]} : vector<16x32xf32> to vector<8x8xf32>
    %1150 = vector.extract_strided_slice %1124 {offsets = [0, 8], sizes = [8, 8], strides = [1, 1]} : vector<16x32xf32> to vector<8x8xf32>
    %1151 = vector.extract_strided_slice %1125 {offsets = [0, 8], sizes = [8, 8], strides = [1, 1]} : vector<16x32xf32> to vector<8x8xf32>
    %1152 = tpu.transpose %1150, [1, 0] : vector<8x8xf32> -> vector<8x8xf32>
    %cst_499 = arith.constant dense<0.000000e+00> : vector<8x8xf32>
    %1153 = tpu.matmul %1149, %1152, %cst_499 {dimension_numbers = #tpu.dot_dimension_numbers<[1], [0], [0], [1], [0, 0, 1, 1], [], []>} : vector<8x8xf32>, vector<8x8xf32>, vector<8x8xf32> -> vector<8x8xf32>
    %c0_500 = arith.constant 0 : index
    %c0_501 = arith.constant 0 : index
    %c0_502 = arith.constant 0 : index
    %1154 = vector.load %arg4[%c0_500, %c0_501, %c0_502] : memref<2x1x8xf32, #tpu.memory_space<vmem>>, vector<1x1x8xf32>
    %1155 = vector.shape_cast %1154 : vector<1x1x8xf32> to vector<1x8xf32>
    %1156 = vector.broadcast %1155 : vector<1x8xf32> to vector<8x8xf32>
    %1157 = arith.addf %1153, %1156 : vector<8x8xf32>
    %cst_503 = arith.constant dense<0xFF800000> : vector<8xf32>
    %1158 = vector.multi_reduction <maximumf>, %1157, %cst_503 [1] : vector<8x8xf32> to vector<8xf32>
    %1159 = vector.shape_cast %1158 : vector<8xf32> to vector<8x1xf32>
    %1160 = vector.broadcast %1159 : vector<8x1xf32> to vector<8x8xf32>
    %1161 = arith.subf %1157, %1160 : vector<8x8xf32>
    %1162 = math.exp %1161 : vector<8x8xf32>
    %cst_504 = arith.constant dense<0.000000e+00> : vector<8xf32>
    %1163 = vector.multi_reduction <add>, %1162, %cst_504 [1] : vector<8x8xf32> to vector<8xf32>
    %1164 = vector.shape_cast %1163 : vector<8xf32> to vector<8x1xf32>
    %1165 = vector.broadcast %1164 : vector<8x1xf32> to vector<8x8xf32>
    %1166 = arith.divf %1162, %1165 : vector<8x8xf32>
    %cst_505 = arith.constant dense<0.000000e+00> : vector<8x8xf32>
    %1167 = tpu.matmul %1166, %1151, %cst_505 {dimension_numbers = #tpu.dot_dimension_numbers<[1], [0], [0], [1], [0, 0, 1, 1], [], []>} : vector<8x8xf32>, vector<8x8xf32>, vector<8x8xf32> -> vector<8x8xf32>
    %1168 = vector.extract_strided_slice %918 {offsets = [8, 0], sizes = [8, 32], strides = [1, 1]} : vector<32x32xf32> to vector<8x32xf32>
    %cst_506 = arith.constant dense<0.000000e+00> : vector<8x32xf32>
    %1169 = tpu.matmul %1167, %1168, %cst_506 {dimension_numbers = #tpu.dot_dimension_numbers<[1], [0], [0], [1], [0, 0, 1, 1], [], []>} : vector<8x8xf32>, vector<8x32xf32>, vector<8x32xf32> -> vector<8x32xf32>
    %1170 = arith.addf %1148, %1169 : vector<8x32xf32>
    %1171 = vector.extract_strided_slice %1122 {offsets = [0, 16], sizes = [8, 8], strides = [1, 1]} : vector<16x32xf32> to vector<8x8xf32>
    %1172 = vector.extract_strided_slice %1124 {offsets = [0, 16], sizes = [8, 8], strides = [1, 1]} : vector<16x32xf32> to vector<8x8xf32>
    %1173 = vector.extract_strided_slice %1125 {offsets = [0, 16], sizes = [8, 8], strides = [1, 1]} : vector<16x32xf32> to vector<8x8xf32>
    %1174 = tpu.transpose %1172, [1, 0] : vector<8x8xf32> -> vector<8x8xf32>
    %cst_507 = arith.constant dense<0.000000e+00> : vector<8x8xf32>
    %1175 = tpu.matmul %1171, %1174, %cst_507 {dimension_numbers = #tpu.dot_dimension_numbers<[1], [0], [0], [1], [0, 0, 1, 1], [], []>} : vector<8x8xf32>, vector<8x8xf32>, vector<8x8xf32> -> vector<8x8xf32>
    %c0_508 = arith.constant 0 : index
    %c0_509 = arith.constant 0 : index
    %c0_510 = arith.constant 0 : index
    %1176 = vector.load %arg4[%c0_508, %c0_509, %c0_510] : memref<2x1x8xf32, #tpu.memory_space<vmem>>, vector<1x1x8xf32>
    %1177 = vector.shape_cast %1176 : vector<1x1x8xf32> to vector<1x8xf32>
    %1178 = vector.broadcast %1177 : vector<1x8xf32> to vector<8x8xf32>
    %1179 = arith.addf %1175, %1178 : vector<8x8xf32>
    %cst_511 = arith.constant dense<0xFF800000> : vector<8xf32>
    %1180 = vector.multi_reduction <maximumf>, %1179, %cst_511 [1] : vector<8x8xf32> to vector<8xf32>
    %1181 = vector.shape_cast %1180 : vector<8xf32> to vector<8x1xf32>
    %1182 = vector.broadcast %1181 : vector<8x1xf32> to vector<8x8xf32>
    %1183 = arith.subf %1179, %1182 : vector<8x8xf32>
    %1184 = math.exp %1183 : vector<8x8xf32>
    %cst_512 = arith.constant dense<0.000000e+00> : vector<8xf32>
    %1185 = vector.multi_reduction <add>, %1184, %cst_512 [1] : vector<8x8xf32> to vector<8xf32>
    %1186 = vector.shape_cast %1185 : vector<8xf32> to vector<8x1xf32>
    %1187 = vector.broadcast %1186 : vector<8x1xf32> to vector<8x8xf32>
    %1188 = arith.divf %1184, %1187 : vector<8x8xf32>
    %cst_513 = arith.constant dense<0.000000e+00> : vector<8x8xf32>
    %1189 = tpu.matmul %1188, %1173, %cst_513 {dimension_numbers = #tpu.dot_dimension_numbers<[1], [0], [0], [1], [0, 0, 1, 1], [], []>} : vector<8x8xf32>, vector<8x8xf32>, vector<8x8xf32> -> vector<8x8xf32>
    %1190 = vector.extract_strided_slice %918 {offsets = [16, 0], sizes = [8, 32], strides = [1, 1]} : vector<32x32xf32> to vector<8x32xf32>
    %cst_514 = arith.constant dense<0.000000e+00> : vector<8x32xf32>
    %1191 = tpu.matmul %1189, %1190, %cst_514 {dimension_numbers = #tpu.dot_dimension_numbers<[1], [0], [0], [1], [0, 0, 1, 1], [], []>} : vector<8x8xf32>, vector<8x32xf32>, vector<8x32xf32> -> vector<8x32xf32>
    %1192 = arith.addf %1170, %1191 : vector<8x32xf32>
    %1193 = vector.extract_strided_slice %1122 {offsets = [0, 24], sizes = [8, 8], strides = [1, 1]} : vector<16x32xf32> to vector<8x8xf32>
    %1194 = vector.extract_strided_slice %1124 {offsets = [0, 24], sizes = [8, 8], strides = [1, 1]} : vector<16x32xf32> to vector<8x8xf32>
    %1195 = vector.extract_strided_slice %1125 {offsets = [0, 24], sizes = [8, 8], strides = [1, 1]} : vector<16x32xf32> to vector<8x8xf32>
    %1196 = tpu.transpose %1194, [1, 0] : vector<8x8xf32> -> vector<8x8xf32>
    %cst_515 = arith.constant dense<0.000000e+00> : vector<8x8xf32>
    %1197 = tpu.matmul %1193, %1196, %cst_515 {dimension_numbers = #tpu.dot_dimension_numbers<[1], [0], [0], [1], [0, 0, 1, 1], [], []>} : vector<8x8xf32>, vector<8x8xf32>, vector<8x8xf32> -> vector<8x8xf32>
    %c0_516 = arith.constant 0 : index
    %c0_517 = arith.constant 0 : index
    %c0_518 = arith.constant 0 : index
    %1198 = vector.load %arg4[%c0_516, %c0_517, %c0_518] : memref<2x1x8xf32, #tpu.memory_space<vmem>>, vector<1x1x8xf32>
    %1199 = vector.shape_cast %1198 : vector<1x1x8xf32> to vector<1x8xf32>
    %1200 = vector.broadcast %1199 : vector<1x8xf32> to vector<8x8xf32>
    %1201 = arith.addf %1197, %1200 : vector<8x8xf32>
    %cst_519 = arith.constant dense<0xFF800000> : vector<8xf32>
    %1202 = vector.multi_reduction <maximumf>, %1201, %cst_519 [1] : vector<8x8xf32> to vector<8xf32>
    %1203 = vector.shape_cast %1202 : vector<8xf32> to vector<8x1xf32>
    %1204 = vector.broadcast %1203 : vector<8x1xf32> to vector<8x8xf32>
    %1205 = arith.subf %1201, %1204 : vector<8x8xf32>
    %1206 = math.exp %1205 : vector<8x8xf32>
    %cst_520 = arith.constant dense<0.000000e+00> : vector<8xf32>
    %1207 = vector.multi_reduction <add>, %1206, %cst_520 [1] : vector<8x8xf32> to vector<8xf32>
    %1208 = vector.shape_cast %1207 : vector<8xf32> to vector<8x1xf32>
    %1209 = vector.broadcast %1208 : vector<8x1xf32> to vector<8x8xf32>
    %1210 = arith.divf %1206, %1209 : vector<8x8xf32>
    %cst_521 = arith.constant dense<0.000000e+00> : vector<8x8xf32>
    %1211 = tpu.matmul %1210, %1195, %cst_521 {dimension_numbers = #tpu.dot_dimension_numbers<[1], [0], [0], [1], [0, 0, 1, 1], [], []>} : vector<8x8xf32>, vector<8x8xf32>, vector<8x8xf32> -> vector<8x8xf32>
    %1212 = vector.extract_strided_slice %918 {offsets = [24, 0], sizes = [8, 32], strides = [1, 1]} : vector<32x32xf32> to vector<8x32xf32>
    %cst_522 = arith.constant dense<0.000000e+00> : vector<8x32xf32>
    %1213 = tpu.matmul %1211, %1212, %cst_522 {dimension_numbers = #tpu.dot_dimension_numbers<[1], [0], [0], [1], [0, 0, 1, 1], [], []>} : vector<8x8xf32>, vector<8x32xf32>, vector<8x32xf32> -> vector<8x32xf32>
    %1214 = arith.addf %1192, %1213 : vector<8x32xf32>
    %cst_523 = arith.constant 0.000000e+00 : f32
    %1215 = vector.broadcast %cst_523 : f32 to vector<8x32xf32>
    %1216 = vector.extract_strided_slice %1122 {offsets = [8, 0], sizes = [8, 8], strides = [1, 1]} : vector<16x32xf32> to vector<8x8xf32>
    %1217 = vector.extract_strided_slice %1124 {offsets = [8, 0], sizes = [8, 8], strides = [1, 1]} : vector<16x32xf32> to vector<8x8xf32>
    %1218 = vector.extract_strided_slice %1125 {offsets = [8, 0], sizes = [8, 8], strides = [1, 1]} : vector<16x32xf32> to vector<8x8xf32>
    %1219 = tpu.transpose %1217, [1, 0] : vector<8x8xf32> -> vector<8x8xf32>
    %cst_524 = arith.constant dense<0.000000e+00> : vector<8x8xf32>
    %1220 = tpu.matmul %1216, %1219, %cst_524 {dimension_numbers = #tpu.dot_dimension_numbers<[1], [0], [0], [1], [0, 0, 1, 1], [], []>} : vector<8x8xf32>, vector<8x8xf32>, vector<8x8xf32> -> vector<8x8xf32>
    %c1_525 = arith.constant 1 : index
    %c0_526 = arith.constant 0 : index
    %c0_527 = arith.constant 0 : index
    %1221 = vector.load %arg4[%c1_525, %c0_526, %c0_527] : memref<2x1x8xf32, #tpu.memory_space<vmem>>, vector<1x1x8xf32>
    %1222 = vector.shape_cast %1221 : vector<1x1x8xf32> to vector<1x8xf32>
    %1223 = vector.broadcast %1222 : vector<1x8xf32> to vector<8x8xf32>
    %1224 = arith.addf %1220, %1223 : vector<8x8xf32>
    %cst_528 = arith.constant dense<0xFF800000> : vector<8xf32>
    %1225 = vector.multi_reduction <maximumf>, %1224, %cst_528 [1] : vector<8x8xf32> to vector<8xf32>
    %1226 = vector.shape_cast %1225 : vector<8xf32> to vector<8x1xf32>
    %1227 = vector.broadcast %1226 : vector<8x1xf32> to vector<8x8xf32>
    %1228 = arith.subf %1224, %1227 : vector<8x8xf32>
    %1229 = math.exp %1228 : vector<8x8xf32>
    %cst_529 = arith.constant dense<0.000000e+00> : vector<8xf32>
    %1230 = vector.multi_reduction <add>, %1229, %cst_529 [1] : vector<8x8xf32> to vector<8xf32>
    %1231 = vector.shape_cast %1230 : vector<8xf32> to vector<8x1xf32>
    %1232 = vector.broadcast %1231 : vector<8x1xf32> to vector<8x8xf32>
    %1233 = arith.divf %1229, %1232 : vector<8x8xf32>
    %cst_530 = arith.constant dense<0.000000e+00> : vector<8x8xf32>
    %1234 = tpu.matmul %1233, %1218, %cst_530 {dimension_numbers = #tpu.dot_dimension_numbers<[1], [0], [0], [1], [0, 0, 1, 1], [], []>} : vector<8x8xf32>, vector<8x8xf32>, vector<8x8xf32> -> vector<8x8xf32>
    %1235 = vector.extract_strided_slice %918 {offsets = [0, 0], sizes = [8, 32], strides = [1, 1]} : vector<32x32xf32> to vector<8x32xf32>
    %cst_531 = arith.constant dense<0.000000e+00> : vector<8x32xf32>
    %1236 = tpu.matmul %1234, %1235, %cst_531 {dimension_numbers = #tpu.dot_dimension_numbers<[1], [0], [0], [1], [0, 0, 1, 1], [], []>} : vector<8x8xf32>, vector<8x32xf32>, vector<8x32xf32> -> vector<8x32xf32>
    %1237 = arith.addf %1215, %1236 : vector<8x32xf32>
    %1238 = vector.extract_strided_slice %1122 {offsets = [8, 8], sizes = [8, 8], strides = [1, 1]} : vector<16x32xf32> to vector<8x8xf32>
    %1239 = vector.extract_strided_slice %1124 {offsets = [8, 8], sizes = [8, 8], strides = [1, 1]} : vector<16x32xf32> to vector<8x8xf32>
    %1240 = vector.extract_strided_slice %1125 {offsets = [8, 8], sizes = [8, 8], strides = [1, 1]} : vector<16x32xf32> to vector<8x8xf32>
    %1241 = tpu.transpose %1239, [1, 0] : vector<8x8xf32> -> vector<8x8xf32>
    %cst_532 = arith.constant dense<0.000000e+00> : vector<8x8xf32>
    %1242 = tpu.matmul %1238, %1241, %cst_532 {dimension_numbers = #tpu.dot_dimension_numbers<[1], [0], [0], [1], [0, 0, 1, 1], [], []>} : vector<8x8xf32>, vector<8x8xf32>, vector<8x8xf32> -> vector<8x8xf32>
    %c1_533 = arith.constant 1 : index
    %c0_534 = arith.constant 0 : index
    %c0_535 = arith.constant 0 : index
    %1243 = vector.load %arg4[%c1_533, %c0_534, %c0_535] : memref<2x1x8xf32, #tpu.memory_space<vmem>>, vector<1x1x8xf32>
    %1244 = vector.shape_cast %1243 : vector<1x1x8xf32> to vector<1x8xf32>
    %1245 = vector.broadcast %1244 : vector<1x8xf32> to vector<8x8xf32>
    %1246 = arith.addf %1242, %1245 : vector<8x8xf32>
    %cst_536 = arith.constant dense<0xFF800000> : vector<8xf32>
    %1247 = vector.multi_reduction <maximumf>, %1246, %cst_536 [1] : vector<8x8xf32> to vector<8xf32>
    %1248 = vector.shape_cast %1247 : vector<8xf32> to vector<8x1xf32>
    %1249 = vector.broadcast %1248 : vector<8x1xf32> to vector<8x8xf32>
    %1250 = arith.subf %1246, %1249 : vector<8x8xf32>
    %1251 = math.exp %1250 : vector<8x8xf32>
    %cst_537 = arith.constant dense<0.000000e+00> : vector<8xf32>
    %1252 = vector.multi_reduction <add>, %1251, %cst_537 [1] : vector<8x8xf32> to vector<8xf32>
    %1253 = vector.shape_cast %1252 : vector<8xf32> to vector<8x1xf32>
    %1254 = vector.broadcast %1253 : vector<8x1xf32> to vector<8x8xf32>
    %1255 = arith.divf %1251, %1254 : vector<8x8xf32>
    %cst_538 = arith.constant dense<0.000000e+00> : vector<8x8xf32>
    %1256 = tpu.matmul %1255, %1240, %cst_538 {dimension_numbers = #tpu.dot_dimension_numbers<[1], [0], [0], [1], [0, 0, 1, 1], [], []>} : vector<8x8xf32>, vector<8x8xf32>, vector<8x8xf32> -> vector<8x8xf32>
    %1257 = vector.extract_strided_slice %918 {offsets = [8, 0], sizes = [8, 32], strides = [1, 1]} : vector<32x32xf32> to vector<8x32xf32>
    %cst_539 = arith.constant dense<0.000000e+00> : vector<8x32xf32>
    %1258 = tpu.matmul %1256, %1257, %cst_539 {dimension_numbers = #tpu.dot_dimension_numbers<[1], [0], [0], [1], [0, 0, 1, 1], [], []>} : vector<8x8xf32>, vector<8x32xf32>, vector<8x32xf32> -> vector<8x32xf32>
    %1259 = arith.addf %1237, %1258 : vector<8x32xf32>
    %1260 = vector.extract_strided_slice %1122 {offsets = [8, 16], sizes = [8, 8], strides = [1, 1]} : vector<16x32xf32> to vector<8x8xf32>
    %1261 = vector.extract_strided_slice %1124 {offsets = [8, 16], sizes = [8, 8], strides = [1, 1]} : vector<16x32xf32> to vector<8x8xf32>
    %1262 = vector.extract_strided_slice %1125 {offsets = [8, 16], sizes = [8, 8], strides = [1, 1]} : vector<16x32xf32> to vector<8x8xf32>
    %1263 = tpu.transpose %1261, [1, 0] : vector<8x8xf32> -> vector<8x8xf32>
    %cst_540 = arith.constant dense<0.000000e+00> : vector<8x8xf32>
    %1264 = tpu.matmul %1260, %1263, %cst_540 {dimension_numbers = #tpu.dot_dimension_numbers<[1], [0], [0], [1], [0, 0, 1, 1], [], []>} : vector<8x8xf32>, vector<8x8xf32>, vector<8x8xf32> -> vector<8x8xf32>
    %c1_541 = arith.constant 1 : index
    %c0_542 = arith.constant 0 : index
    %c0_543 = arith.constant 0 : index
    %1265 = vector.load %arg4[%c1_541, %c0_542, %c0_543] : memref<2x1x8xf32, #tpu.memory_space<vmem>>, vector<1x1x8xf32>
    %1266 = vector.shape_cast %1265 : vector<1x1x8xf32> to vector<1x8xf32>
    %1267 = vector.broadcast %1266 : vector<1x8xf32> to vector<8x8xf32>
    %1268 = arith.addf %1264, %1267 : vector<8x8xf32>
    %cst_544 = arith.constant dense<0xFF800000> : vector<8xf32>
    %1269 = vector.multi_reduction <maximumf>, %1268, %cst_544 [1] : vector<8x8xf32> to vector<8xf32>
    %1270 = vector.shape_cast %1269 : vector<8xf32> to vector<8x1xf32>
    %1271 = vector.broadcast %1270 : vector<8x1xf32> to vector<8x8xf32>
    %1272 = arith.subf %1268, %1271 : vector<8x8xf32>
    %1273 = math.exp %1272 : vector<8x8xf32>
    %cst_545 = arith.constant dense<0.000000e+00> : vector<8xf32>
    %1274 = vector.multi_reduction <add>, %1273, %cst_545 [1] : vector<8x8xf32> to vector<8xf32>
    %1275 = vector.shape_cast %1274 : vector<8xf32> to vector<8x1xf32>
    %1276 = vector.broadcast %1275 : vector<8x1xf32> to vector<8x8xf32>
    %1277 = arith.divf %1273, %1276 : vector<8x8xf32>
    %cst_546 = arith.constant dense<0.000000e+00> : vector<8x8xf32>
    %1278 = tpu.matmul %1277, %1262, %cst_546 {dimension_numbers = #tpu.dot_dimension_numbers<[1], [0], [0], [1], [0, 0, 1, 1], [], []>} : vector<8x8xf32>, vector<8x8xf32>, vector<8x8xf32> -> vector<8x8xf32>
    %1279 = vector.extract_strided_slice %918 {offsets = [16, 0], sizes = [8, 32], strides = [1, 1]} : vector<32x32xf32> to vector<8x32xf32>
    %cst_547 = arith.constant dense<0.000000e+00> : vector<8x32xf32>
    %1280 = tpu.matmul %1278, %1279, %cst_547 {dimension_numbers = #tpu.dot_dimension_numbers<[1], [0], [0], [1], [0, 0, 1, 1], [], []>} : vector<8x8xf32>, vector<8x32xf32>, vector<8x32xf32> -> vector<8x32xf32>
    %1281 = arith.addf %1259, %1280 : vector<8x32xf32>
    %1282 = vector.extract_strided_slice %1122 {offsets = [8, 24], sizes = [8, 8], strides = [1, 1]} : vector<16x32xf32> to vector<8x8xf32>
    %1283 = vector.extract_strided_slice %1124 {offsets = [8, 24], sizes = [8, 8], strides = [1, 1]} : vector<16x32xf32> to vector<8x8xf32>
    %1284 = vector.extract_strided_slice %1125 {offsets = [8, 24], sizes = [8, 8], strides = [1, 1]} : vector<16x32xf32> to vector<8x8xf32>
    %1285 = tpu.transpose %1283, [1, 0] : vector<8x8xf32> -> vector<8x8xf32>
    %cst_548 = arith.constant dense<0.000000e+00> : vector<8x8xf32>
    %1286 = tpu.matmul %1282, %1285, %cst_548 {dimension_numbers = #tpu.dot_dimension_numbers<[1], [0], [0], [1], [0, 0, 1, 1], [], []>} : vector<8x8xf32>, vector<8x8xf32>, vector<8x8xf32> -> vector<8x8xf32>
    %c1_549 = arith.constant 1 : index
    %c0_550 = arith.constant 0 : index
    %c0_551 = arith.constant 0 : index
    %1287 = vector.load %arg4[%c1_549, %c0_550, %c0_551] : memref<2x1x8xf32, #tpu.memory_space<vmem>>, vector<1x1x8xf32>
    %1288 = vector.shape_cast %1287 : vector<1x1x8xf32> to vector<1x8xf32>
    %1289 = vector.broadcast %1288 : vector<1x8xf32> to vector<8x8xf32>
    %1290 = arith.addf %1286, %1289 : vector<8x8xf32>
    %cst_552 = arith.constant dense<0xFF800000> : vector<8xf32>
    %1291 = vector.multi_reduction <maximumf>, %1290, %cst_552 [1] : vector<8x8xf32> to vector<8xf32>
    %1292 = vector.shape_cast %1291 : vector<8xf32> to vector<8x1xf32>
    %1293 = vector.broadcast %1292 : vector<8x1xf32> to vector<8x8xf32>
    %1294 = arith.subf %1290, %1293 : vector<8x8xf32>
    %1295 = math.exp %1294 : vector<8x8xf32>
    %cst_553 = arith.constant dense<0.000000e+00> : vector<8xf32>
    %1296 = vector.multi_reduction <add>, %1295, %cst_553 [1] : vector<8x8xf32> to vector<8xf32>
    %1297 = vector.shape_cast %1296 : vector<8xf32> to vector<8x1xf32>
    %1298 = vector.broadcast %1297 : vector<8x1xf32> to vector<8x8xf32>
    %1299 = arith.divf %1295, %1298 : vector<8x8xf32>
    %cst_554 = arith.constant dense<0.000000e+00> : vector<8x8xf32>
    %1300 = tpu.matmul %1299, %1284, %cst_554 {dimension_numbers = #tpu.dot_dimension_numbers<[1], [0], [0], [1], [0, 0, 1, 1], [], []>} : vector<8x8xf32>, vector<8x8xf32>, vector<8x8xf32> -> vector<8x8xf32>
    %1301 = vector.extract_strided_slice %918 {offsets = [24, 0], sizes = [8, 32], strides = [1, 1]} : vector<32x32xf32> to vector<8x32xf32>
    %cst_555 = arith.constant dense<0.000000e+00> : vector<8x32xf32>
    %1302 = tpu.matmul %1300, %1301, %cst_555 {dimension_numbers = #tpu.dot_dimension_numbers<[1], [0], [0], [1], [0, 0, 1, 1], [], []>} : vector<8x8xf32>, vector<8x32xf32>, vector<8x32xf32> -> vector<8x32xf32>
    %1303 = arith.addf %1281, %1302 : vector<8x32xf32>
    %1304 = tpu.concatenate %1214, %1303 in 0 : vector<8x32xf32>, vector<8x32xf32> -> vector<16x32xf32>
    %1305 = arith.addf %1109, %1304 : vector<16x32xf32>
    %1306 = arith.mulf %1305, %1305 : vector<16x32xf32>
    %cst_556 = arith.constant dense<0.000000e+00> : vector<16xf32>
    %1307 = vector.multi_reduction <add>, %1306, %cst_556 [1] : vector<16x32xf32> to vector<16xf32>
    %1308 = vector.shape_cast %1307 : vector<16xf32> to vector<16x1xf32>
    %cst_557 = arith.constant 3.200000e+01 : f32
    %1309 = vector.broadcast %cst_557 : f32 to vector<16x1xf32>
    %1310 = arith.divf %1308, %1309 : vector<16x1xf32>
    %cst_558 = arith.constant 9.99999997E-7 : f32
    %1311 = vector.broadcast %cst_558 : f32 to vector<16x1xf32>
    %1312 = arith.addf %1310, %1311 : vector<16x1xf32>
    %1313 = math.rsqrt %1312 : vector<16x1xf32>
    %1314 = vector.broadcast %1313 : vector<16x1xf32> to vector<16x32xf32>
    %1315 = arith.mulf %1305, %1314 : vector<16x32xf32>
    %1316 = vector.broadcast %919 : vector<1x32xf32> to vector<16x32xf32>
    %1317 = arith.mulf %1315, %1316 : vector<16x32xf32>
    %cst_559 = arith.constant dense<0.000000e+00> : vector<16x64xf32>
    %1318 = tpu.matmul %1317, %920, %cst_559 {dimension_numbers = #tpu.dot_dimension_numbers<[1], [0], [0], [1], [0, 0, 1, 1], [], []>} : vector<16x32xf32>, vector<32x64xf32>, vector<16x64xf32> -> vector<16x64xf32>
    %cst_560 = arith.constant 0.000000e+00 : f32
    %1319 = vector.broadcast %cst_560 : f32 to vector<16x64xf32>
    %1320 = arith.maximumf %1318, %1319 : vector<16x64xf32>
    %cst_561 = arith.constant dense<0.000000e+00> : vector<16x32xf32>
    %1321 = tpu.matmul %1320, %921, %cst_561 {dimension_numbers = #tpu.dot_dimension_numbers<[1], [0], [0], [1], [0, 0, 1, 1], [], []>} : vector<16x64xf32>, vector<64x32xf32>, vector<16x32xf32> -> vector<16x32xf32>
    %1322 = arith.addf %1305, %1321 : vector<16x32xf32>
    %c0_562 = arith.constant 0 : index
    %c0_563 = arith.constant 0 : index
    %1323 = vector.load %arg40[%c0_562, %c0_563] : memref<1x32xf32, #tpu.memory_space<vmem>>, vector<1x32xf32>
    %1324 = arith.mulf %1322, %1322 : vector<16x32xf32>
    %cst_564 = arith.constant dense<0.000000e+00> : vector<16xf32>
    %1325 = vector.multi_reduction <add>, %1324, %cst_564 [1] : vector<16x32xf32> to vector<16xf32>
    %1326 = vector.shape_cast %1325 : vector<16xf32> to vector<16x1xf32>
    %cst_565 = arith.constant 3.200000e+01 : f32
    %1327 = vector.broadcast %cst_565 : f32 to vector<16x1xf32>
    %1328 = arith.divf %1326, %1327 : vector<16x1xf32>
    %cst_566 = arith.constant 9.99999997E-7 : f32
    %1329 = vector.broadcast %cst_566 : f32 to vector<16x1xf32>
    %1330 = arith.addf %1328, %1329 : vector<16x1xf32>
    %1331 = math.rsqrt %1330 : vector<16x1xf32>
    %1332 = vector.broadcast %1331 : vector<16x1xf32> to vector<16x32xf32>
    %1333 = arith.mulf %1322, %1332 : vector<16x32xf32>
    %1334 = vector.broadcast %1323 : vector<1x32xf32> to vector<16x32xf32>
    %1335 = arith.mulf %1333, %1334 : vector<16x32xf32>
    %c0_567 = arith.constant 0 : index
    %c0_568 = arith.constant 0 : index
    %1336 = vector.load %arg41[%c0_567, %c0_568] : memref<32x64xf32, #tpu.memory_space<vmem>>, vector<32x64xf32>
    %cst_569 = arith.constant dense<0.000000e+00> : vector<16x64xf32>
    %1337 = tpu.matmul %1335, %1336, %cst_569 {dimension_numbers = #tpu.dot_dimension_numbers<[1], [0], [0], [1], [0, 0, 1, 1], [], []>} : vector<16x32xf32>, vector<32x64xf32>, vector<16x64xf32> -> vector<16x64xf32>
    %c0_570 = arith.constant 0 : index
    %c0_571 = arith.constant 0 : index
    %1338 = vector.load %arg42[%c0_570, %c0_571] : memref<16x64xf32, #tpu.memory_space<vmem>>, vector<16x64xf32>
    tpu.vector_store %arg42[%c0_570, %c0_571], %1337 {strides = array<i32>} : memref<16x64xf32, #tpu.memory_space<vmem>>, vector<16x64xf32>,
    %cst_572 = arith.constant dense<0xFF800000> : vector<16xf32>
    %1339 = vector.multi_reduction <maximumf>, %1337, %cst_572 [1] : vector<16x64xf32> to vector<16xf32>
    %1340 = vector.shape_cast %1339 : vector<16xf32> to vector<16x1xf32>
    %1341 = vector.broadcast %1340 : vector<16x1xf32> to vector<16x64xf32>
    %1342 = arith.subf %1337, %1341 : vector<16x64xf32>
    %1343 = math.exp %1342 : vector<16x64xf32>
    %cst_573 = arith.constant dense<0.000000e+00> : vector<16xf32>
    %1344 = vector.multi_reduction <add>, %1343, %cst_573 [1] : vector<16x64xf32> to vector<16xf32>
    %1345 = vector.shape_cast %1344 : vector<16xf32> to vector<16x1xf32>
    %1346 = math.log %1345 : vector<16x1xf32>
    %1347 = arith.addf %1340, %1346 : vector<16x1xf32>
    %1348 = tpu.iota {dimensions = array<i32: 1>} : vector<16x64xi32>
    %c0_574 = arith.constant 0 : index
    %c0_575 = arith.constant 0 : index
    %1349 = vector.load %arg5[%c0_574, %c0_575] : memref<16x1xi32, #tpu.memory_space<vmem>>, vector<16x1xi32>
    %1350 = vector.broadcast %1349 : vector<16x1xi32> to vector<16x64xi32>
    %1351 = arith.cmpi eq, %1348, %1350 : vector<16x64xi32>
    %cst_576 = arith.constant 0.000000e+00 : f32
    %1352 = vector.broadcast %cst_576 : f32 to vector<16x64xf32>
    %1353 = arith.select %1351, %1337, %1352 : vector<16x64xi1>, vector<16x64xf32>
    %cst_577 = arith.constant dense<0.000000e+00> : vector<16xf32>
    %1354 = vector.multi_reduction <add>, %1353, %cst_577 [1] : vector<16x64xf32> to vector<16xf32>
    %1355 = vector.shape_cast %1354 : vector<16xf32> to vector<16x1xf32>
    %c0_578 = arith.constant 0 : index
    %c0_579 = arith.constant 0 : index
    %1356 = vector.load %arg6[%c0_578, %c0_579] : memref<16x1xf32, #tpu.memory_space<vmem>>, vector<16x1xf32>
    %1357 = arith.subf %1347, %1355 : vector<16x1xf32>
    %1358 = arith.mulf %1357, %1356 : vector<16x1xf32>
    %1359 = vector.shape_cast %1356 : vector<16x1xf32> to vector<1x16x1xf32>
    %cst_580 = arith.constant dense<0.000000e+00> : vector<1xf32>
    %1360 = vector.multi_reduction <add>, %1359, %cst_580 [1, 2] : vector<1x16x1xf32> to vector<1xf32>
    %1361 = vector.shape_cast %1360 : vector<1xf32> to vector<1x1x1xf32>
    %1362 = vector.extract %1361[0, 0, 0] : f32 from vector<1x1x1xf32>
    %1363 = vector.broadcast %1362 : f32 to vector<1x1xf32>
    %cst_581 = arith.constant 1.000000e+00 : f32
    %1364 = vector.broadcast %cst_581 : f32 to vector<1x1xf32>
    %1365 = arith.maximumf %1363, %1364 : vector<1x1xf32>
    %1366 = vector.shape_cast %1358 : vector<16x1xf32> to vector<1x16x1xf32>
    %cst_582 = arith.constant dense<0.000000e+00> : vector<1xf32>
    %1367 = vector.multi_reduction <add>, %1366, %cst_582 [1, 2] : vector<1x16x1xf32> to vector<1xf32>
    %1368 = vector.shape_cast %1367 : vector<1xf32> to vector<1x1x1xf32>
    %1369 = vector.extract %1368[0, 0, 0] : f32 from vector<1x1x1xf32>
    %1370 = vector.broadcast %1369 : f32 to vector<1x1xf32>
    %1371 = arith.divf %1370, %1365 : vector<1x1xf32>
    %c0_583 = arith.constant 0 : index
    %c0_584 = arith.constant 0 : index
    %1372 = vector.load %arg43[%c0_583, %c0_584] : memref<1x1xf32, #tpu.memory_space<vmem>>, vector<1x1xf32>
    tpu.vector_store %arg43[%c0_583, %c0_584], %1371 {strides = array<i32>} : memref<1x1xf32, #tpu.memory_space<vmem>>, vector<1x1xf32>,
    return
  }
}

</mosaic_0001>

<bundles_post_ra>
// kernel: _lambda_.1
= control target key start
LH: loop header
LB: loop body
LE: loop exit
PB: predicated region body
PF: predicated region fallthrough
CT: control target
= control target key end

     0   :  { %s6996_s6 = smov 1   ;;  %s6997_s10 = smov 2   ;;  %s8546_s0 = inlined_call_operand.smem [shape: u32[44], index: -1, kind: input, shape index: {}] }
   0x1   :  { %s7064_s5 = sld [smem:[%s8546_s0]]   ;;  %s6998_s14 = smov 3  }
   0x2   :  { %s7069_s9 = sld [smem:[%s8546_s0 + %s6996_s6]]   ;;  %s6999_s18 = smov 4  }
   0x3   :  { %s7074_s13 = sld [smem:[%s8546_s0 + %s6997_s10]]   ;;  %s7000_s22 = smov 5  }
   0x4   :  { %s7079_s17 = sld [smem:[%s8546_s0 + %s6998_s14]]   ;;  %s7001_s26 = smov 6  }
   0x5   :  { %s7084_s21 = sld [smem:[%s8546_s0 + %s6999_s18]]   ;;  %s7002_s30 = smov 7  }
   0x6   :  { %s7089_s25 = sld [smem:[%s8546_s0 + %s7000_s22]]   ;;  %s7003_s4 = smov 8  }
   0x7   :  { %s7094_s29 = sld [smem:[%s8546_s0 + %s7001_s26]]   ;;  %s7004_s10 = smov 9  }
   0x8   :  { %s7099_s3 = sld [smem:[%s8546_s0 + %s7002_s30]]   ;;  %s7005_s15 = smov 10  }
   0x9   :  { %s7104_s8 = sld [smem:[%s8546_s0 + %s7003_s4]]   ;;  %s7006_s20 = smov 11  }
   0xa   :  { %8565 = sst [smem:[#allocation8_spill]] %s7079_s17  ;;  %s7007_s26 = smov 12  }
   0xb   :  { %s7109_s14 = sld [smem:[%s8546_s0 + %s7004_s10]]   ;;  %s7008_s1 = smov 13  }
   0xc   :  { %8566 = sst [smem:[#allocation9_spill]] %s7089_s25  ;;  %s7009_s7 = smov 14  }
   0xd   :  { %8567 = sst [smem:[#allocation10_spill]] %s7094_s29  ;;  %s7011_s22 = smov 16  }
   0xe   :  { %s7114_s19 = sld [smem:[%s8546_s0 + %s7005_s15]]   ;;  %s7010_s15 = smov 15  }
   0xf   :  { %s7119_s24 = sld [smem:[%s8546_s0 + %s7006_s20]]   ;;  %s7012_s28 = smov 17  }
  0x10   :  { %s7124_s30 = sld [smem:[%s8546_s0 + %s7007_s26]]  }
  0x11   :  { %s7129_s6 = sld [smem:[%s8546_s0 + %s7008_s1]]  }
  0x12   :  { %s7134_s12 = sld [smem:[%s8546_s0 + %s7009_s7]]   ;;  %s7013_s7 = smov 18  }
  0x13   :  { %s7139_s20 = sld [smem:[%s8546_s0 + %s7010_s15]]   ;;  %s7014_s15 = smov 19  }
  0x14   :  { %s7144_s27 = sld [smem:[%s8546_s0 + %s7011_s22]]   ;;  %s7015_s22 = smov 20  }
  0x15   :  { %s7149_s4 = sld [smem:[%s8546_s0 + %s7012_s28]]   ;;  %s7016_s28 = smov 21  }
  0x16   :  { %s7154_s29 = sld [smem:[%s8546_s0 + %s7013_s7]]   ;;  %s7017_s7 = smov 22  }
  0x17   :  { %s7159_s25 = sld [smem:[%s8546_s0 + %s7014_s15]]   ;;  %s7018_s15 = smov 23  }
  0x18   :  { %s7164_s17 = sld [smem:[%s8546_s0 + %s7015_s22]]   ;;  %s7019_s22 = smov 24  }
  0x1a   :  { %8568 = sst [smem:[#allocation11_spill]] %s7144_s27 }
  0x1b   :  { %8569 = sst [smem:[#allocation12_spill]] %s7149_s4 }
  0x1c   :  { %8570 = sst [smem:[#allocation13_spill]] %s7154_s29 }
  0x1d   :  { %8571 = sst [smem:[#allocation14_spill]] %s7159_s25 }
  0x1e   :  { %8572 = sst [smem:[#allocation15_spill]] %s7164_s17 }
  0x1f   :  { %s7169_s27 = sld [smem:[%s8546_s0 + %s7016_s28]]   ;;  %s7020_s28 = smov 25  }
  0x20   :  { %s7174_s29 = sld [smem:[%s8546_s0 + %s7017_s7]]   ;;  %s7021_s7 = smov 26  }
  0x21   :  { %s7179_s25 = sld [smem:[%s8546_s0 + %s7018_s15]]   ;;  %s7022_s15 = smov 27  }
  0x22   :  { %s7184_s4 = sld [smem:[%s8546_s0 + %s7019_s22]]   ;;  %s7023_s22 = smov 28  }
  0x23   :  { %s7189_s17 = sld [smem:[%s8546_s0 + %s7020_s28]]   ;;  %s7024_s28 = smov 29  }
  0x26   :  { %8573 = sst [smem:[#allocation16_spill]] %s7174_s29 }
  0x27   :  { %8574 = sst [smem:[#allocation17_spill]] %s7179_s25 }
  0x28   :  { %8575 = sst [smem:[#allocation18_spill]] %s7184_s4 }
  0x29   :  { %8576 = sst [smem:[#allocation19_spill]] %s7189_s17 }
  0x2a   :  { %s7194_s29 = sld [smem:[%s8546_s0 + %s7021_s7]]   ;;  %s7025_s7 = smov 30  }
  0x2b   :  { %s7199_s25 = sld [smem:[%s8546_s0 + %s7022_s15]]   ;;  %s7026_s15 = smov 31  }
  0x2c   :  { %s7204_s4 = sld [smem:[%s8546_s0 + %s7023_s22]]   ;;  %s7027_s22 = smov 32  }
  0x2d   :  { %s7209_s17 = sld [smem:[%s8546_s0 + %s7024_s28]]   ;;  %s7028_s28 = smov 33  }
  0x30   :  { %8577 = sst [smem:[#allocation20_spill]] %s7194_s29 }
  0x31   :  { %8578 = sst [smem:[#allocation21_spill]] %s7199_s25 }
  0x32   :  { %8579 = sst [smem:[#allocation22_spill]] %s7204_s4 }
  0x33   :  { %8580 = sst [smem:[#allocation23_spill]] %s7209_s17 }
  0x34   :  { %s7214_s29 = sld [smem:[%s8546_s0 + %s7025_s7]]   ;;  %s7029_s7 = smov 34  }
  0x35   :  { %s7219_s25 = sld [smem:[%s8546_s0 + %s7026_s15]]   ;;  %s7030_s15 = smov 35  }
  0x36   :  { %s7224_s4 = sld [smem:[%s8546_s0 + %s7027_s22]]   ;;  %s7031_s22 = smov 36  }
  0x37   :  { %s7229_s17 = sld [smem:[%s8546_s0 + %s7028_s28]]   ;;  %s7032_s28 = smov 37  }
  0x3a   :  { %8581 = sst [smem:[#allocation24_spill]] %s7214_s29 }
  0x3b   :  { %8582 = sst [smem:[#allocation25_spill]] %s7219_s25 }
  0x3c   :  { %8583 = sst [smem:[#allocation26_spill]] %s7224_s4 }
  0x3d   :  { %8584 = sst [smem:[#allocation27_spill]] %s7229_s17 }
  0x3e   :  { %s7234_s29 = sld [smem:[%s8546_s0 + %s7029_s7]]   ;;  %s7033_s7 = smov 38  }
  0x3f   :  { %s7239_s25 = sld [smem:[%s8546_s0 + %s7030_s15]]   ;;  %s7034_s15 = smov 39  }
  0x40   :  { %s7244_s4 = sld [smem:[%s8546_s0 + %s7031_s22]]   ;;  %s7035_s22 = smov 40  }
  0x41   :  { %s7249_s17 = sld [smem:[%s8546_s0 + %s7032_s28]]   ;;  %s7036_s28 = smov 41  }
  0x44   :  { %8585 = sst [smem:[#allocation28_spill]] %s7234_s29 }
  0x45   :  { %8586 = sst [smem:[#allocation29_spill]] %s7239_s25 }
  0x46   :  { %8587 = sst [smem:[#allocation30_spill]] %s7244_s4 }
  0x47   :  { %8588 = sst [smem:[#allocation31_spill]] %s7249_s17 }
  0x48   :  { %s7254_s29 = sld [smem:[%s8546_s0 + %s7033_s7]]   ;;  %s7037_s7 = smov 42  }
  0x49   :  { %s7259_s25 = sld [smem:[%s8546_s0 + %s7034_s15]]   ;;  %s7038_s15 = smov 43  }
  0x4a   :  { %s7264_s4 = sld [smem:[%s8546_s0 + %s7035_s22]]  }
  0x4b   :  { %s7269_s17 = sld [smem:[%s8546_s0 + %s7036_s28]]  }
  0x4e   :  { %8589 = sst [smem:[#allocation32_spill]] %s7254_s29 }
  0x4f   :  { %8590 = sst [smem:[#allocation33_spill]] %s7259_s25 }
  0x50   :  { %s7274_s29 = sld [smem:[%s8546_s0 + %s7037_s7]]  }
  0x51   :  { %s7279_s25 = sld [smem:[%s8546_s0 + %s7038_s15]]  }
  0x52   :  { %93 = vsyncpa [#allocation3], 0  ;;  %v7282_v0 = vld [vmem:[%s7064_s5] sm:$0xff]  ;;  %vm205_vm0 = vcmask 261120  }
  0x53   :  { %v203_v1 = vmul.f32 %v7282_v0, %v7282_v0 }
  0x55   :  { %v206_v2 = vsel %vm205_vm0, %v203_v1, 0.0 }
  0x56   :  { %207 = vadd.xlane.f32.xlu0 %v206_v2 }
  0x57   :  { %94 = vsyncpa [#allocation5], 0  ;;  %v7039_v3 = vmov 32.0   ;;  %v185_v7 = vld [vmem:[%s7104_s8 + $0x18] sm:$0xff]  ;;  %v184_v8 = vld [vmem:[%s7104_s8 + $0x10] sm:$0xff]  ;;  %s7040_s0 = smov 64  }
  0x58   :  { %6678 = vrcp.f32 %v7039_v3  ;;  %268 = vmatpush.msra.mxu0 %v185_v7  ;;  %v183_v9 = vld [vmem:[%s7104_s8 + $0x8] sm:$0xff]  ;;  %v182_v11 = vld [vmem:[%s7104_s8] sm:$0xff]  ;;  %s7041_s8 = smov 96   ;;  %vm283_vm5 = vcmask 64512   ;;  %s7043_s22 = smov 120  }
  0x59   :  { %v7295_v23 = vld [vmem:[%s7099_s3] ss:$0 sm:$0xff]  ;;  %s7042_s3 = smov 88   ;;  %s7044_s23 = smov 56   ;;  %v7331_v42 = vld [vmem:[%s7064_s5 + $0x8] sm:$0xff] }
  0x5a   :  { %269 = vmatpush.msra.mxu0 %v184_v8  ;;  %v7313_v31 = vld [vmem:[%s7074_s13] sm:$0xff]  ;;  %s7045_s26 = smov 80   ;;  %s7046_s28 = smov 112   ;;  %v204_v43 = vmul.f32 %v7331_v42, %v7331_v42  ;;  %v7342_v61 = vld [vmem:[%s7074_s13 + $0x8] sm:$0xff] }
  0x5b   :  { %v7316_v32 = vld [vmem:[%s7084_s21] ss:$0 sm:$0xff]  ;;  %s7047_s1 = smov 40   ;;  %s7048_s5 = smov 48  }
  0x5c   :  { %270 = vmatpush.msra.mxu0 %v183_v9  ;;  %v209_v44 = vsel %vm205_vm0, %v204_v43, 0.0  ;;  %s7049_s2 = smov 104   ;;  %s7050_s7 = smov 72  }
  0x5d   :  { %s8601_s10 = sld [smem:[#allocation20_spill]] }
  0x5e   :  { %v6679_v4 = vpop.eup %6678  ;;  %271 = vmatpush.msra.mxu0 %v182_v11  ;;  %s8602_s11 = sld [smem:[#allocation22_spill]] }
  0x5f   :  { %v213_v5 = vmul.f32 32.0, %v6679_v4  ;;  %vm217_vm1 = vweird.f32 %v6679_v4  ;;  %s8603_s15 = sld [smem:[#allocation21_spill]] }
  0x60   :  { %s8604_s16 = sld [smem:[#allocation23_spill]] }
  0x61   :  { %v214_v6 = vsub.f32 1.0, %v213_v5  ;;  %s8605_s18 = sld [smem:[#allocation25_spill]] }
  0x63   :  { %v215_v10 = vmul.f32 %v6679_v4, %v214_v6 }
  0x65   :  { %v216_v12 = vadd.f32 %v6679_v4, %v215_v10 }
  0x67   :  { %v7291_v13 = vsel %vm217_vm1, %v6679_v4, %v216_v12 }
  0xc9   :  { %v208_v14 = vpop.xlane.xlu0 %207 }
  0xca   :  { %v219_v15 = vmul.f32 %v7291_v13, %v208_v14 }
  0xcc   :  { %v221_v16 = vadd.f32 1e-06, %v219_v15 }
  0xce   :  { %6680 = vrsqrt.f32 %v221_v16  ;;  %vm229_vm3 = vweird.f32 %v221_v16 }
  0xd4   :  { %v6681_v17 = vpop.eup %6680 }
  0xd5   :  { %v224_v18 = vmul.f32 %v6681_v17, %v221_v16  ;;  %vm230_vm2 = vweird.f32 %v6681_v17 }
  0xd6   :  { %vm231_vm4 = vmor %vm229_vm3, %vm230_vm2 }
  0xd7   :  { %v225_v19 = vmul.f32 %v6681_v17, %v224_v18 }
  0xd9   :  { %v226_v20 = vmul.f32 0.5, %v225_v19 }
  0xdb   :  { %v227_v21 = vsub.f32 1.5, %v226_v20 }
  0xdd   :  { %v228_v22 = vmul.f32 %v6681_v17, %v227_v21 }
  0xdf   :  { %v232_v24 = vsel %vm231_vm4, %v6681_v17, %v228_v22 }
  0xe0   :  { %v243_v25 = vmul.f32 %v232_v24, %v7282_v0 }
  0xe2   :  { %v248_v26 = vmul.f32 %v7295_v23, %v243_v25 }
  0xe4   :  { %6365 = vmatmul.msk.f32.vlgmr.msra.gmra.mxu0 %vm205_vm0, %v248_v26  ;;  %v7355_v26 = vld [vmem:[%s7109_s14 + $0x8] sm:$0xff] }
 0x161   :  { %v7300_v27 = vpop.f32.mrf.mxu0 }
 0x162   :  { %337 = vrot.lane.b32.xlu2 %v7300_v27, %s7040_s0  ;;  %281 = vrot.lane.b32.xlu0 %v7300_v27, %s7041_s8 }
 0x16a   :  { %367 = vrot.lane.b32.xlu2 %v7300_v27, %s7042_s3 }
 0x1bc   :  { %v338_v28 = vpop.permute.xlu2 %337 }
 0x1bd   :  { %358 = vmatpush.msra.mxu3 %v338_v28  ;;  %v7359_v28 = vld [vmem:[%s7109_s14] sm:$0xff] }
 0x1c4   :  { %v368_v29 = vpop.permute.xlu2 %367 }
 0x1c5   :  { %6371 = vmatpush.xpose.msk.msrb.mxu3 %vm283_vm5, %v368_v29 }
 0x1d4   :  { %v282_v30 = vpop.permute.xlu0 %281 }
 0x1d5   :  { %6367 = vmatpush.xpose.msk.msra.mxu1 %vm283_vm5, %v282_v30  ;;  %v7364_v30 = vld [vmem:[%s7074_s13 + $0x10] sm:$0xff] }
 0x1d8   :  { %6368 = vmatmul.msk.f32.vlgmr.msra.gmra.mxu1 %vm283_vm5, %v7300_v27 }
 0x255   :  { %v305_v33 = vpop.f32.mrf.mxu1 }
 0x256   :  { %v306_v34 = vadd.f32 %v305_v33, %v7313_v31 }
 0x258   :  { %v312_v35 = vadd.f32 %v7316_v32, %v306_v34 }
 0x25a   :  { %v313_v36 = vsel %vm283_vm5, %v312_v35, -inf }
 0x25b   :  { %314 = vmax.xlane.f32.xlu1 %v313_v36 }
 0x2ce   :  { %v315_v37 = vpop.xlane.xlu1 %314 }
 0x2cf   :  { %v316_v38 = vsub.f32 %v312_v35, %v315_v37 }
 0x2d1   :  { %v317_v39 = vmul.f32 1.442695, %v316_v38 }
 0x2d3   :  { %6682 = vpow2.f32 %v317_v39 }
 0x2d9   :  { %v6683_v40 = vpop.eup %6682 }
 0x2da   :  { %v319_v41 = vsel %vm283_vm5, %v6683_v40, 0.0 }
 0x2db   :  { %320 = vadd.xlane.f32.xlu1 %v319_v41 }
 0x2f4   :  { %365 = vrot.lane.b32.xlu1 %v7300_v27, %s7043_s22 }
 0x2fc   :  { %418 = vrot.lane.b32.xlu1 %v7300_v27, %s7044_s23 }
 0x304   :  { %494 = vrot.lane.b32.xlu1 %v7300_v27, %s7045_s26 }
 0x30c   :  { %492 = vrot.lane.b32.xlu1 %v7300_v27, %s7046_s28 }
 0x336   :  { %210 = vadd.xlane.f32.xlu1 %v209_v44 }
 0x34e   :  { %v321_v45 = vpop.xlane.xlu1 %320 }
 0x34f   :  { %6684 = vrcp.f32 %v321_v45  ;;  %650 = vrot.lane.b32.xlu1 %v7300_v27, %s7047_s1  ;;  %v333_v49 = vand.u32 2147483648, %v321_v45  ;;  %v331_v51 = vand.u32 2147483647, %v321_v45  ;;  %vm327_vm7 = vweird.f32 %v321_v45 }
 0x351   :  { %v334_v53 = vor.u32 1.1754944e-38, %v333_v49  ;;  %vm332_vm9 = vcmp.eq.f32.partialorder %v331_v51, 8.507059e+37 }
 0x355   :  { %v6685_v46 = vpop.eup %6684 }
 0x356   :  { %v323_v47 = vmul.f32 %v6685_v46, %v321_v45  ;;  %vm328_vm6 = vweird.f32 %v6685_v46 }
 0x357   :  { %vm329_vm8 = vmor %vm327_vm7, %vm328_vm6 }
 0x358   :  { %v324_v48 = vsub.f32 1.0, %v323_v47 }
 0x35a   :  { %v325_v50 = vmul.f32 %v6685_v46, %v324_v48 }
 0x35c   :  { %v326_v52 = vadd.f32 %v6685_v46, %v325_v50 }
 0x35e   :  { %v330_v54 = vsel %vm329_vm8, %v6685_v46, %v326_v52 }
 0x35f   :  { %v335_v55 = vsel %vm332_vm9, %v334_v53, %v330_v54 }
 0x360   :  { %v336_v56 = vmul.f32 %v6683_v40, %v335_v55 }
 0x362   :  { %6369 = vmatmul.msk.f32.vlgmr.msra.gmra.mxu3 %vm283_vm5, %v336_v56 }
 0x363   :  { %462 = vmatpush.msra.mxu3 %v7355_v26 }
 0x366   :  { %v366_v57 = vpop.permute.xlu1 %365 }
 0x36a   :  { %6372 = vmatmul.msk.f32.vlgmr.msrb.gmra.mxu3 %vm283_vm5, %v366_v57 }
 0x36b   :  { %485 = vmatpush.msrb.mxu3 %v7359_v28 }
 0x36e   :  { %v419_v58 = vpop.permute.xlu1 %418 }
 0x36f   :  { %439 = vmatpush.msra.mxu2 %v419_v58 }
 0x376   :  { %v495_v59 = vpop.permute.xlu1 %494 }
 0x377   :  { %6377 = vmatpush.xpose.msk.msrb.mxu2 %vm283_vm5, %v495_v59 }
 0x37e   :  { %v493_v9 = vpop.permute.xlu1 %492 }
 0x3a9   :  { %v211_v12 = vpop.xlane.xlu1 %210 }
 0x3aa   :  { %v220_v37 = vmul.f32 %v7291_v13, %v211_v12 }
 0x3ac   :  { %v222_v38 = vadd.f32 1e-06, %v220_v37 }
 0x3ae   :  { %vm239_vm14 = vweird.f32 %v222_v38 }
 0x3c1   :  { %v651_v25 = vpop.permute.xlu1 %650 }
 0x3e5   :  { %v360_v60 = vpop.f32.mrf.mxu3 }
 0x3ed   :  { %v390_v62 = vpop.f32.mrf.mxu3 }
 0x3ee   :  { %v391_v63 = vadd.f32 %v7342_v61, %v390_v62 }
 0x3f0   :  { %v393_v1 = vadd.f32 %v7316_v32, %v391_v63 }
 0x3f2   :  { %v394_v2 = vsel %vm283_vm5, %v393_v1, -inf }
 0x3f3   :  { %395 = vmax.xlane.f32.xlu2 %v394_v2 }
 0x466   :  { %v396_v3 = vpop.xlane.xlu2 %395 }
 0x467   :  { %v397_v4 = vsub.f32 %v393_v1, %v396_v3 }
 0x469   :  { %v398_v5 = vmul.f32 1.442695, %v397_v4 }
 0x46b   :  { %6686 = vpow2.f32 %v398_v5  ;;  %v188_v5 = vld [vmem:[%s7109_s14 + $0x10] sm:$0xff] }
 0x471   :  { %v6687_v6 = vpop.eup %6686 }
 0x472   :  { %v400_v7 = vsel %vm283_vm5, %v6687_v6, 0.0 }
 0x473   :  { %401 = vadd.xlane.f32.xlu0 %v400_v7  ;;  %v7389_v7 = vld [vmem:[%s7074_s13 + $0x18] sm:$0xff] }
 0x487   :  { %545 = vrot.lane.b32.xlu0 %v7300_v27, %s7048_s5 }
 0x48f   :  { %597 = vrot.lane.b32.xlu0 %v7300_v27, %s7049_s2 }
 0x4e6   :  { %v402_v8 = vpop.xlane.xlu0 %401 }
 0x4e7   :  { %6688 = vrcp.f32 %v402_v8  ;;  %v414_v15 = vand.u32 2147483648, %v402_v8  ;;  %v412_v17 = vand.u32 2147483647, %v402_v8  ;;  %vm408_vm11 = vweird.f32 %v402_v8 }
 0x4e8   :  { %6690 = vrsqrt.f32 %v222_v38 }
 0x4e9   :  { %v415_v19 = vor.u32 1.1754944e-38, %v414_v15  ;;  %vm413_vm13 = vcmp.eq.f32.partialorder %v412_v17, 8.507059e+37 }
 0x4ed   :  { %v6689_v10 = vpop.eup %6688 }
 0x4ee   :  { %v404_v11 = vmul.f32 %v6689_v10, %v402_v8  ;;  %vm409_vm10 = vweird.f32 %v6689_v10  ;;  %v6691_v39 = vpop.eup %6690 }
 0x4ef   :  { %vm410_vm12 = vmor %vm408_vm11, %vm409_vm10  ;;  %v234_v40 = vmul.f32 %v6691_v39, %v222_v38  ;;  %vm240_vm15 = vweird.f32 %v6691_v39 }
 0x4f0   :  { %v405_v14 = vsub.f32 1.0, %v404_v11  ;;  %vm241_vm1 = vmor %vm239_vm14, %vm240_vm15 }
 0x4f1   :  { %v235_v41 = vmul.f32 %v6691_v39, %v234_v40 }
 0x4f2   :  { %v406_v16 = vmul.f32 %v6689_v10, %v405_v14 }
 0x4f3   :  { %v236_v43 = vmul.f32 0.5, %v235_v41 }
 0x4f4   :  { %v407_v18 = vadd.f32 %v6689_v10, %v406_v16 }
 0x4f5   :  { %v237_v45 = vsub.f32 1.5, %v236_v43 }
 0x4f6   :  { %v411_v20 = vsel %vm410_vm12, %v6689_v10, %v407_v18 }
 0x4f7   :  { %v416_v21 = vsel %vm413_vm13, %v415_v19, %v411_v20  ;;  %v238_v48 = vmul.f32 %v6691_v39, %v237_v45 }
 0x4f8   :  { %v417_v22 = vmul.f32 %v6687_v6, %v416_v21 }
 0x4f9   :  { %v546_v24 = vpop.permute.xlu0 %545  ;;  %v242_v49 = vsel %vm241_vm1, %v6691_v39, %v238_v48 }
 0x4fa   :  { %6373 = vmatmul.msk.f32.vlgmr.msra.gmra.mxu2 %vm283_vm5, %v417_v22  ;;  %566 = vmatpush.msrb.mxu1 %v546_v24  ;;  %v244_v50 = vmul.f32 %v242_v49, %v7331_v42  ;;  %v7411_v24 = vld [vmem:[%s7084_s21 + $0x1] ss:$0 sm:$0xff] }
 0x4fb   :  { %671 = vmatpush.msra.mxu2 %v651_v25 }
 0x4fc   :  { %v249_v51 = vmul.f32 %v7295_v23, %v244_v50 }
 0x4fe   :  { %6366 = vmatmul.msk.f32.gmra.mxu0 %vm205_vm0, %v249_v51 }
 0x501   :  { %v598_v59 = vpop.permute.xlu0 %597 }
 0x502   :  { %6378 = vmatmul.msk.f32.vlgmr.msrb.gmra.mxu2 %vm283_vm5, %v493_v9 }
 0x57b   :  { %v7378_v58 = vpop.f32.mrf.mxu0 }
 0x57c   :  { %783 = vrot.lane.b32.xlu1 %v7378_v58, %s7043_s22 }
 0x57d   :  { %v441_v29 = vpop.f32.mrf.mxu2 }
 0x57e   :  { %6374 = vmatmul.msk.f32.vlgmr.msra.gmra.mxu3 %vm283_vm5, %v441_v29 }
 0x57f   :  { %589 = vmatpush.msra.mxu3 %v188_v5 }
 0x585   :  { %v517_v33 = vpop.f32.mrf.mxu2 }
 0x586   :  { %v518_v34 = vadd.f32 %v7364_v30, %v517_v33  ;;  %6375 = vmatmul.msk.f32.vlgmr.msrb.gmra.mxu3 %vm283_vm5, %v360_v60 }
 0x588   :  { %v520_v35 = vadd.f32 %v7316_v32, %v518_v34 }
 0x58a   :  { %v521_v36 = vsel %vm283_vm5, %v520_v35, -inf }
 0x58b   :  { %522 = vmax.xlane.f32.xlu2 %v521_v36 }
 0x5ee   :  { %v784_v39 = vpop.permute.xlu1 %783 }
 0x5fe   :  { %v523_v44 = vpop.xlane.xlu2 %522 }
 0x5ff   :  { %v524_v46 = vsub.f32 %v520_v35, %v523_v44 }
 0x601   :  { %v525_v47 = vmul.f32 1.442695, %v524_v46  ;;  %v7402_v15 = vpop.f32.mrf.mxu3 }
 0x603   :  { %6692 = vpow2.f32 %v525_v47 }
 0x609   :  { %v6693_v52 = vpop.eup %6692  ;;  %v7404_v19 = vpop.f32.mrf.mxu3 }
 0x60a   :  { %v527_v53 = vsel %vm283_vm5, %v6693_v52, 0.0 }
 0x60b   :  { %528 = vadd.xlane.f32.xlu2 %v527_v53 }
 0x623   :  { %599 = vrot.lane.b32.xlu2 %v7300_v27, %s7050_s7 }
 0x62b   :  { %701 = vrot.lane.b32.xlu2 %v7378_v58, %s7041_s8 }
 0x67e   :  { %v529_v54 = vpop.xlane.xlu2 %528 }
 0x67f   :  { %6694 = vrcp.f32 %v529_v54  ;;  %v541_v60 = vand.u32 2147483648, %v529_v54  ;;  %v539_v62 = vand.u32 2147483647, %v529_v54  ;;  %vm535_vm3 = vweird.f32 %v529_v54 }
 0x681   :  { %v542_v1 = vor.u32 1.1754944e-38, %v541_v60  ;;  %vm540_vm6 = vcmp.eq.f32.partialorder %v539_v62, 8.507059e+37 }
 0x685   :  { %v6695_v55 = vpop.eup %6694 }
 0x686   :  { %v531_v56 = vmul.f32 %v6695_v55, %v529_v54  ;;  %v600_v57 = vpop.permute.xlu2 %599  ;;  %vm536_vm2 = vweird.f32 %v6695_v55  ;;  %v7431_v54 = vld [vmem:[%s7109_s14 + $0x18] sm:$0xff]  ;;  %s8592_s14 = sld [smem:[#allocation12_spill]] }
 0x687   :  { %6382 = vmatpush.xpose.msk.msrb.mxu0 %vm283_vm5, %v600_v57  ;;  %vm537_vm4 = vmor %vm535_vm3, %vm536_vm2  ;;  %694 = vmatpush.msra.mxu1 %v7431_v54 }
 0x688   :  { %v532_v23 = vsub.f32 1.0, %v531_v56 }
 0x68a   :  { %v533_v27 = vmul.f32 %v6695_v55, %v532_v23  ;;  %6383 = vmatmul.msk.f32.vlgmr.msrb.gmra.mxu0 %vm283_vm5, %v598_v59 }
 0x68c   :  { %v534_v63 = vadd.f32 %v6695_v55, %v533_v27 }
 0x68e   :  { %v538_v2 = vsel %vm537_vm4, %v6695_v55, %v534_v63  ;;  %v702_v6 = vpop.permute.xlu2 %701 }
 0x68f   :  { %v543_v3 = vsel %vm540_vm6, %v542_v1, %v538_v2  ;;  %6386 = vmatpush.xpose.msk.msrb.mxu3 %vm283_vm5, %v702_v6 }
 0x690   :  { %v544_v4 = vmul.f32 %v6693_v52, %v543_v3 }
 0x692   :  { %6379 = vmatmul.msk.f32.vlgmr.msrb.gmra.mxu1 %vm283_vm5, %v544_v4 }
 0x707   :  { %v622_v8 = vpop.f32.mrf.mxu0 }
 0x708   :  { %v623_v9 = vadd.f32 %v7389_v7, %v622_v8 }
 0x70a   :  { %v625_v10 = vadd.f32 %v7316_v32, %v623_v9 }
 0x70c   :  { %v626_v11 = vsel %vm283_vm5, %v625_v10, -inf }
 0x70d   :  { %627 = vmax.xlane.f32.xlu0 %v626_v11 }
 0x70f   :  { %v568_v12 = vpop.f32.mrf.mxu1 }
 0x710   :  { %6380 = vmatmul.msk.f32.vlgmr.msra.gmra.mxu3 %vm283_vm5, %v568_v12 }
 0x711   :  { %880 = vmatpush.msra.mxu3 %v7355_v26 }
 0x718   :  { %6387 = vmatmul.msk.f32.vlgmr.msrb.gmra.mxu3 %vm283_vm5, %v7378_v58 }
 0x719   :  { %1005 = vmatpush.msrb.mxu3 %v188_v5 }
 0x721   :  { %785 = vrot.lane.b32.xlu0 %v7378_v58, %s7042_s3 }
 0x729   :  { %757 = vrot.lane.b32.xlu0 %v7378_v58, %s7040_s0 }
 0x780   :  { %v628_v14 = vpop.xlane.xlu0 %627 }
 0x781   :  { %v629_v16 = vsub.f32 %v625_v10, %v628_v14 }
 0x783   :  { %v630_v17 = vmul.f32 1.442695, %v629_v16 }
 0x785   :  { %6696 = vpow2.f32 %v630_v17 }
 0x78b   :  { %v6697_v18 = vpop.eup %6696 }
 0x78c   :  { %v632_v20 = vsel %vm283_vm5, %v6697_v18, 0.0 }
 0x78d   :  { %633 = vadd.xlane.f32.xlu2 %v632_v20 }
 0x793   :  { %v7407_v21 = vpop.f32.mrf.mxu3  ;;  %v786_v22 = vpop.permute.xlu0 %785 }
 0x794   :  { %6390 = vmatpush.xpose.msk.msrb.mxu2 %vm283_vm5, %v786_v22 }
 0x79b   :  { %v724_v25 = vpop.f32.mrf.mxu3  ;;  %v758_v26 = vpop.permute.xlu0 %757 }
 0x79c   :  { %v725_v29 = vadd.f32 %v724_v25, %v7313_v31  ;;  %778 = vmatpush.msra.mxu0 %v758_v26 }
 0x79e   :  { %903 = vmatpush.msrb.mxu0 %v7359_v28  ;;  %v732_v33 = vadd.f32 %v7411_v24, %v725_v29 }
 0x7a0   :  { %v733_v34 = vsel %vm283_vm5, %v732_v33, -inf }
 0x7a1   :  { %734 = vmax.xlane.f32.xlu1 %v733_v34 }
 0x7a5   :  { %910 = vrot.lane.b32.xlu2 %v7378_v58, %s7045_s26 }
 0x7ba   :  { %908 = vrot.lane.b32.xlu1 %v7378_v58, %s7046_s28 }
 0x800   :  { %v634_v35 = vpop.xlane.xlu2 %633 }
 0x801   :  { %6698 = vrcp.f32 %v634_v35  ;;  %v646_v31 = vand.u32 2147483648, %v634_v35  ;;  %v644_v28 = vand.u32 2147483647, %v634_v35  ;;  %vm640_vm8 = vweird.f32 %v634_v35 }
 0x803   :  { %v647_v43 = vor.u32 1.1754944e-38, %v646_v31  ;;  %vm645_vm10 = vcmp.eq.f32.partialorder %v644_v28, 8.507059e+37 }
 0x807   :  { %v6699_v36 = vpop.eup %6698 }
 0x808   :  { %v636_v37 = vmul.f32 %v6699_v36, %v634_v35  ;;  %vm641_vm7 = vweird.f32 %v6699_v36  ;;  %v911_v47 = vpop.permute.xlu2 %910 }
 0x809   :  { %vm642_vm9 = vmor %vm640_vm8, %vm641_vm7 }
 0x80a   :  { %v637_v38 = vsub.f32 1.0, %v636_v37 }
 0x80c   :  { %v638_v40 = vmul.f32 %v6699_v36, %v637_v38 }
 0x80e   :  { %v639_v41 = vadd.f32 %v6699_v36, %v638_v40 }
 0x810   :  { %v643_v44 = vsel %vm642_vm9, %v6699_v36, %v639_v41 }
 0x811   :  { %v648_v45 = vsel %vm645_vm10, %v647_v43, %v643_v44 }
 0x812   :  { %v649_v46 = vmul.f32 %v6697_v18, %v648_v45  ;;  %v488_v18 = vadd.f32 %v7404_v19, %v7402_v15 }
 0x814   :  { %6384 = vmatmul.msk.f32.vlgmr.msra.gmra.mxu2 %vm283_vm5, %v649_v46  ;;  %v735_v48 = vpop.xlane.xlu1 %734  ;;  %v594_v20 = vadd.f32 %v7407_v21, %v488_v18 }
 0x815   :  { %6395 = vmatpush.xpose.msk.msra.mxu2 %vm283_vm5, %v911_v47  ;;  %v736_v49 = vsub.f32 %v732_v33, %v735_v48 }
 0x817   :  { %v737_v50 = vmul.f32 1.442695, %v736_v49 }
 0x819   :  { %6700 = vpow2.f32 %v737_v50 }
 0x81c   :  { %6391 = vmatmul.msk.f32.vlgmr.msrb.gmra.mxu2 %vm283_vm5, %v784_v39 }
 0x81f   :  { %v6701_v51 = vpop.eup %6700 }
 0x820   :  { %v739_v52 = vsel %vm283_vm5, %v6701_v51, 0.0 }
 0x821   :  { %740 = vadd.xlane.f32.xlu1 %v739_v52 }
 0x82c   :  { %v909_v53 = vpop.permute.xlu1 %908 }
 0x82d   :  { %6396 = vmatmul.msk.f32.vlgmr.msra.gmra.mxu2 %vm283_vm5, %v909_v53 }
 0x83a   :  { %1013 = vrot.lane.b32.xlu1 %v7378_v58, %s7050_s7 }
 0x842   :  { %836 = vrot.lane.b32.xlu1 %v7378_v58, %s7044_s23 }
 0x894   :  { %v741_v55 = vpop.xlane.xlu1 %740 }
 0x895   :  { %6702 = vrcp.f32 %v741_v55  ;;  %v753_v60 = vand.u32 2147483648, %v741_v55  ;;  %v751_v63 = vand.u32 2147483647, %v741_v55  ;;  %vm747_vm12 = vweird.f32 %v741_v55 }
 0x897   :  { %v673_v56 = vpop.f32.mrf.mxu2  ;;  %v754_v4 = vor.u32 1.1754944e-38, %v753_v60  ;;  %vm752_vm14 = vcmp.eq.f32.partialorder %v751_v63, 8.507059e+37 }
 0x898   :  { %6385 = vmatmul.msk.f32.vlgmr.msra.gmra.mxu1 %vm283_vm5, %v673_v56 }
 0x89b   :  { %v6703_v57 = vpop.eup %6702 }
 0x89c   :  { %v743_v23 = vmul.f32 %v6703_v57, %v741_v55  ;;  %vm748_vm11 = vweird.f32 %v6703_v57 }
 0x89d   :  { %vm749_vm13 = vmor %vm747_vm12, %vm748_vm11 }
 0x89e   :  { %v744_v59 = vsub.f32 1.0, %v743_v23 }
 0x89f   :  { %v808_v27 = vpop.f32.mrf.mxu2 }
 0x8a0   :  { %v745_v62 = vmul.f32 %v6703_v57, %v744_v59  ;;  %v809_v1 = vadd.f32 %v7342_v61, %v808_v27 }
 0x8a2   :  { %v746_v2 = vadd.f32 %v6703_v57, %v745_v62  ;;  %v811_v3 = vadd.f32 %v7411_v24, %v809_v1 }
 0x8a4   :  { %v750_v5 = vsel %vm749_vm13, %v6703_v57, %v746_v2  ;;  %v812_v6 = vsel %vm283_vm5, %v811_v3, -inf }
 0x8a5   :  { %813 = vmax.xlane.f32.xlu0 %v812_v6  ;;  %v755_v8 = vsel %vm752_vm14, %v754_v4, %v750_v5 }
 0x8a6   :  { %v756_v9 = vmul.f32 %v6701_v51, %v755_v8 }
 0x8a8   :  { %6389 = vmatmul.msk.f32.vlgmr.msra.gmra.mxu0 %vm283_vm5, %v756_v9 }
 0x8ac   :  { %v1014_v10 = vpop.permute.xlu1 %1013 }
 0x8ad   :  { %6399 = vmatpush.xpose.msk.msra.mxu0 %vm283_vm5, %v1014_v10 }
 0x8b0   :  { %v933_v11 = vpop.f32.mrf.mxu2 }
 0x8b1   :  { %v934_v12 = vadd.f32 %v7364_v30, %v933_v11 }
 0x8b3   :  { %v936_v14 = vadd.f32 %v7411_v24, %v934_v12 }
 0x8b4   :  { %v837_v16 = vpop.permute.xlu1 %836 }
 0x8b5   :  { %857 = vmatpush.msrb.mxu1 %v837_v16  ;;  %v937_v17 = vsel %vm283_vm5, %v936_v14, -inf }
 0x8b6   :  { %938 = vmax.xlane.f32.xlu2 %v937_v17 }
 0x8b9   :  { %1011 = vrot.lane.b32.xlu0 %v7378_v58, %s7049_s2 }
 0x915   :  { %v696_v22 = vpop.f32.mrf.mxu1 }
 0x916   :  { %v699_v25 = vadd.f32 %v696_v22, %v594_v20  ;;  %v194_v20 = vld [vmem:[%s7119_s24 + $0x18] sm:$0xff] }
 0x918   :  { %v7449_v26 = vadd.f32 %v699_v25, %v7282_v0  ;;  %v814_v29 = vpop.xlane.xlu0 %813 }
 0x919   :  { %v815_v33 = vsub.f32 %v811_v3, %v814_v29  ;;  %v193_v29 = vld [vmem:[%s7119_s24 + $0x10] sm:$0xff] }
 0x91a   :  { %v1116_v34 = vmul.f32 %v7449_v26, %v7449_v26 }
 0x91b   :  { %v816_v35 = vmul.f32 1.442695, %v815_v33  ;;  %v192_v33 = vld [vmem:[%s7119_s24 + $0x8] sm:$0xff] }
 0x91c   :  { %v1118_v36 = vsel %vm205_vm0, %v1116_v34, 0.0 }
 0x91d   :  { %6704 = vpow2.f32 %v816_v35  ;;  %1119 = vadd.xlane.f32.xlu0 %v1118_v36  ;;  %v191_v36 = vld [vmem:[%s7119_s24] sm:$0xff]  ;;  %s8594_s24 = sld [smem:[#allocation13_spill]] }
 0x923   :  { %v6705_v37 = vpop.eup %6704 }
 0x924   :  { %v818_v15 = vsel %vm283_vm5, %v6705_v37, 0.0 }
 0x925   :  { %819 = vadd.xlane.f32.xlu2 %v818_v15  ;;  %v780_v19 = vpop.f32.mrf.mxu0 }
 0x926   :  { %6394 = vmatmul.msk.f32.vlgmr.msrb.gmra.mxu0 %vm283_vm5, %v780_v19 }
 0x929   :  { %v939_v21 = vpop.xlane.xlu2 %938 }
 0x92a   :  { %v940_v0 = vsub.f32 %v936_v14, %v939_v21 }
 0x92b   :  { %v1012_v31 = vpop.permute.xlu0 %1011 }
 0x92c   :  { %v941_v38 = vmul.f32 1.442695, %v940_v0 }
 0x92e   :  { %6706 = vpow2.f32 %v941_v38  ;;  %6400 = vmatmul.msk.f32.vlgmr.msra.gmra.mxu0 %vm283_vm5, %v1012_v31  ;;  %v7480_v31 = vld [vmem:[%s7114_s19] ss:$0 sm:$0xff]  ;;  %s8593_s19 = sld [smem:[#allocation11_spill]] }
 0x931   :  { %1064 = vrot.lane.b32.xlu0 %v7378_v58, %s7047_s1 }
 0x934   :  { %v6707_v39 = vpop.eup %6706 }
 0x935   :  { %v943_v40 = vsel %vm283_vm5, %v6707_v39, 0.0 }
 0x936   :  { %944 = vadd.xlane.f32.xlu2 %v943_v40  ;;  %v202_v40 = vld [vmem:[%s7124_s30 + $0x38] sm:$0xff] }
 0x937   :  { %1201 = vmatpush.msrb.mxu0 %v202_v40 }
 0x94e   :  { %961 = vrot.lane.b32.xlu2 %v7378_v58, %s7048_s5 }
 0x990   :  { %v1120_v41 = vpop.xlane.xlu0 %1119 }
 0x991   :  { %v1124_v11 = vmul.f32 %v1120_v41, %v7291_v13  ;;  %v200_v41 = vld [vmem:[%s7124_s30 + $0x28] sm:$0xff] }
 0x998   :  { %v820_v28 = vpop.xlane.xlu2 %819 }
 0x999   :  { %6708 = vrcp.f32 %v820_v28  ;;  %v832_v46 = vand.u32 2147483648, %v820_v28  ;;  %v830_v50 = vand.u32 2147483647, %v820_v28  ;;  %vm826_vm1 = vweird.f32 %v820_v28 }
 0x99b   :  { %v833_v52 = vor.u32 1.1754944e-38, %v832_v46  ;;  %vm831_vm3 = vcmp.eq.f32.partialorder %v830_v50, 8.507059e+37 }
 0x99f   :  { %v6709_v43 = vpop.eup %6708 }
 0x9a0   :  { %v822_v44 = vmul.f32 %v6709_v43, %v820_v28  ;;  %vm827_vm15 = vweird.f32 %v6709_v43  ;;  %v201_v28 = vld [vmem:[%s7124_s30 + $0x30] sm:$0xff] }
 0x9a1   :  { %vm828_vm2 = vmor %vm826_vm1, %vm827_vm15  ;;  %1202 = vmatpush.msrb.mxu0 %v201_v28  ;;  %vm1186_vm1 = vcmask 523264  }
 0x9a2   :  { %v823_v45 = vsub.f32 1.0, %v822_v44  ;;  %v198_v44 = vld [vmem:[%s7124_s30 + $0x18] sm:$0xff] }
 0x9a3   :  { %v1065_v47 = vpop.permute.xlu0 %1064  ;;  %v7462_v48 = vpop.f32.mrf.mxu0  ;;  %1203 = vmatpush.msrb.mxu0 %v200_v41 }
 0x9a4   :  { %v824_v49 = vmul.f32 %v6709_v43, %v823_v45  ;;  %1085 = vmatpush.msrb.mxu2 %v1065_v47  ;;  %v197_v45 = vld [vmem:[%s7124_s30 + $0x10] sm:$0xff]  ;;  %v196_v47 = vld [vmem:[%s7124_s30 + $0x8] sm:$0xff] }
 0x9a6   :  { %v825_v51 = vadd.f32 %v6709_v43, %v824_v49  ;;  %v195_v49 = vld [vmem:[%s7124_s30] sm:$0xff] }
 0x9a8   :  { %v829_v53 = vsel %vm828_vm2, %v6709_v43, %v825_v51  ;;  %v199_v43 = vld [vmem:[%s7124_s30 + $0x20] sm:$0xff]  ;;  %s8595_s30 = sld [smem:[#allocation8_spill]] }
 0x9a9   :  { %v945_v58 = vpop.xlane.xlu2 %944  ;;  %v834_v55 = vsel %vm831_vm3, %v833_v52, %v829_v53  ;;  %1204 = vmatpush.msrb.mxu0 %v199_v43 }
 0x9aa   :  { %6710 = vrcp.f32 %v945_v58  ;;  %v835_v57 = vmul.f32 %v6705_v37, %v834_v55  ;;  %v957_v2 = vand.u32 2147483648, %v945_v58  ;;  %v955_v4 = vand.u32 2147483647, %v945_v58 }
 0x9ab   :  { %v1036_v56 = vpop.f32.mrf.mxu0  ;;  %vm951_vm6 = vweird.f32 %v945_v58  ;;  %1205 = vmatpush.msrb.mxu0 %v198_v44 }
 0x9ac   :  { %v1037_v23 = vadd.f32 %v7389_v7, %v1036_v56  ;;  %6392 = vmatmul.msk.f32.vlgmr.msrb.gmra.mxu1 %vm283_vm5, %v835_v57  ;;  %v958_v6 = vor.u32 1.1754944e-38, %v957_v2  ;;  %vm956_vm8 = vcmp.eq.f32.partialorder %v955_v4, 8.507059e+37 }
 0x9ad   :  { %1206 = vmatpush.msrb.mxu0 %v197_v45 }
 0x9ae   :  { %v1039_v59 = vadd.f32 %v7411_v24, %v1037_v23 }
 0x9af   :  { %1207 = vmatpush.msrb.mxu0 %v196_v47 }
 0x9b0   :  { %v6711_v60 = vpop.eup %6710  ;;  %v1040_v27 = vsel %vm283_vm5, %v1039_v59, -inf }
 0x9b1   :  { %v947_v62 = vmul.f32 %v6711_v60, %v945_v58  ;;  %v962_v63 = vpop.permute.xlu2 %961  ;;  %1041 = vmax.xlane.f32.xlu1 %v1040_v27  ;;  %vm952_vm4 = vweird.f32 %v6711_v60  ;;  %1208 = vmatpush.msrb.mxu0 %v195_v49 }
 0x9b2   :  { %982 = vmatpush.msra.mxu1 %v962_v63  ;;  %vm953_vm7 = vmor %vm951_vm6, %vm952_vm4 }
 0x9b3   :  { %v948_v1 = vsub.f32 1.0, %v947_v62 }
 0x9b4   :  { %1108 = vmatpush.msrb.mxu1 %v7431_v54  ;;  %v1126_v54 = vadd.f32 1e-06, %v1124_v11  ;;  %v1220_v11 = vld [vmem:[%s7134_s12 + $0x8] sm:$0xff] }
 0x9b5   :  { %v949_v3 = vmul.f32 %v6711_v60, %v948_v1 }
 0x9b6   :  { %6712 = vrsqrt.f32 %v1126_v54  ;;  %vm1134_vm10 = vweird.f32 %v1126_v54 }
 0x9b7   :  { %v950_v5 = vadd.f32 %v6711_v60, %v949_v3 }
 0x9b9   :  { %v954_v8 = vsel %vm953_vm7, %v6711_v60, %v950_v5 }
 0x9ba   :  { %v959_v9 = vsel %vm956_vm8, %v958_v6, %v954_v8  ;;  %v1222_v8 = vld [vmem:[%s7134_s12 + $0x18] sm:$0xff] }
 0x9bb   :  { %v960_v10 = vmul.f32 %v6707_v39, %v959_v9  ;;  %1297 = vmatpush.msra.mxu2 %v1222_v8  ;;  %v1221_v9 = vld [vmem:[%s7134_s12 + $0x10] sm:$0xff] }
 0x9bc   :  { %v6713_v12 = vpop.eup %6712 }
 0x9bd   :  { %6397 = vmatmul.msk.f32.vlgmr.msra.gmra.mxu1 %vm283_vm5, %v960_v10  ;;  %v1129_v17 = vmul.f32 %v6713_v12, %v1126_v54  ;;  %vm1135_vm9 = vweird.f32 %v6713_v12  ;;  %1298 = vmatpush.msra.mxu2 %v1221_v9  ;;  %v1219_v54 = vld [vmem:[%s7134_s12] sm:$0xff]  ;;  %s8598_s12 = sld [smem:[#allocation14_spill]] }
 0x9be   :  { %vm1136_vm11 = vmor %vm1134_vm10, %vm1135_vm9 }
 0x9bf   :  { %v1130_v22 = vmul.f32 %v6713_v12, %v1129_v17  ;;  %1299 = vmatpush.msra.mxu2 %v1220_v11 }
 0x9c1   :  { %v1131_v34 = vmul.f32 0.5, %v1130_v22  ;;  %1300 = vmatpush.msra.mxu2 %v1219_v54 }
 0x9c3   :  { %v1132_v15 = vsub.f32 1.5, %v1131_v34 }
 0x9c5   :  { %v1133_v19 = vmul.f32 %v6713_v12, %v1132_v15 }
 0x9c7   :  { %v1137_v21 = vsel %vm1136_vm11, %v6713_v12, %v1133_v19 }
 0x9c8   :  { %v1148_v38 = vmul.f32 %v1137_v21, %v7449_v26 }
 0x9ca   :  { %v1153_v39 = vmul.f32 %v7480_v31, %v1148_v38 }
 0xa24   :  { %v1042_v14 = vpop.xlane.xlu1 %1041 }
 0xa25   :  { %v1043_v16 = vsub.f32 %v1039_v59, %v1042_v14 }
 0xa27   :  { %v1044_v18 = vmul.f32 1.442695, %v1043_v16 }
 0xa29   :  { %6714 = vpow2.f32 %v1044_v18  ;;  %v859_v25 = vpop.f32.mrf.mxu1 }
 0xa2a   :  { %6393 = vmatmul.msk.f32.vlgmr.msra.gmra.mxu3 %vm283_vm5, %v859_v25 }
 0xa2b   :  { %1173 = vmatpush.msra.mxu3 %v194_v20 }
 0xa2d   :  { %1174 = vmatpush.msra.mxu3 %v193_v29 }
 0xa2f   :  { %v6715_v35 = vpop.eup %6714  ;;  %1175 = vmatpush.msra.mxu3 %v192_v33 }
 0xa30   :  { %v1046_v37 = vsel %vm283_vm5, %v6715_v35, 0.0 }
 0xa31   :  { %1047 = vadd.xlane.f32.xlu2 %v1046_v37  ;;  %1176 = vmatpush.msra.mxu3 %v191_v36 }
 0xa3a   :  { %v984_v0 = vpop.f32.mrf.mxu1 }
 0xa3b   :  { %6398 = vmatmul.msk.f32.vlgmr.msrb.gmra.mxu3 %vm283_vm5, %v984_v0 }
 0xa43   :  { %6403 = vmatmul.msk.f32.vlgmr.msra.gmra.mxu3 %vm205_vm0, %v1153_v39 }
 0xaa4   :  { %v1048_v46 = vpop.xlane.xlu2 %1047 }
 0xaa5   :  { %6716 = vrcp.f32 %v1048_v46  ;;  %v1060_v53 = vand.u32 2147483648, %v1048_v46  ;;  %v1058_v55 = vand.u32 2147483647, %v1048_v46  ;;  %vm1054_vm13 = vweird.f32 %v1048_v46 }
 0xaa7   :  { %v1061_v57 = vor.u32 1.1754944e-38, %v1060_v53  ;;  %vm1059_vm15 = vcmp.eq.f32.partialorder %v1058_v55, 8.507059e+37 }
 0xaab   :  { %v6717_v50 = vpop.eup %6716 }
 0xaac   :  { %v1050_v51 = vmul.f32 %v6717_v50, %v1048_v46  ;;  %vm1055_vm12 = vweird.f32 %v6717_v50 }
 0xaad   :  { %vm1056_vm14 = vmor %vm1054_vm13, %vm1055_vm12  ;;  %v882_v60 = vpop.f32.mrf.mxu3 }
 0xaae   :  { %v1051_v52 = vsub.f32 1.0, %v1050_v51  ;;  %v906_v10 = vadd.f32 %v7462_v48, %v882_v60 }
 0xab0   :  { %v1052_v58 = vmul.f32 %v6717_v50, %v1051_v52 }
 0xab2   :  { %v1053_v56 = vadd.f32 %v6717_v50, %v1052_v58 }
 0xab4   :  { %v1057_v23 = vsel %vm1056_vm14, %v6717_v50, %v1053_v56 }
 0xab5   :  { %v1062_v59 = vsel %vm1059_vm15, %v1061_v57, %v1057_v23 }
 0xab6   :  { %v1063_v27 = vmul.f32 %v6715_v35, %v1062_v59 }
 0xab8   :  { %6401 = vmatmul.msk.f32.vlgmr.msrb.gmra.mxu2 %vm283_vm5, %v1063_v27 }
 0xabe   :  { %v1007_v62 = vpop.f32.mrf.mxu3 }
 0xabf   :  { %v1010_v12 = vadd.f32 %v1007_v62, %v906_v10 }
 0xac6   :  { %v1178_v63 = vpop.f32.mrf.mxu3 }
 0xac7   :  { %v1184_v1 = vmax.f32 %v1178_v63, 0.0 }
 0xac9   :  { %6405 = vmatmul.msk.f32.vlgmr.msrb.gmra.mxu0 %vm1186_vm1, %v1184_v1 }
 0xb3b   :  { %v1087_v2 = vpop.f32.mrf.mxu2 }
 0xb3c   :  { %6402 = vmatmul.msk.f32.vlgmr.msrb.gmra.mxu1 %vm283_vm5, %v1087_v2 }
 0xb46   :  { %v1210_v3 = vpop.f32.mrf.mxu0 }
 0xb47   :  { %v7496_v4 = vadd.f32 %v1210_v3, %v7449_v26 }
 0xb49   :  { %v1240_v5 = vmul.f32 %v7496_v4, %v7496_v4 }
 0xb4b   :  { %v1242_v6 = vsel %vm205_vm0, %v1240_v5, 0.0 }
 0xb4c   :  { %1243 = vadd.xlane.f32.xlu1 %v1242_v6 }
 0xbb9   :  { %v1110_v14 = vpop.f32.mrf.mxu1 }
 0xbba   :  { %v1113_v16 = vadd.f32 %v1110_v14, %v1010_v12  ;;  %v7557_v14 = vld [vmem:[%s7139_s20] sm:$0xff] }
 0xbbc   :  { %v1115_v26 = vadd.f32 %v1113_v16, %v7331_v42  ;;  %v7510_v42 = vld [vmem:[%s7129_s6] ss:$0 sm:$0xff]  ;;  %s8597_s6 = sld [smem:[#allocation19_spill]] }
 0xbbe   :  { %v1117_v17 = vmul.f32 %v1115_v26, %v1115_v26 }
 0xbbf   :  { %v1244_v18 = vpop.xlane.xlu1 %1243 }
 0xbc0   :  { %v1248_v20 = vmul.f32 %v1244_v18, %v7291_v13  ;;  %v1121_v22 = vsel %vm205_vm0, %v1117_v17, 0.0 }
 0xbc1   :  { %1122 = vadd.xlane.f32.xlu1 %v1121_v22 }
 0xbc2   :  { %v1250_v25 = vadd.f32 1e-06, %v1248_v20 }
 0xbc4   :  { %6718 = vrsqrt.f32 %v1250_v25  ;;  %vm1258_vm3 = vweird.f32 %v1250_v25 }
 0xbca   :  { %v6719_v48 = vpop.eup %6718 }
 0xbcb   :  { %v1253_v29 = vmul.f32 %v6719_v48, %v1250_v25  ;;  %vm1259_vm2 = vweird.f32 %v6719_v48 }
 0xbcc   :  { %vm1260_vm4 = vmor %vm1258_vm3, %vm1259_vm2 }
 0xbcd   :  { %v1254_v33 = vmul.f32 %v6719_v48, %v1253_v29  ;;  %v7564_v29 = vld [vmem:[%s7074_s13] sm:$0xff] }
 0xbcf   :  { %v1255_v34 = vmul.f32 0.5, %v1254_v33 }
 0xbd1   :  { %v1256_v35 = vsub.f32 1.5, %v1255_v34 }
 0xbd3   :  { %v1257_v36 = vmul.f32 %v6719_v48, %v1256_v35 }
 0xbd5   :  { %v1261_v37 = vsel %vm1260_vm4, %v6719_v48, %v1257_v36 }
 0xbd6   :  { %v1272_v15 = vmul.f32 %v1261_v37, %v7496_v4 }
 0xbd8   :  { %v1277_v19 = vmul.f32 %v7510_v42, %v1272_v15  ;;  %v7571_v15 = vld [vmem:[%s7084_s21] ss:$0 sm:$0xff] }
 0xbda   :  { %6407 = vmatmul.msk.f32.vlgmr.msra.gmra.mxu2 %vm205_vm0, %v1277_v19 }
 0xc34   :  { %v1123_v21 = vpop.xlane.xlu1 %1122 }
 0xc35   :  { %v1125_v0 = vmul.f32 %v1123_v21, %v7291_v13 }
 0xc37   :  { %v1127_v38 = vadd.f32 1e-06, %v1125_v0 }
 0xc39   :  { %6720 = vrsqrt.f32 %v1127_v38  ;;  %vm1144_vm7 = vweird.f32 %v1127_v38 }
 0xc3f   :  { %v6721_v39 = vpop.eup %6720 }
 0xc40   :  { %v1139_v40 = vmul.f32 %v6721_v39, %v1127_v38  ;;  %vm1145_vm6 = vweird.f32 %v6721_v39 }
 0xc41   :  { %vm1146_vm8 = vmor %vm1144_vm7, %vm1145_vm6 }
 0xc42   :  { %v1140_v28 = vmul.f32 %v6721_v39, %v1139_v40 }
 0xc44   :  { %v1141_v41 = vmul.f32 0.5, %v1140_v28 }
 0xc46   :  { %v1142_v43 = vsub.f32 1.5, %v1141_v41 }
 0xc48   :  { %v1143_v44 = vmul.f32 %v6721_v39, %v1142_v43 }
 0xc4a   :  { %v1147_v45 = vsel %vm1146_vm8, %v6721_v39, %v1143_v44 }
 0xc4b   :  { %v1149_v46 = vmul.f32 %v1147_v45, %v1115_v26 }
 0xc4d   :  { %v1154_v47 = vmul.f32 %v7480_v31, %v1149_v46 }
 0xc4f   :  { %6404 = vmatmul.msk.f32.gmra.mxu3 %vm205_vm0, %v1154_v47 }
 0xc5d   :  { %v7518_v49 = vpop.f32.mrf.mxu2 }
 0xc5e   :  { %1513 = vrot.lane.b32.xlu2 %v7518_v49, %s7045_s26  ;;  %1386 = vrot.lane.b32.xlu0 %v7518_v49, %s7043_s22 }
 0xc5f   :  { %1388 = vrot.lane.b32.xlu1 %v7518_v49, %s7042_s3 }
 0xc66   :  { %1511 = vrot.lane.b32.xlu0 %v7518_v49, %s7046_s28 }
 0xc6e   :  { %1309 = vrot.lane.b32.xlu0 %v7518_v49, %s7041_s8 }
 0xcb8   :  { %v1514_v31 = vpop.permute.xlu2 %1513 }
 0xcb9   :  { %6417 = vmatpush.xpose.msk.msra.mxu0 %vm283_vm5, %v1514_v31 }
 0xcd0   :  { %v1387_v50 = vpop.permute.xlu0 %1386 }
 0xcd1   :  { %v1389_v51 = vpop.permute.xlu1 %1388 }
 0xcd2   :  { %6412 = vmatpush.xpose.msk.msrb.mxu3 %vm283_vm5, %v1389_v51  ;;  %v1181_v52 = vpop.f32.mrf.mxu3 }
 0xcd3   :  { %v1185_v53 = vmax.f32 %v1181_v52, 0.0 }
 0xcd5   :  { %6413 = vmatmul.msk.f32.vlgmr.msrb.gmra.mxu3 %vm283_vm5, %v1387_v50  ;;  %6406 = vmatmul.msk.f32.gmra.mxu0 %vm1186_vm1, %v1185_v53 }
 0xcd6   :  { %1506 = vmatpush.msra.mxu3 %v7557_v14 }
 0xcd8   :  { %v1512_v58 = vpop.permute.xlu0 %1511 }
 0xcdd   :  { %6418 = vmatmul.msk.f32.vlgmr.msra.gmra.mxu0 %vm283_vm5, %v1512_v58 }
 0xce0   :  { %v1310_v55 = vpop.permute.xlu0 %1309 }
 0xce1   :  { %6409 = vmatpush.xpose.msk.msra.mxu1 %vm283_vm5, %v1310_v55 }
 0xce4   :  { %6410 = vmatmul.msk.f32.vlgmr.msra.gmra.mxu1 %vm283_vm5, %v7518_v49 }
 0xd52   :  { %v1213_v56 = vpop.f32.mrf.mxu0 }
 0xd53   :  { %v7538_v57 = vadd.f32 %v1213_v56, %v1115_v26 }
 0xd55   :  { %v1241_v23 = vmul.f32 %v7538_v57, %v7538_v57 }
 0xd57   :  { %v1245_v59 = vsel %vm205_vm0, %v1241_v23, 0.0 }
 0xd58   :  { %v1411_v60 = vpop.f32.mrf.mxu3  ;;  %1246 = vadd.xlane.f32.xlu2 %v1245_v59 }
 0xd59   :  { %v1412_v27 = vadd.f32 %v7342_v61, %v1411_v60 }
 0xd5a   :  { %v1536_v62 = vpop.f32.mrf.mxu0 }
 0xd5b   :  { %v1537_v63 = vadd.f32 %v7364_v30, %v1536_v62  ;;  %v1414_v1 = vadd.f32 %v7316_v32, %v1412_v27 }
 0xd5d   :  { %v1415_v2 = vsel %vm283_vm5, %v1414_v1, -inf  ;;  %v1539_v3 = vadd.f32 %v7316_v32, %v1537_v63 }
 0xd5e   :  { %1416 = vmax.xlane.f32.xlu1 %v1415_v2 }
 0xd5f   :  { %v1540_v5 = vsel %vm283_vm5, %v1539_v3, -inf }
 0xd60   :  { %1541 = vmax.xlane.f32.xlu0 %v1540_v5 }
 0xd61   :  { %v1332_v20 = vpop.f32.mrf.mxu1 }
 0xd62   :  { %v1333_v33 = vadd.f32 %v7564_v29, %v1332_v20 }
 0xd64   :  { %v1335_v19 = vadd.f32 %v7571_v15, %v1333_v33  ;;  %v1225_v33 = vld [vmem:[%s7139_s20 + $0x10] sm:$0xff] }
 0xd66   :  { %v1336_v38 = vsel %vm283_vm5, %v1335_v19, -inf }
 0xd74   :  { %1439 = vrot.lane.b32.xlu0 %v7518_v49, %s7044_s23 }
 0xd7c   :  { %1360 = vrot.lane.b32.xlu0 %v7518_v49, %s7040_s0 }
 0xd84   :  { %1616 = vrot.lane.b32.xlu0 %v7518_v49, %s7050_s7 }
 0xdcb   :  { %v1247_v61 = vpop.xlane.xlu2 %1246 }
 0xdcc   :  { %v1249_v30 = vmul.f32 %v1247_v61, %v7291_v13 }
 0xdce   :  { %v1251_v6 = vadd.f32 1e-06, %v1249_v30 }
 0xdd0   :  { %6722 = vrsqrt.f32 %v1251_v6  ;;  %vm1268_vm10 = vweird.f32 %v1251_v6 }
 0xdd1   :  { %v1417_v32 = vpop.xlane.xlu1 %1416 }
 0xdd2   :  { %v1418_v8 = vsub.f32 %v1414_v1, %v1417_v32 }
 0xdd3   :  { %v1542_v9 = vpop.xlane.xlu0 %1541 }
 0xdd4   :  { %v1419_v10 = vmul.f32 1.442695, %v1418_v8  ;;  %v1543_v11 = vsub.f32 %v1539_v3, %v1542_v9  ;;  %v1224_v9 = vld [vmem:[%s7139_s20 + $0x8] sm:$0xff] }
 0xdd6   :  { %v6723_v54 = vpop.eup %6722  ;;  %6724 = vpow2.f32 %v1419_v10  ;;  %v1544_v12 = vmul.f32 1.442695, %v1543_v11 }
 0xdd7   :  { %v1263_v16 = vmul.f32 %v6723_v54, %v1251_v6  ;;  %vm1269_vm9 = vweird.f32 %v6723_v54 }
 0xdd8   :  { %6726 = vpow2.f32 %v1544_v12  ;;  %vm1270_vm11 = vmor %vm1268_vm10, %vm1269_vm9 }
 0xdd9   :  { %v1264_v26 = vmul.f32 %v6723_v54, %v1263_v16 }
 0xddb   :  { %v1265_v17 = vmul.f32 0.5, %v1264_v26 }
 0xddc   :  { %v6725_v18 = vpop.eup %6724 }
 0xddd   :  { %v1266_v22 = vsub.f32 1.5, %v1265_v17  ;;  %v1421_v25 = vsel %vm283_vm5, %v6725_v18, 0.0 }
 0xdde   :  { %v7561_v48 = vpop.eup %6726  ;;  %1422 = vadd.xlane.f32.xlu1 %v1421_v25 }
 0xddf   :  { %v1546_v34 = vsel %vm283_vm5, %v7561_v48, 0.0  ;;  %v1267_v35 = vmul.f32 %v6723_v54, %v1266_v22 }
 0xde0   :  { %1547 = vadd.xlane.f32.xlu2 %v1546_v34 }
 0xde1   :  { %v1271_v36 = vsel %vm1270_vm11, %v6723_v54, %v1267_v35 }
 0xde2   :  { %v1273_v37 = vmul.f32 %v1271_v36, %v7538_v57 }
 0xde4   :  { %v1278_v21 = vmul.f32 %v7510_v42, %v1273_v37 }
 0xde6   :  { %v1440_v0 = vpop.permute.xlu0 %1439  ;;  %6408 = vmatmul.msk.f32.gmra.mxu2 %vm205_vm0, %v1278_v21 }
 0xde7   :  { %1460 = vmatpush.msrb.mxu2 %v1440_v0 }
 0xde8   :  { %1337 = vmax.xlane.f32.xlu2 %v1336_v38 }
 0xdee   :  { %v1361_v39 = vpop.permute.xlu0 %1360 }
 0xdef   :  { %1381 = vmatpush.msrb.mxu1 %v1361_v39 }
 0xdf1   :  { %1483 = vmatpush.msra.mxu1 %v1224_v9 }
 0xdf6   :  { %v1617_v40 = vpop.permute.xlu0 %1616 }
 0xdf7   :  { %1564 = vrot.lane.b32.xlu1 %v7518_v49, %s7048_s5  ;;  %6421 = vmatpush.xpose.msk.msrb.mxu3 %vm283_vm5, %v1617_v40 }
 0xdff   :  { %1614 = vrot.lane.b32.xlu1 %v7518_v49, %s7049_s2 }
 0xe51   :  { %v1423_v28 = vpop.xlane.xlu1 %1422 }
 0xe52   :  { %6728 = vrcp.f32 %v1423_v28  ;;  %v1435_v31 = vand.u32 2147483648, %v1423_v28  ;;  %v1433_v52 = vand.u32 2147483647, %v1423_v28  ;;  %vm1429_vm13 = vweird.f32 %v1423_v28 }
 0xe53   :  { %v1548_v42 = vpop.xlane.xlu2 %1547 }
 0xe54   :  { %6730 = vrcp.f32 %v1548_v42  ;;  %v1436_v23 = vor.u32 1.1754944e-38, %v1435_v31  ;;  %vm1434_vm15 = vcmp.eq.f32.partialorder %v1433_v52, 8.507059e+37  ;;  %v1560_v27 = vand.u32 2147483648, %v1548_v42 }
 0xe55   :  { %vm1554_vm3 = vweird.f32 %v1548_v42  ;;  %v1558_v63 = vand.u32 2147483647, %v1548_v42 }
 0xe56   :  { %v1561_v5 = vor.u32 1.1754944e-38, %v1560_v27 }
 0xe57   :  { %vm1559_vm6 = vcmp.eq.f32.partialorder %v1558_v63, 8.507059e+37 }
 0xe58   :  { %v6729_v41 = vpop.eup %6728 }
 0xe59   :  { %v1425_v43 = vmul.f32 %v6729_v41, %v1423_v28  ;;  %vm1430_vm12 = vweird.f32 %v6729_v41 }
 0xe5a   :  { %v6731_v44 = vpop.eup %6730  ;;  %vm1431_vm14 = vmor %vm1429_vm13, %vm1430_vm12 }
 0xe5b   :  { %v1426_v45 = vsub.f32 1.0, %v1425_v43  ;;  %v1550_v46 = vmul.f32 %v6731_v44, %v1548_v42  ;;  %v1338_v47 = vpop.xlane.xlu2 %1337  ;;  %vm1555_vm2 = vweird.f32 %v6731_v44 }
 0xe5c   :  { %v1339_v50 = vsub.f32 %v1335_v19, %v1338_v47  ;;  %vm1556_vm4 = vmor %vm1554_vm3, %vm1555_vm2 }
 0xe5d   :  { %v1427_v51 = vmul.f32 %v6729_v41, %v1426_v45  ;;  %v1551_v53 = vsub.f32 1.0, %v1550_v46 }
 0xe5e   :  { %v1340_v58 = vmul.f32 1.442695, %v1339_v50 }
 0xe5f   :  { %v1428_v55 = vadd.f32 %v6729_v41, %v1427_v51  ;;  %v1552_v56 = vmul.f32 %v6731_v44, %v1551_v53 }
 0xe60   :  { %6732 = vpow2.f32 %v1340_v58 }
 0xe61   :  { %v1432_v59 = vsel %vm1431_vm14, %v6729_v41, %v1428_v55  ;;  %v1553_v60 = vadd.f32 %v6731_v44, %v1552_v56 }
 0xe62   :  { %v1437_v62 = vsel %vm1434_vm15, %v1436_v23, %v1432_v59 }
 0xe63   :  { %v1438_v1 = vmul.f32 %v6725_v18, %v1437_v62  ;;  %v1557_v2 = vsel %vm1556_vm4, %v6731_v44, %v1553_v60 }
 0xe64   :  { %v1562_v30 = vsel %vm1559_vm6, %v1561_v5, %v1557_v2 }
 0xe65   :  { %6414 = vmatmul.msk.f32.vlgmr.msrb.gmra.mxu2 %vm283_vm5, %v1438_v1  ;;  %v1563_v32 = vmul.f32 %v7561_v48, %v1562_v30 }
 0xe66   :  { %v6733_v3 = vpop.eup %6732 }
 0xe67   :  { %v1342_v61 = vsel %vm283_vm5, %v6733_v3, 0.0 }
 0xe68   :  { %1343 = vadd.xlane.f32.xlu2 %v1342_v61 }
 0xe69   :  { %v1565_v6 = vpop.permute.xlu1 %1564  ;;  %v7586_v8 = vpop.f32.mrf.mxu2 }
 0xe6a   :  { %1585 = vmatpush.msra.mxu2 %v1565_v6 }
 0xe6d   :  { %6419 = vmatmul.msk.f32.vlgmr.msra.gmra.mxu2 %vm283_vm5, %v1563_v32 }
 0xe71   :  { %v1615_v21 = vpop.permute.xlu1 %1614 }
 0xe80   :  { %1718 = vrot.lane.b32.xlu2 %v7586_v8, %s7041_s8 }
 0xe88   :  { %1769 = vrot.lane.b32.xlu2 %v7586_v8, %s7040_s0 }
 0xedb   :  { %v1344_v10 = vpop.xlane.xlu2 %1343 }
 0xedc   :  { %6734 = vrcp.f32 %v1344_v10  ;;  %v1356_v16 = vand.u32 2147483648, %v1344_v10  ;;  %v1354_v17 = vand.u32 2147483647, %v1344_v10  ;;  %vm1350_vm8 = vweird.f32 %v1344_v10 }
 0xede   :  { %v1357_v20 = vor.u32 1.1754944e-38, %v1356_v16  ;;  %vm1355_vm10 = vcmp.eq.f32.partialorder %v1354_v17, 8.507059e+37 }
 0xee2   :  { %v6735_v11 = vpop.eup %6734 }
 0xee3   :  { %v1346_v54 = vmul.f32 %v6735_v11, %v1344_v10  ;;  %vm1351_vm7 = vweird.f32 %v6735_v11  ;;  %v1719_v35 = vpop.permute.xlu2 %1718 }
 0xee4   :  { %vm1352_vm9 = vmor %vm1350_vm8, %vm1351_vm7 }
 0xee5   :  { %v1347_v12 = vsub.f32 1.0, %v1346_v54 }
 0xee7   :  { %v1348_v26 = vmul.f32 %v6735_v11, %v1347_v12 }
 0xee8   :  { %v1462_v34 = vpop.f32.mrf.mxu2 }
 0xee9   :  { %v1349_v18 = vadd.f32 %v6735_v11, %v1348_v26 }
 0xeeb   :  { %v1353_v22 = vsel %vm1352_vm9, %v6735_v11, %v1349_v18  ;;  %v1770_v19 = vpop.permute.xlu2 %1769 }
 0xeec   :  { %v1358_v25 = vsel %vm1355_vm10, %v1357_v20, %v1353_v22 }
 0xeed   :  { %v1359_v48 = vmul.f32 %v6733_v3, %v1358_v25 }
 0xeef   :  { %6411 = vmatmul.msk.f32.vlgmr.msrb.gmra.mxu1 %vm283_vm5, %v1359_v48 }
 0xef0   :  { %1608 = vmatpush.msrb.mxu1 %v1225_v33  ;;  %v1587_v36 = vpop.f32.mrf.mxu2 }
 0xef7   :  { %6415 = vmatmul.msk.f32.vlgmr.msra.gmra.mxu1 %vm283_vm5, %v1462_v34 }
 0xef8   :  { %6425 = vmatpush.xpose.msk.msra.mxu1 %vm283_vm5, %v1719_v35 }
 0xeff   :  { %6420 = vmatmul.msk.f32.vlgmr.msrb.gmra.mxu1 %vm283_vm5, %v1587_v36  ;;  %v6932_v36 = vld [vmem:[%s7074_s13 + $0x8] sm:$0xff] }
 0xf00   :  { %1892 = vmatpush.msrb.mxu1 %v1224_v9 }
 0xf07   :  { %6426 = vmatmul.msk.f32.vlgmr.msra.gmra.mxu1 %vm283_vm5, %v7586_v8 }
 0xf08   :  { %2017 = vmatpush.msra.mxu1 %v1225_v33  ;;  %v7641_v33 = vld [vmem:[%s7139_s20 + $0x18] sm:$0xff]  ;;  %s8599_s20 = sld [smem:[#allocation18_spill]] }
 0xf09   :  { %1711 = vmatpush.msrb.mxu2 %v7641_v33 }
 0xf6c   :  { %v1383_v37 = vpop.f32.mrf.mxu1 }
 0xf6d   :  { %6416 = vmatmul.msk.f32.vlgmr.msra.gmra.mxu3 %vm283_vm5, %v1383_v37 }
 0xf6e   :  { %1790 = vmatpush.msra.mxu3 %v1770_v19  ;;  %v6933_v19 = vld [vmem:[%s7084_s21 + $0x1] ss:$0 sm:$0xff] }
 0xf74   :  { %v7601_v0 = vpop.f32.mrf.mxu1 }
 0xf75   :  { %6422 = vmatmul.msk.f32.vlgmr.msrb.gmra.mxu3 %vm283_vm5, %v1615_v21 }
 0xf76   :  { %1915 = vmatpush.msrb.mxu3 %v7557_v14 }
 0xf7c   :  { %v7605_v38 = vpop.f32.mrf.mxu1 }
 0xf84   :  { %v1741_v39 = vpop.f32.mrf.mxu1 }
 0xf85   :  { %v1742_v40 = vadd.f32 %v7564_v29, %v1741_v39 }
 0xf87   :  { %v1744_v28 = vadd.f32 %v7411_v24, %v1742_v40 }
 0xf89   :  { %v1745_v42 = vsel %vm283_vm5, %v1744_v28, -inf }
 0xf8a   :  { %1746 = vmax.xlane.f32.xlu0 %v1745_v42 }
 0xff0   :  { %v7610_v41 = vpop.f32.mrf.mxu3 }
 0xff8   :  { %v1639_v43 = vpop.f32.mrf.mxu3 }
 0xff9   :  { %v1640_v44 = vadd.f32 %v7389_v7, %v1639_v43 }
 0xffb   :  { %v1642_v45 = vadd.f32 %v7571_v15, %v1640_v44 }
 0xffd   :  { %v1747_v46 = vpop.xlane.xlu0 %1746  ;;  %v1643_v14 = vsel %vm283_vm5, %v1642_v45, -inf }
 0xffe   :  { %v1748_v47 = vsub.f32 %v1744_v28, %v1747_v46  ;;  %1644 = vmax.xlane.f32.xlu2 %v1643_v14  ;;  %v6934_v28 = vld [vmem:[%s7074_s13 + $0x10] sm:$0xff]  ;;  %v6935_v14 = vld [vmem:[%s7074_s13 + $0x18] sm:$0xff]  ;;  %s8591_s13 = sld [smem:[#allocation15_spill]] }
0x1000   :  { %v1749_v31 = vmul.f32 1.442695, %v1748_v47 }
0x1002   :  { %6736 = vpow2.f32 %v1749_v31 }
0x1008   :  { %v6737_v29 = vpop.eup %6736 }
0x1009   :  { %v1751_v24 = vsel %vm283_vm5, %v6737_v29, 0.0 }
0x100a   :  { %1752 = vadd.xlane.f32.xlu1 %v1751_v24 }
0x1016   :  { %1795 = vrot.lane.b32.xlu2 %v7586_v8, %s7043_s22 }
0x1023   :  { %1667 = vrot.lane.b32.xlu1 %v7518_v49, %s7047_s1 }
0x102b   :  { %2023 = vrot.lane.b32.xlu1 %v7586_v8, %s7049_s2 }
0x1033   :  { %1920 = vrot.lane.b32.xlu1 %v7586_v8, %s7046_s28 }
0x1071   :  { %v1645_v7 = vpop.xlane.xlu2 %1644 }
0x1072   :  { %v1646_v15 = vsub.f32 %v1642_v45, %v1645_v7 }
0x1074   :  { %v1647_v50 = vmul.f32 1.442695, %v1646_v15 }
0x1076   :  { %6738 = vpow2.f32 %v1647_v50 }
0x1079   :  { %v1796_v17 = vpop.permute.xlu2 %1795 }
0x107c   :  { %v6739_v51 = vpop.eup %6738 }
0x107d   :  { %v1753_v52 = vpop.xlane.xlu1 %1752  ;;  %v1649_v53 = vsel %vm283_vm5, %v6739_v51, 0.0 }
0x107e   :  { %6740 = vrcp.f32 %v1753_v52  ;;  %1650 = vadd.xlane.f32.xlu0 %v1649_v53  ;;  %v1765_v49 = vand.u32 2147483648, %v1753_v52  ;;  %v1763_v59 = vand.u32 2147483647, %v1753_v52  ;;  %vm1759_vm12 = vweird.f32 %v1753_v52 }
0x1080   :  { %v1766_v27 = vor.u32 1.1754944e-38, %v1765_v49  ;;  %vm1764_vm14 = vcmp.eq.f32.partialorder %v1763_v59, 8.507059e+37 }
0x1084   :  { %v6741_v58 = vpop.eup %6740 }
0x1085   :  { %v1755_v55 = vmul.f32 %v6741_v58, %v1753_v52  ;;  %vm1760_vm11 = vweird.f32 %v6741_v58 }
0x1086   :  { %vm1761_vm13 = vmor %vm1759_vm12, %vm1760_vm11 }
0x1087   :  { %v1756_v56 = vsub.f32 1.0, %v1755_v55 }
0x1089   :  { %v1757_v23 = vmul.f32 %v6741_v58, %v1756_v56 }
0x108b   :  { %v1758_v60 = vadd.f32 %v6741_v58, %v1757_v23 }
0x108d   :  { %v1762_v62 = vsel %vm1761_vm13, %v6741_v58, %v1758_v60 }
0x108e   :  { %v1767_v63 = vsel %vm1764_vm14, %v1766_v27, %v1762_v62  ;;  %v1509_v62 = vadd.f32 %v7610_v41, %v7601_v0 }
0x108f   :  { %v1768_v1 = vmul.f32 %v6737_v29, %v1767_v63 }
0x1091   :  { %6427 = vmatmul.msk.f32.vlgmr.msra.gmra.mxu3 %vm283_vm5, %v1768_v1  ;;  %v1613_v1 = vadd.f32 %v7605_v38, %v1509_v62 }
0x1092   :  { %1797 = vrot.lane.b32.xlu0 %v7586_v8, %s7042_s3 }
0x1095   :  { %v1668_v2 = vpop.permute.xlu1 %1667 }
0x1096   :  { %1688 = vmatpush.msrb.mxu0 %v1668_v2 }
0x109a   :  { %2025 = vrot.lane.b32.xlu0 %v7586_v8, %s7050_s7 }
0x109d   :  { %v2024_v20 = vpop.permute.xlu1 %2023 }
0x10a2   :  { %1922 = vrot.lane.b32.xlu0 %v7586_v8, %s7045_s26 }
0x10a5   :  { %v1921_v48 = vpop.permute.xlu1 %1920 }
0x10f1   :  { %v1651_v3 = vpop.xlane.xlu0 %1650 }
0x10f2   :  { %6742 = vrcp.f32 %v1651_v3  ;;  %v1663_v6 = vand.u32 2147483648, %v1651_v3  ;;  %v1661_v9 = vand.u32 2147483647, %v1651_v3  ;;  %vm1657_vm2 = vweird.f32 %v1651_v3 }
0x10f4   :  { %v1664_v11 = vor.u32 1.1754944e-38, %v1663_v6  ;;  %vm1662_vm4 = vcmp.eq.f32.partialorder %v1661_v9, 8.507059e+37 }
0x10f8   :  { %v6743_v5 = vpop.eup %6742 }
0x10f9   :  { %v1653_v61 = vmul.f32 %v6743_v5, %v1651_v3  ;;  %vm1658_vm15 = vweird.f32 %v6743_v5 }
0x10fa   :  { %vm1659_vm3 = vmor %vm1657_vm2, %vm1658_vm15 }
0x10fb   :  { %v1654_v30 = vsub.f32 1.0, %v1653_v61  ;;  %v7678_v61 = vld [vmem:[%s7069_s9] sm:$0xff] }
0x10fc   :  { %v2306_v0 = vmul.f32 %v7678_v61, %v7678_v61 }
0x10fd   :  { %v1655_v32 = vmul.f32 %v6743_v5, %v1654_v30 }
0x10ff   :  { %v1656_v10 = vadd.f32 %v6743_v5, %v1655_v32 }
0x1101   :  { %v1660_v54 = vsel %vm1659_vm3, %v6743_v5, %v1656_v10 }
0x1102   :  { %v1665_v12 = vsel %vm1662_vm4, %v1664_v11, %v1660_v54 }
0x1103   :  { %v1666_v16 = vmul.f32 %v6739_v51, %v1665_v12 }
0x1104   :  { %v1798_v26 = vpop.permute.xlu0 %1797 }
0x1105   :  { %6423 = vmatmul.msk.f32.vlgmr.msrb.gmra.mxu0 %vm283_vm5, %v1666_v16 }
0x1106   :  { %6428 = vmatpush.xpose.msk.msra.mxu0 %vm283_vm5, %v1798_v26 }
0x110c   :  { %v2026_v18 = vpop.permute.xlu0 %2025 }
0x110d   :  { %6429 = vmatmul.msk.f32.vlgmr.msra.gmra.mxu0 %vm283_vm5, %v1796_v17  ;;  %6437 = vmatpush.xpose.msk.msra.mxu3 %vm283_vm5, %v2026_v18 }
0x1114   :  { %v1923_v22 = vpop.permute.xlu0 %1922  ;;  %v1792_v25 = vpop.f32.mrf.mxu3 }
0x1115   :  { %6432 = vmatmul.msk.f32.vlgmr.msrb.gmra.mxu3 %vm283_vm5, %v1792_v25  ;;  %6433 = vmatpush.xpose.msk.msrb.mxu0 %vm283_vm5, %v1923_v22 }
0x1118   :  { %6434 = vmatmul.msk.f32.vlgmr.msrb.gmra.mxu0 %vm283_vm5, %v1921_v48 }
0x111d   :  { %6438 = vmatmul.msk.f32.vlgmr.msra.gmra.mxu3 %vm283_vm5, %v2024_v20 }
0x1182   :  { %v1690_v34 = vpop.f32.mrf.mxu0 }
0x1183   :  { %6424 = vmatmul.msk.f32.vlgmr.msrb.gmra.mxu2 %vm283_vm5, %v1690_v34 }
0x118a   :  { %v1820_v35 = vpop.f32.mrf.mxu0 }
0x118b   :  { %v1821_v37 = vadd.f32 %v6932_v36, %v1820_v35 }
0x118d   :  { %v1823_v21 = vadd.f32 %v6933_v19, %v1821_v37 }
0x118f   :  { %v1824_v39 = vsel %vm283_vm5, %v1823_v21, -inf }
0x1190   :  { %1825 = vmax.xlane.f32.xlu2 %v1824_v39 }
0x1195   :  { %v1945_v40 = vpop.f32.mrf.mxu0 }
0x1196   :  { %v1946_v42 = vadd.f32 %v6934_v28, %v1945_v40 }
0x1198   :  { %v7649_v43 = vpop.f32.mrf.mxu3  ;;  %v1948_v44 = vadd.f32 %v6933_v19, %v1946_v42 }
0x119a   :  { %v1949_v45 = vsel %vm283_vm5, %v1948_v44, -inf }
0x119b   :  { %1950 = vmax.xlane.f32.xlu0 %v1949_v45 }
0x11a0   :  { %v2048_v46 = vpop.f32.mrf.mxu3 }
0x11a1   :  { %v2049_v47 = vadd.f32 %v6935_v14, %v2048_v46 }
0x11a3   :  { %v2051_v31 = vadd.f32 %v6933_v19, %v2049_v47 }
0x11a5   :  { %v2052_v29 = vsel %vm283_vm5, %v2051_v31, -inf }
0x11a6   :  { %2053 = vmax.xlane.f32.xlu1 %v2052_v29 }
0x1203   :  { %v1826_v24 = vpop.xlane.xlu2 %1825 }
0x1204   :  { %v1827_v7 = vsub.f32 %v1823_v21, %v1826_v24 }
0x1206   :  { %v1828_v15 = vmul.f32 1.442695, %v1827_v7  ;;  %v1713_v63 = vpop.f32.mrf.mxu2 }
0x1207   :  { %v1716_v2 = vadd.f32 %v1713_v63, %v1613_v1  ;;  %v7696_v63 = vld [vmem:[%s8591_s13] ss:$0 sm:$0xff]  ;;  %s8606_s13 = sld [smem:[#allocation24_spill]] }
0x1208   :  { %6744 = vpow2.f32 %v1828_v15 }
0x1209   :  { %v7673_v3 = vadd.f32 %v1716_v2, %v7496_v4 }
0x120b   :  { %v2128_v5 = vmul.f32 %v7673_v3, %v7673_v3 }
0x120d   :  { %v2130_v30 = vsel %vm205_vm0, %v2128_v5, 0.0 }
0x120e   :  { %v6745_v50 = vpop.eup %6744  ;;  %v1951_v51 = vpop.xlane.xlu0 %1950 }
0x120f   :  { %v1952_v52 = vsub.f32 %v1948_v44, %v1951_v51  ;;  %v1830_v53 = vsel %vm283_vm5, %v6745_v50, 0.0  ;;  %v2274_v51 = vld [vmem:[%s7169_s27 + $0x10] sm:$0xff] }
0x1210   :  { %1831 = vadd.xlane.f32.xlu2 %v1830_v53  ;;  %v2272_v53 = vld [vmem:[%s7169_s27] sm:$0xff] }
0x1211   :  { %v1953_v58 = vmul.f32 1.442695, %v1952_v52  ;;  %v2273_v52 = vld [vmem:[%s7169_s27 + $0x8] sm:$0xff] }
0x1213   :  { %6746 = vpow2.f32 %v1953_v58 }
0x1219   :  { %v7655_v55 = vpop.eup %6746  ;;  %v2054_v56 = vpop.xlane.xlu1 %2053 }
0x121a   :  { %v2055_v49 = vsub.f32 %v2051_v31, %v2054_v56  ;;  %v1955_v23 = vsel %vm283_vm5, %v7655_v55, 0.0 }
0x121b   :  { %1956 = vadd.xlane.f32.xlu0 %v1955_v23 }
0x121c   :  { %v2056_v59 = vmul.f32 1.442695, %v2055_v49 }
0x121e   :  { %6748 = vpow2.f32 %v2056_v59 }
0x1224   :  { %v7659_v60 = vpop.eup %6748 }
0x1225   :  { %v2058_v27 = vsel %vm283_vm5, %v7659_v60, 0.0 }
0x1226   :  { %2059 = vadd.xlane.f32.xlu1 %v2058_v27 }
0x1228   :  { %1848 = vrot.lane.b32.xlu2 %v7586_v8, %s7044_s23 }
0x122f   :  { %1973 = vrot.lane.b32.xlu0 %v7586_v8, %s7048_s5 }
0x123f   :  { %2076 = vrot.lane.b32.xlu1 %v7586_v8, %s7047_s1  ;;  %v2308_v8 = vsel %vm205_vm0, %v2306_v0, 0.0 }
0x1251   :  { %2131 = vadd.xlane.f32.xlu2 %v2130_v30 }
0x1259   :  { %2309 = vadd.xlane.f32.xlu0 %v2308_v8 }
0x1283   :  { %v1832_v41 = vpop.xlane.xlu2 %1831 }
0x1284   :  { %6750 = vrcp.f32 %v1832_v41  ;;  %v1844_v9 = vand.u32 2147483648, %v1832_v41  ;;  %v1842_v54 = vand.u32 2147483647, %v1832_v41  ;;  %vm1838_vm7 = vweird.f32 %v1832_v41 }
0x1286   :  { %v1845_v16 = vor.u32 1.1754944e-38, %v1844_v9  ;;  %vm1843_vm9 = vcmp.eq.f32.partialorder %v1842_v54, 8.507059e+37 }
0x128a   :  { %v6751_v38 = vpop.eup %6750 }
0x128b   :  { %v1834_v6 = vmul.f32 %v6751_v38, %v1832_v41  ;;  %v1849_v4 = vpop.permute.xlu2 %1848  ;;  %vm1839_vm6 = vweird.f32 %v6751_v38 }
0x128c   :  { %1869 = vmatpush.msra.mxu2 %v1849_v4  ;;  %vm1840_vm8 = vmor %vm1838_vm7, %vm1839_vm6  ;;  %v1231_v4 = vld [vmem:[%s8592_s14 + $0x18] sm:$0xff] }
0x128d   :  { %v1835_v32 = vsub.f32 1.0, %v1834_v6 }
0x128e   :  { %v1957_v10 = vpop.xlane.xlu0 %1956 }
0x128f   :  { %v1836_v11 = vmul.f32 %v6751_v38, %v1835_v32  ;;  %6752 = vrcp.f32 %v1957_v10  ;;  %v1969_v48 = vand.u32 2147483648, %v1957_v10  ;;  %v1967_v36 = vand.u32 2147483647, %v1957_v10 }
0x1290   :  { %vm1963_vm11 = vweird.f32 %v1957_v10 }
0x1291   :  { %v1837_v12 = vadd.f32 %v6751_v38, %v1836_v11  ;;  %v1970_v19 = vor.u32 1.1754944e-38, %v1969_v48  ;;  %vm1968_vm13 = vcmp.eq.f32.partialorder %v1967_v36, 8.507059e+37  ;;  %v1229_v11 = vld [vmem:[%s8592_s14 + $0x8] sm:$0xff] }
0x1292   :  { %v1237_v36 = vld [vmem:[%s8594_s24 + $0x28] sm:$0xff] }
0x1293   :  { %v1841_v26 = vsel %vm1840_vm8, %v6751_v38, %v1837_v12  ;;  %v1228_v12 = vld [vmem:[%s8592_s14] sm:$0xff] }
0x1294   :  { %v1846_v17 = vsel %vm1843_vm9, %v1845_v16, %v1841_v26 }
0x1295   :  { %v6753_v18 = vpop.eup %6752  ;;  %v1847_v20 = vmul.f32 %v6745_v50, %v1846_v17 }
0x1296   :  { %v1959_v22 = vmul.f32 %v6753_v18, %v1957_v10  ;;  %vm1964_vm10 = vweird.f32 %v6753_v18  ;;  %v1230_v10 = vld [vmem:[%s8592_s14 + $0x10] sm:$0xff]  ;;  %s8607_s14 = sld [smem:[#allocation26_spill]] }
0x1297   :  { %6430 = vmatmul.msk.f32.vlgmr.msra.gmra.mxu2 %vm283_vm5, %v1847_v20  ;;  %vm1965_vm12 = vmor %vm1963_vm11, %vm1964_vm10  ;;  %v7710_v20 = vld [vmem:[%s8593_s19] ss:$0 sm:$0xff]  ;;  %s6960_s19 = scalar_lea.hbm %s7274_s29, 16 }
0x1298   :  { %v1960_v25 = vsub.f32 1.0, %v1959_v22 }
0x1299   :  { %v2060_v34 = vpop.xlane.xlu1 %2059 }
0x129a   :  { %v1961_v35 = vmul.f32 %v6753_v18, %v1960_v25  ;;  %6754 = vrcp.f32 %v2060_v34  ;;  %v2072_v47 = vand.u32 2147483648, %v2060_v34  ;;  %vm2066_vm15 = vweird.f32 %v2060_v34 }
0x129b   :  { %v2070_v31 = vand.u32 2147483647, %v2060_v34 }
0x129c   :  { %v1962_v37 = vadd.f32 %v6753_v18, %v1961_v35  ;;  %v2073_v24 = vor.u32 1.1754944e-38, %v2072_v47  ;;  %v1238_v35 = vld [vmem:[%s8594_s24 + $0x30] sm:$0xff] }
0x129d   :  { %vm2071_vm3 = vcmp.eq.f32.partialorder %v2070_v31, 8.507059e+37 }
0x129e   :  { %v1966_v21 = vsel %vm1965_vm12, %v6753_v18, %v1962_v37  ;;  %v1236_v37 = vld [vmem:[%s8594_s24 + $0x20] sm:$0xff] }
0x129f   :  { %v1971_v39 = vsel %vm1968_vm13, %v1970_v19, %v1966_v21  ;;  %v1235_v19 = vld [vmem:[%s8594_s24 + $0x18] sm:$0xff]  ;;  %v1234_v21 = vld [vmem:[%s8594_s24 + $0x10] sm:$0xff] }
0x12a0   :  { %v6755_v40 = vpop.eup %6754  ;;  %v1972_v28 = vmul.f32 %v7655_v55, %v1971_v39  ;;  %v1233_v39 = vld [vmem:[%s8594_s24 + $0x8] sm:$0xff] }
0x12a1   :  { %v2062_v42 = vmul.f32 %v6755_v40, %v2060_v34  ;;  %v1974_v44 = vpop.permute.xlu0 %1973  ;;  %vm2067_vm14 = vweird.f32 %v6755_v40  ;;  %v1239_v34 = vld [vmem:[%s8594_s24 + $0x38] sm:$0xff] }
0x12a2   :  { %1994 = vmatpush.msrb.mxu2 %v1974_v44  ;;  %vm2068_vm2 = vmor %vm2066_vm15, %vm2067_vm14  ;;  %2212 = vmatpush.msrb.mxu3 %v1239_v34 }
0x12a3   :  { %v2063_v45 = vsub.f32 1.0, %v2062_v42  ;;  %6435 = vmatmul.msk.f32.vlgmr.msrb.gmra.mxu2 %vm283_vm5, %v1972_v28 }
0x12a4   :  { %2120 = vmatpush.msra.mxu2 %v7641_v33  ;;  %v2275_v33 = vld [vmem:[%s7169_s27 + $0x18] sm:$0xff]  ;;  %2213 = vmatpush.msrb.mxu3 %v1238_v35  ;;  %s8600_s27 = sld [smem:[#allocation17_spill]] }
0x12a5   :  { %v2064_v46 = vmul.f32 %v6755_v40, %v2063_v45 }
0x12a6   :  { %2214 = vmatpush.msrb.mxu3 %v1237_v36  ;;  %v7783_v36 = vld [vmem:[%s8595_s30 + $0x10] sm:$0xff] }
0x12a7   :  { %v2065_v14 = vadd.f32 %v6755_v40, %v2064_v46 }
0x12a8   :  { %2215 = vmatpush.msrb.mxu3 %v1236_v37 }
0x12a9   :  { %v2069_v29 = vsel %vm2068_vm2, %v6755_v40, %v2065_v14  ;;  %v1232_v40 = vld [vmem:[%s8594_s24] sm:$0xff] }
0x12aa   :  { %v2074_v7 = vsel %vm2071_vm3, %v2073_v24, %v2069_v29  ;;  %2216 = vmatpush.msrb.mxu3 %v1235_v19 }
0x12ab   :  { %v2075_v50 = vmul.f32 %v7659_v60, %v2074_v7 }
0x12ac   :  { %2217 = vmatpush.msrb.mxu3 %v1234_v21 }
0x12ae   :  { %2218 = vmatpush.msrb.mxu3 %v1233_v39 }
0x12b0   :  { %2219 = vmatpush.msrb.mxu3 %v1232_v40 }
0x12b1   :  { %v2077_v15 = vpop.permute.xlu1 %2076 }
0x12b2   :  { %2097 = vmatpush.msra.mxu0 %v2077_v15 }
0x12b3   :  { %6439 = vmatmul.msk.f32.vlgmr.msra.gmra.mxu0 %vm283_vm5, %v2075_v50 }
0x12b4   :  { %2363 = vmatpush.msrb.mxu0 %v2275_v33 }
0x12b6   :  { %2364 = vmatpush.msrb.mxu0 %v2274_v51 }
0x12b8   :  { %2365 = vmatpush.msrb.mxu0 %v2273_v52 }
0x12ba   :  { %2366 = vmatpush.msrb.mxu0 %v2272_v53 }
0x12c4   :  { %v2132_v30 = vpop.xlane.xlu2 %2131 }
0x12c5   :  { %v2136_v0 = vmul.f32 %v2132_v30, %v7291_v13 }
0x12c7   :  { %v2138_v8 = vadd.f32 1e-06, %v2136_v0 }
0x12c9   :  { %vm2146_vm9 = vweird.f32 %v2138_v8 }
0x12cc   :  { %v2310_v58 = vpop.xlane.xlu0 %2309 }
0x12cd   :  { %v2314_v55 = vmul.f32 %v2310_v58, %v7291_v13 }
0x12cf   :  { %v2316_v56 = vadd.f32 1e-06, %v2314_v55 }
0x12d1   :  { %6756 = vrsqrt.f32 %v2316_v56  ;;  %vm2324_vm4 = vweird.f32 %v2316_v56 }
0x12d2   :  { %6758 = vrsqrt.f32 %v2138_v8 }
0x12d7   :  { %v6757_v49 = vpop.eup %6756 }
0x12d8   :  { %v2319_v23 = vmul.f32 %v6757_v49, %v2316_v56  ;;  %vm2325_vm6 = vweird.f32 %v6757_v49  ;;  %v6759_v41 = vpop.eup %6758 }
0x12d9   :  { %vm2326_vm7 = vmor %vm2324_vm4, %vm2325_vm6  ;;  %v2141_v38 = vmul.f32 %v6759_v41, %v2138_v8  ;;  %vm2147_vm8 = vweird.f32 %v6759_v41 }
0x12da   :  { %v2320_v59 = vmul.f32 %v6757_v49, %v2319_v23  ;;  %vm2148_vm10 = vmor %vm2146_vm9, %vm2147_vm8 }
0x12db   :  { %v2142_v6 = vmul.f32 %v6759_v41, %v2141_v38  ;;  %v7762_v38 = vld [vmem:[%s8595_s30 + $0x8] sm:$0xff] }
0x12dc   :  { %v2321_v60 = vmul.f32 0.5, %v2320_v59 }
0x12dd   :  { %v2143_v32 = vmul.f32 0.5, %v2142_v6 }
0x12de   :  { %v2322_v27 = vsub.f32 1.5, %v2321_v60 }
0x12df   :  { %v2144_v54 = vsub.f32 1.5, %v2143_v32 }
0x12e0   :  { %v2323_v62 = vmul.f32 %v6757_v49, %v2322_v27 }
0x12e1   :  { %v2145_v16 = vmul.f32 %v6759_v41, %v2144_v54 }
0x12e2   :  { %v2327_v1 = vsel %vm2326_vm7, %v6757_v49, %v2323_v62 }
0x12e3   :  { %v2338_v2 = vmul.f32 %v2327_v1, %v7678_v61  ;;  %v2149_v26 = vsel %vm2148_vm10, %v6759_v41, %v2145_v16 }
0x12e4   :  { %v2160_v18 = vmul.f32 %v2149_v26, %v7673_v3 }
0x12e5   :  { %v2343_v5 = vmul.f32 %v7696_v63, %v2338_v2  ;;  %v7756_v2 = vld [vmem:[%s8595_s30] sm:$0xff] }
0x12e6   :  { %v2165_v22 = vmul.f32 %v7710_v20, %v2160_v18 }
0x12e7   :  { %6445 = vmatmul.msk.f32.vlgmr.msrb.gmra.mxu0 %vm205_vm0, %v2343_v5 }
0x131a   :  { %v1871_v9 = vpop.f32.mrf.mxu2 }
0x131b   :  { %6431 = vmatmul.msk.f32.vlgmr.msrb.gmra.mxu1 %vm283_vm5, %v1871_v9 }
0x131c   :  { %2185 = vmatpush.msrb.mxu1 %v1231_v4 }
0x131e   :  { %2186 = vmatpush.msrb.mxu1 %v1230_v10 }
0x1320   :  { %2187 = vmatpush.msrb.mxu1 %v1229_v11 }
0x1322   :  { %2188 = vmatpush.msrb.mxu1 %v1228_v12  ;;  %v7768_v12 = vld [vmem:[%s7069_s9 + $0x8] sm:$0xff]  ;;  %s8596_s9 = sld [smem:[#allocation16_spill]] }
0x1323   :  { %v2307_v26 = vmul.f32 %v7768_v12, %v7768_v12 }
0x1326   :  { %v1996_v17 = vpop.f32.mrf.mxu2 }
0x1327   :  { %6436 = vmatmul.msk.f32.vlgmr.msra.gmra.mxu1 %vm283_vm5, %v1996_v17  ;;  %v2311_v17 = vsel %vm205_vm0, %v2307_v26, 0.0 }
0x132f   :  { %6441 = vmatmul.msk.f32.vlgmr.msrb.gmra.mxu1 %vm205_vm0, %v2165_v22 }
0x1330   :  { %v2099_v25 = vpop.f32.mrf.mxu0 }
0x1331   :  { %6440 = vmatmul.msk.f32.vlgmr.msra.gmra.mxu2 %vm283_vm5, %v2099_v25 }
0x1364   :  { %v7715_v48 = vpop.f32.mrf.mxu0 }
0x1365   :  { %2376 = vrot.lane.b32.xlu0 %v7715_v48, %s7041_s8  ;;  %2456 = vrot.lane.b32.xlu2 %v7715_v48, %s7042_s3 }
0x136d   :  { %2580 = vrot.lane.b32.xlu2 %v7715_v48, %s7046_s28  ;;  %2454 = vrot.lane.b32.xlu0 %v7715_v48, %s7043_s22 }
0x1375   :  { %2426 = vrot.lane.b32.xlu2 %v7715_v48, %s7040_s0 }
0x1398   :  { %v1894_v28 = vpop.f32.mrf.mxu1 }
0x1399   :  { %v1918_v46 = vadd.f32 %v7649_v43, %v1894_v28 }
0x13a4   :  { %v2019_v42 = vpop.f32.mrf.mxu1 }
0x13a5   :  { %v2022_v14 = vadd.f32 %v2019_v42, %v1918_v46 }
0x13ac   :  { %v2190_v44 = vpop.f32.mrf.mxu1 }
0x13ad   :  { %v2196_v45 = vmax.f32 %v2190_v44, 0.0 }
0x13af   :  { %6443 = vmatmul.msk.f32.vlgmr.msrb.gmra.mxu3 %vm1186_vm1, %v2196_v45 }
0x13b4   :  { %v2122_v47 = vpop.f32.mrf.mxu2 }
0x13b5   :  { %v2125_v31 = vadd.f32 %v2122_v47, %v2022_v14 }
0x13b7   :  { %v7738_v29 = vadd.f32 %v2125_v31, %v7538_v57 }
0x13b9   :  { %v2129_v24 = vmul.f32 %v7738_v29, %v7738_v29 }
0x13bb   :  { %v2133_v7 = vsel %vm205_vm0, %v2129_v24, 0.0 }
0x13bc   :  { %2134 = vadd.xlane.f32.xlu1 %v2133_v7 }
0x13bf   :  { %v2457_v15 = vpop.permute.xlu2 %2456 }
0x13c0   :  { %6451 = vmatpush.xpose.msk.msra.mxu1 %vm283_vm5, %v2457_v15 }
0x13c7   :  { %v2581_v50 = vpop.permute.xlu2 %2580 }
0x13cf   :  { %v2427_v43 = vpop.permute.xlu2 %2426 }
0x13d5   :  { %2582 = vrot.lane.b32.xlu1 %v7715_v48, %s7045_s26 }
0x13d7   :  { %v2377_v33 = vpop.permute.xlu0 %2376 }
0x13d8   :  { %6447 = vmatpush.xpose.msk.msrb.mxu2 %vm283_vm5, %v2377_v33 }
0x13db   :  { %6448 = vmatmul.msk.f32.vlgmr.msrb.gmra.mxu2 %vm283_vm5, %v7715_v48 }
0x13dc   :  { %2447 = vmatpush.msra.mxu2 %v2427_v43 }
0x13df   :  { %v2455_v1 = vpop.permute.xlu0 %2454 }
0x142f   :  { %v2135_v57 = vpop.xlane.xlu1 %2134 }
0x1430   :  { %v2137_v51 = vmul.f32 %v2135_v57, %v7291_v13 }
0x1432   :  { %v2139_v52 = vadd.f32 1e-06, %v2137_v51  ;;  %v7778_v18 = vpop.f32.mrf.mxu3 }
0x1434   :  { %6760 = vrsqrt.f32 %v2139_v52  ;;  %vm2156_vm12 = vweird.f32 %v2139_v52 }
0x143a   :  { %v6761_v53 = vpop.eup %6760 }
0x143b   :  { %v2151_v58 = vmul.f32 %v6761_v53, %v2139_v52  ;;  %vm2157_vm11 = vweird.f32 %v6761_v53 }
0x143c   :  { %vm2158_vm13 = vmor %vm2156_vm12, %vm2157_vm11 }
0x143d   :  { %v2152_v55 = vmul.f32 %v6761_v53, %v2151_v58 }
0x143f   :  { %v2153_v56 = vmul.f32 0.5, %v2152_v55 }
0x1441   :  { %v2154_v49 = vsub.f32 1.5, %v2153_v56 }
0x1443   :  { %v2155_v23 = vmul.f32 %v6761_v53, %v2154_v49 }
0x1445   :  { %v2159_v59 = vsel %vm2158_vm13, %v6761_v53, %v2155_v23 }
0x1446   :  { %v2161_v60 = vmul.f32 %v2159_v59, %v7738_v29 }
0x1447   :  { %v2583_v27 = vpop.permute.xlu1 %2582 }
0x1448   :  { %6457 = vmatpush.xpose.msk.msra.mxu3 %vm283_vm5, %v2583_v27  ;;  %v2166_v62 = vmul.f32 %v7710_v20, %v2161_v60  ;;  %v7796_v27 = vld [vmem:[%s8596_s9] sm:$0xff] }
0x1449   :  { %2573 = vmatpush.msrb.mxu1 %v7796_v27 }
0x144a   :  { %6442 = vmatmul.msk.f32.gmra.mxu1 %vm205_vm0, %v2166_v62 }
0x1452   :  { %6452 = vmatmul.msk.f32.vlgmr.msra.gmra.mxu1 %vm283_vm5, %v2455_v1 }
0x145e   :  { %v2399_v5 = vpop.f32.mrf.mxu2 }
0x145f   :  { %v2400_v30 = vadd.f32 %v2399_v5, %v7756_v2 }
0x1461   :  { %v2402_v0 = vsel %vm283_vm5, %v2400_v30, -inf }
0x1462   :  { %2403 = vmax.xlane.f32.xlu0 %v2402_v0 }
0x14c7   :  { %v2193_v8 = vpop.f32.mrf.mxu1 }
0x14c8   :  { %v2197_v41 = vmax.f32 %v2193_v8, 0.0 }
0x14ca   :  { %6444 = vmatmul.msk.f32.gmra.mxu3 %vm1186_vm1, %v2197_v41 }
0x14cf   :  { %v2479_v6 = vpop.f32.mrf.mxu1 }
0x14d0   :  { %v2480_v4 = vadd.f32 %v7762_v38, %v2479_v6 }
0x14d2   :  { %6458 = vmatmul.msk.f32.vlgmr.msra.gmra.mxu3 %vm283_vm5, %v2581_v50  ;;  %v2482_v32 = vsel %vm283_vm5, %v2480_v4, -inf }
0x14d3   :  { %2483 = vmax.xlane.f32.xlu2 %v2482_v32 }
0x14d5   :  { %v2404_v9 = vpop.xlane.xlu0 %2403 }
0x14d6   :  { %v2405_v10 = vsub.f32 %v2400_v30, %v2404_v9 }
0x14d8   :  { %v2406_v11 = vmul.f32 1.442695, %v2405_v10 }
0x14da   :  { %6762 = vpow2.f32 %v2406_v11 }
0x14e0   :  { %v6763_v54 = vpop.eup %6762 }
0x14e1   :  { %v2408_v16 = vsel %vm283_vm5, %v6763_v54, 0.0 }
0x14e2   :  { %2409 = vadd.xlane.f32.xlu1 %v2408_v16 }
0x14ea   :  { %2312 = vadd.xlane.f32.xlu1 %v2311_v17 }
0x14eb   :  { %2506 = vrot.lane.b32.xlu2 %v7715_v48, %s7044_s23 }
0x14f3   :  { %2632 = vrot.lane.b32.xlu2 %v7715_v48, %s7048_s5 }
0x1546   :  { %v2484_v20 = vpop.xlane.xlu2 %2483 }
0x1547   :  { %v2485_v34 = vsub.f32 %v2480_v4, %v2484_v20 }
0x1549   :  { %v2486_v35 = vmul.f32 1.442695, %v2485_v34  ;;  %v2277_v34 = vld [vmem:[%s8596_s9 + $0x8] sm:$0xff] }
0x154a   :  { %2550 = vmatpush.msrb.mxu2 %v2277_v34 }
0x154d   :  { %v7780_v22 = vpop.f32.mrf.mxu3 }
0x154e   :  { %v2507_v25 = vpop.permute.xlu2 %2506 }
0x154f   :  { %2527 = vmatpush.msra.mxu0 %v2507_v25 }
0x1555   :  { %v2605_v37 = vpop.f32.mrf.mxu3  ;;  %v2410_v19 = vpop.xlane.xlu1 %2409 }
0x1556   :  { %v2606_v21 = vadd.f32 %v7783_v36, %v2605_v37  ;;  %6764 = vrcp.f32 %v2410_v19  ;;  %v2633_v39 = vpop.permute.xlu2 %2632  ;;  %v2422_v47 = vand.u32 2147483648, %v2410_v19  ;;  %v2420_v15 = vand.u32 2147483647, %v2410_v19 }
0x1557   :  { %6766 = vpow2.f32 %v2486_v35  ;;  %2653 = vmatpush.msrb.mxu0 %v2633_v39  ;;  %vm2416_vm15 = vweird.f32 %v2410_v19 }
0x1558   :  { %v2608_v40 = vsel %vm283_vm5, %v2606_v21, -inf  ;;  %v2423_v43 = vor.u32 1.1754944e-38, %v2422_v47  ;;  %vm2421_vm3 = vcmp.eq.f32.partialorder %v2420_v15, 8.507059e+37 }
0x1559   :  { %2609 = vmax.xlane.f32.xlu0 %v2608_v40 }
0x155c   :  { %v6765_v28 = vpop.eup %6764 }
0x155d   :  { %v6767_v42 = vpop.eup %6766  ;;  %v2412_v44 = vmul.f32 %v6765_v28, %v2410_v19  ;;  %v2313_v45 = vpop.xlane.xlu1 %2312  ;;  %vm2417_vm14 = vweird.f32 %v6765_v28 }
0x155e   :  { %v2315_v46 = vmul.f32 %v2313_v45, %v7291_v13  ;;  %v2488_v24 = vsel %vm283_vm5, %v6767_v42, 0.0  ;;  %vm2418_vm2 = vmor %vm2416_vm15, %vm2417_vm14 }
0x155f   :  { %v2413_v14 = vsub.f32 1.0, %v2412_v44 }
0x1560   :  { %v2317_v31 = vadd.f32 1e-06, %v2315_v46 }
0x1561   :  { %v2414_v7 = vmul.f32 %v6765_v28, %v2413_v14  ;;  %2489 = vadd.xlane.f32.xlu0 %v2488_v24 }
0x1562   :  { %6768 = vrsqrt.f32 %v2317_v31  ;;  %vm2334_vm4 = vweird.f32 %v2317_v31 }
0x1563   :  { %v2415_v50 = vadd.f32 %v6765_v28, %v2414_v7  ;;  %v2278_v7 = vld [vmem:[%s8596_s9 + $0x10] sm:$0xff] }
0x1565   :  { %v2419_v33 = vsel %vm2418_vm2, %v6765_v28, %v2415_v50 }
0x1566   :  { %v2424_v57 = vsel %vm2421_vm3, %v2423_v43, %v2419_v33  ;;  %v7829_v33 = vld [vmem:[%s8595_s30 + $0x18] sm:$0xff] }
0x1567   :  { %v2425_v51 = vmul.f32 %v6763_v54, %v2424_v57 }
0x1568   :  { %v6769_v52 = vpop.eup %6768 }
0x1569   :  { %v2329_v53 = vmul.f32 %v6769_v52, %v2317_v31  ;;  %6449 = vmatmul.msk.f32.vlgmr.msra.gmra.mxu2 %vm283_vm5, %v2425_v51  ;;  %vm2335_vm6 = vweird.f32 %v6769_v52 }
0x156a   :  { %vm2336_vm7 = vmor %vm2334_vm4, %vm2335_vm6  ;;  %2676 = vmatpush.msra.mxu2 %v2278_v7 }
0x156b   :  { %v2330_v58 = vmul.f32 %v6769_v52, %v2329_v53 }
0x156d   :  { %v2331_v55 = vmul.f32 0.5, %v2330_v58 }
0x156f   :  { %v2332_v56 = vsub.f32 1.5, %v2331_v55 }
0x1571   :  { %v2333_v49 = vmul.f32 %v6769_v52, %v2332_v56 }
0x1573   :  { %v2337_v23 = vsel %vm2336_vm7, %v6769_v52, %v2333_v49 }
0x1574   :  { %v2339_v59 = vmul.f32 %v2337_v23, %v7768_v12 }
0x1575   :  { %2686 = vrot.lane.b32.xlu0 %v7715_v48, %s7050_s7 }
0x1576   :  { %v2344_v60 = vmul.f32 %v7696_v63, %v2339_v59 }
0x1578   :  { %6446 = vmatmul.msk.f32.gmra.mxu0 %vm205_vm0, %v2344_v60 }
0x15cc   :  { %v2610_v62 = vpop.xlane.xlu0 %2609 }
0x15cd   :  { %v2611_v1 = vsub.f32 %v2606_v21, %v2610_v62 }
0x15cf   :  { %v2612_v5 = vmul.f32 1.442695, %v2611_v1 }
0x15d1   :  { %6770 = vpow2.f32 %v2612_v5 }
0x15d4   :  { %v2490_v30 = vpop.xlane.xlu0 %2489 }
0x15d5   :  { %6772 = vrcp.f32 %v2490_v30  ;;  %v2502_v63 = vand.u32 2147483648, %v2490_v30  ;;  %v2500_v9 = vand.u32 2147483647, %v2490_v30  ;;  %vm2496_vm9 = vweird.f32 %v2490_v30 }
0x15d7   :  { %v6771_v0 = vpop.eup %6770  ;;  %v2503_v11 = vor.u32 1.1754944e-38, %v2502_v63  ;;  %vm2501_vm11 = vcmp.eq.f32.partialorder %v2500_v9, 8.507059e+37 }
0x15d8   :  { %v2614_v8 = vsel %vm283_vm5, %v6771_v0, 0.0 }
0x15d9   :  { %2615 = vadd.xlane.f32.xlu1 %v2614_v8 }
0x15db   :  { %v6773_v41 = vpop.eup %6772 }
0x15dc   :  { %v2492_v6 = vmul.f32 %v6773_v41, %v2490_v30  ;;  %vm2497_vm8 = vweird.f32 %v6773_v41 }
0x15dd   :  { %vm2498_vm10 = vmor %vm2496_vm9, %vm2497_vm8 }
0x15de   :  { %v2493_v4 = vsub.f32 1.0, %v2492_v6 }
0x15e0   :  { %v2494_v32 = vmul.f32 %v6773_v41, %v2493_v4 }
0x15e2   :  { %v2495_v10 = vadd.f32 %v6773_v41, %v2494_v32 }
0x15e4   :  { %v2499_v54 = vsel %vm2498_vm10, %v6773_v41, %v2495_v10 }
0x15e5   :  { %v2504_v16 = vsel %vm2501_vm11, %v2503_v11, %v2499_v54 }
0x15e6   :  { %v2505_v26 = vmul.f32 %v6767_v42, %v2504_v16 }
0x15e7   :  { %v2687_v17 = vpop.permute.xlu0 %2686 }
0x15e8   :  { %6453 = vmatmul.msk.f32.vlgmr.msra.gmra.mxu0 %vm283_vm5, %v2505_v26  ;;  %6462 = vmatpush.xpose.msk.msra.mxu1 %vm283_vm5, %v2687_v17 }
0x15ec   :  { %v2449_v20 = vpop.f32.mrf.mxu2 }
0x15ed   :  { %6455 = vmatmul.msk.f32.vlgmr.msrb.gmra.mxu1 %vm283_vm5, %v2449_v20 }
0x15f2   :  { %2684 = vrot.lane.b32.xlu1 %v7715_v48, %s7049_s2 }
0x15f5   :  { %v7805_v25 = vpop.f32.mrf.mxu0 }
0x15f6   :  { %2787 = vrot.lane.b32.xlu0 %v7805_v25, %s7041_s8 }
0x15fe   :  { %2736 = vrot.lane.b32.xlu0 %v7715_v48, %s7047_s1 }
0x1606   :  { %2865 = vrot.lane.b32.xlu0 %v7805_v25, %s7042_s3 }
0x160e   :  { %2863 = vrot.lane.b32.xlu0 %v7805_v25, %s7043_s22 }
0x1616   :  { %2989 = vrot.lane.b32.xlu0 %v7805_v25, %s7045_s26 }
0x161e   :  { %2987 = vrot.lane.b32.xlu0 %v7805_v25, %s7046_s28 }
0x164c   :  { %v2616_v35 = vpop.xlane.xlu1 %2615 }
0x164d   :  { %6774 = vrcp.f32 %v2616_v35  ;;  %v2628_v48 = vand.u32 2147483648, %v2616_v35  ;;  %v2626_v40 = vand.u32 2147483647, %v2616_v35  ;;  %vm2622_vm13 = vweird.f32 %v2616_v35 }
0x164f   :  { %v2629_v42 = vor.u32 1.1754944e-38, %v2628_v48  ;;  %vm2627_vm15 = vcmp.eq.f32.partialorder %v2626_v40, 8.507059e+37 }
0x1653   :  { %v6775_v37 = vpop.eup %6774 }
0x1654   :  { %v2618_v19 = vmul.f32 %v6775_v37, %v2616_v35  ;;  %vm2623_vm12 = vweird.f32 %v6775_v37 }
0x1655   :  { %vm2624_vm14 = vmor %vm2622_vm13, %vm2623_vm12 }
0x1656   :  { %v2619_v21 = vsub.f32 1.0, %v2618_v19 }
0x1658   :  { %v2620_v39 = vmul.f32 %v6775_v37, %v2619_v21 }
0x165a   :  { %v2621_v28 = vadd.f32 %v6775_v37, %v2620_v39 }
0x165c   :  { %v2625_v44 = vsel %vm2624_vm14, %v6775_v37, %v2621_v28  ;;  %v7856_v37 = vld [vmem:[%s8596_s9 + $0x18] sm:$0xff] }
0x165d   :  { %v2630_v45 = vsel %vm2627_vm15, %v2629_v42, %v2625_v44  ;;  %2780 = vmatpush.msra.mxu0 %v7856_v37 }
0x165e   :  { %v2631_v46 = vmul.f32 %v6771_v0, %v2630_v45 }
0x1660   :  { %6459 = vmatmul.msk.f32.vlgmr.msrb.gmra.mxu0 %vm283_vm5, %v2631_v46 }
0x1664   :  { %v2685_v14 = vpop.permute.xlu1 %2684 }
0x1665   :  { %v2529_v47 = vpop.f32.mrf.mxu0  ;;  %6463 = vmatmul.msk.f32.vlgmr.msra.gmra.mxu1 %vm283_vm5, %v2685_v14 }
0x1666   :  { %6454 = vmatmul.msk.f32.vlgmr.msrb.gmra.mxu2 %vm283_vm5, %v2529_v47 }
0x1668   :  { %v2788_v31 = vpop.permute.xlu0 %2787 }
0x1669   :  { %6466 = vmatpush.xpose.msk.msrb.mxu2 %vm283_vm5, %v2788_v31 }
0x166a   :  { %v7825_v15 = vpop.f32.mrf.mxu1 }
0x1670   :  { %v2737_v24 = vpop.permute.xlu0 %2736 }
0x1671   :  { %2757 = vmatpush.msrb.mxu3 %v2737_v24 }
0x1678   :  { %v2866_v43 = vpop.permute.xlu0 %2865 }
0x1679   :  { %6469 = vmatpush.xpose.msk.msra.mxu3 %vm283_vm5, %v2866_v43 }
0x1680   :  { %v2864_v30 = vpop.permute.xlu0 %2863 }
0x1688   :  { %v2990_v0 = vpop.permute.xlu0 %2989 }
0x1690   :  { %v2988_v8 = vpop.permute.xlu0 %2987 }
0x16dd   :  { %v2655_v50 = vpop.f32.mrf.mxu0 }
0x16de   :  { %6460 = vmatmul.msk.f32.vlgmr.msra.gmra.mxu2 %vm283_vm5, %v2655_v50 }
0x16df   :  { %2959 = vmatpush.msra.mxu2 %v2277_v34 }
0x16e2   :  { %v2709_v57 = vpop.f32.mrf.mxu1 }
0x16e3   :  { %v2710_v51 = vadd.f32 %v7829_v33, %v2709_v57 }
0x16e5   :  { %v2712_v52 = vsel %vm283_vm5, %v2710_v51, -inf }
0x16e6   :  { %6467 = vmatmul.msk.f32.vlgmr.msrb.gmra.mxu2 %vm283_vm5, %v7805_v25  ;;  %2713 = vmax.xlane.f32.xlu1 %v2712_v52 }
0x16e7   :  { %3083 = vmatpush.msrb.mxu2 %v2278_v7 }
0x16e9   :  { %v7838_v53 = vpop.f32.mrf.mxu2 }
0x16ff   :  { %2837 = vrot.lane.b32.xlu1 %v7805_v25, %s7040_s0 }
0x1759   :  { %v2714_v58 = vpop.xlane.xlu1 %2713 }
0x175a   :  { %v2715_v55 = vsub.f32 %v2710_v51, %v2714_v58 }
0x175c   :  { %v2716_v56 = vmul.f32 1.442695, %v2715_v55 }
0x175e   :  { %6776 = vpow2.f32 %v2716_v56 }
0x1761   :  { %v7840_v49 = vpop.f32.mrf.mxu2 }
0x1764   :  { %v6777_v23 = vpop.eup %6776 }
0x1765   :  { %v2718_v59 = vsel %vm283_vm5, %v6777_v23, 0.0 }
0x1766   :  { %2719 = vadd.xlane.f32.xlu2 %v2718_v59 }
0x1769   :  { %v2810_v60 = vpop.f32.mrf.mxu2 }
0x176a   :  { %v2811_v62 = vadd.f32 %v2810_v60, %v7756_v2 }
0x176c   :  { %v2813_v1 = vsel %vm283_vm5, %v2811_v62, -inf }
0x176d   :  { %2814 = vmax.xlane.f32.xlu0 %v2813_v1 }
0x1771   :  { %v2838_v5 = vpop.permute.xlu1 %2837 }
0x1772   :  { %2858 = vmatpush.msrb.mxu1 %v2838_v5 }
0x1774   :  { %2982 = vmatpush.msra.mxu1 %v7796_v27 }
0x1781   :  { %3039 = vrot.lane.b32.xlu0 %v7805_v25, %s7048_s5 }
0x1789   :  { %3089 = vrot.lane.b32.xlu0 %v7805_v25, %s7049_s2 }
0x17d9   :  { %v2720_v41 = vpop.xlane.xlu2 %2719 }
0x17da   :  { %6778 = vrcp.f32 %v2720_v41  ;;  %v2732_v10 = vand.u32 2147483648, %v2720_v41  ;;  %v2730_v27 = vand.u32 2147483647, %v2720_v41  ;;  %vm2726_vm3 = vweird.f32 %v2720_v41 }
0x17dc   :  { %v2733_v16 = vor.u32 1.1754944e-38, %v2732_v10  ;;  %vm2731_vm6 = vcmp.eq.f32.partialorder %v2730_v27, 8.507059e+37 }
0x17e0   :  { %v6779_v6 = vpop.eup %6778  ;;  %v2815_v2 = vpop.xlane.xlu0 %2814 }
0x17e1   :  { %v2722_v4 = vmul.f32 %v6779_v6, %v2720_v41  ;;  %v2816_v63 = vsub.f32 %v2811_v62, %v2815_v2  ;;  %vm2727_vm2 = vweird.f32 %v6779_v6 }
0x17e2   :  { %vm2728_vm4 = vmor %vm2726_vm3, %vm2727_vm2 }
0x17e3   :  { %v2723_v32 = vsub.f32 1.0, %v2722_v4  ;;  %v2817_v9 = vmul.f32 1.442695, %v2816_v63 }
0x17e5   :  { %v2724_v11 = vmul.f32 %v6779_v6, %v2723_v32  ;;  %6780 = vpow2.f32 %v2817_v9 }
0x17e7   :  { %v2725_v54 = vadd.f32 %v6779_v6, %v2724_v11 }
0x17e9   :  { %v2729_v26 = vsel %vm2728_vm4, %v6779_v6, %v2725_v54 }
0x17ea   :  { %v2734_v17 = vsel %vm2731_vm6, %v2733_v16, %v2729_v26 }
0x17eb   :  { %v6781_v20 = vpop.eup %6780  ;;  %v2735_v34 = vmul.f32 %v6777_v23, %v2734_v17  ;;  %v2288_v17 = vld [vmem:[%s8597_s6 + $0x18] sm:$0xff] }
0x17ec   :  { %v2819_v35 = vsel %vm283_vm5, %v6781_v20, 0.0 }
0x17ed   :  { %2820 = vadd.xlane.f32.xlu2 %v2819_v35  ;;  %6464 = vmatmul.msk.f32.vlgmr.msrb.gmra.mxu3 %vm283_vm5, %v2735_v34 }
0x17ee   :  { %6474 = vmatpush.xpose.msk.msrb.mxu3 %vm283_vm5, %v2990_v0 }
0x17f5   :  { %6470 = vmatmul.msk.f32.vlgmr.msra.gmra.mxu3 %vm283_vm5, %v2864_v30 }
0x17fd   :  { %6475 = vmatmul.msk.f32.vlgmr.msrb.gmra.mxu3 %vm283_vm5, %v2988_v8 }
0x1860   :  { %v2821_v19 = vpop.xlane.xlu2 %2820 }
0x1861   :  { %6782 = vrcp.f32 %v2821_v19  ;;  %v2833_v40 = vand.u32 2147483648, %v2821_v19  ;;  %v2831_v42 = vand.u32 2147483647, %v2821_v19  ;;  %vm2827_vm8 = vweird.f32 %v2821_v19 }
0x1863   :  { %v2834_v45 = vor.u32 1.1754944e-38, %v2833_v40  ;;  %vm2832_vm10 = vcmp.eq.f32.partialorder %v2831_v42, 8.507059e+37 }
0x1867   :  { %v6783_v21 = vpop.eup %6782 }
0x1868   :  { %v2823_v48 = vmul.f32 %v6783_v21, %v2821_v19  ;;  %vm2828_vm7 = vweird.f32 %v6783_v21 }
0x1869   :  { %vm2829_vm9 = vmor %vm2827_vm8, %vm2828_vm7 }
0x186a   :  { %v2824_v39 = vsub.f32 1.0, %v2823_v48 }
0x186c   :  { %v2825_v28 = vmul.f32 %v6783_v21, %v2824_v39 }
0x186e   :  { %v2826_v44 = vadd.f32 %v6783_v21, %v2825_v28  ;;  %v2287_v28 = vld [vmem:[%s8597_s6 + $0x10] sm:$0xff] }
0x1870   :  { %v2830_v46 = vsel %vm2829_vm9, %v6783_v21, %v2826_v44  ;;  %v2759_v14 = vpop.f32.mrf.mxu3 }
0x1871   :  { %v2835_v47 = vsel %vm2832_vm10, %v2834_v45, %v2830_v46  ;;  %6465 = vmatmul.msk.f32.vlgmr.msra.gmra.mxu0 %vm283_vm5, %v2759_v14 }
0x1872   :  { %v2836_v31 = vmul.f32 %v6781_v20, %v2835_v47  ;;  %v2286_v47 = vld [vmem:[%s8597_s6 + $0x8] sm:$0xff] }
0x1874   :  { %6468 = vmatmul.msk.f32.vlgmr.msrb.gmra.mxu1 %vm283_vm5, %v2836_v31 }
0x1878   :  { %v2888_v24 = vpop.f32.mrf.mxu3 }
0x1879   :  { %v2889_v7 = vadd.f32 %v7762_v38, %v2888_v24  ;;  %v2285_v24 = vld [vmem:[%s8597_s6] sm:$0xff] }
0x187b   :  { %v2891_v50 = vsel %vm283_vm5, %v2889_v7, -inf }
0x187c   :  { %2892 = vmax.xlane.f32.xlu2 %v2891_v50 }
0x1880   :  { %v3012_v43 = vpop.f32.mrf.mxu3 }
0x1881   :  { %v3013_v57 = vadd.f32 %v7783_v36, %v3012_v43  ;;  %v7871_v36 = vadd.f32 %v7778_v18, %v7673_v3  ;;  %v2576_v3 = vadd.f32 %v7825_v15, %v7838_v53  ;;  %v3040_v53 = vpop.permute.xlu0 %3039 }
0x1883   :  { %v3015_v51 = vsel %vm283_vm5, %v3013_v57, -inf  ;;  %v2230_v30 = vmul.f32 %v7871_v36, %v7871_v36  ;;  %v2681_v8 = vadd.f32 %v7840_v49, %v2576_v3 }
0x1884   :  { %3016 = vmax.xlane.f32.xlu2 %v3015_v51 }
0x1885   :  { %v2232_v0 = vsel %vm205_vm0, %v2230_v30, 0.0 }
0x1889   :  { %v3090_v42 = vpop.permute.xlu0 %3089 }
0x18ee   :  { %v2782_v18 = vpop.f32.mrf.mxu0 }
0x18ef   :  { %v2893_v52 = vpop.xlane.xlu2 %2892  ;;  %v2785_v41 = vadd.f32 %v2782_v18, %v2681_v8  ;;  %v2284_v8 = vld [vmem:[%s8599_s20 + $0x18] sm:$0xff] }
0x18f0   :  { %v2894_v58 = vsub.f32 %v2889_v7, %v2893_v52 }
0x18f1   :  { %v2860_v55 = vpop.f32.mrf.mxu1  ;;  %v7886_v6 = vadd.f32 %v2785_v41, %v7678_v61 }
0x18f2   :  { %v2895_v56 = vmul.f32 1.442695, %v2894_v58  ;;  %6473 = vmatmul.msk.f32.vlgmr.msra.gmra.mxu1 %vm283_vm5, %v2860_v55 }
0x18f3   :  { %v3193_v2 = vmul.f32 %v7886_v6, %v7886_v6 }
0x18f4   :  { %6784 = vpow2.f32 %v2895_v56 }
0x18f5   :  { %v3195_v4 = vsel %vm205_vm0, %v3193_v2, 0.0 }
0x18f7   :  { %v3017_v23 = vpop.xlane.xlu2 %3016 }
0x18f8   :  { %v3018_v59 = vsub.f32 %v3013_v57, %v3017_v23  ;;  %v7903_v23 = vld [vmem:[%s8598_s12] ss:$0 sm:$0xff] }
0x18fa   :  { %v6785_v60 = vpop.eup %6784  ;;  %v3019_v38 = vmul.f32 1.442695, %v3018_v59 }
0x18fb   :  { %v2897_v62 = vsel %vm283_vm5, %v6785_v60, 0.0 }
0x18fc   :  { %6786 = vpow2.f32 %v3019_v38  ;;  %2898 = vadd.xlane.f32.xlu2 %v2897_v62 }
0x1902   :  { %v7867_v1 = vpop.eup %6786 }
0x1903   :  { %v3021_v5 = vsel %vm283_vm5, %v7867_v1, 0.0 }
0x1904   :  { %3022 = vadd.xlane.f32.xlu1 %v3021_v5 }
0x190c   :  { %2233 = vadd.xlane.f32.xlu1 %v2232_v0 }
0x1914   :  { %2915 = vrot.lane.b32.xlu2 %v7805_v25, %s7044_s23 }
0x191c   :  { %3091 = vrot.lane.b32.xlu2 %v7805_v25, %s7050_s7 }
0x1945   :  { %3196 = vadd.xlane.f32.xlu2 %v3195_v4 }
0x196f   :  { %v2899_v63 = vpop.xlane.xlu2 %2898  ;;  %v7912_v3 = vpop.f32.mrf.mxu1 }
0x1970   :  { %6788 = vrcp.f32 %v2899_v63  ;;  %v2911_v61 = vand.u32 2147483648, %v2899_v63  ;;  %v2909_v27 = vand.u32 2147483647, %v2899_v63  ;;  %vm2905_vm12 = vweird.f32 %v2899_v63 }
0x1972   :  { %v2912_v26 = vor.u32 1.1754944e-38, %v2911_v61  ;;  %vm2910_vm14 = vcmp.eq.f32.partialorder %v2909_v27, 8.507059e+37 }
0x1976   :  { %v6789_v32 = vpop.eup %6788 }
0x1977   :  { %v2901_v9 = vmul.f32 %v6789_v32, %v2899_v63  ;;  %v2916_v10 = vpop.permute.xlu2 %2915  ;;  %v3023_v15 = vpop.xlane.xlu1 %3022  ;;  %vm2906_vm11 = vweird.f32 %v6789_v32 }
0x1978   :  { %6790 = vrcp.f32 %v3023_v15  ;;  %2936 = vmatpush.msrb.mxu0 %v2916_v10  ;;  %vm2907_vm13 = vmor %vm2905_vm12, %vm2906_vm11  ;;  %v3035_v44 = vand.u32 2147483648, %v3023_v15  ;;  %v3033_v14 = vand.u32 2147483647, %v3023_v15  ;;  %vm3029_vm2 = vweird.f32 %v3023_v15  ;;  %v2282_v10 = vld [vmem:[%s8599_s20 + $0x8] sm:$0xff] }
0x1979   :  { %v2902_v49 = vsub.f32 1.0, %v2901_v9 }
0x197a   :  { %3060 = vmatpush.msra.mxu0 %v3040_v53  ;;  %v3036_v7 = vor.u32 1.1754944e-38, %v3035_v44  ;;  %vm3034_vm4 = vcmp.eq.f32.partialorder %v3033_v14, 8.507059e+37  ;;  %v2281_v53 = vld [vmem:[%s8599_s20] sm:$0xff] }
0x197b   :  { %v2903_v11 = vmul.f32 %v6789_v32, %v2902_v49 }
0x197d   :  { %v2904_v54 = vadd.f32 %v6789_v32, %v2903_v11 }
0x197e   :  { %v6791_v16 = vpop.eup %6790 }
0x197f   :  { %v2908_v20 = vsel %vm2907_vm13, %v6789_v32, %v2904_v54  ;;  %v3025_v34 = vmul.f32 %v6791_v16, %v3023_v15  ;;  %v3092_v35 = vpop.permute.xlu2 %3091  ;;  %v2234_v19 = vpop.xlane.xlu1 %2233  ;;  %vm3030_vm15 = vweird.f32 %v6791_v16  ;;  %v2283_v32 = vld [vmem:[%s8599_s20 + $0x10] sm:$0xff] }
0x1980   :  { %v2913_v21 = vsel %vm2910_vm14, %v2912_v26, %v2908_v20  ;;  %v2238_v48 = vmul.f32 %v2234_v19, %v7291_v13  ;;  %6478 = vmatpush.xpose.msk.msrb.mxu1 %vm283_vm5, %v3092_v35  ;;  %vm3031_vm3 = vmor %vm3029_vm2, %vm3030_vm15 }
0x1981   :  { %v3026_v39 = vsub.f32 1.0, %v3025_v34  ;;  %v2914_v40 = vmul.f32 %v6785_v60, %v2913_v21 }
0x1982   :  { %v2240_v45 = vadd.f32 1e-06, %v2238_v48 }
0x1983   :  { %v3027_v46 = vmul.f32 %v6791_v16, %v3026_v39  ;;  %6471 = vmatmul.msk.f32.vlgmr.msrb.gmra.mxu0 %vm283_vm5, %v2914_v40  ;;  %6479 = vmatmul.msk.f32.vlgmr.msrb.gmra.mxu1 %vm283_vm5, %v3090_v42 }
0x1984   :  { %3279 = vmatpush.msra.mxu1 %v2288_v17  ;;  %6792 = vrsqrt.f32 %v2240_v45  ;;  %3185 = vmatpush.msrb.mxu0 %v7856_v37  ;;  %vm2248_vm7 = vweird.f32 %v2240_v45 }
0x1985   :  { %v3028_v31 = vadd.f32 %v6791_v16, %v3027_v46 }
0x1986   :  { %3280 = vmatpush.msra.mxu1 %v2287_v28 }
0x1987   :  { %v3032_v50 = vsel %vm3031_vm3, %v6791_v16, %v3028_v31 }
0x1988   :  { %3281 = vmatpush.msra.mxu1 %v2286_v47  ;;  %v3037_v43 = vsel %vm3034_vm4, %v3036_v7, %v3032_v50 }
0x1989   :  { %v3038_v57 = vmul.f32 %v7867_v1, %v3037_v43 }
0x198a   :  { %3282 = vmatpush.msra.mxu1 %v2285_v24  ;;  %v6793_v51 = vpop.eup %6792 }
0x198b   :  { %v2243_v52 = vmul.f32 %v6793_v51, %v2240_v45  ;;  %6476 = vmatmul.msk.f32.vlgmr.msra.gmra.mxu0 %vm283_vm5, %v3038_v57  ;;  %vm2249_vm6 = vweird.f32 %v6793_v51 }
0x198c   :  { %vm2250_vm8 = vmor %vm2248_vm7, %vm2249_vm6 }
0x198d   :  { %v2244_v58 = vmul.f32 %v6793_v51, %v2243_v52 }
0x198f   :  { %v2245_v55 = vmul.f32 0.5, %v2244_v58 }
0x1991   :  { %v2246_v37 = vsub.f32 1.5, %v2245_v55  ;;  %v7960_v55 = vld [vmem:[%s7084_s21] ss:$0 sm:$0xff] }
0x1993   :  { %v2247_v56 = vmul.f32 %v6793_v51, %v2246_v37 }
0x1995   :  { %v2251_v59 = vsel %vm2250_vm8, %v6793_v51, %v2247_v56 }
0x1996   :  { %v2262_v60 = vmul.f32 %v2251_v59, %v7871_v36 }
0x1998   :  { %v7907_v38 = vmul.f32 %v7903_v23, %v2262_v60 }
0x199a   :  { %6484 = vmatmul.msk.f32.vlgmr.msra.gmra.mxu1 %vm205_vm0, %v7907_v38 }
0x19b8   :  { %v3197_v62 = vpop.xlane.xlu2 %3196 }
0x19b9   :  { %v3201_v1 = vmul.f32 %v3197_v62, %v7291_v13 }
0x19bb   :  { %v3203_v5 = vadd.f32 1e-06, %v3201_v1 }
0x19bd   :  { %6794 = vrsqrt.f32 %v3203_v5  ;;  %vm3211_vm10 = vweird.f32 %v3203_v5 }
0x19c3   :  { %v6795_v30 = vpop.eup %6794 }
0x19c4   :  { %v3206_v0 = vmul.f32 %v6795_v30, %v3203_v5  ;;  %vm3212_vm9 = vweird.f32 %v6795_v30 }
0x19c5   :  { %vm3213_vm11 = vmor %vm3211_vm10, %vm3212_vm9 }
0x19c6   :  { %v3207_v18 = vmul.f32 %v6795_v30, %v3206_v0  ;;  %v7973_v0 = vld [vmem:[%s8601_s10] sm:$0xff] }
0x19c7   :  { %3485 = vmatpush.msrb.mxu1 %v7973_v0 }
0x19c8   :  { %v3208_v36 = vmul.f32 0.5, %v3207_v18 }
0x19ca   :  { %v3209_v41 = vsub.f32 1.5, %v3208_v36 }
0x19cc   :  { %v3210_v15 = vmul.f32 %v6795_v30, %v3209_v41 }
0x19ce   :  { %v3214_v49 = vsel %vm3213_vm11, %v6795_v30, %v3210_v15 }
0x19cf   :  { %v3225_v11 = vmul.f32 %v3214_v49, %v7886_v6 }
0x1a00   :  { %v2938_v2 = vpop.f32.mrf.mxu0  ;;  %v3114_v4 = vpop.f32.mrf.mxu1 }
0x1a01   :  { %v3115_v63 = vadd.f32 %v7829_v33, %v3114_v4  ;;  %6472 = vmatmul.msk.f32.vlgmr.msra.gmra.mxu2 %vm283_vm5, %v2938_v2  ;;  %v7923_v33 = vld [vmem:[%s8600_s27] ss:$0 sm:$0xff] }
0x1a02   :  { %3250 = vmatpush.msra.mxu2 %v2284_v8  ;;  %v3230_v27 = vmul.f32 %v7923_v33, %v3225_v11 }
0x1a03   :  { %v3117_v9 = vsel %vm283_vm5, %v3115_v63, -inf }
0x1a04   :  { %3118 = vmax.xlane.f32.xlu0 %v3117_v9  ;;  %3251 = vmatpush.msra.mxu2 %v2283_v32  ;;  %v7978_v32 = vadd.f32 %v7780_v22, %v7738_v29 }
0x1a06   :  { %3252 = vmatpush.msra.mxu2 %v2282_v10  ;;  %v2231_v11 = vmul.f32 %v7978_v32, %v7978_v32 }
0x1a08   :  { %v3062_v61 = vpop.f32.mrf.mxu0  ;;  %3253 = vmatpush.msra.mxu2 %v2281_v53 }
0x1a09   :  { %6477 = vmatmul.msk.f32.vlgmr.msrb.gmra.mxu2 %vm283_vm5, %v3062_v61 }
0x1a11   :  { %6482 = vmatmul.msk.f32.vlgmr.msra.gmra.mxu2 %vm205_vm0, %v3230_v27 }
0x1a17   :  { %v7928_v54 = vpop.f32.mrf.mxu1 }
0x1a18   :  { %3492 = vrot.lane.b32.xlu0 %v7928_v54, %s7046_s28  ;;  %3368 = vrot.lane.b32.xlu2 %v7928_v54, %s7043_s22 }
0x1a20   :  { %3340 = vrot.lane.b32.xlu0 %v7928_v54, %s7041_s8 }
0x1a72   :  { %v3369_v43 = vpop.permute.xlu2 %3368 }
0x1a77   :  { %v3119_v16 = vpop.xlane.xlu0 %3118 }
0x1a78   :  { %v3120_v26 = vsub.f32 %v3115_v63, %v3119_v16 }
0x1a7a   :  { %v3121_v17 = vmul.f32 1.442695, %v3120_v26  ;;  %v2235_v26 = vsel %vm205_vm0, %v2231_v11, 0.0 }
0x1a7c   :  { %6796 = vpow2.f32 %v3121_v17 }
0x1a82   :  { %v6797_v20 = vpop.eup %6796 }
0x1a83   :  { %v3123_v34 = vsel %vm283_vm5, %v6797_v20, 0.0 }
0x1a84   :  { %3124 = vadd.xlane.f32.xlu1 %v3123_v34  ;;  %v7937_v19 = vpop.f32.mrf.mxu2 }
0x1a85   :  { %v2985_v9 = vadd.f32 %v7912_v3, %v7937_v19 }
0x1a8a   :  { %v3493_v35 = vpop.permute.xlu0 %3492 }
0x1a8c   :  { %v7939_v48 = vpop.f32.mrf.mxu2 }
0x1a8d   :  { %v3088_v53 = vadd.f32 %v7939_v48, %v2985_v9 }
0x1a92   :  { %v3341_v21 = vpop.permute.xlu0 %3340 }
0x1a93   :  { %3361 = vmatpush.msra.mxu0 %v3341_v21 }
0x1a94   :  { %v7943_v39 = vpop.f32.mrf.mxu2 }
0x1a9d   :  { %3141 = vrot.lane.b32.xlu1 %v7805_v25, %s7047_s1 }
0x1aa5   :  { %3366 = vrot.lane.b32.xlu1 %v7943_v39, %s7043_s22 }
0x1aad   :  { %3490 = vrot.lane.b32.xlu1 %v7943_v39, %s7046_s28 }
0x1af7   :  { %v3125_v40 = vpop.xlane.xlu1 %3124 }
0x1af8   :  { %6798 = vrcp.f32 %v3125_v40  ;;  %v3137_v14 = vand.u32 2147483648, %v3125_v40  ;;  %vm3131_vm13 = vweird.f32 %v3125_v40  ;;  %v3135_v47 = vand.u32 2147483647, %v3125_v40 }
0x1afa   :  { %v3138_v31 = vor.u32 1.1754944e-38, %v3137_v14  ;;  %vm3136_vm15 = vcmp.eq.f32.partialorder %v3135_v47, 8.507059e+37 }
0x1afe   :  { %v6799_v28 = vpop.eup %6798 }
0x1aff   :  { %v3127_v42 = vmul.f32 %v6799_v28, %v3125_v40  ;;  %vm3132_vm12 = vweird.f32 %v6799_v28 }
0x1b00   :  { %vm3133_vm14 = vmor %vm3131_vm13, %vm3132_vm12 }
0x1b01   :  { %v3128_v44 = vsub.f32 1.0, %v3127_v42 }
0x1b03   :  { %v3129_v45 = vmul.f32 %v6799_v28, %v3128_v44 }
0x1b05   :  { %v3130_v46 = vadd.f32 %v6799_v28, %v3129_v45 }
0x1b07   :  { %v3134_v25 = vsel %vm3133_vm14, %v6799_v28, %v3130_v46 }
0x1b08   :  { %v3139_v24 = vsel %vm3136_vm15, %v3138_v31, %v3134_v25 }
0x1b09   :  { %v3140_v50 = vmul.f32 %v6797_v20, %v3139_v24 }
0x1b0f   :  { %v3142_v7 = vpop.permute.xlu1 %3141 }
0x1b10   :  { %3162 = vmatpush.msra.mxu3 %v3142_v7 }
0x1b11   :  { %6480 = vmatmul.msk.f32.vlgmr.msra.gmra.mxu3 %vm283_vm5, %v3140_v50 }
0x1b12   :  { %6486 = vmatpush.xpose.msk.msrb.mxu3 %vm283_vm5, %v7928_v54 }
0x1b16   :  { %6489 = vmatpush.xpose.msk.msra.mxu3 %vm283_vm5, %v3369_v43 }
0x1b17   :  { %v3367_v57 = vpop.permute.xlu1 %3366 }
0x1b19   :  { %6487 = vmatmul.msk.f32.vlgmr.msrb.gmra.mxu3 %vm283_vm5, %v7943_v39 }
0x1b1a   :  { %6494 = vmatpush.xpose.msk.msrb.mxu3 %vm283_vm5, %v3493_v35 }
0x1b1f   :  { %v3491_v51 = vpop.permute.xlu1 %3490 }
0x1b21   :  { %6490 = vmatmul.msk.f32.vlgmr.msra.gmra.mxu3 %vm283_vm5, %v3367_v57 }
0x1b29   :  { %6495 = vmatmul.msk.f32.vlgmr.msrb.gmra.mxu3 %vm283_vm5, %v3491_v51 }
0x1b94   :  { %v3164_v52 = vpop.f32.mrf.mxu3 }
0x1b95   :  { %6481 = vmatmul.msk.f32.vlgmr.msrb.gmra.mxu0 %vm283_vm5, %v3164_v52 }
0x1b9c   :  { %v3313_v58 = vpop.f32.mrf.mxu3 }
0x1b9d   :  { %v3314_v37 = vadd.f32 %v7960_v55, %v3313_v58 }
0x1b9f   :  { %v3316_v56 = vsel %vm283_vm5, %v3314_v37, -inf }
0x1ba0   :  { %3317 = vmax.xlane.f32.xlu1 %v3316_v56 }
0x1ba4   :  { %v3391_v59 = vpop.f32.mrf.mxu3 }
0x1ba5   :  { %v3392_v60 = vadd.f32 %v7960_v55, %v3391_v59 }
0x1ba7   :  { %v3394_v62 = vsel %vm283_vm5, %v3392_v60, -inf }
0x1ba8   :  { %3395 = vmax.xlane.f32.xlu0 %v3394_v62 }
0x1bac   :  { %v3515_v1 = vpop.f32.mrf.mxu3 }
0x1bad   :  { %v3516_v5 = vadd.f32 %v7960_v55, %v3515_v1 }
0x1baf   :  { %v3518_v30 = vsel %vm283_vm5, %v3516_v5, -inf }
0x1bb0   :  { %3519 = vmax.xlane.f32.xlu1 %v3518_v30 }
0x1bbc   :  { %3594 = vrot.lane.b32.xlu0 %v7928_v54, %s7049_s2 }
0x1bc4   :  { %3542 = vrot.lane.b32.xlu0 %v7928_v54, %s7045_s26 }
0x1c12   :  { %v3187_v15 = vpop.f32.mrf.mxu0 }
0x1c13   :  { %v3318_v18 = vpop.xlane.xlu1 %3317  ;;  %v3190_v49 = vadd.f32 %v3187_v15, %v3088_v53 }
0x1c14   :  { %v3319_v36 = vsub.f32 %v3314_v37, %v3318_v18 }
0x1c15   :  { %v7989_v22 = vadd.f32 %v3190_v49, %v7768_v12 }
0x1c16   :  { %v3320_v8 = vmul.f32 1.442695, %v3319_v36 }
0x1c17   :  { %v3194_v17 = vmul.f32 %v7989_v22, %v7989_v22 }
0x1c18   :  { %6800 = vpow2.f32 %v3320_v8 }
0x1c19   :  { %v3198_v35 = vsel %vm205_vm0, %v3194_v17, 0.0 }
0x1c1b   :  { %v3396_v41 = vpop.xlane.xlu0 %3395 }
0x1c1c   :  { %v3397_v2 = vsub.f32 %v3392_v60, %v3396_v41 }
0x1c1e   :  { %v6801_v4 = vpop.eup %6800  ;;  %v3398_v63 = vmul.f32 1.442695, %v3397_v2 }
0x1c1f   :  { %v3322_v10 = vsel %vm283_vm5, %v6801_v4, 0.0 }
0x1c20   :  { %6802 = vpow2.f32 %v3398_v63  ;;  %3323 = vadd.xlane.f32.xlu2 %v3322_v10 }
0x1c23   :  { %v3520_v61 = vpop.xlane.xlu1 %3519 }
0x1c24   :  { %v3521_v27 = vsub.f32 %v3516_v5, %v3520_v61 }
0x1c26   :  { %v7986_v16 = vpop.eup %6802  ;;  %v3522_v29 = vmul.f32 1.442695, %v3521_v27 }
0x1c27   :  { %v3400_v3 = vsel %vm283_vm5, %v7986_v16, 0.0 }
0x1c28   :  { %6804 = vpow2.f32 %v3522_v29  ;;  %3401 = vadd.xlane.f32.xlu1 %v3400_v3  ;;  %2236 = vadd.xlane.f32.xlu2 %v2235_v26 }
0x1c2e   :  { %v7996_v20 = vpop.eup %6804  ;;  %v3595_v34 = vpop.permute.xlu0 %3594 }
0x1c2f   :  { %6498 = vmatpush.xpose.msk.msra.mxu1 %vm283_vm5, %v3595_v34  ;;  %v3524_v12 = vsel %vm283_vm5, %v7996_v20, 0.0 }
0x1c30   :  { %3199 = vadd.xlane.f32.xlu2 %v3198_v35  ;;  %3525 = vadd.xlane.f32.xlu1 %v3524_v12 }
0x1c48   :  { %3592 = vrot.lane.b32.xlu2 %v7943_v39, %s7049_s2 }
0x1c49   :  { %3418 = vrot.lane.b32.xlu1 %v7928_v54, %s7042_s3 }
0x1c51   :  { %3644 = vrot.lane.b32.xlu1 %v7928_v54, %s7050_s7 }
0x1c93   :  { %v3324_v19 = vpop.xlane.xlu2 %3323 }
0x1c94   :  { %6806 = vrcp.f32 %v3324_v19  ;;  %v3336_v45 = vand.u32 2147483648, %v3324_v19  ;;  %v3334_v39 = vand.u32 2147483647, %v3324_v19  ;;  %vm3330_vm3 = vweird.f32 %v3324_v19 }
0x1c96   :  { %v3337_v54 = vor.u32 1.1754944e-38, %v3336_v45  ;;  %vm3335_vm6 = vcmp.eq.f32.partialorder %v3334_v39, 8.507059e+37 }
0x1c9a   :  { %v6807_v21 = vpop.eup %6806 }
0x1c9b   :  { %v3326_v48 = vmul.f32 %v6807_v21, %v3324_v19  ;;  %v2237_v40 = vpop.xlane.xlu2 %2236  ;;  %v3402_v28 = vpop.xlane.xlu1 %3401  ;;  %vm3331_vm2 = vweird.f32 %v6807_v21 }
0x1c9c   :  { %v2239_v42 = vmul.f32 %v2237_v40, %v7291_v13  ;;  %6808 = vrcp.f32 %v3402_v28  ;;  %vm3332_vm4 = vmor %vm3330_vm3, %vm3331_vm2  ;;  %v3414_v9 = vand.u32 2147483648, %v3402_v28  ;;  %vm3408_vm11 = vweird.f32 %v3402_v28 }
0x1c9d   :  { %v3327_v44 = vsub.f32 1.0, %v3326_v48  ;;  %v3412_v15 = vand.u32 2147483647, %v3402_v28  ;;  %v3543_v48 = vpop.permute.xlu0 %3542 }
0x1c9e   :  { %v2241_v46 = vadd.f32 1e-06, %v2239_v42  ;;  %v3415_v29 = vor.u32 1.1754944e-38, %v3414_v9 }
0x1c9f   :  { %v3328_v14 = vmul.f32 %v6807_v21, %v3327_v44  ;;  %vm3413_vm14 = vcmp.eq.f32.partialorder %v3412_v15, 8.507059e+37 }
0x1ca0   :  { %6810 = vrsqrt.f32 %v2241_v46  ;;  %vm2258_vm8 = vweird.f32 %v2241_v46 }
0x1ca1   :  { %v3329_v47 = vadd.f32 %v6807_v21, %v3328_v14 }
0x1ca2   :  { %v6809_v25 = vpop.eup %6808 }
0x1ca3   :  { %v3333_v31 = vsel %vm3332_vm4, %v6807_v21, %v3329_v47  ;;  %v3200_v24 = vpop.xlane.xlu2 %3199  ;;  %v8009_v7 = vpop.xlane.xlu1 %3525  ;;  %v3404_v57 = vmul.f32 %v6809_v25, %v3402_v28  ;;  %vm3409_vm10 = vweird.f32 %v6809_v25 }
0x1ca4   :  { %v3338_v50 = vsel %vm3335_vm6, %v3337_v54, %v3333_v31  ;;  %v3202_v43 = vmul.f32 %v3200_v24, %v7291_v13  ;;  %6812 = vrcp.f32 %v8009_v7  ;;  %vm3410_vm12 = vmor %vm3408_vm11, %vm3409_vm10  ;;  %v3538_v34 = vand.u32 2147483648, %v8009_v7 }
0x1ca5   :  { %v3339_v51 = vmul.f32 %v6801_v4, %v3338_v50  ;;  %v3405_v59 = vsub.f32 1.0, %v3404_v57  ;;  %vm3532_vm4 = vweird.f32 %v8009_v7  ;;  %v3536_v35 = vand.u32 2147483647, %v8009_v7 }
0x1ca6   :  { %v6811_v52 = vpop.eup %6810  ;;  %v3204_v58 = vadd.f32 1e-06, %v3202_v43  ;;  %v3539_v28 = vor.u32 1.1754944e-38, %v3538_v34  ;;  %v8073_v34 = vld [vmem:[%s8601_s10 + $0x18] sm:$0xff] }
0x1ca7   :  { %v2253_v37 = vmul.f32 %v6811_v52, %v2241_v46  ;;  %6488 = vmatmul.msk.f32.vlgmr.msra.gmra.mxu0 %vm283_vm5, %v3339_v51  ;;  %vm2259_vm7 = vweird.f32 %v6811_v52  ;;  %v3406_v5 = vmul.f32 %v6809_v25, %v3405_v59  ;;  %v2291_v46 = vld [vmem:[%s8601_s10 + $0x10] sm:$0xff] }
0x1ca8   :  { %6814 = vrsqrt.f32 %v3204_v58  ;;  %vm2260_vm9 = vmor %vm2258_vm8, %vm2259_vm7  ;;  %vm3221_vm15 = vweird.f32 %v3204_v58  ;;  %vm3537_vm7 = vcmp.eq.f32.partialorder %v3536_v35, 8.507059e+37 }
0x1ca9   :  { %v2254_v56 = vmul.f32 %v6811_v52, %v2253_v37  ;;  %v3407_v41 = vadd.f32 %v6809_v25, %v3406_v5 }
0x1caa   :  { %v6813_v60 = vpop.eup %6812 }
0x1cab   :  { %v2255_v62 = vmul.f32 0.5, %v2254_v56  ;;  %v3528_v30 = vmul.f32 %v6813_v60, %v8009_v7  ;;  %v3411_v61 = vsel %vm3410_vm12, %v6809_v25, %v3407_v41  ;;  %vm3533_vm3 = vweird.f32 %v6813_v60  ;;  %v3593_v14 = vpop.permute.xlu2 %3592 }
0x1cac   :  { %v3416_v26 = vsel %vm3413_vm14, %v3415_v29, %v3411_v61  ;;  %vm3534_vm6 = vmor %vm3532_vm4, %vm3533_vm3 }
0x1cad   :  { %v2256_v1 = vsub.f32 1.5, %v2255_v62  ;;  %v3529_v4 = vsub.f32 1.0, %v3528_v30  ;;  %v3417_v19 = vmul.f32 %v7986_v16, %v3416_v26  ;;  %v2290_v16 = vld [vmem:[%s8601_s10 + $0x8] sm:$0xff] }
0x1cae   :  { %v6815_v18 = vpop.eup %6814  ;;  %3462 = vmatpush.msrb.mxu2 %v2290_v16 }
0x1caf   :  { %v2257_v36 = vmul.f32 %v6811_v52, %v2256_v1  ;;  %v3216_v8 = vmul.f32 %v6815_v18, %v3204_v58  ;;  %vm3222_vm13 = vweird.f32 %v6815_v18  ;;  %v3530_v27 = vmul.f32 %v6813_v60, %v3529_v4 }
0x1cb0   :  { %vm3223_vm2 = vmor %vm3221_vm15, %vm3222_vm13  ;;  %3586 = vmatpush.msra.mxu2 %v2291_v46 }
0x1cb1   :  { %v3217_v2 = vmul.f32 %v6815_v18, %v3216_v8  ;;  %v2261_v63 = vsel %vm2260_vm9, %v6811_v52, %v2257_v36 }
0x1cb2   :  { %v2263_v10 = vmul.f32 %v2261_v63, %v7978_v32  ;;  %v3531_v32 = vadd.f32 %v6813_v60, %v3530_v27 }
0x1cb3   :  { %v3218_v53 = vmul.f32 0.5, %v3217_v2 }
0x1cb4   :  { %v8017_v49 = vmul.f32 %v7903_v23, %v2263_v10  ;;  %v3535_v40 = vsel %vm3534_vm6, %v6813_v60, %v3531_v32 }
0x1cb5   :  { %v3219_v11 = vsub.f32 1.5, %v3218_v53  ;;  %v3540_v42 = vsel %vm3537_vm7, %v3539_v28, %v3535_v40 }
0x1cb6   :  { %6485 = vmatmul.msk.f32.gmra.mxu1 %vm205_vm0, %v8017_v49  ;;  %v3541_v45 = vmul.f32 %v7996_v20, %v3540_v42 }
0x1cb7   :  { %v3220_v3 = vmul.f32 %v6815_v18, %v3219_v11 }
0x1cb9   :  { %v3224_v17 = vsel %vm3223_vm2, %v6815_v18, %v3220_v3  ;;  %v8063_v18 = vld [vmem:[%s7084_s21 + $0x1] ss:$0 sm:$0xff] }
0x1cba   :  { %v3226_v23 = vmul.f32 %v3224_v17, %v7989_v22 }
0x1cbb   :  { %v3419_v12 = vpop.permute.xlu1 %3418 }
0x1cbc   :  { %3439 = vmatpush.msrb.mxu0 %v3419_v12  ;;  %v3231_v21 = vmul.f32 %v7923_v33, %v3226_v23 }
0x1cbd   :  { %6491 = vmatmul.msk.f32.vlgmr.msrb.gmra.mxu0 %vm283_vm5, %v3417_v19 }
0x1cbe   :  { %3563 = vmatpush.msra.mxu0 %v3543_v48  ;;  %6483 = vmatmul.msk.f32.gmra.mxu2 %vm205_vm0, %v3231_v21 }
0x1cc0   :  { %3688 = vmatpush.msrb.mxu0 %v8073_v34 }
0x1cc3   :  { %v3645_v44 = vpop.permute.xlu1 %3644 }
0x1cc4   :  { %3665 = vmatpush.msra.mxu3 %v3645_v44 }
0x1cc5   :  { %6496 = vmatmul.msk.f32.vlgmr.msra.gmra.mxu0 %vm283_vm5, %v3541_v45 }
0x1d24   :  { %v3363_v33 = vpop.f32.mrf.mxu0 }
0x1d25   :  { %6493 = vmatmul.msk.f32.vlgmr.msrb.gmra.mxu1 %vm283_vm5, %v3363_v33 }
0x1d2d   :  { %6499 = vmatmul.msk.f32.vlgmr.msra.gmra.mxu1 %vm283_vm5, %v3593_v14 }
0x1d33   :  { %v8035_v39 = vpop.f32.mrf.mxu1 }
0x1d34   :  { %3772 = vrot.lane.b32.xlu1 %v8035_v39, %s7043_s22 }
0x1d3a   :  { %v3441_v47 = vpop.f32.mrf.mxu0 }
0x1d3b   :  { %6492 = vmatmul.msk.f32.vlgmr.msrb.gmra.mxu2 %vm283_vm5, %v3441_v47 }
0x1d3c   :  { %6502 = vmatpush.xpose.msk.msrb.mxu2 %vm283_vm5, %v8035_v39 }
0x1d41   :  { %v8042_v20 = vpop.f32.mrf.mxu2 }
0x1d42   :  { %3770 = vrot.lane.b32.xlu1 %v8042_v20, %s7043_s22  ;;  %v3565_v25 = vpop.f32.mrf.mxu0 }
0x1d43   :  { %6497 = vmatmul.msk.f32.vlgmr.msra.gmra.mxu2 %vm283_vm5, %v3565_v25 }
0x1d44   :  { %3866 = vmatpush.msra.mxu2 %v2290_v16 }
0x1d4a   :  { %3896 = vrot.lane.b32.xlu1 %v8035_v39, %s7046_s28 }
0x1d4b   :  { %6503 = vmatmul.msk.f32.vlgmr.msrb.gmra.mxu2 %vm283_vm5, %v8042_v20 }
0x1d4c   :  { %3990 = vmatpush.msrb.mxu2 %v2291_v46 }
0x1d52   :  { %3894 = vrot.lane.b32.xlu1 %v8042_v20, %s7046_s28 }
0x1d5a   :  { %3744 = vrot.lane.b32.xlu1 %v8035_v39, %s7041_s8 }
0x1da2   :  { %v3487_v54 = vpop.f32.mrf.mxu1 }
0x1da6   :  { %v3773_v31 = vpop.permute.xlu1 %3772 }
0x1da7   :  { %6505 = vmatpush.xpose.msk.msrb.mxu3 %vm283_vm5, %v3773_v31 }
0x1daa   :  { %v3617_v24 = vpop.f32.mrf.mxu1 }
0x1dab   :  { %v3618_v7 = vadd.f32 %v7960_v55, %v3617_v24 }
0x1dad   :  { %v3620_v50 = vsel %vm283_vm5, %v3618_v7, -inf }
0x1dae   :  { %3621 = vmax.xlane.f32.xlu0 %v3620_v50 }
0x1db4   :  { %v3771_v43 = vpop.permute.xlu1 %3770 }
0x1dbc   :  { %v3897_v57 = vpop.permute.xlu1 %3896 }
0x1dbe   :  { %v3464_v51 = vpop.f32.mrf.mxu2 }
0x1dbf   :  { %v3488_v52 = vadd.f32 %v3487_v54, %v3464_v51 }
0x1dc4   :  { %v3895_v58 = vpop.permute.xlu1 %3894 }
0x1dc6   :  { %v3588_v37 = vpop.f32.mrf.mxu2 }
0x1dc7   :  { %v8058_v56 = vadd.f32 %v3588_v37, %v3488_v52 }
0x1dcc   :  { %v3745_v59 = vpop.permute.xlu1 %3744 }
0x1dcd   :  { %3765 = vmatpush.msrb.mxu1 %v3745_v59 }
0x1dce   :  { %v3717_v30 = vpop.f32.mrf.mxu2 }
0x1dcf   :  { %3889 = vmatpush.msra.mxu1 %v7973_v0  ;;  %v3718_v36 = vadd.f32 %v8063_v18, %v3717_v30 }
0x1dd1   :  { %v3720_v8 = vsel %vm283_vm5, %v3718_v36, -inf }
0x1e21   :  { %v3622_v60 = vpop.xlane.xlu0 %3621 }
0x1e22   :  { %v3623_v62 = vsub.f32 %v3618_v7, %v3622_v60 }
0x1e24   :  { %v3624_v1 = vmul.f32 1.442695, %v3623_v62 }
0x1e26   :  { %6816 = vpow2.f32 %v3624_v1 }
0x1e2c   :  { %v6817_v55 = vpop.eup %6816 }
0x1e2d   :  { %v3626_v5 = vsel %vm283_vm5, %v6817_v55, 0.0 }
0x1e2e   :  { %3627 = vadd.xlane.f32.xlu2 %v3626_v5 }
0x1e36   :  { %3721 = vmax.xlane.f32.xlu2 %v3720_v8 }
0x1ea1   :  { %v3628_v41 = vpop.xlane.xlu2 %3627 }
0x1ea2   :  { %6818 = vrcp.f32 %v3628_v41  ;;  %v3640_v10 = vand.u32 2147483648, %v3628_v41  ;;  %v3638_v61 = vand.u32 2147483647, %v3628_v41  ;;  %vm3634_vm9 = vweird.f32 %v3628_v41 }
0x1ea4   :  { %v3641_v27 = vor.u32 1.1754944e-38, %v3640_v10  ;;  %vm3639_vm11 = vcmp.eq.f32.partialorder %v3638_v61, 8.507059e+37 }
0x1ea8   :  { %v6819_v2 = vpop.eup %6818 }
0x1ea9   :  { %v3630_v0 = vmul.f32 %v6819_v2, %v3628_v41  ;;  %v3722_v4 = vpop.xlane.xlu2 %3721  ;;  %vm3635_vm8 = vweird.f32 %v6819_v2 }
0x1eaa   :  { %v3723_v63 = vsub.f32 %v3718_v36, %v3722_v4  ;;  %vm3636_vm10 = vmor %vm3634_vm9, %vm3635_vm8 }
0x1eab   :  { %v3631_v9 = vsub.f32 1.0, %v3630_v0 }
0x1eac   :  { %v3724_v15 = vmul.f32 1.442695, %v3723_v63 }
0x1ead   :  { %v3632_v53 = vmul.f32 %v6819_v2, %v3631_v9 }
0x1eae   :  { %6820 = vpow2.f32 %v3724_v15 }
0x1eaf   :  { %v3633_v11 = vadd.f32 %v6819_v2, %v3632_v53 }
0x1eb1   :  { %v3637_v29 = vsel %vm3636_vm10, %v6819_v2, %v3633_v11 }
0x1eb2   :  { %v3642_v3 = vsel %vm3639_vm11, %v3641_v27, %v3637_v29 }
0x1eb3   :  { %v3643_v26 = vmul.f32 %v6817_v55, %v3642_v3 }
0x1eb4   :  { %v6821_v32 = vpop.eup %6820 }
0x1eb5   :  { %6500 = vmatmul.msk.f32.vlgmr.msra.gmra.mxu3 %vm283_vm5, %v3643_v26  ;;  %v3726_v17 = vsel %vm283_vm5, %v6821_v32, 0.0 }
0x1eb6   :  { %6510 = vmatpush.xpose.msk.msra.mxu3 %vm283_vm5, %v3897_v57  ;;  %3727 = vadd.xlane.f32.xlu0 %v3726_v17 }
0x1ebd   :  { %6506 = vmatmul.msk.f32.vlgmr.msrb.gmra.mxu3 %vm283_vm5, %v3771_v43 }
0x1ec5   :  { %6511 = vmatmul.msk.f32.vlgmr.msra.gmra.mxu3 %vm283_vm5, %v3895_v58 }
0x1f29   :  { %v3728_v23 = vpop.xlane.xlu0 %3727 }
0x1f2a   :  { %6822 = vrcp.f32 %v3728_v23  ;;  %v3740_v21 = vand.u32 2147483648, %v3728_v23  ;;  %v3738_v40 = vand.u32 2147483647, %v3728_v23  ;;  %vm3734_vm13 = vweird.f32 %v3728_v23 }
0x1f2c   :  { %v3741_v42 = vor.u32 1.1754944e-38, %v3740_v21  ;;  %vm3739_vm15 = vcmp.eq.f32.partialorder %v3738_v40, 8.507059e+37 }
0x1f30   :  { %v6823_v35 = vpop.eup %6822 }
0x1f31   :  { %v3730_v12 = vmul.f32 %v6823_v35, %v3728_v23  ;;  %vm3735_vm12 = vweird.f32 %v6823_v35 }
0x1f32   :  { %vm3736_vm14 = vmor %vm3734_vm13, %vm3735_vm12 }
0x1f33   :  { %v3731_v19 = vsub.f32 1.0, %v3730_v12 }
0x1f35   :  { %v3732_v48 = vmul.f32 %v6823_v35, %v3731_v19 }
0x1f37   :  { %v3733_v28 = vadd.f32 %v6823_v35, %v3732_v48 }
0x1f38   :  { %v3667_v44 = vpop.f32.mrf.mxu3 }
0x1f39   :  { %v3737_v45 = vsel %vm3736_vm14, %v6823_v35, %v3733_v28  ;;  %6501 = vmatmul.msk.f32.vlgmr.msrb.gmra.mxu0 %vm283_vm5, %v3667_v44 }
0x1f3a   :  { %v3742_v16 = vsel %vm3739_vm15, %v3741_v42, %v3737_v45 }
0x1f3b   :  { %v3743_v46 = vmul.f32 %v6821_v32, %v3742_v16 }
0x1f3d   :  { %6504 = vmatmul.msk.f32.vlgmr.msrb.gmra.mxu1 %vm283_vm5, %v3743_v46 }
0x1f40   :  { %v3795_v33 = vpop.f32.mrf.mxu3 }
0x1f41   :  { %v3796_v14 = vadd.f32 %v8063_v18, %v3795_v33 }
0x1f43   :  { %v3798_v47 = vsel %vm283_vm5, %v3796_v14, -inf }
0x1f44   :  { %3799 = vmax.xlane.f32.xlu2 %v3798_v47 }
0x1f48   :  { %v3919_v25 = vpop.f32.mrf.mxu3 }
0x1f49   :  { %v3920_v54 = vadd.f32 %v8063_v18, %v3919_v25  ;;  %v2297_v25 = vld [vmem:[%s8602_s11 + $0x18] sm:$0xff] }
0x1f4b   :  { %v3922_v31 = vsel %vm283_vm5, %v3920_v54, -inf }
0x1f4c   :  { %3923 = vmax.xlane.f32.xlu0 %v3922_v31 }
0x1f60   :  { %3822 = vrot.lane.b32.xlu0 %v8035_v39, %s7042_s3 }
0x1f68   :  { %3998 = vrot.lane.b32.xlu0 %v8035_v39, %s7049_s2 }
0x1f70   :  { %3996 = vrot.lane.b32.xlu0 %v8042_v20, %s7049_s2 }
0x1fb6   :  { %v3690_v55 = vpop.f32.mrf.mxu0 }
0x1fb7   :  { %v3800_v24 = vpop.xlane.xlu2 %3799  ;;  %v3693_v5 = vadd.f32 %v3690_v55, %v8058_v56  ;;  %v2304_v55 = vld [vmem:[%s8604_s16 + $0x30] sm:$0xff] }
0x1fb8   :  { %v3801_v7 = vsub.f32 %v3796_v14, %v3800_v24  ;;  %v2295_v24 = vld [vmem:[%s8602_s11 + $0x8] sm:$0xff] }
0x1fb9   :  { %v8097_v30 = vadd.f32 %v3693_v5, %v7886_v6  ;;  %v2303_v5 = vld [vmem:[%s8604_s16 + $0x28] sm:$0xff] }
0x1fba   :  { %v3802_v50 = vmul.f32 1.442695, %v3801_v7  ;;  %v3767_v43 = vpop.f32.mrf.mxu1 }
0x1fbb   :  { %6509 = vmatmul.msk.f32.vlgmr.msra.gmra.mxu1 %vm283_vm5, %v3767_v43  ;;  %v4100_v36 = vmul.f32 %v8097_v30, %v8097_v30 }
0x1fbc   :  { %6824 = vpow2.f32 %v3802_v50  ;;  %v2294_v50 = vld [vmem:[%s8602_s11] sm:$0xff] }
0x1fbd   :  { %v4102_v8 = vsel %vm205_vm0, %v4100_v36, 0.0  ;;  %v2302_v36 = vld [vmem:[%s8604_s16 + $0x20] sm:$0xff] }
0x1fbf   :  { %v3924_v57 = vpop.xlane.xlu0 %3923 }
0x1fc0   :  { %v3925_v51 = vsub.f32 %v3920_v54, %v3924_v57 }
0x1fc2   :  { %v6825_v52 = vpop.eup %6824  ;;  %v3926_v58 = vmul.f32 1.442695, %v3925_v51  ;;  %v8115_v51 = vld [vmem:[%s8603_s15] ss:$0 sm:$0xff] }
0x1fc3   :  { %v3804_v37 = vsel %vm283_vm5, %v6825_v52, 0.0 }
0x1fc4   :  { %6826 = vpow2.f32 %v3926_v58  ;;  %3805 = vadd.xlane.f32.xlu1 %v3804_v37 }
0x1fca   :  { %v6827_v59 = vpop.eup %6826 }
0x1fcb   :  { %v3928_v60 = vsel %vm283_vm5, %v6827_v59, 0.0 }
0x1fcc   :  { %3929 = vadd.xlane.f32.xlu2 %v3928_v60 }
0x1fd2   :  { %v3823_v20 = vpop.permute.xlu0 %3822 }
0x1fd3   :  { %3843 = vmatpush.msra.mxu0 %v3823_v20 }
0x1fda   :  { %v3999_v62 = vpop.permute.xlu0 %3998 }
0x1fdb   :  { %6514 = vmatpush.xpose.msk.msrb.mxu1 %vm283_vm5, %v3999_v62 }
0x1fe2   :  { %v3997_v1 = vpop.permute.xlu0 %3996 }
0x1fe3   :  { %6515 = vmatmul.msk.f32.vlgmr.msrb.gmra.mxu1 %vm283_vm5, %v3997_v1  ;;  %v2305_v1 = vld [vmem:[%s8604_s16 + $0x38] sm:$0xff] }
0x1fe4   :  { %3946 = vrot.lane.b32.xlu2 %v8035_v39, %s7045_s26  ;;  %4184 = vmatpush.msra.mxu1 %v2305_v1 }
0x1fe6   :  { %4185 = vmatpush.msra.mxu1 %v2304_v55 }
0x1fe8   :  { %4186 = vmatpush.msra.mxu1 %v2303_v5 }
0x1fea   :  { %4187 = vmatpush.msra.mxu1 %v2302_v36 }
0x200d   :  { %4103 = vadd.xlane.f32.xlu2 %v4102_v8  ;;  %v2301_v8 = vld [vmem:[%s8604_s16 + $0x18] sm:$0xff] }
0x200e   :  { %4188 = vmatpush.msra.mxu1 %v2301_v8 }
0x2037   :  { %v3806_v41 = vpop.xlane.xlu1 %3805 }
0x2038   :  { %6828 = vrcp.f32 %v3806_v41  ;;  %v3818_v9 = vand.u32 2147483648, %v3806_v41  ;;  %v3816_v56 = vand.u32 2147483647, %v3806_v41  ;;  %vm3812_vm3 = vweird.f32 %v3806_v41  ;;  %v3891_v40 = vpop.f32.mrf.mxu1 }
0x203a   :  { %v3819_v53 = vor.u32 1.1754944e-38, %v3818_v9  ;;  %vm3817_vm6 = vcmp.eq.f32.partialorder %v3816_v56, 8.507059e+37 }
0x203e   :  { %v6829_v2 = vpop.eup %6828 }
0x203f   :  { %v3808_v0 = vmul.f32 %v6829_v2, %v3806_v41  ;;  %v3930_v4 = vpop.xlane.xlu2 %3929  ;;  %vm3813_vm2 = vweird.f32 %v6829_v2  ;;  %v2300_v41 = vld [vmem:[%s8604_s16 + $0x10] sm:$0xff] }
0x2040   :  { %6830 = vrcp.f32 %v3930_v4  ;;  %vm3814_vm4 = vmor %vm3812_vm3, %vm3813_vm2  ;;  %v3942_v32 = vand.u32 2147483648, %v3930_v4  ;;  %v3940_v23 = vand.u32 2147483647, %v3930_v4  ;;  %vm3936_vm8 = vweird.f32 %v3930_v4  ;;  %4189 = vmatpush.msra.mxu1 %v2300_v41 }
0x2041   :  { %v3809_v63 = vsub.f32 1.0, %v3808_v0  ;;  %v2298_v0 = vld [vmem:[%s8604_s16] sm:$0xff] }
0x2042   :  { %v3943_v12 = vor.u32 1.1754944e-38, %v3942_v32  ;;  %vm3941_vm10 = vcmp.eq.f32.partialorder %v3940_v23, 8.507059e+37 }
0x2043   :  { %v3810_v10 = vmul.f32 %v6829_v2, %v3809_v63 }
0x2045   :  { %v3811_v15 = vadd.f32 %v6829_v2, %v3810_v10 }
0x2046   :  { %v6831_v6 = vpop.eup %6830 }
0x2047   :  { %v3815_v61 = vsel %vm3814_vm4, %v6829_v2, %v3811_v15  ;;  %v3932_v11 = vmul.f32 %v6831_v6, %v3930_v4  ;;  %v3947_v27 = vpop.permute.xlu2 %3946  ;;  %vm3937_vm7 = vweird.f32 %v6831_v6  ;;  %v2299_v2 = vld [vmem:[%s8604_s16 + $0x8] sm:$0xff] }
0x2048   :  { %v3820_v29 = vsel %vm3817_vm6, %v3819_v53, %v3815_v61  ;;  %3967 = vmatpush.msrb.mxu0 %v3947_v27  ;;  %vm3938_vm9 = vmor %vm3936_vm8, %vm3937_vm7  ;;  %4190 = vmatpush.msra.mxu1 %v2299_v2 }
0x2049   :  { %v3821_v3 = vmul.f32 %v6825_v52, %v3820_v29  ;;  %v3933_v26 = vsub.f32 1.0, %v3932_v11 }
0x204a   :  { %4191 = vmatpush.msra.mxu1 %v2298_v0 }
0x204b   :  { %v3934_v17 = vmul.f32 %v6831_v6, %v3933_v26  ;;  %6507 = vmatmul.msk.f32.vlgmr.msra.gmra.mxu0 %vm283_vm5, %v3821_v3 }
0x204c   :  { %4092 = vmatpush.msra.mxu0 %v8073_v34 }
0x204d   :  { %v3935_v35 = vadd.f32 %v6831_v6, %v3934_v17 }
0x204f   :  { %v3939_v19 = vsel %vm3938_vm9, %v6831_v6, %v3935_v35 }
0x2050   :  { %v3944_v21 = vsel %vm3941_vm10, %v3943_v12, %v3939_v19 }
0x2051   :  { %v3945_v48 = vmul.f32 %v6827_v59, %v3944_v21 }
0x2053   :  { %6512 = vmatmul.msk.f32.vlgmr.msrb.gmra.mxu0 %vm283_vm5, %v3945_v48 }
0x2060   :  { %v4021_v28 = vpop.f32.mrf.mxu1 }
0x2061   :  { %v4022_v42 = vadd.f32 %v8063_v18, %v4021_v28  ;;  %v2296_v18 = vld [vmem:[%s8602_s11 + $0x10] sm:$0xff]  ;;  %v4205_v28 = vld [vmem:[%s8605_s18 + $0x18] sm:$0xff] }
0x2063   :  { %v4024_v44 = vsel %vm283_vm5, %v4022_v42, -inf }
0x2064   :  { %4025 = vmax.xlane.f32.xlu0 %v4024_v44  ;;  %v4203_v44 = vld [vmem:[%s8605_s18 + $0x8] sm:$0xff] }
0x2080   :  { %v4104_v34 = vpop.xlane.xlu2 %4103 }
0x2081   :  { %v4108_v45 = vmul.f32 %v4104_v34, %v7291_v13  ;;  %v4202_v34 = vld [vmem:[%s8605_s18] sm:$0xff] }
0x2083   :  { %v4110_v16 = vadd.f32 1e-06, %v4108_v45 }
0x2085   :  { %6832 = vrsqrt.f32 %v4110_v16  ;;  %vm4118_vm12 = vweird.f32 %v4110_v16 }
0x208b   :  { %v6833_v46 = vpop.eup %6832 }
0x208c   :  { %v4113_v33 = vmul.f32 %v6833_v46, %v4110_v16  ;;  %vm4119_vm11 = vweird.f32 %v6833_v46 }
0x208d   :  { %vm4120_vm13 = vmor %vm4118_vm12, %vm4119_vm11 }
0x208e   :  { %v4114_v14 = vmul.f32 %v6833_v46, %v4113_v33 }
0x2090   :  { %v4115_v47 = vmul.f32 0.5, %v4114_v14 }
0x2092   :  { %v4116_v54 = vsub.f32 1.5, %v4115_v47 }
0x2094   :  { %v4117_v7 = vmul.f32 %v6833_v46, %v4116_v54 }
0x2096   :  { %v4121_v43 = vsel %vm4120_vm13, %v6833_v46, %v4117_v7 }
0x2097   :  { %v4132_v52 = vmul.f32 %v4121_v43, %v8097_v30 }
0x2099   :  { %v4137_v58 = vmul.f32 %v8115_v51, %v4132_v52 }
0x20c8   :  { %v3845_v31 = vpop.f32.mrf.mxu0 }
0x20c9   :  { %6508 = vmatmul.msk.f32.vlgmr.msra.gmra.mxu2 %vm283_vm5, %v3845_v31  ;;  %v8146_v31 = vld [vmem:[%s8606_s13] ss:$0 sm:$0xff] }
0x20ca   :  { %4157 = vmatpush.msra.mxu2 %v2297_v25 }
0x20cc   :  { %4158 = vmatpush.msra.mxu2 %v2296_v18 }
0x20ce   :  { %4159 = vmatpush.msra.mxu2 %v2295_v24 }
0x20d0   :  { %v3969_v57 = vpop.f32.mrf.mxu0  ;;  %4160 = vmatpush.msra.mxu2 %v2294_v50 }
0x20d1   :  { %6513 = vmatmul.msk.f32.vlgmr.msrb.gmra.mxu2 %vm283_vm5, %v3969_v57 }
0x20d7   :  { %v4026_v37 = vpop.xlane.xlu0 %4025 }
0x20d8   :  { %v4027_v59 = vsub.f32 %v4022_v42, %v4026_v37  ;;  %v4204_v42 = vld [vmem:[%s8605_s18 + $0x10] sm:$0xff] }
0x20d9   :  { %6518 = vmatmul.msk.f32.vlgmr.msra.gmra.mxu2 %vm205_vm0, %v4137_v58 }
0x20da   :  { %v4028_v60 = vmul.f32 1.442695, %v4027_v59 }
0x20dc   :  { %6834 = vpow2.f32 %v4028_v60 }
0x20e2   :  { %v6835_v20 = vpop.eup %6834 }
0x20e3   :  { %v4030_v62 = vsel %vm283_vm5, %v6835_v20, 0.0 }
0x20e4   :  { %4031 = vadd.xlane.f32.xlu1 %v4030_v62 }
0x20fd   :  { %4048 = vrot.lane.b32.xlu1 %v8035_v39, %s7050_s7 }
0x214c   :  { %v3868_v4 = vpop.f32.mrf.mxu2 }
0x214d   :  { %v3892_v63 = vadd.f32 %v3891_v40, %v3868_v4 }
0x2154   :  { %v3992_v9 = vpop.f32.mrf.mxu2 }
0x2155   :  { %v3995_v39 = vadd.f32 %v3992_v9, %v3892_v63 }
0x2157   :  { %v4032_v10 = vpop.xlane.xlu1 %4031 }
0x2158   :  { %6836 = vrcp.f32 %v4032_v10  ;;  %v4044_v29 = vand.u32 2147483648, %v4032_v10  ;;  %vm4038_vm15 = vweird.f32 %v4032_v10  ;;  %v4042_v3 = vand.u32 2147483647, %v4032_v10 }
0x215a   :  { %v4045_v32 = vor.u32 1.1754944e-38, %v4044_v29  ;;  %vm4043_vm3 = vcmp.eq.f32.partialorder %v4042_v3, 8.507059e+37  ;;  %v8193_v29 = vld [vmem:[%s8595_s30 + $0x10] sm:$0xff] }
0x215c   :  { %v4162_v56 = vpop.f32.mrf.mxu2 }
0x215d   :  { %v4168_v15 = vmax.f32 %v4162_v56, 0.0 }
0x215e   :  { %v6837_v6 = vpop.eup %6836 }
0x215f   :  { %v4034_v53 = vmul.f32 %v6837_v6, %v4032_v10  ;;  %6520 = vmatmul.msk.f32.vlgmr.msra.gmra.mxu1 %vm1186_vm1, %v4168_v15  ;;  %vm4039_vm14 = vweird.f32 %v6837_v6 }
0x2160   :  { %vm4040_vm2 = vmor %vm4038_vm15, %vm4039_vm14 }
0x2161   :  { %v4035_v61 = vsub.f32 1.0, %v4034_v53 }
0x2163   :  { %v4036_v11 = vmul.f32 %v6837_v6, %v4035_v61 }
0x2165   :  { %v4037_v27 = vadd.f32 %v6837_v6, %v4036_v11 }
0x2167   :  { %v4041_v26 = vsel %vm4040_vm2, %v6837_v6, %v4037_v27  ;;  %v8184_v6 = vld [vmem:[%s8595_s30] sm:$0xff] }
0x2168   :  { %v4046_v17 = vsel %vm4043_vm3, %v4045_v32, %v4041_v26 }
0x2169   :  { %v4047_v23 = vmul.f32 %v6835_v20, %v4046_v17 }
0x216f   :  { %v4049_v35 = vpop.permute.xlu1 %4048 }
0x2170   :  { %4069 = vmatpush.msrb.mxu3 %v4049_v35 }
0x2171   :  { %6516 = vmatmul.msk.f32.vlgmr.msrb.gmra.mxu3 %vm283_vm5, %v4047_v23 }
0x2172   :  { %4293 = vmatpush.msra.mxu3 %v4205_v28 }
0x2174   :  { %4294 = vmatpush.msra.mxu3 %v4204_v42 }
0x2176   :  { %4295 = vmatpush.msra.mxu3 %v4203_v44 }
0x2178   :  { %4296 = vmatpush.msra.mxu3 %v4202_v34  ;;  %v8211_v34 = vld [vmem:[%s8607_s14] sm:$0xff] }
0x21dc   :  { %v4193_v12 = vpop.f32.mrf.mxu1 }
0x21dd   :  { %v8134_v19 = vadd.f32 %v4193_v12, %v8097_v30 }
0x21df   :  { %v4236_v21 = vmul.f32 %v8134_v19, %v8134_v19 }
0x21e1   :  { %v4238_v48 = vsel %vm205_vm0, %v4236_v21, 0.0 }
0x21e2   :  { %4239 = vadd.xlane.f32.xlu1 %v4238_v48  ;;  %v8201_v48 = vld [vmem:[%s8595_s30 + $0x8] sm:$0xff] }
0x21f4   :  { %v4071_v40 = vpop.f32.mrf.mxu3 }
0x21f5   :  { %6517 = vmatmul.msk.f32.vlgmr.msra.gmra.mxu0 %vm283_vm5, %v4071_v40 }
0x2255   :  { %v4240_v30 = vpop.xlane.xlu1 %4239 }
0x2256   :  { %v4244_v45 = vmul.f32 %v4240_v30, %v7291_v13 }
0x2258   :  { %v4246_v16 = vadd.f32 1e-06, %v4244_v45 }
0x225a   :  { %6838 = vrsqrt.f32 %v4246_v16  ;;  %vm4254_vm6 = vweird.f32 %v4246_v16 }
0x2260   :  { %v6839_v46 = vpop.eup %6838 }
0x2261   :  { %v4249_v33 = vmul.f32 %v6839_v46, %v4246_v16  ;;  %vm4255_vm4 = vweird.f32 %v6839_v46 }
0x2262   :  { %vm4256_vm7 = vmor %vm4254_vm6, %vm4255_vm4 }
0x2263   :  { %v4250_v14 = vmul.f32 %v6839_v46, %v4249_v33 }
0x2265   :  { %v4251_v47 = vmul.f32 0.5, %v4250_v14 }
0x2267   :  { %v4252_v25 = vsub.f32 1.5, %v4251_v47 }
0x2269   :  { %v4253_v54 = vmul.f32 %v6839_v46, %v4252_v25 }
0x226b   :  { %v4257_v18 = vsel %vm4256_vm7, %v6839_v46, %v4253_v54 }
0x226c   :  { %v4268_v24 = vmul.f32 %v4257_v18, %v8134_v19 }
0x226e   :  { %v4273_v7 = vmul.f32 %v8146_v31, %v4268_v24 }
0x2270   :  { %6522 = vmatmul.msk.f32.vlgmr.msra.gmra.mxu3 %vm205_vm0, %v4273_v7 }
0x2272   :  { %v4094_v50 = vpop.f32.mrf.mxu0 }
0x2273   :  { %v4097_v43 = vadd.f32 %v4094_v50, %v3995_v39 }
0x2275   :  { %v8152_v57 = vadd.f32 %v4097_v43, %v7989_v22 }
0x2277   :  { %v4101_v52 = vmul.f32 %v8152_v57, %v8152_v57 }
0x2279   :  { %v4105_v58 = vsel %vm205_vm0, %v4101_v52, 0.0 }
0x227a   :  { %4106 = vadd.xlane.f32.xlu2 %v4105_v58 }
0x22ed   :  { %v4107_v37 = vpop.xlane.xlu2 %4106 }
0x22ee   :  { %v4109_v59 = vmul.f32 %v4107_v37, %v7291_v13 }
0x22f0   :  { %v4111_v60 = vadd.f32 1e-06, %v4109_v59 }
0x22f2   :  { %6840 = vrsqrt.f32 %v4111_v60  ;;  %vm4128_vm9 = vweird.f32 %v4111_v60 }
0x22f3   :  { %v8158_v20 = vpop.f32.mrf.mxu3 }
0x22f4   :  { %4383 = vrot.lane.b32.xlu2 %v8158_v20, %s7042_s3  ;;  %4305 = vrot.lane.b32.xlu0 %v8158_v20, %s7041_s8 }
0x22f8   :  { %v6841_v22 = vpop.eup %6840 }
0x22f9   :  { %v4123_v62 = vmul.f32 %v6841_v22, %v4111_v60  ;;  %vm4129_vm8 = vweird.f32 %v6841_v22 }
0x22fa   :  { %vm4130_vm10 = vmor %vm4128_vm9, %vm4129_vm8 }
0x22fb   :  { %v4124_v1 = vmul.f32 %v6841_v22, %v4123_v62 }
0x22fc   :  { %4507 = vrot.lane.b32.xlu2 %v8158_v20, %s7045_s26  ;;  %4381 = vrot.lane.b32.xlu0 %v8158_v20, %s7043_s22 }
0x22fd   :  { %v4125_v55 = vmul.f32 0.5, %v4124_v1 }
0x22ff   :  { %v4126_v5 = vsub.f32 1.5, %v4125_v55 }
0x2301   :  { %v4127_v36 = vmul.f32 %v6841_v22, %v4126_v5 }
0x2303   :  { %v4131_v8 = vsel %vm4130_vm10, %v6841_v22, %v4127_v36 }
0x2304   :  { %4505 = vrot.lane.b32.xlu0 %v8158_v20, %s7046_s28  ;;  %v4133_v41 = vmul.f32 %v4131_v8, %v8152_v57 }
0x2306   :  { %v4138_v2 = vmul.f32 %v8115_v51, %v4133_v41 }
0x2308   :  { %6519 = vmatmul.msk.f32.gmra.mxu2 %vm205_vm0, %v4138_v2 }
0x230c   :  { %4355 = vrot.lane.b32.xlu0 %v8158_v20, %s7040_s0 }
0x234e   :  { %v4384_v0 = vpop.permute.xlu2 %4383 }
0x234f   :  { %6527 = vmatpush.xpose.msk.msrb.mxu2 %vm283_vm5, %v4384_v0 }
0x2353   :  { %4500 = vmatpush.msra.mxu2 %v8211_v34 }
0x2356   :  { %v4508_v4 = vpop.permute.xlu2 %4507 }
0x2357   :  { %6532 = vmatpush.xpose.msk.msrb.mxu1 %vm283_vm5, %v4508_v4 }
0x2366   :  { %v4306_v63 = vpop.permute.xlu0 %4305 }
0x2367   :  { %6524 = vmatpush.xpose.msk.msrb.mxu0 %vm283_vm5, %v4306_v63 }
0x236a   :  { %6525 = vmatmul.msk.f32.vlgmr.msrb.gmra.mxu0 %vm283_vm5, %v8158_v20 }
0x236e   :  { %v4382_v9 = vpop.permute.xlu0 %4381 }
0x236f   :  { %6528 = vmatmul.msk.f32.vlgmr.msrb.gmra.mxu2 %vm283_vm5, %v4382_v9 }
0x2376   :  { %v4506_v51 = vpop.permute.xlu0 %4505 }
0x237e   :  { %v4356_v39 = vpop.permute.xlu0 %4355 }
0x237f   :  { %4376 = vmatpush.msra.mxu0 %v4356_v39 }
0x238b   :  { %v4165_v10 = vpop.f32.mrf.mxu2 }
0x238c   :  { %v4169_v56 = vmax.f32 %v4165_v10, 0.0 }
0x238e   :  { %6521 = vmatmul.msk.f32.gmra.mxu1 %vm1186_vm1, %v4169_v56 }
0x2396   :  { %6533 = vmatmul.msk.f32.vlgmr.msrb.gmra.mxu1 %vm283_vm5, %v4506_v51 }
0x23e7   :  { %v4328_v15 = vpop.f32.mrf.mxu0 }
0x23e8   :  { %v4329_v53 = vadd.f32 %v8184_v6, %v4328_v15 }
0x23ea   :  { %v4331_v61 = vsel %vm283_vm5, %v4329_v53, -inf }
0x23eb   :  { %4332 = vmax.xlane.f32.xlu2 %v4331_v61 }
0x23f2   :  { %v4406_v21 = vpop.f32.mrf.mxu2 }
0x23f3   :  { %v4407_v40 = vadd.f32 %v8201_v48, %v4406_v21 }
0x23f5   :  { %v4409_v42 = vsel %vm283_vm5, %v4407_v40, -inf }
0x2403   :  { %4557 = vrot.lane.b32.xlu2 %v8158_v20, %s7048_s5 }
0x240b   :  { %v4196_v11 = vpop.f32.mrf.mxu1  ;;  %4607 = vrot.lane.b32.xlu2 %v8158_v20, %s7049_s2 }
0x240c   :  { %v8205_v28 = vadd.f32 %v4196_v11, %v8152_v57 }
0x240e   :  { %v4237_v44 = vmul.f32 %v8205_v28, %v8205_v28 }
0x2410   :  { %v4241_v30 = vsel %vm205_vm0, %v4237_v44, 0.0 }
0x2413   :  { %v4530_v27 = vpop.f32.mrf.mxu1 }
0x2414   :  { %v4531_v3 = vadd.f32 %v8193_v29, %v4530_v27 }
0x2416   :  { %v4533_v26 = vsel %vm283_vm5, %v4531_v3, -inf }
0x2417   :  { %4534 = vmax.xlane.f32.xlu0 %v4533_v26 }
0x242b   :  { %4609 = vrot.lane.b32.xlu0 %v8158_v20, %s7050_s7 }
0x245e   :  { %v4333_v32 = vpop.xlane.xlu2 %4332 }
0x245f   :  { %v4334_v17 = vsub.f32 %v4329_v53, %v4333_v32 }
0x2461   :  { %v4335_v23 = vmul.f32 1.442695, %v4334_v17 }
0x2463   :  { %6842 = vpow2.f32 %v4335_v23 }
0x2466   :  { %v4558_v11 = vpop.permute.xlu2 %4557 }
0x2469   :  { %v6843_v35 = vpop.eup %6842 }
0x246a   :  { %v4337_v12 = vsel %vm283_vm5, %v6843_v35, 0.0 }
0x246b   :  { %4338 = vadd.xlane.f32.xlu1 %v4337_v12 }
0x246e   :  { %v4608_v21 = vpop.permute.xlu2 %4607 }
0x2473   :  { %4410 = vmax.xlane.f32.xlu1 %v4409_v42 }
0x247b   :  { %4242 = vadd.xlane.f32.xlu1 %v4241_v30 }
0x248a   :  { %v4535_v45 = vpop.xlane.xlu0 %4534 }
0x248b   :  { %v4536_v16 = vsub.f32 %v4531_v3, %v4535_v45 }
0x248d   :  { %v4537_v46 = vmul.f32 1.442695, %v4536_v16 }
0x248f   :  { %6844 = vpow2.f32 %v4537_v46 }
0x2495   :  { %v8215_v33 = vpop.eup %6844 }
0x2496   :  { %v4539_v14 = vsel %vm283_vm5, %v8215_v33, 0.0 }
0x2497   :  { %4540 = vadd.xlane.f32.xlu1 %v4539_v14 }
0x249d   :  { %v4610_v47 = vpop.permute.xlu0 %4609 }
0x249e   :  { %6536 = vmatpush.xpose.msk.msrb.mxu2 %vm283_vm5, %v4610_v47 }
0x24de   :  { %v4339_v25 = vpop.xlane.xlu1 %4338 }
0x24df   :  { %6846 = vrcp.f32 %v4339_v25  ;;  %v4351_v43 = vand.u32 2147483648, %v4339_v25  ;;  %v4349_v58 = vand.u32 2147483647, %v4339_v25  ;;  %vm4345_vm12 = vweird.f32 %v4339_v25 }
0x24e1   :  { %v4352_v59 = vor.u32 1.1754944e-38, %v4351_v43  ;;  %vm4350_vm14 = vcmp.eq.f32.partialorder %v4349_v58, 8.507059e+37 }
0x24e5   :  { %v6847_v54 = vpop.eup %6846 }
0x24e6   :  { %v4341_v18 = vmul.f32 %v6847_v54, %v4339_v25  ;;  %v4411_v24 = vpop.xlane.xlu1 %4410  ;;  %vm4346_vm11 = vweird.f32 %v6847_v54 }
0x24e7   :  { %v4412_v7 = vsub.f32 %v4407_v40, %v4411_v24  ;;  %vm4347_vm13 = vmor %vm4345_vm12, %vm4346_vm11 }
0x24e8   :  { %v4342_v50 = vsub.f32 1.0, %v4341_v18 }
0x24e9   :  { %v4413_v57 = vmul.f32 1.442695, %v4412_v7 }
0x24ea   :  { %v4343_v52 = vmul.f32 %v6847_v54, %v4342_v50  ;;  %v4208_v50 = vld [vmem:[%s8607_s14 + $0x10] sm:$0xff] }
0x24eb   :  { %6848 = vpow2.f32 %v4413_v57 }
0x24ec   :  { %v4344_v37 = vadd.f32 %v6847_v54, %v4343_v52  ;;  %v8250_v52 = vld [vmem:[%s8595_s30 + $0x18] sm:$0xff] }
0x24ee   :  { %v4348_v60 = vsel %vm4347_vm13, %v6847_v54, %v4344_v37  ;;  %v4243_v22 = vpop.xlane.xlu1 %4242 }
0x24ef   :  { %v4353_v62 = vsel %vm4350_vm14, %v4352_v59, %v4348_v60  ;;  %v4245_v1 = vmul.f32 %v4243_v22, %v7291_v13 }
0x24f0   :  { %v4354_v55 = vmul.f32 %v6843_v35, %v4353_v62 }
0x24f1   :  { %v6849_v5 = vpop.eup %6848  ;;  %v4247_v36 = vadd.f32 1e-06, %v4245_v1 }
0x24f2   :  { %6526 = vmatmul.msk.f32.vlgmr.msra.gmra.mxu0 %vm283_vm5, %v4354_v55  ;;  %v4415_v8 = vsel %vm283_vm5, %v6849_v5, 0.0 }
0x24f3   :  { %6850 = vrsqrt.f32 %v4247_v36  ;;  %4416 = vadd.xlane.f32.xlu1 %v4415_v8  ;;  %vm4264_vm2 = vweird.f32 %v4247_v36 }
0x24f9   :  { %v6851_v41 = vpop.eup %6850 }
0x24fa   :  { %v4259_v2 = vmul.f32 %v6851_v41, %v4247_v36  ;;  %vm4265_vm15 = vweird.f32 %v6851_v41 }
0x24fb   :  { %vm4266_vm3 = vmor %vm4264_vm2, %vm4265_vm15 }
0x24fc   :  { %v4260_v0 = vmul.f32 %v6851_v41, %v4259_v2 }
0x24fe   :  { %v4261_v4 = vmul.f32 0.5, %v4260_v0 }
0x2500   :  { %v4262_v63 = vsub.f32 1.5, %v4261_v4 }
0x2502   :  { %v4263_v9 = vmul.f32 %v6851_v41, %v4262_v63 }
0x2504   :  { %v4267_v51 = vsel %vm4266_vm3, %v6851_v41, %v4263_v9 }
0x2505   :  { %v4269_v39 = vmul.f32 %v4267_v51, %v8205_v28 }
0x2507   :  { %v4274_v10 = vmul.f32 %v8146_v31, %v4269_v39 }
0x2509   :  { %6523 = vmatmul.msk.f32.gmra.mxu3 %vm205_vm0, %v4274_v10 }
0x250a   :  { %v4541_v56 = vpop.xlane.xlu1 %4540 }
0x250b   :  { %6852 = vrcp.f32 %v4541_v56  ;;  %v4553_v16 = vand.u32 2147483648, %v4541_v56  ;;  %vm4547_vm10 = vweird.f32 %v4541_v56  ;;  %v4551_v46 = vand.u32 2147483647, %v4541_v56 }
0x250c   :  { %4433 = vrot.lane.b32.xlu1 %v8158_v20, %s7044_s23 }
0x250d   :  { %v4554_v54 = vor.u32 1.1754944e-38, %v4553_v16  ;;  %vm4552_vm12 = vcmp.eq.f32.partialorder %v4551_v46, 8.507059e+37 }
0x2511   :  { %v6853_v53 = vpop.eup %6852 }
0x2512   :  { %v4543_v26 = vmul.f32 %v6853_v53, %v4541_v56  ;;  %vm4548_vm9 = vweird.f32 %v6853_v53 }
0x2513   :  { %vm4549_vm11 = vmor %vm4547_vm10, %vm4548_vm9 }
0x2514   :  { %v4544_v31 = vsub.f32 1.0, %v4543_v26 }
0x2516   :  { %v4545_v40 = vmul.f32 %v6853_v53, %v4544_v31 }
0x2518   :  { %v4546_v45 = vadd.f32 %v6853_v53, %v4545_v40 }
0x251a   :  { %v4550_v25 = vsel %vm4549_vm11, %v6853_v53, %v4546_v45 }
0x251b   :  { %v4555_v18 = vsel %vm4552_vm12, %v4554_v54, %v4550_v25 }
0x251c   :  { %v4556_v24 = vmul.f32 %v8215_v33, %v4555_v18  ;;  %v4207_v33 = vld [vmem:[%s8607_s14 + $0x8] sm:$0xff] }
0x251d   :  { %4477 = vmatpush.msrb.mxu0 %v4207_v33 }
0x251f   :  { %4601 = vmatpush.msra.mxu0 %v4208_v50 }
0x2566   :  { %v4417_v15 = vpop.xlane.xlu1 %4416 }
0x2567   :  { %6854 = vrcp.f32 %v4417_v15  ;;  %v4429_v35 = vand.u32 2147483648, %v4417_v15  ;;  %vm4423_vm6 = vweird.f32 %v4417_v15  ;;  %v4427_v12 = vand.u32 2147483647, %v4417_v15 }
0x2569   :  { %v4430_v44 = vor.u32 1.1754944e-38, %v4429_v35  ;;  %vm4428_vm8 = vcmp.eq.f32.partialorder %v4427_v12, 8.507059e+37 }
0x256d   :  { %v6855_v61 = vpop.eup %6854 }
0x256e   :  { %v4419_v27 = vmul.f32 %v6855_v61, %v4417_v15  ;;  %vm4424_vm4 = vweird.f32 %v6855_v61 }
0x256f   :  { %v4378_v3 = vpop.f32.mrf.mxu0  ;;  %vm4425_vm7 = vmor %vm4423_vm6, %vm4424_vm4 }
0x2570   :  { %v4420_v32 = vsub.f32 1.0, %v4419_v27  ;;  %6531 = vmatmul.msk.f32.vlgmr.msra.gmra.mxu2 %vm283_vm5, %v4378_v3 }
0x2572   :  { %v4421_v17 = vmul.f32 %v6855_v61, %v4420_v32 }
0x2574   :  { %v4422_v23 = vadd.f32 %v6855_v61, %v4421_v17 }
0x2576   :  { %v4426_v42 = vsel %vm4425_vm7, %v6855_v61, %v4422_v23 }
0x2577   :  { %v4431_v30 = vsel %vm4428_vm8, %v4430_v44, %v4426_v42  ;;  %v8276_v44 = vld [vmem:[%s8607_s14 + $0x18] sm:$0xff] }
0x2578   :  { %6537 = vmatmul.msk.f32.vlgmr.msrb.gmra.mxu2 %vm283_vm5, %v4608_v21  ;;  %v4432_v14 = vmul.f32 %v6849_v5, %v4431_v30 }
0x257e   :  { %v4434_v47 = vpop.permute.xlu1 %4433 }
0x257f   :  { %4454 = vmatpush.msrb.mxu3 %v4434_v47 }
0x2580   :  { %6529 = vmatmul.msk.f32.vlgmr.msrb.gmra.mxu3 %vm283_vm5, %v4432_v14 }
0x2581   :  { %4578 = vmatpush.msra.mxu3 %v4558_v11 }
0x2583   :  { %4703 = vmatpush.msrb.mxu3 %v8276_v44 }
0x2588   :  { %6534 = vmatmul.msk.f32.vlgmr.msra.gmra.mxu3 %vm283_vm5, %v4556_v24 }
0x258c   :  { %v8233_v7 = vpop.f32.mrf.mxu3 }
0x258d   :  { %4710 = vrot.lane.b32.xlu1 %v8233_v7, %s7041_s8 }
0x2595   :  { %4659 = vrot.lane.b32.xlu1 %v8158_v20, %s7047_s1 }
0x259d   :  { %4788 = vrot.lane.b32.xlu1 %v8233_v7, %s7042_s3 }
0x25a5   :  { %4786 = vrot.lane.b32.xlu1 %v8233_v7, %s7043_s22 }
0x25ad   :  { %4912 = vrot.lane.b32.xlu1 %v8233_v7, %s7045_s26 }
0x25b5   :  { %4910 = vrot.lane.b32.xlu1 %v8233_v7, %s7046_s28 }
0x25f3   :  { %v4502_v43 = vpop.f32.mrf.mxu2 }
0x25fb   :  { %v4632_v57 = vpop.f32.mrf.mxu2 }
0x25fc   :  { %v4633_v20 = vadd.f32 %v8250_v52, %v4632_v57 }
0x25fe   :  { %v4635_v58 = vsel %vm283_vm5, %v4633_v20, -inf }
0x25ff   :  { %v4711_v37 = vpop.permute.xlu1 %4710  ;;  %4636 = vmax.xlane.f32.xlu0 %v4635_v58 }
0x2603   :  { %v4456_v59 = vpop.f32.mrf.mxu3 }
0x2604   :  { %6530 = vmatmul.msk.f32.vlgmr.msrb.gmra.mxu0 %vm283_vm5, %v4456_v59 }
0x2605   :  { %6540 = vmatpush.xpose.msk.msrb.mxu0 %vm283_vm5, %v4711_v37 }
0x2607   :  { %v4660_v60 = vpop.permute.xlu1 %4659 }
0x2608   :  { %4680 = vmatpush.msra.mxu1 %v4660_v60 }
0x260b   :  { %v4580_v22 = vpop.f32.mrf.mxu3 }
0x260c   :  { %6535 = vmatmul.msk.f32.vlgmr.msra.gmra.mxu0 %vm283_vm5, %v4580_v22 }
0x260d   :  { %4882 = vmatpush.msra.mxu0 %v4207_v33 }
0x260f   :  { %v4789_v62 = vpop.permute.xlu1 %4788 }
0x2610   :  { %6543 = vmatpush.xpose.msk.msrb.mxu1 %vm283_vm5, %v4789_v62 }
0x2614   :  { %6541 = vmatmul.msk.f32.vlgmr.msrb.gmra.mxu0 %vm283_vm5, %v8233_v7 }
0x2615   :  { %5006 = vmatpush.msrb.mxu0 %v4208_v50 }
0x2617   :  { %v4787_v53 = vpop.permute.xlu1 %4786 }
0x261f   :  { %v4913_v23 = vpop.permute.xlu1 %4912 }
0x2627   :  { %v4911_v42 = vpop.permute.xlu1 %4910 }
0x2672   :  { %v4637_v1 = vpop.xlane.xlu0 %4636 }
0x2673   :  { %v4638_v55 = vsub.f32 %v4633_v20, %v4637_v1 }
0x2675   :  { %v4639_v5 = vmul.f32 1.442695, %v4638_v55 }
0x2677   :  { %6856 = vpow2.f32 %v4639_v5 }
0x267d   :  { %v6857_v36 = vpop.eup %6856 }
0x267e   :  { %v4641_v8 = vsel %vm283_vm5, %v6857_v36, 0.0 }
0x267f   :  { %4642 = vadd.xlane.f32.xlu2 %v4641_v8 }
0x2681   :  { %v4479_v41 = vpop.f32.mrf.mxu0 }
0x2682   :  { %v4503_v2 = vadd.f32 %v4502_v43, %v4479_v41 }
0x2689   :  { %v4603_v0 = vpop.f32.mrf.mxu0 }
0x268a   :  { %v8261_v4 = vadd.f32 %v4603_v0, %v4503_v2 }
0x2691   :  { %v4733_v63 = vpop.f32.mrf.mxu0 }
0x2692   :  { %v4734_v9 = vadd.f32 %v8184_v6, %v4733_v63 }
0x2694   :  { %v4736_v51 = vsel %vm283_vm5, %v4734_v9, -inf }
0x2695   :  { %4737 = vmax.xlane.f32.xlu0 %v4736_v51 }
0x2697   :  { %4760 = vrot.lane.b32.xlu2 %v8233_v7, %s7040_s0  ;;  %s8608_s0 = sld [smem:[#allocation29_spill]] }
0x26f2   :  { %v4643_v39 = vpop.xlane.xlu2 %4642 }
0x26f3   :  { %6858 = vrcp.f32 %v4643_v39  ;;  %v4655_v11 = vand.u32 2147483648, %v4643_v39  ;;  %v4653_v6 = vand.u32 2147483647, %v4643_v39  ;;  %vm4649_vm14 = vweird.f32 %v4643_v39 }
0x26f5   :  { %v4656_v26 = vor.u32 1.1754944e-38, %v4655_v11  ;;  %vm4654_vm2 = vcmp.eq.f32.partialorder %v4653_v6, 8.507059e+37 }
0x26f9   :  { %v6859_v10 = vpop.eup %6858 }
0x26fa   :  { %v4645_v56 = vmul.f32 %v6859_v10, %v4643_v39  ;;  %v4761_v15 = vpop.permute.xlu2 %4760  ;;  %vm4650_vm13 = vweird.f32 %v6859_v10 }
0x26fb   :  { %4781 = vmatpush.msra.mxu2 %v4761_v15  ;;  %vm4651_vm15 = vmor %vm4649_vm14, %vm4650_vm13 }
0x26fc   :  { %v4646_v61 = vsub.f32 1.0, %v4645_v56 }
0x26fd   :  { %4905 = vmatpush.msrb.mxu2 %v8211_v34 }
0x26fe   :  { %v4647_v27 = vmul.f32 %v6859_v10, %v4646_v61 }
0x2700   :  { %v4648_v3 = vadd.f32 %v6859_v10, %v4647_v27 }
0x2702   :  { %v4652_v32 = vsel %vm4651_vm15, %v6859_v10, %v4648_v3 }
0x2703   :  { %v4657_v17 = vsel %vm4654_vm2, %v4656_v26, %v4652_v32  ;;  %v4218_v32 = vld [vmem:[%s8608_s0 + $0x18] sm:$0xff] }
0x2704   :  { %v4658_v31 = vmul.f32 %v6857_v36, %v4657_v17 }
0x2706   :  { %6538 = vmatmul.msk.f32.vlgmr.msra.gmra.mxu1 %vm283_vm5, %v4658_v31 }
0x2707   :  { %6548 = vmatpush.xpose.msk.msra.mxu1 %vm283_vm5, %v4913_v23 }
0x2708   :  { %v4738_v35 = vpop.xlane.xlu0 %4737 }
0x2709   :  { %v4739_v34 = vsub.f32 %v4734_v9, %v4738_v35  ;;  %v4217_v35 = vld [vmem:[%s8608_s0 + $0x10] sm:$0xff] }
0x270b   :  { %v4740_v12 = vmul.f32 1.442695, %v4739_v34 }
0x270d   :  { %6860 = vpow2.f32 %v4740_v12 }
0x270e   :  { %6544 = vmatmul.msk.f32.vlgmr.msrb.gmra.mxu1 %vm283_vm5, %v4787_v53 }
0x2713   :  { %v6861_v21 = vpop.eup %6860 }
0x2714   :  { %v4742_v40 = vsel %vm283_vm5, %v6861_v21, 0.0 }
0x2715   :  { %4743 = vadd.xlane.f32.xlu1 %v4742_v40 }
0x2716   :  { %6549 = vmatmul.msk.f32.vlgmr.msra.gmra.mxu1 %vm283_vm5, %v4911_v42 }
0x272e   :  { %5012 = vrot.lane.b32.xlu1 %v8233_v7, %s7049_s2 }
0x2783   :  { %v4682_v30 = vpop.f32.mrf.mxu1 }
0x2784   :  { %6539 = vmatmul.msk.f32.vlgmr.msrb.gmra.mxu3 %vm283_vm5, %v4682_v30 }
0x2788   :  { %v4744_v45 = vpop.xlane.xlu1 %4743 }
0x2789   :  { %6862 = vrcp.f32 %v4744_v45  ;;  %v4756_v18 = vand.u32 2147483648, %v4744_v45  ;;  %v4754_v50 = vand.u32 2147483647, %v4744_v45  ;;  %vm4750_vm4 = vweird.f32 %v4744_v45 }
0x278b   :  { %v4811_v16 = vpop.f32.mrf.mxu1  ;;  %v4757_v58 = vor.u32 1.1754944e-38, %v4756_v18  ;;  %vm4755_vm7 = vcmp.eq.f32.partialorder %v4754_v50, 8.507059e+37 }
0x278c   :  { %v4812_v46 = vadd.f32 %v8201_v48, %v4811_v16 }
0x278e   :  { %v4814_v14 = vsel %vm283_vm5, %v4812_v46, -inf }
0x278f   :  { %v6863_v47 = vpop.eup %6862  ;;  %4815 = vmax.xlane.f32.xlu0 %v4814_v14 }
0x2790   :  { %v4746_v25 = vmul.f32 %v6863_v47, %v4744_v45  ;;  %vm4751_vm3 = vweird.f32 %v6863_v47  ;;  %v4215_v45 = vld [vmem:[%s8608_s0] sm:$0xff] }
0x2791   :  { %vm4752_vm6 = vmor %vm4750_vm4, %vm4751_vm3 }
0x2792   :  { %v4747_v54 = vsub.f32 1.0, %v4746_v25 }
0x2793   :  { %v4935_v24 = vpop.f32.mrf.mxu1 }
0x2794   :  { %v4748_v33 = vmul.f32 %v6863_v47, %v4747_v54  ;;  %v4936_v43 = vadd.f32 %v8193_v29, %v4935_v24 }
0x2796   :  { %v4749_v57 = vadd.f32 %v6863_v47, %v4748_v33  ;;  %v4938_v20 = vsel %vm283_vm5, %v4936_v43, -inf }
0x2797   :  { %4939 = vmax.xlane.f32.xlu0 %v4938_v20 }
0x2798   :  { %v4753_v48 = vsel %vm4752_vm6, %v6863_v47, %v4749_v57 }
0x2799   :  { %v4758_v37 = vsel %vm4755_vm7, %v4757_v58, %v4753_v48 }
0x279a   :  { %v4759_v59 = vmul.f32 %v6861_v21, %v4758_v37  ;;  %v4216_v21 = vld [vmem:[%s8608_s0 + $0x8] sm:$0xff] }
0x279c   :  { %6542 = vmatmul.msk.f32.vlgmr.msra.gmra.mxu2 %vm283_vm5, %v4759_v59 }
0x27a0   :  { %v5013_v34 = vpop.permute.xlu1 %5012 }
0x2802   :  { %v4816_v60 = vpop.xlane.xlu0 %4815 }
0x2803   :  { %v4817_v22 = vsub.f32 %v4812_v46, %v4816_v60 }
0x2805   :  { %v4818_v62 = vmul.f32 1.442695, %v4817_v22 }
0x2807   :  { %6864 = vpow2.f32 %v4818_v62  ;;  %v4705_v8 = vpop.f32.mrf.mxu3 }
0x2808   :  { %v4708_v41 = vadd.f32 %v4705_v8, %v8261_v4 }
0x280a   :  { %v4940_v1 = vpop.xlane.xlu0 %4939  ;;  %v8290_v0 = vadd.f32 %v4708_v41, %v8134_v19 }
0x280b   :  { %v4941_v55 = vsub.f32 %v4936_v43, %v4940_v1 }
0x280c   :  { %v5116_v9 = vmul.f32 %v8290_v0, %v8290_v0 }
0x280d   :  { %v6865_v29 = vpop.eup %6864  ;;  %v4942_v5 = vmul.f32 1.442695, %v4941_v55 }
0x280e   :  { %v4820_v36 = vsel %vm283_vm5, %v6865_v29, 0.0  ;;  %v5118_v51 = vsel %vm205_vm0, %v5116_v9, 0.0 }
0x280f   :  { %6866 = vpow2.f32 %v4942_v5  ;;  %4821 = vadd.xlane.f32.xlu0 %v4820_v36 }
0x2815   :  { %v8287_v2 = vpop.eup %6866 }
0x2816   :  { %v4944_v63 = vsel %vm283_vm5, %v8287_v2, 0.0 }
0x2817   :  { %4945 = vadd.xlane.f32.xlu2 %v4944_v63 }
0x281f   :  { %v4783_v39 = vpop.f32.mrf.mxu2  ;;  %5119 = vadd.xlane.f32.xlu2 %v5118_v51 }
0x2820   :  { %6547 = vmatmul.msk.f32.vlgmr.msrb.gmra.mxu2 %vm283_vm5, %v4783_v39 }
0x2823   :  { %5014 = vrot.lane.b32.xlu0 %v8233_v7, %s7050_s7 }
0x282b   :  { %4838 = vrot.lane.b32.xlu0 %v8233_v7, %s7044_s23  ;;  %s8609_s23 = sld [smem:[#allocation28_spill]] }
0x2831   :  { %v4214_v60 = vld [vmem:[%s8609_s23 + $0x18] sm:$0xff]  ;;  %v4213_v62 = vld [vmem:[%s8609_s23 + $0x10] sm:$0xff] }
0x2833   :  { %4962 = vrot.lane.b32.xlu0 %v8233_v7, %s7048_s5  ;;  %s8611_s5 = sld [smem:[#allocation30_spill]] }
0x2837   :  { %5064 = vrot.lane.b32.xlu2 %v8233_v7, %s7047_s1  ;;  %s8610_s1 = sld [smem:[#allocation27_spill]] }
0x283d   :  { %v8336_v8 = vld [vmem:[%s8610_s1] ss:$0 sm:$0xff] }
0x2882   :  { %v4822_v19 = vpop.xlane.xlu0 %4821 }
0x2883   :  { %6868 = vrcp.f32 %v4822_v19  ;;  %v4834_v3 = vand.u32 2147483648, %v4822_v19  ;;  %vm4828_vm9 = vweird.f32 %v4822_v19  ;;  %v4832_v7 = vand.u32 2147483647, %v4822_v19 }
0x2885   :  { %v4835_v12 = vor.u32 1.1754944e-38, %v4834_v3  ;;  %vm4833_vm11 = vcmp.eq.f32.partialorder %v4832_v7, 8.507059e+37 }
0x2889   :  { %v6869_v4 = vpop.eup %6868 }
0x288a   :  { %v4824_v10 = vmul.f32 %v6869_v4, %v4822_v19  ;;  %v4946_v56 = vpop.xlane.xlu2 %4945  ;;  %vm4829_vm8 = vweird.f32 %v6869_v4 }
0x288b   :  { %6870 = vrcp.f32 %v4946_v56  ;;  %vm4830_vm10 = vmor %vm4828_vm9, %vm4829_vm8  ;;  %v4958_v16 = vand.u32 2147483648, %v4946_v56  ;;  %vm4952_vm13 = vweird.f32 %v4946_v56  ;;  %v4956_v14 = vand.u32 2147483647, %v4946_v56 }
0x288c   :  { %v4825_v15 = vsub.f32 1.0, %v4824_v10 }
0x288d   :  { %v4959_v54 = vor.u32 1.1754944e-38, %v4958_v16  ;;  %vm4957_vm15 = vcmp.eq.f32.partialorder %v4956_v14, 8.507059e+37 }
0x288e   :  { %v4826_v53 = vmul.f32 %v6869_v4, %v4825_v15 }
0x2890   :  { %v4827_v6 = vadd.f32 %v6869_v4, %v4826_v53 }
0x2891   :  { %v6871_v61 = vpop.eup %6870 }
0x2892   :  { %v4948_v11 = vmul.f32 %v6871_v61, %v4946_v56  ;;  %v5120_v27 = vpop.xlane.xlu2 %5119  ;;  %v4831_v31 = vsel %vm4830_vm10, %v6869_v4, %v4827_v6  ;;  %vm4953_vm12 = vweird.f32 %v6871_v61 }
0x2893   :  { %v4836_v40 = vsel %vm4833_vm11, %v4835_v12, %v4831_v31  ;;  %vm4954_vm14 = vmor %vm4952_vm13, %vm4953_vm12  ;;  %v5124_v50 = vmul.f32 %v5120_v27, %v7291_v13 }
0x2894   :  { %v4949_v26 = vsub.f32 1.0, %v4948_v11  ;;  %v4837_v46 = vmul.f32 %v6865_v29, %v4836_v40  ;;  %v4211_v29 = vld [vmem:[%s8609_s23] sm:$0xff] }
0x2895   :  { %v5015_v17 = vpop.permute.xlu0 %5014  ;;  %v5126_v43 = vadd.f32 1e-06, %v5124_v50 }
0x2896   :  { %6552 = vmatpush.xpose.msk.msra.mxu2 %vm283_vm5, %v5015_v17  ;;  %v4950_v23 = vmul.f32 %v6871_v61, %v4949_v26 }
0x2897   :  { %6872 = vrsqrt.f32 %v5126_v43  ;;  %vm5134_vm3 = vweird.f32 %v5126_v43 }
0x2898   :  { %v4951_v30 = vadd.f32 %v6871_v61, %v4950_v23 }
0x2899   :  { %6553 = vmatmul.msk.f32.vlgmr.msra.gmra.mxu2 %vm283_vm5, %v5013_v34 }
0x289a   :  { %5196 = vmatpush.msrb.mxu2 %v4218_v32  ;;  %v5065_v42 = vpop.permute.xlu2 %5064  ;;  %v4955_v25 = vsel %vm4954_vm14, %v6871_v61, %v4951_v30 }
0x289b   :  { %5085 = vmatpush.msrb.mxu1 %v5065_v42  ;;  %v4960_v18 = vsel %vm4957_vm15, %v4959_v54, %v4955_v25 }
0x289c   :  { %5197 = vmatpush.msrb.mxu2 %v4217_v35  ;;  %v4961_v24 = vmul.f32 %v8287_v2, %v4960_v18 }
0x289d   :  { %v4839_v47 = vpop.permute.xlu0 %4838  ;;  %v6873_v57 = vpop.eup %6872 }
0x289e   :  { %5198 = vmatpush.msrb.mxu2 %v4216_v21  ;;  %4859 = vmatpush.msra.mxu3 %v4839_v47  ;;  %v5129_v20 = vmul.f32 %v6873_v57, %v5126_v43  ;;  %vm5135_vm2 = vweird.f32 %v6873_v57 }
0x289f   :  { %6545 = vmatmul.msk.f32.vlgmr.msra.gmra.mxu3 %vm283_vm5, %v4837_v46  ;;  %vm5136_vm4 = vmor %vm5134_vm3, %vm5135_vm2 }
0x28a0   :  { %5199 = vmatpush.msrb.mxu2 %v4215_v45  ;;  %v5130_v58 = vmul.f32 %v6873_v57, %v5129_v20  ;;  %v8354_v45 = vld [vmem:[%s7084_s21] ss:$0 sm:$0xff] }
0x28a1   :  { %6558 = vmatmul.msk.f32.vlgmr.msrb.gmra.mxu2 %vm205_vm0, %v7907_v38 }
0x28a2   :  { %v5131_v59 = vmul.f32 0.5, %v5130_v58 }
0x28a3   :  { %v4907_v38 = vpop.f32.mrf.mxu2 }
0x28a5   :  { %v4963_v33 = vpop.permute.xlu0 %4962 }
0x28a6   :  { %4983 = vmatpush.msrb.mxu3 %v4963_v33  ;;  %v8368_v33 = vld [vmem:[%s8611_s5] sm:$0xff] }
0x28a7   :  { %6550 = vmatmul.msk.f32.vlgmr.msrb.gmra.mxu3 %vm283_vm5, %v4961_v24  ;;  %5402 = vmatpush.msra.mxu2 %v8368_v33 }
0x28a8   :  { %5108 = vmatpush.msra.mxu3 %v8276_v44 }
0x28a9   :  { %6559 = vmatmul.msk.f32.gmra.mxu2 %vm205_vm0, %v8017_v49  ;;  %v5132_v49 = vsub.f32 1.5, %v5131_v59 }
0x28ab   :  { %v5133_v55 = vmul.f32 %v6873_v57, %v5132_v49 }
0x28ad   :  { %v5137_v5 = vsel %vm5136_vm4, %v6873_v57, %v5133_v55 }
0x28ae   :  { %v5148_v41 = vmul.f32 %v5137_v5, %v8290_v0 }
0x28b0   :  { %v5153_v2 = vmul.f32 %v8336_v8, %v5148_v41 }
0x291c   :  { %v5037_v48 = vpop.f32.mrf.mxu2 }
0x291d   :  { %v5038_v37 = vadd.f32 %v8250_v52, %v5037_v48  ;;  %v4212_v52 = vld [vmem:[%s8609_s23 + $0x8] sm:$0xff] }
0x291f   :  { %v5040_v44 = vsel %vm283_vm5, %v5038_v37, -inf }
0x2920   :  { %5041 = vmax.xlane.f32.xlu1 %v5040_v44 }
0x2922   :  { %v4861_v22 = vpop.f32.mrf.mxu3 }
0x2923   :  { %6546 = vmatmul.msk.f32.vlgmr.msra.gmra.mxu0 %vm283_vm5, %v4861_v22 }
0x2924   :  { %v8326_v1 = vpop.f32.mrf.mxu2  ;;  %5173 = vmatpush.msra.mxu0 %v4214_v60 }
0x2925   :  { %5285 = vrot.lane.b32.xlu2 %v8326_v1, %s7043_s22  ;;  %6560 = vmatpush.xpose.msk.msra.mxu1 %vm283_vm5, %v8326_v1 }
0x2926   :  { %5174 = vmatpush.msra.mxu0 %v4213_v62 }
0x2928   :  { %5175 = vmatpush.msra.mxu0 %v4212_v52 }
0x292a   :  { %v4985_v36 = vpop.f32.mrf.mxu3  ;;  %5176 = vmatpush.msra.mxu0 %v4211_v29 }
0x292b   :  { %6551 = vmatmul.msk.f32.vlgmr.msrb.gmra.mxu0 %vm283_vm5, %v4985_v36 }
0x2933   :  { %6556 = vmatmul.msk.f32.vlgmr.msra.gmra.mxu0 %vm205_vm0, %v5153_v2 }
0x2939   :  { %5409 = vrot.lane.b32.xlu1 %v8326_v1, %s7046_s28 }
0x297f   :  { %v5286_v34 = vpop.permute.xlu2 %5285 }
0x2993   :  { %v5042_v63 = vpop.xlane.xlu1 %5041 }
0x2994   :  { %v5043_v9 = vsub.f32 %v5038_v37, %v5042_v63  ;;  %v8389_v63 = vpop.f32.mrf.mxu2 }
0x2996   :  { %v5044_v51 = vmul.f32 1.442695, %v5043_v9 }
0x2998   :  { %6874 = vpow2.f32 %v5044_v51 }
0x299e   :  { %v6875_v39 = vpop.eup %6874 }
0x299f   :  { %v5046_v19 = vsel %vm283_vm5, %v6875_v39, 0.0 }
0x29a0   :  { %5047 = vadd.xlane.f32.xlu0 %v5046_v19  ;;  %v4884_v4 = vpop.f32.mrf.mxu0 }
0x29a1   :  { %v4908_v10 = vadd.f32 %v4907_v38, %v4884_v4 }
0x29a8   :  { %v5008_v56 = vpop.f32.mrf.mxu0 }
0x29a9   :  { %v5011_v15 = vadd.f32 %v5008_v56, %v4908_v10 }
0x29ab   :  { %v5410_v12 = vpop.permute.xlu1 %5409 }
0x29b0   :  { %v5178_v53 = vpop.f32.mrf.mxu0 }
0x29b1   :  { %5283 = vrot.lane.b32.xlu2 %v5178_v53, %s7043_s22 }
0x29b4   :  { %5407 = vrot.lane.b32.xlu0 %v5178_v53, %s7046_s28 }
0x2a0b   :  { %v5284_v21 = vpop.permute.xlu2 %5283 }
0x2a13   :  { %v5048_v61 = vpop.xlane.xlu0 %5047 }
0x2a14   :  { %6876 = vrcp.f32 %v5048_v61  ;;  %v5060_v3 = vand.u32 2147483648, %v5048_v61  ;;  %v5058_v32 = vand.u32 2147483647, %v5048_v61  ;;  %vm5054_vm7 = vweird.f32 %v5048_v61 }
0x2a16   :  { %v5061_v17 = vor.u32 1.1754944e-38, %v5060_v3  ;;  %vm5059_vm9 = vcmp.eq.f32.partialorder %v5058_v32, 8.507059e+37 }
0x2a1a   :  { %v6877_v11 = vpop.eup %6876 }
0x2a1b   :  { %v5050_v27 = vmul.f32 %v6877_v11, %v5048_v61  ;;  %vm5055_vm6 = vweird.f32 %v6877_v11 }
0x2a1c   :  { %vm5056_vm8 = vmor %vm5054_vm7, %vm5055_vm6 }
0x2a1d   :  { %v5051_v6 = vsub.f32 1.0, %v5050_v27 }
0x2a1f   :  { %v5052_v26 = vmul.f32 %v6877_v11, %v5051_v6 }
0x2a21   :  { %v5053_v7 = vadd.f32 %v6877_v11, %v5052_v26 }
0x2a23   :  { %v5057_v31 = vsel %vm5056_vm8, %v6877_v11, %v5053_v7 }
0x2a24   :  { %v5062_v23 = vsel %vm5059_vm9, %v5061_v17, %v5057_v31 }
0x2a25   :  { %v5063_v35 = vmul.f32 %v6875_v39, %v5062_v23 }
0x2a26   :  { %v5408_v40 = vpop.permute.xlu0 %5407 }
0x2a27   :  { %6554 = vmatmul.msk.f32.vlgmr.msrb.gmra.mxu1 %vm283_vm5, %v5063_v35 }
0x2a28   :  { %6563 = vmatpush.xpose.msk.msrb.mxu1 %vm283_vm5, %v5286_v34 }
0x2a2f   :  { %6561 = vmatmul.msk.f32.vlgmr.msra.gmra.mxu1 %vm283_vm5, %v5178_v53 }
0x2a30   :  { %6568 = vmatpush.xpose.msk.msra.mxu1 %vm283_vm5, %v5410_v12 }
0x2a37   :  { %6564 = vmatmul.msk.f32.vlgmr.msrb.gmra.mxu1 %vm283_vm5, %v5284_v21 }
0x2a3f   :  { %6569 = vmatmul.msk.f32.vlgmr.msra.gmra.mxu1 %vm283_vm5, %v5408_v40 }
0x2aa4   :  { %v5087_v42 = vpop.f32.mrf.mxu1 }
0x2aa5   :  { %6555 = vmatmul.msk.f32.vlgmr.msra.gmra.mxu3 %vm283_vm5, %v5087_v42 }
0x2aac   :  { %v5230_v30 = vpop.f32.mrf.mxu1 }
0x2aad   :  { %v5231_v16 = vadd.f32 %v8354_v45, %v5230_v30 }
0x2aaf   :  { %v5233_v46 = vsel %vm283_vm5, %v5231_v16, -inf }
0x2ab0   :  { %5234 = vmax.xlane.f32.xlu2 %v5233_v46 }
0x2ab4   :  { %v5308_v14 = vpop.f32.mrf.mxu1 }
0x2ab5   :  { %v5309_v47 = vadd.f32 %v8354_v45, %v5308_v14 }
0x2ab7   :  { %v5311_v25 = vsel %vm283_vm5, %v5309_v47, -inf }
0x2ab8   :  { %5312 = vmax.xlane.f32.xlu0 %v5311_v25 }
0x2abc   :  { %v5432_v54 = vpop.f32.mrf.mxu1 }
0x2abd   :  { %v5433_v18 = vadd.f32 %v8354_v45, %v5432_v54 }
0x2abf   :  { %v5435_v24 = vsel %vm283_vm5, %v5433_v18, -inf }
0x2ac0   :  { %5436 = vmax.xlane.f32.xlu1 %v5435_v24 }
0x2acc   :  { %5257 = vrot.lane.b32.xlu0 %v8326_v1, %s7041_s8 }
0x2ad4   :  { %5511 = vrot.lane.b32.xlu0 %v8326_v1, %s7049_s2 }
0x2adc   :  { %5509 = vrot.lane.b32.xlu0 %v5178_v53, %s7049_s2 }
0x2b23   :  { %v5235_v50 = vpop.xlane.xlu2 %5234 }
0x2b24   :  { %v5236_v43 = vsub.f32 %v5231_v16, %v5235_v50 }
0x2b26   :  { %v5237_v57 = vmul.f32 1.442695, %v5236_v43 }
0x2b28   :  { %6878 = vpow2.f32 %v5237_v57  ;;  %v5110_v38 = vpop.f32.mrf.mxu3 }
0x2b29   :  { %v5113_v20 = vadd.f32 %v5110_v38, %v5011_v15 }
0x2b2b   :  { %v8372_v58 = vadd.f32 %v5113_v20, %v8205_v28  ;;  %v5313_v48 = vpop.xlane.xlu0 %5312 }
0x2b2c   :  { %v5314_v37 = vsub.f32 %v5309_v47, %v5313_v48 }
0x2b2d   :  { %v5117_v59 = vmul.f32 %v8372_v58, %v8372_v58 }
0x2b2e   :  { %v6879_v44 = vpop.eup %6878  ;;  %v5315_v60 = vmul.f32 1.442695, %v5314_v37 }
0x2b2f   :  { %v5239_v49 = vsel %vm283_vm5, %v6879_v44, 0.0  ;;  %v5121_v22 = vsel %vm205_vm0, %v5117_v59, 0.0 }
0x2b30   :  { %6880 = vpow2.f32 %v5315_v60  ;;  %5240 = vadd.xlane.f32.xlu2 %v5239_v49  ;;  %5122 = vadd.xlane.f32.xlu1 %v5121_v22 }
0x2b33   :  { %v5437_v62 = vpop.xlane.xlu1 %5436 }
0x2b34   :  { %v5438_v52 = vsub.f32 %v5433_v18, %v5437_v62 }
0x2b36   :  { %v8378_v55 = vpop.eup %6880  ;;  %v5439_v28 = vmul.f32 1.442695, %v5438_v52 }
0x2b37   :  { %v5317_v29 = vsel %vm283_vm5, %v8378_v55, 0.0 }
0x2b38   :  { %6882 = vpow2.f32 %v5439_v28  ;;  %5318 = vadd.xlane.f32.xlu2 %v5317_v29  ;;  %v4221_v28 = vld [vmem:[%s8611_s5 + $0x10] sm:$0xff] }
0x2b3e   :  { %v8382_v5 = vpop.eup %6882  ;;  %v5258_v36 = vpop.permute.xlu0 %5257 }
0x2b3f   :  { %5278 = vmatpush.msrb.mxu3 %v5258_v36  ;;  %v5441_v41 = vsel %vm283_vm5, %v8382_v5, 0.0 }
0x2b40   :  { %5442 = vadd.xlane.f32.xlu2 %v5441_v41 }
0x2b46   :  { %v5512_v2 = vpop.permute.xlu0 %5511 }
0x2b47   :  { %6572 = vmatpush.xpose.msk.msrb.mxu2 %vm283_vm5, %v5512_v2 }
0x2b49   :  { %5459 = vrot.lane.b32.xlu1 %v8326_v1, %s7045_s26 }
0x2b4e   :  { %v5510_v41 = vpop.permute.xlu0 %5509 }
0x2b51   :  { %5661 = vrot.lane.b32.xlu1 %v8389_v63, %s7041_s8  ;;  %s8613_s8 = sld [smem:[#allocation31_spill]] }
0x2b58   :  { %5335 = vrot.lane.b32.xlu2 %v8326_v1, %s7042_s3 }
0x2ba3   :  { %v5241_v9 = vpop.xlane.xlu2 %5240  ;;  %v5123_v51 = vpop.xlane.xlu1 %5122 }
0x2ba4   :  { %6884 = vrcp.f32 %v5241_v9  ;;  %v5125_v39 = vmul.f32 %v5123_v51, %v7291_v13  ;;  %v5253_v53 = vand.u32 2147483648, %v5241_v9  ;;  %v5251_v27 = vand.u32 2147483647, %v5241_v9 }
0x2ba5   :  { %vm5247_vm11 = vweird.f32 %v5241_v9 }
0x2ba6   :  { %v5127_v19 = vadd.f32 1e-06, %v5125_v39  ;;  %v5254_v32 = vor.u32 1.1754944e-38, %v5253_v53  ;;  %vm5252_vm13 = vcmp.eq.f32.partialorder %v5251_v27, 8.507059e+37 }
0x2ba8   :  { %6886 = vrsqrt.f32 %v5127_v19  ;;  %vm5144_vm2 = vweird.f32 %v5127_v19 }
0x2baa   :  { %v6885_v4 = vpop.eup %6884 }
0x2bab   :  { %v5243_v10 = vmul.f32 %v6885_v4, %v5241_v9  ;;  %v5319_v56 = vpop.xlane.xlu2 %5318  ;;  %vm5248_vm10 = vweird.f32 %v6885_v4 }
0x2bac   :  { %6888 = vrcp.f32 %v5319_v56  ;;  %vm5249_vm12 = vmor %vm5247_vm11, %vm5248_vm10  ;;  %v5331_v42 = vand.u32 2147483648, %v5319_v56  ;;  %v5329_v16 = vand.u32 2147483647, %v5319_v56  ;;  %vm5325_vm4 = vweird.f32 %v5319_v56 }
0x2bad   :  { %v5244_v15 = vsub.f32 1.0, %v5243_v10 }
0x2bae   :  { %v6887_v61 = vpop.eup %6886  ;;  %v5332_v54 = vor.u32 1.1754944e-38, %v5331_v42  ;;  %vm5330_vm7 = vcmp.eq.f32.partialorder %v5329_v16, 8.507059e+37 }
0x2baf   :  { %v5245_v11 = vmul.f32 %v6885_v4, %v5244_v15  ;;  %v5139_v6 = vmul.f32 %v6887_v61, %v5127_v19  ;;  %vm5145_vm14 = vweird.f32 %v6887_v61 }
0x2bb0   :  { %vm5146_vm3 = vmor %vm5144_vm2, %vm5145_vm14 }
0x2bb1   :  { %v5246_v3 = vadd.f32 %v6885_v4, %v5245_v11  ;;  %v5140_v7 = vmul.f32 %v6887_v61, %v5139_v6 }
0x2bb2   :  { %v6889_v26 = vpop.eup %6888 }
0x2bb3   :  { %v5250_v17 = vsel %vm5249_vm12, %v6885_v4, %v5246_v3  ;;  %v5321_v31 = vmul.f32 %v6889_v26, %v5319_v56  ;;  %v5443_v23 = vpop.xlane.xlu2 %5442  ;;  %v5141_v34 = vmul.f32 0.5, %v5140_v7  ;;  %vm5326_vm15 = vweird.f32 %v6889_v26 }
0x2bb4   :  { %v5255_v35 = vsel %vm5252_vm13, %v5254_v32, %v5250_v17  ;;  %6890 = vrcp.f32 %v5443_v23  ;;  %vm5327_vm6 = vmor %vm5325_vm4, %vm5326_vm15  ;;  %v5455_v59 = vand.u32 2147483648, %v5443_v23  ;;  %v5453_v60 = vand.u32 2147483647, %v5443_v23 }
0x2bb5   :  { %v5256_v12 = vmul.f32 %v6879_v44, %v5255_v35  ;;  %v5322_v21 = vsub.f32 1.0, %v5321_v31  ;;  %v5142_v40 = vsub.f32 1.5, %v5141_v34  ;;  %vm5449_vm9 = vweird.f32 %v5443_v23 }
0x2bb6   :  { %v5456_v22 = vor.u32 1.1754944e-38, %v5455_v59  ;;  %vm5454_vm11 = vcmp.eq.f32.partialorder %v5453_v60, 8.507059e+37 }
0x2bb7   :  { %v5323_v30 = vmul.f32 %v6889_v26, %v5322_v21  ;;  %6562 = vmatmul.msk.f32.vlgmr.msrb.gmra.mxu3 %vm283_vm5, %v5256_v12  ;;  %v5143_v46 = vmul.f32 %v6887_v61, %v5142_v40 }
0x2bb9   :  { %v5324_v14 = vadd.f32 %v6889_v26, %v5323_v30  ;;  %v5147_v25 = vsel %vm5146_vm3, %v6887_v61, %v5143_v46  ;;  %v8419_v61 = vld [vmem:[%s7084_s21 + $0x1] ss:$0 sm:$0xff]  ;;  %s8612_s21 = sld [smem:[#allocation32_spill]] }
0x2bba   :  { %v6891_v47 = vpop.eup %6890  ;;  %v5149_v57 = vmul.f32 %v5147_v25, %v8372_v58 }
0x2bbb   :  { %v5328_v18 = vsel %vm5327_vm6, %v6889_v26, %v5324_v14  ;;  %v5445_v24 = vmul.f32 %v6891_v47, %v5443_v23  ;;  %v5460_v50 = vpop.permute.xlu1 %5459  ;;  %v5336_v43 = vpop.permute.xlu2 %5335  ;;  %vm5450_vm8 = vweird.f32 %v6891_v47 }
0x2bbc   :  { %v5333_v38 = vsel %vm5330_vm7, %v5332_v54, %v5328_v18  ;;  %5356 = vmatpush.msra.mxu3 %v5336_v43  ;;  %v5154_v37 = vmul.f32 %v8336_v8, %v5149_v57  ;;  %vm5451_vm10 = vmor %vm5449_vm9, %vm5450_vm8  ;;  %v4220_v8 = vld [vmem:[%s8611_s5 + $0x8] sm:$0xff] }
0x2bbd   :  { %v5334_v20 = vmul.f32 %v8378_v55, %v5333_v38  ;;  %v5446_v48 = vsub.f32 1.0, %v5445_v24  ;;  %5379 = vmatpush.msrb.mxu0 %v4220_v8 }
0x2bbe   :  { %5480 = vmatpush.msrb.mxu3 %v5460_v50  ;;  %6557 = vmatmul.msk.f32.gmra.mxu0 %vm205_vm0, %v5154_v37 }
0x2bbf   :  { %v5447_v44 = vmul.f32 %v6891_v47, %v5446_v48  ;;  %6565 = vmatmul.msk.f32.vlgmr.msra.gmra.mxu3 %vm283_vm5, %v5334_v20  ;;  %5503 = vmatpush.msra.mxu0 %v4221_v28 }
0x2bc1   :  { %v5448_v49 = vadd.f32 %v6891_v47, %v5447_v44 }
0x2bc3   :  { %v5452_v62 = vsel %vm5451_vm10, %v6891_v47, %v5448_v49  ;;  %v5662_v36 = vpop.permute.xlu1 %5661 }
0x2bc4   :  { %v5457_v52 = vsel %vm5454_vm11, %v5456_v22, %v5452_v62 }
0x2bc5   :  { %v5458_v55 = vmul.f32 %v8382_v5, %v5457_v52 }
0x2bc7   :  { %6570 = vmatmul.msk.f32.vlgmr.msrb.gmra.mxu3 %vm283_vm5, %v5458_v55 }
0x2c3a   :  { %v5280_v29 = vpop.f32.mrf.mxu3 }
0x2c3b   :  { %6567 = vmatmul.msk.f32.vlgmr.msra.gmra.mxu2 %vm283_vm5, %v5280_v29  ;;  %v5181_v9 = vpop.f32.mrf.mxu0 }
0x2c3c   :  { %5682 = vmatpush.msra.mxu2 %v5662_v36 }
0x2c42   :  { %v5358_v2 = vpop.f32.mrf.mxu3 }
0x2c43   :  { %6566 = vmatmul.msk.f32.vlgmr.msrb.gmra.mxu0 %vm283_vm5, %v5358_v2  ;;  %6573 = vmatmul.msk.f32.vlgmr.msrb.gmra.mxu2 %vm283_vm5, %v5510_v41 }
0x2c44   :  { %6576 = vmatpush.xpose.msk.msrb.mxu0 %vm283_vm5, %v8389_v63  ;;  %5806 = vmatpush.msrb.mxu2 %v8368_v33 }
0x2c4a   :  { %v5482_v5 = vpop.f32.mrf.mxu3 }
0x2c4b   :  { %6571 = vmatmul.msk.f32.vlgmr.msra.gmra.mxu0 %vm283_vm5, %v5482_v5 }
0x2c4c   :  { %5783 = vmatpush.msra.mxu0 %v4220_v8 }
0x2c53   :  { %6577 = vmatmul.msk.f32.vlgmr.msrb.gmra.mxu0 %vm283_vm5, %v5181_v9 }
0x2c54   :  { %5907 = vmatpush.msrb.mxu0 %v4221_v28  ;;  %v8444_v28 = vld [vmem:[%s8611_s5 + $0x18] sm:$0xff] }
0x2c55   :  { %5605 = vmatpush.msra.mxu3 %v8444_v28 }
0x2cbe   :  { %v5404_v51 = vpop.f32.mrf.mxu2 }
0x2cc0   :  { %v5381_v39 = vpop.f32.mrf.mxu0 }
0x2cc1   :  { %v5405_v19 = vadd.f32 %v5404_v51, %v5381_v39 }
0x2cc6   :  { %v5534_v4 = vpop.f32.mrf.mxu2 }
0x2cc7   :  { %v5535_v10 = vadd.f32 %v8354_v45, %v5534_v4 }
0x2cc8   :  { %v5505_v56 = vpop.f32.mrf.mxu0 }
0x2cc9   :  { %v8415_v15 = vadd.f32 %v5505_v56, %v5405_v19  ;;  %v5537_v33 = vsel %vm283_vm5, %v5535_v10, -inf }
0x2cca   :  { %5538 = vmax.xlane.f32.xlu1 %v5537_v33 }
0x2cd0   :  { %v5634_v53 = vpop.f32.mrf.mxu0 }
0x2cd1   :  { %v5635_v11 = vadd.f32 %v8419_v61, %v5634_v53 }
0x2cd3   :  { %v5637_v27 = vsel %vm283_vm5, %v5635_v11, -inf }
0x2cd4   :  { %5638 = vmax.xlane.f32.xlu2 %v5637_v27 }
0x2ce3   :  { %5687 = vrot.lane.b32.xlu1 %v5181_v9, %s7043_s22 }
0x2d3d   :  { %v5539_v6 = vpop.xlane.xlu1 %5538 }
0x2d3e   :  { %v5540_v3 = vsub.f32 %v5535_v10, %v5539_v6 }
0x2d40   :  { %v5541_v26 = vmul.f32 1.442695, %v5540_v3 }
0x2d42   :  { %6892 = vpow2.f32 %v5541_v26 }
0x2d47   :  { %v5639_v45 = vpop.xlane.xlu2 %5638 }
0x2d48   :  { %v6893_v32 = vpop.eup %6892  ;;  %v5640_v7 = vsub.f32 %v5635_v11, %v5639_v45 }
0x2d49   :  { %v5543_v17 = vsel %vm283_vm5, %v6893_v32, 0.0 }
0x2d4a   :  { %v5641_v31 = vmul.f32 1.442695, %v5640_v7  ;;  %5544 = vadd.xlane.f32.xlu2 %v5543_v17 }
0x2d4c   :  { %6894 = vpow2.f32 %v5641_v31 }
0x2d52   :  { %v6895_v23 = vpop.eup %6894 }
0x2d53   :  { %v5643_v35 = vsel %vm283_vm5, %v6895_v23, 0.0 }
0x2d54   :  { %5644 = vadd.xlane.f32.xlu0 %v5643_v35 }
0x2d55   :  { %v5688_v62 = vpop.permute.xlu1 %5687 }
0x2d62   :  { %5689 = vrot.lane.b32.xlu2 %v8389_v63, %s7043_s22  ;;  %s6294_s22 = sshll.u32 %s7274_s29, 4  ;;  %s6295_s22 = int_to_ptr.hbm [resolvable:$true] %s6294_s22 }
0x2d68   :  { %5561 = vrot.lane.b32.xlu0 %v8326_v1, %s7050_s7 }
0x2d6a   :  { %5913 = vrot.lane.b32.xlu2 %v5181_v9, %s7049_s2 }
0x2d70   :  { %5915 = vrot.lane.b32.xlu0 %v8389_v63, %s7049_s2  ;;  %s6956_s2 = sshra.s32 %s6295_s22, 4  ;;  %s6957_s2 = int_to_ptr.hbm [resolvable:$true] %s6956_s2 }
0x2d71   :  { %p6961_p1 = scmp.lt.s32.totalorder %s6957_s2, %s7274_s29 }
0x2d72   :  { %5811 = vrot.lane.b32.xlu2 %v5181_v9, %s7046_s28 }
0x2d78   :  { %5813 = vrot.lane.b32.xlu0 %v8389_v63, %s7046_s28 }
0x2dbd   :  { %v5545_v34 = vpop.xlane.xlu2 %5544 }
0x2dbe   :  { %6896 = vrcp.f32 %v5545_v34  ;;  %v5557_v14 = vand.u32 2147483648, %v5545_v34  ;;  %vm5551_vm13 = vweird.f32 %v5545_v34  ;;  %v5555_v25 = vand.u32 2147483647, %v5545_v34 }
0x2dc0   :  { %v5558_v43 = vor.u32 1.1754944e-38, %v5557_v14  ;;  %vm5556_vm3 = vcmp.eq.f32.partialorder %v5555_v25, 8.507059e+37 }
0x2dc4   :  { %v6897_v12 = vpop.eup %6896 }
0x2dc5   :  { %v5547_v21 = vmul.f32 %v6897_v12, %v5545_v34  ;;  %vm5552_vm12 = vweird.f32 %v6897_v12  ;;  %v5690_v59 = vpop.permute.xlu2 %5689 }
0x2dc6   :  { %vm5553_vm14 = vmor %vm5551_vm13, %vm5552_vm12 }
0x2dc7   :  { %v5645_v40 = vpop.xlane.xlu0 %5644  ;;  %v5548_v42 = vsub.f32 1.0, %v5547_v21 }
0x2dc8   :  { %6898 = vrcp.f32 %v5645_v40  ;;  %v5657_v54 = vand.u32 2147483648, %v5645_v40  ;;  %v5655_v24 = vand.u32 2147483647, %v5645_v40  ;;  %vm5651_vm2 = vweird.f32 %v5645_v40 }
0x2dc9   :  { %v5549_v30 = vmul.f32 %v6897_v12, %v5548_v42 }
0x2dca   :  { %v5658_v38 = vor.u32 1.1754944e-38, %v5657_v54  ;;  %vm5656_vm6 = vcmp.eq.f32.partialorder %v5655_v24, 8.507059e+37 }
0x2dcb   :  { %v5550_v46 = vadd.f32 %v6897_v12, %v5549_v30 }
0x2dcd   :  { %v5554_v50 = vsel %vm5553_vm14, %v6897_v12, %v5550_v46  ;;  %v5914_v52 = vpop.permute.xlu2 %5913 }
0x2dce   :  { %v6899_v16 = vpop.eup %6898  ;;  %v5559_v20 = vsel %vm5556_vm3, %v5558_v43, %v5554_v50 }
0x2dcf   :  { %v5647_v1 = vmul.f32 %v6899_v16, %v5645_v40  ;;  %vm5652_vm15 = vweird.f32 %v6899_v16  ;;  %v5560_v60 = vmul.f32 %v6893_v32, %v5559_v20 }
0x2dd0   :  { %vm5653_vm4 = vmor %vm5651_vm2, %vm5652_vm15 }
0x2dd1   :  { %v5648_v47 = vsub.f32 1.0, %v5647_v1 }
0x2dd3   :  { %v5649_v18 = vmul.f32 %v6899_v16, %v5648_v47 }
0x2dd5   :  { %v5650_v57 = vadd.f32 %v6899_v16, %v5649_v18  ;;  %v5812_v8 = vpop.permute.xlu2 %5811 }
0x2dd7   :  { %v5654_v48 = vsel %vm5653_vm4, %v6899_v16, %v5650_v57 }
0x2dd8   :  { %v5659_v37 = vsel %vm5656_vm6, %v5658_v38, %v5654_v48 }
0x2dd9   :  { %v5660_v44 = vmul.f32 %v6895_v23, %v5659_v37 }
0x2dda   :  { %v5562_v49 = vpop.permute.xlu0 %5561 }
0x2ddb   :  { %5582 = vmatpush.msrb.mxu1 %v5562_v49  ;;  %6578 = vmatmul.msk.f32.vlgmr.msra.gmra.mxu2 %vm283_vm5, %v5660_v44 }
0x2ddc   :  { %6574 = vmatmul.msk.f32.vlgmr.msrb.gmra.mxu1 %vm283_vm5, %v5560_v60 }
0x2ddd   :  { %6579 = vmatpush.xpose.msk.msra.mxu1 %vm283_vm5, %v5690_v59 }
0x2de2   :  { %v5916_v22 = vpop.permute.xlu0 %5915 }
0x2de3   :  { %6588 = vmatpush.xpose.msk.msra.mxu2 %vm283_vm5, %v5916_v22 }
0x2de4   :  { %6580 = vmatmul.msk.f32.vlgmr.msra.gmra.mxu1 %vm283_vm5, %v5688_v62 }
0x2dea   :  { %v5814_v55 = vpop.permute.xlu0 %5813 }
0x2deb   :  { %6584 = vmatpush.xpose.msk.msrb.mxu1 %vm283_vm5, %v5814_v55 }
0x2dee   :  { %6585 = vmatmul.msk.f32.vlgmr.msrb.gmra.mxu1 %vm283_vm5, %v5812_v8 }
0x2e59   :  { %v5584_v29 = vpop.f32.mrf.mxu1 }
0x2e5a   :  { %6575 = vmatmul.msk.f32.vlgmr.msra.gmra.mxu3 %vm283_vm5, %v5584_v29 }
0x2e5e   :  { %v5684_v36 = vpop.f32.mrf.mxu2 }
0x2e5f   :  { %6583 = vmatmul.msk.f32.vlgmr.msrb.gmra.mxu2 %vm283_vm5, %v5684_v36 }
0x2e61   :  { %v5712_v41 = vpop.f32.mrf.mxu1 }
0x2e62   :  { %v5713_v2 = vadd.f32 %v8419_v61, %v5712_v41 }
0x2e64   :  { %v5715_v5 = vsel %vm283_vm5, %v5713_v2, -inf }
0x2e65   :  { %5716 = vmax.xlane.f32.xlu1 %v5715_v5 }
0x2e67   :  { %6589 = vmatmul.msk.f32.vlgmr.msra.gmra.mxu2 %vm283_vm5, %v5914_v52 }
0x2e6b   :  { %v5836_v9 = vpop.f32.mrf.mxu1 }
0x2e6c   :  { %v5837_v51 = vadd.f32 %v8419_v61, %v5836_v9 }
0x2e6e   :  { %v5839_v39 = vsel %vm283_vm5, %v5837_v51, -inf }
0x2e6f   :  { %5840 = vmax.xlane.f32.xlu0 %v5839_v39 }
0x2ed8   :  { %v5717_v19 = vpop.xlane.xlu1 %5716 }
0x2ed9   :  { %v5718_v4 = vsub.f32 %v5713_v2, %v5717_v19 }
0x2edb   :  { %v5719_v10 = vmul.f32 1.442695, %v5718_v4 }
0x2edd   :  { %6900 = vpow2.f32 %v5719_v10  ;;  %v5607_v17 = vpop.f32.mrf.mxu3 }
0x2ede   :  { %v5610_v31 = vadd.f32 %v5607_v17, %v8415_v15 }
0x2ee0   :  { %v8466_v23 = vadd.f32 %v5610_v31, %v8290_v0  ;;  %v4224_v31 = vld [vmem:[%s8612_s21] sm:$0xff] }
0x2ee2   :  { %v8454_v56 = vpop.f32.mrf.mxu2  ;;  %v5841_v33 = vpop.xlane.xlu0 %5840 }
0x2ee3   :  { %v6901_v53 = vpop.eup %6900  ;;  %v5842_v11 = vsub.f32 %v5837_v51, %v5841_v33 }
0x2ee4   :  { %v5721_v27 = vsel %vm283_vm5, %v6901_v53, 0.0 }
0x2ee5   :  { %v5843_v6 = vmul.f32 1.442695, %v5842_v11  ;;  %5722 = vadd.xlane.f32.xlu1 %v5721_v27 }
0x2ee7   :  { %6902 = vpow2.f32 %v5843_v6 }
0x2eea   :  { %v5938_v3 = vpop.f32.mrf.mxu2 }
0x2eeb   :  { %v5939_v26 = vadd.f32 %v8419_v61, %v5938_v3  ;;  %v6017_v61 = vmul.f32 %v8466_v23, %v8466_v23  ;;  %v4227_v3 = vld [vmem:[%s8612_s21 + $0x18] sm:$0xff] }
0x2eed   :  { %v6903_v45 = vpop.eup %6902  ;;  %v5941_v32 = vsel %vm283_vm5, %v5939_v26, -inf  ;;  %v6019_v35 = vsel %vm205_vm0, %v6017_v61, 0.0 }
0x2eee   :  { %5942 = vmax.xlane.f32.xlu2 %v5941_v32  ;;  %v5845_v7 = vsel %vm283_vm5, %v6903_v45, 0.0  ;;  %v4226_v32 = vld [vmem:[%s8612_s21 + $0x10] sm:$0xff] }
0x2eef   :  { %5846 = vadd.xlane.f32.xlu0 %v5845_v7  ;;  %v4225_v7 = vld [vmem:[%s8612_s21 + $0x8] sm:$0xff] }
0x2efe   :  { %5739 = vrot.lane.b32.xlu1 %v8389_v63, %s7042_s3  ;;  %s8614_s3 = sld [smem:[#allocation33_spill]] }
0x2f03   :  { %5863 = vrot.lane.b32.xlu0 %v8389_v63, %s7045_s26  ;;  %s7052_s26 = smov [#allocation2]  }
0x2f04   :  { %s6292_s28 = sshll.u32 %s7052_s26, 4  ;;  %s6293_s28 = int_to_ptr.vmem [resolvable:$true] %s6292_s28 }
0x2f2d   :  { %6020 = vadd.xlane.f32.xlu0 %v6019_v35 }
0x2f58   :  { %v5723_v34 = vpop.xlane.xlu1 %5722 }
0x2f59   :  { %6904 = vrcp.f32 %v5723_v34  ;;  %v5735_v0 = vand.u32 2147483648, %v5723_v34  ;;  %vm5729_vm8 = vweird.f32 %v5723_v34  ;;  %v5733_v14 = vand.u32 2147483647, %v5723_v34 }
0x2f5b   :  { %v5736_v18 = vor.u32 1.1754944e-38, %v5735_v0  ;;  %vm5734_vm10 = vcmp.eq.f32.partialorder %v5733_v14, 8.507059e+37  ;;  %v4228_v0 = vld [vmem:[%s8614_s3] sm:$0xff] }
0x2f5f   :  { %v6905_v12 = vpop.eup %6904 }
0x2f60   :  { %v5725_v21 = vmul.f32 %v6905_v12, %v5723_v34  ;;  %vm5730_vm7 = vweird.f32 %v6905_v12  ;;  %v8486_v34 = vld [vmem:[%s8613_s8] ss:$0 sm:$0xff] }
0x2f61   :  { %v5943_v40 = vpop.xlane.xlu2 %5942  ;;  %vm5731_vm9 = vmor %vm5729_vm8, %vm5730_vm7 }
0x2f62   :  { %v5726_v42 = vsub.f32 1.0, %v5725_v21  ;;  %v5944_v30 = vsub.f32 %v5939_v26, %v5943_v40  ;;  %v5847_v16 = vpop.xlane.xlu0 %5846  ;;  %v4235_v40 = vld [vmem:[%s8614_s3 + $0x38] sm:$0xff] }
0x2f63   :  { %6906 = vrcp.f32 %v5847_v16  ;;  %v5859_v20 = vand.u32 2147483648, %v5847_v16  ;;  %vm5853_vm12 = vweird.f32 %v5847_v16  ;;  %v5857_v59 = vand.u32 2147483647, %v5847_v16  ;;  %6101 = vmatpush.msrb.mxu2 %v4235_v40 }
0x2f64   :  { %v5727_v1 = vmul.f32 %v6905_v12, %v5726_v42  ;;  %v5945_v15 = vmul.f32 1.442695, %v5944_v30  ;;  %v4234_v42 = vld [vmem:[%s8614_s3 + $0x30] sm:$0xff]  ;;  %v4233_v30 = vld [vmem:[%s8614_s3 + $0x28] sm:$0xff] }
0x2f65   :  { %v5860_v49 = vor.u32 1.1754944e-38, %v5859_v20  ;;  %vm5858_vm14 = vcmp.eq.f32.partialorder %v5857_v59, 8.507059e+37  ;;  %6102 = vmatpush.msrb.mxu2 %v4234_v42 }
0x2f66   :  { %v5728_v46 = vadd.f32 %v6905_v12, %v5727_v1  ;;  %6908 = vpow2.f32 %v5945_v15  ;;  %v4231_v1 = vld [vmem:[%s8614_s3 + $0x18] sm:$0xff]  ;;  %v4230_v15 = vld [vmem:[%s8614_s3 + $0x10] sm:$0xff] }
0x2f67   :  { %6103 = vmatpush.msrb.mxu2 %v4233_v30 }
0x2f68   :  { %v5732_v25 = vsel %vm5731_vm9, %v6905_v12, %v5728_v46  ;;  %v4229_v46 = vld [vmem:[%s8614_s3 + $0x8] sm:$0xff] }
0x2f69   :  { %v6907_v47 = vpop.eup %6906  ;;  %v5737_v43 = vsel %vm5734_vm10, %v5736_v18, %v5732_v25 }
0x2f6a   :  { %v5849_v54 = vmul.f32 %v6907_v47, %v5847_v16  ;;  %vm5854_vm11 = vweird.f32 %v6907_v47  ;;  %v5738_v48 = vmul.f32 %v6901_v53, %v5737_v43  ;;  %v4232_v16 = vld [vmem:[%s8614_s3 + $0x20] sm:$0xff] }
0x2f6b   :  { %vm5855_vm13 = vmor %vm5853_vm12, %vm5854_vm11  ;;  %6104 = vmatpush.msrb.mxu2 %v4232_v16 }
0x2f6c   :  { %v6909_v24 = vpop.eup %6908  ;;  %v5850_v50 = vsub.f32 1.0, %v5849_v54 }
0x2f6d   :  { %v5947_v57 = vsel %vm283_vm5, %v6909_v24, 0.0  ;;  %6105 = vmatpush.msrb.mxu2 %v4231_v1  ;;  %v7051_v1 = vmov 0  }
0x2f6e   :  { %v5851_v38 = vmul.f32 %v6907_v47, %v5850_v50  ;;  %5948 = vadd.xlane.f32.xlu2 %v5947_v57  ;;  %6663 = vset.pattern.permute.xlu0 %v7051_v1 }
0x2f6f   :  { %6106 = vmatpush.msrb.mxu2 %v4230_v15  ;;  %6662 = vset.pattern.permute.xlu2 %v7051_v1 }
0x2f70   :  { %v5852_v37 = vadd.f32 %v6907_v47, %v5851_v38  ;;  %v5740_v44 = vpop.permute.xlu1 %5739 }
0x2f71   :  { %5760 = vmatpush.msrb.mxu3 %v5740_v44  ;;  %6107 = vmatpush.msrb.mxu2 %v4229_v46 }
0x2f72   :  { %v5856_v60 = vsel %vm5855_vm13, %v6907_v47, %v5852_v37  ;;  %6581 = vmatmul.msk.f32.vlgmr.msrb.gmra.mxu3 %vm283_vm5, %v5738_v48 }
0x2f73   :  { %v5861_v22 = vsel %vm5858_vm14, %v5860_v49, %v5856_v60  ;;  %6108 = vmatpush.msrb.mxu2 %v4228_v0 }
0x2f74   :  { %v5862_v52 = vmul.f32 %v6903_v45, %v5861_v22 }
0x2f75   :  { %v5864_v62 = vpop.permute.xlu0 %5863 }
0x2f76   :  { %5884 = vmatpush.msra.mxu3 %v5864_v62  ;;  %v6161_v62 = vld [vmem:[%s7269_s17 + $0x18] sm:$0xff] }
0x2f78   :  { %6009 = vmatpush.msrb.mxu3 %v8444_v28 }
0x2f7a   :  { %6586 = vmatmul.msk.f32.vlgmr.msra.gmra.mxu3 %vm283_vm5, %v5862_v52  ;;  %v6159_v52 = vld [vmem:[%s7269_s17 + $0x8] sm:$0xff] }
0x2f86   :  { %5965 = vrot.lane.b32.xlu2 %v8389_v63, %s7050_s7  ;;  %s6958_s7 = scalar_lea.hbm %s6957_s2, 16 }
0x2f87   :  { %p6959_p0 = scmp.ne.s32.totalorder %s6957_s2, %s6958_s7  ;;  %p6962_p2 = scmp.lt.s32.totalorder %s6960_s19, %s6958_s7 }
0x2f89   :  { %p6963_p3 = por %p6962_p2, %p6961_p1 }
0x2f8b   :  { %p6964_p4 = pnand %p6963_p3, %p6959_p0 }
0x2fa0   :  { %v6021_v55 = vpop.xlane.xlu0 %6020 }
0x2fa1   :  { %v6025_v8 = vmul.f32 %v6021_v55, %v7291_v13  ;;  %v6158_v55 = vld [vmem:[%s7269_s17] sm:$0xff] }
0x2fa3   :  { %v6027_v29 = vadd.f32 1e-06, %v6025_v8 }
0x2fa5   :  { %6910 = vrsqrt.f32 %v6027_v29  ;;  %vm6035_vm7 = vweird.f32 %v6027_v29 }
0x2fab   :  { %v6911_v41 = vpop.eup %6910 }
0x2fac   :  { %v6030_v5 = vmul.f32 %v6911_v41, %v6027_v29  ;;  %vm6036_vm6 = vweird.f32 %v6911_v41 }
0x2fad   :  { %vm6037_vm8 = vmor %vm6035_vm7, %vm6036_vm6 }
0x2fae   :  { %v6031_v19 = vmul.f32 %v6911_v41, %v6030_v5 }
0x2fb0   :  { %v6032_v53 = vmul.f32 0.5, %v6031_v19 }
0x2fb2   :  { %v6033_v26 = vsub.f32 1.5, %v6032_v53 }
0x2fb4   :  { %v6034_v17 = vmul.f32 %v6911_v41, %v6033_v26 }
0x2fb6   :  { %v6038_v61 = vsel %vm6037_vm8, %v6911_v41, %v6034_v17 }
0x2fb7   :  { %v6049_v12 = vmul.f32 %v6038_v61, %v8466_v23 }
0x2fb9   :  { %v6054_v21 = vmul.f32 %v8486_v34, %v6049_v12 }
0x2fe1   :  { %v5949_v36 = vpop.xlane.xlu2 %5948 }
0x2fe2   :  { %6912 = vrcp.f32 %v5949_v36  ;;  %v5961_v39 = vand.u32 2147483648, %v5949_v36  ;;  %v5959_v63 = vand.u32 2147483647, %v5949_v36  ;;  %vm5955_vm2 = vweird.f32 %v5949_v36 }
0x2fe4   :  { %v5962_v33 = vor.u32 1.1754944e-38, %v5961_v39  ;;  %vm5960_vm4 = vcmp.eq.f32.partialorder %v5959_v63, 8.507059e+37 }
0x2fe8   :  { %v6913_v2 = vpop.eup %6912 }
0x2fe9   :  { %v5951_v9 = vmul.f32 %v6913_v2, %v5949_v36  ;;  %v5966_v51 = vpop.permute.xlu2 %5965  ;;  %vm5956_vm15 = vweird.f32 %v6913_v2 }
0x2fea   :  { %5986 = vmatpush.msra.mxu1 %v5966_v51  ;;  %vm5957_vm3 = vmor %vm5955_vm2, %vm5956_vm15 }
0x2feb   :  { %v5952_v28 = vsub.f32 1.0, %v5951_v9 }
0x2fec   :  { %6180 = vmatpush.msrb.mxu1 %v6161_v62 }
0x2fed   :  { %v5953_v4 = vmul.f32 %v6913_v2, %v5952_v28 }
0x2fef   :  { %v5954_v10 = vadd.f32 %v6913_v2, %v5953_v4 }
0x2ff1   :  { %v5958_v11 = vsel %vm5957_vm3, %v6913_v2, %v5954_v10 }
0x2ff2   :  { %v5963_v27 = vsel %vm5960_vm4, %v5962_v33, %v5958_v11  ;;  %vm6243_vm4 = vcmask 7168  }
0x2ff3   :  { %v5964_v6 = vmul.f32 %v6909_v24, %v5963_v27  ;;  %v6677_v27 = vld [vmem:[%s7264_s4] ss:$0 sm:$0xff]  ;;  %s8616_s4 = sld [smem:[#allocation10_spill]] }
0x2ff5   :  { %v5762_v45 = vpop.f32.mrf.mxu3  ;;  %6590 = vmatmul.msk.f32.vlgmr.msra.gmra.mxu1 %vm283_vm5, %v5964_v6 }
0x2ff6   :  { %6582 = vmatmul.msk.f32.vlgmr.msra.gmra.mxu0 %vm283_vm5, %v5762_v45 }
0x2ff7   :  { %6074 = vmatpush.msra.mxu0 %v4227_v3 }
0x2ff9   :  { %6075 = vmatpush.msra.mxu0 %v4226_v32 }
0x2ffb   :  { %6076 = vmatpush.msra.mxu0 %v4225_v7 }
0x2ffd   :  { %v5886_v35 = vpop.f32.mrf.mxu3  ;;  %6077 = vmatpush.msra.mxu0 %v4224_v31 }
0x2ffe   :  { %6587 = vmatmul.msk.f32.vlgmr.msrb.gmra.mxu0 %vm283_vm5, %v5886_v35 }
0x3006   :  { %6592 = vmatmul.msk.f32.vlgmr.msra.gmra.mxu0 %vm205_vm0, %v6054_v21 }
0x3072   :  { %v5988_v14 = vpop.f32.mrf.mxu1 }
0x3073   :  { %v5785_v47 = vpop.f32.mrf.mxu0  ;;  %6591 = vmatmul.msk.f32.vlgmr.msrb.gmra.mxu3 %vm283_vm5, %v5988_v14 }
0x3074   :  { %v5809_v25 = vadd.f32 %v8454_v56, %v5785_v47 }
0x307b   :  { %v5909_v54 = vpop.f32.mrf.mxu0 }
0x307c   :  { %v5912_v18 = vadd.f32 %v5909_v54, %v5809_v25 }
0x3083   :  { %v6079_v24 = vpop.f32.mrf.mxu0 }
0x3084   :  { %v6085_v50 = vmax.f32 %v6079_v24, 0.0 }
0x3086   :  { %6594 = vmatmul.msk.f32.vlgmr.msrb.gmra.mxu2 %vm1186_vm1, %v6085_v50 }
0x30f6   :  { %v6011_v43 = vpop.f32.mrf.mxu3 }
0x30f7   :  { %v6014_v57 = vadd.f32 %v6011_v43, %v5912_v18 }
0x30f9   :  { %v6016_v38 = vadd.f32 %v6014_v57, %v8372_v58  ;;  %v6160_v58 = vld [vmem:[%s7269_s17 + $0x10] sm:$0xff]  ;;  %s8615_s17 = sld [smem:[#allocation9_spill]] }
0x30fa   :  { %6181 = vmatpush.msrb.mxu1 %v6160_v58 }
0x30fb   :  { %v6018_v20 = vmul.f32 %v6016_v38, %v6016_v38 }
0x30fc   :  { %6182 = vmatpush.msrb.mxu1 %v6159_v52 }
0x30fd   :  { %v6022_v48 = vsel %vm205_vm0, %v6018_v20, 0.0 }
0x30fe   :  { %6023 = vadd.xlane.f32.xlu1 %v6022_v48  ;;  %6183 = vmatpush.msrb.mxu1 %v6158_v55 }
0x30ff   :  { %v6220_v16 = vld [vmem:[%s8615_s17 + $0x8] sm:$0xff]  ;;  %v6219_v20 = vld [vmem:[%s8615_s17] sm:$0xff] }
0x3109   :  { %v6110_v37 = vpop.f32.mrf.mxu2 }
0x310a   :  { %v6116_v56 = vadd.f32 %v6110_v37, %v8466_v23 }
0x310c   :  { %v6119_v59 = vmul.f32 %v6116_v56, %v6116_v56 }
0x310e   :  { %v6121_v44 = vsel %vm205_vm0, %v6119_v59, 0.0  ;;  %v6217_v59 = vlaneseq }
0x310f   :  { %6122 = vadd.xlane.f32.xlu2 %v6121_v44 }
0x3171   :  { %v6024_v60 = vpop.xlane.xlu1 %6023 }
0x3172   :  { %v6026_v49 = vmul.f32 %v6024_v60, %v7291_v13 }
0x3174   :  { %v6028_v22 = vadd.f32 1e-06, %v6026_v49 }
0x3176   :  { %6914 = vrsqrt.f32 %v6028_v22  ;;  %vm6045_vm9 = vweird.f32 %v6028_v22 }
0x317c   :  { %v6915_v8 = vpop.eup %6914 }
0x317d   :  { %v6040_v29 = vmul.f32 %v6915_v8, %v6028_v22  ;;  %vm6046_vm5 = vweird.f32 %v6915_v8  ;;  %v6218_v22 = vand.u32 127, %v6217_v59 }
0x317e   :  { %vm6047_vm10 = vmor %vm6045_vm9, %vm6046_vm5 }
0x317f   :  { %v6041_v23 = vmul.f32 %v6915_v8, %v6040_v29  ;;  %v6237_v29 = vld [vmem:[%s8616_s4] sm:$0xff] }
0x3181   :  { %v6042_v36 = vmul.f32 0.5, %v6041_v23  ;;  %v6238_v23 = vld [vmem:[%s8616_s4 + $0x8] sm:$0xff] }
0x3182   :  { %v6123_v41 = vpop.xlane.xlu2 %6122 }
0x3183   :  { %v6043_v2 = vsub.f32 1.5, %v6042_v36  ;;  %v6127_v5 = vmul.f32 %v6123_v41, %v7291_v13  ;;  %v6244_v41 = vsel %vm6243_vm4, %v6237_v29, 0.0 }
0x3185   :  { %v6044_v9 = vmul.f32 %v6915_v8, %v6043_v2  ;;  %v6129_v51 = vadd.f32 1e-06, %v6127_v5  ;;  %v6245_v2 = vsel %vm6243_vm4, %v6238_v23, 0.0 }
0x3186   :  { %v6246_v5 = vadd.f32 %v6245_v2, %v6244_v41 }
0x3187   :  { %v6048_v28 = vsel %vm6047_vm10, %v6915_v8, %v6044_v9  ;;  %6916 = vrsqrt.f32 %v6129_v51  ;;  %vm6137_vm12 = vweird.f32 %v6129_v51 }
0x3188   :  { %v6050_v39 = vmul.f32 %v6048_v28, %v6016_v38 }
0x318a   :  { %v6055_v19 = vmul.f32 %v8486_v34, %v6050_v39 }
0x318c   :  { %6593 = vmatmul.msk.f32.gmra.mxu0 %vm205_vm0, %v6055_v19 }
0x318d   :  { %v6917_v4 = vpop.eup %6916 }
0x318e   :  { %v6132_v63 = vmul.f32 %v6917_v4, %v6129_v51  ;;  %vm6138_vm11 = vweird.f32 %v6917_v4 }
0x318f   :  { %vm6139_vm13 = vmor %vm6137_vm12, %vm6138_vm11 }
0x3190   :  { %v6133_v10 = vmul.f32 %v6917_v4, %v6132_v63 }
0x3192   :  { %v6134_v33 = vmul.f32 0.5, %v6133_v10 }
0x3194   :  { %v6135_v53 = vsub.f32 1.5, %v6134_v33 }
0x3196   :  { %v6136_v11 = vmul.f32 %v6917_v4, %v6135_v53 }
0x3198   :  { %v6140_v6 = vsel %vm6139_vm13, %v6917_v4, %v6136_v11 }
0x3199   :  { %v6151_v3 = vmul.f32 %v6140_v6, %v6116_v56 }
0x319b   :  { %v6156_v26 = vmul.f32 %v6677_v27, %v6151_v3 }
0x319d   :  { %6596 = vmatmul.msk.f32.vlgmr.msrb.gmra.mxu1 %vm205_vm0, %v6156_v26 }
0x3209   :  { %v6082_v45 = vpop.f32.mrf.mxu0 }
0x320a   :  { %v6086_v32 = vmax.f32 %v6082_v45, 0.0 }
0x320c   :  { %6595 = vmatmul.msk.f32.gmra.mxu2 %vm1186_vm1, %v6086_v32 }
0x321a   :  { %v6185_v7 = vpop.f32.mrf.mxu1 }
0x321b   :  { %6191 = vst.msk [vmem:[#allocation2] sm:$0xff] %vm1186_vm1, %v6185_v7  ;;  %v6193_v17 = vsel %vm1186_vm1, %v6185_v7, -inf }
0x321c   :  { %6194 = vmax.xlane.f32.xlu1 %v6193_v17 }
0x328f   :  { %v8519_v31 = vpop.xlane.xlu1 %6194  ;;  %v6113_v61 = vpop.f32.mrf.mxu2 }
0x3290   :  { %v6199_v35 = vsub.f32 %v6185_v7, %v8519_v31  ;;  %v6117_v34 = vadd.f32 %v6113_v61, %v6016_v38 }
0x3292   :  { %v6201_v12 = vmul.f32 1.442695, %v6199_v35  ;;  %v6120_v21 = vmul.f32 %v6117_v34, %v6117_v34 }
0x3294   :  { %6918 = vpow2.f32 %v6201_v12  ;;  %v6124_v40 = vsel %vm205_vm0, %v6120_v21, 0.0 }
0x3295   :  { %6125 = vadd.xlane.f32.xlu0 %v6124_v40 }
0x329a   :  { %v6919_v42 = vpop.eup %6918 }
0x329b   :  { %v6205_v30 = vsel %vm1186_vm1, %v6919_v42, 0.0 }
0x329d   :  { %6206 = vadd.xlane.f32.xlu0 %v6205_v30 }
0x32b1   :  { %6225 = vperm.xlu0 %6663, %v6220_v16  }
0x3308   :  { %v6126_v15 = vpop.xlane.xlu0 %6125 }
0x3309   :  { %v6128_v46 = vmul.f32 %v6126_v15, %v7291_v13 }
0x330b   :  { %v6130_v0 = vadd.f32 1e-06, %v6128_v46 }
0x330d   :  { %6920 = vrsqrt.f32 %v6130_v0  ;;  %vm6147_vm15 = vweird.f32 %v6130_v0 }
0x3310   :  { %v6207_v60 = vpop.xlane.xlu0 %6206 }
0x3313   :  { %v6921_v14 = vpop.eup %6920 }
0x3314   :  { %v6142_v47 = vmul.f32 %v6921_v14, %v6130_v0  ;;  %vm6148_vm14 = vweird.f32 %v6921_v14 }
0x3315   :  { %vm6149_vm2 = vmor %vm6147_vm15, %vm6148_vm14 }
0x3316   :  { %v6143_v25 = vmul.f32 %v6921_v14, %v6142_v47 }
0x3318   :  { %v6144_v54 = vmul.f32 0.5, %v6143_v25 }
0x331a   :  { %v6145_v18 = vsub.f32 1.5, %v6144_v54 }
0x331c   :  { %v6146_v24 = vmul.f32 %v6921_v14, %v6145_v18 }
0x331e   :  { %v6150_v50 = vsel %vm6149_vm2, %v6921_v14, %v6146_v24 }
0x331f   :  { %v6152_v43 = vmul.f32 %v6150_v50, %v6117_v34 }
0x3321   :  { %v6157_v57 = vmul.f32 %v6677_v27, %v6152_v43 }
0x3323   :  { %6597 = vmatmul.msk.f32.gmra.mxu1 %vm205_vm0, %v6157_v57  ;;  %v6226_v52 = vpop.permute.xlu0 %6225 }
0x3324   :  { %vm6228_vm3 = vcmp.eq.s32.totalorder %v6218_v22, %v6226_v52 }
0x33a0   :  { %v6188_v38 = vpop.f32.mrf.mxu1 }
0x33a1   :  { %6192 = vst.msk [vmem:[#allocation2 + $0x8] sm:$0xff] %vm1186_vm1, %v6188_v38  ;;  %v6196_v13 = vsel %vm1186_vm1, %v6188_v38, -inf  ;;  %v6230_v8 = vsel %vm6228_vm3, %v6188_v38, 0.0 }
0x33a2   :  { %6197 = vmax.xlane.f32.xlu2 %v6196_v13  ;;  %v6234_v36 = vsel %vm1186_vm1, %v6230_v8, 0.0 }
0x33ba   :  { %6222 = vperm.xlu2 %6662, %v6219_v20  }
0x3415   :  { %v6198_v48 = vpop.xlane.xlu2 %6197 }
0x3416   :  { %v6200_v37 = vsub.f32 %v6188_v38, %v6198_v48 }
0x3418   :  { %v6203_v56 = vmul.f32 1.442695, %v6200_v37 }
0x341a   :  { %6922 = vpow2.f32 %v6203_v56 }
0x341b   :  { %6924 = vlog2.f32 %v6207_v60 }
0x341d   :  { %v6223_v49 = vpop.permute.xlu2 %6222 }
0x341e   :  { %vm6227_vm0 = vcmp.eq.s32.totalorder %v6218_v22, %v6223_v49 }
0x341f   :  { %v6229_v58 = vsel %vm6227_vm0, %v6185_v7, 0.0 }
0x3420   :  { %v6923_v44 = vpop.eup %6922  ;;  %v6231_v55 = vsel %vm1186_vm1, %v6229_v58, 0.0 }
0x3421   :  { %v6208_v62 = vsel %vm1186_vm1, %v6923_v44, 0.0  ;;  %v6925_v51 = vpop.eup %6924 }
0x3422   :  { %6209 = vadd.xlane.f32.xlu1 %v6208_v62  ;;  %v6212_v28 = vmul.f32 0.6931472, %v6925_v51 }
0x3424   :  { %v6215_v63 = vadd.f32 %v6212_v28, %v8519_v31 }
0x342a   :  { %6232 = vadd.xlane.f32.xlu1 %v6231_v55 }
0x3432   :  { %6235 = vadd.xlane.f32.xlu1 %v6234_v36 }
0x343a   :  { %6247 = vadd.xlane.f32.xlu1 %v6246_v5 }
0x3495   :  { %v6210_v9 = vpop.xlane.xlu1 %6209 }
0x3496   :  { %6926 = vlog2.f32 %v6210_v9 }
0x349c   :  { %v6927_v39 = vpop.eup %6926 }
0x349d   :  { %v6233_v19 = vpop.xlane.xlu1 %6232  ;;  %v6214_v4 = vmul.f32 0.6931472, %v6927_v39 }
0x349e   :  { %v6239_v10 = vsub.f32 %v6215_v63, %v6233_v19 }
0x349f   :  { %v6216_v33 = vadd.f32 %v6214_v4, %v6198_v48 }
0x34a0   :  { %v6241_v11 = vmul.f32 %v6239_v10, %v6237_v29 }
0x34a2   :  { %v6258_v3 = vsel %vm6243_vm4, %v6241_v11, 0.0 }
0x34a5   :  { %v6236_v53 = vpop.xlane.xlu1 %6235 }
0x34a6   :  { %v6240_v27 = vsub.f32 %v6216_v33, %v6236_v53 }
0x34a8   :  { %v6242_v6 = vmul.f32 %v6240_v27, %v6238_v23 }
0x34aa   :  { %v6259_v26 = vsel %vm6243_vm4, %v6242_v6, 0.0 }
0x34ab   :  { %v6260_v45 = vadd.f32 %v6259_v26, %v6258_v3 }
0x34ad   :  { %6261 = vadd.xlane.f32.xlu2 %v6260_v45  ;;  %v6248_v32 = vpop.xlane.xlu1 %6247 }
0x34ae   :  { %v6249_v7 = vrot.slane %v6248_v32, 4 }
0x34b0   :  { %v6250_v17 = vadd.f32 %v6249_v7, %v6248_v32 }
0x34b2   :  { %v6251_v61 = vrot.slane %v6250_v17, 2 }
0x34b4   :  { %v6252_v31 = vadd.f32 %v6251_v61, %v6250_v17 }
0x34b6   :  { %v6253_v35 = vrot.slane %v6252_v31, 1 }
0x34b8   :  { %v6254_v34 = vadd.f32 %v6253_v35, %v6252_v31 }
0x34ba   :  { %6598 = vpush %v6254_v34 }
0x34bb   :  { %6967 = shalt.err (!%p6964_p4)
}
0x34bc   :  { %s7053_s24 = smov 128   ;;  %s7054_s30 = smov 8   ;;  %vm6286_vm5 = vcmask 0  }
0x34bd   :  { %6300 = dma.vmem_to_hbm [thread:$0]  %s6293_s28, 256, %s6295_s22, [#allocation3], %s7053_s24, %s7053_s24, %s7054_s30  }
0x34be   :  { %s7055_s29 = smov [#allocation4]   ;;  %s6308_s12 = sshll.u32 %s7279_s25, 4  ;;  %s6309_s12 = int_to_ptr.hbm [resolvable:$true] %s6308_s12 }
0x34bf   :  { %s6306_s6 = sshll.u32 %s7055_s29, 4  ;;  %s6980_s27 = sshra.s32 %s6309_s12, 4  ;;  %s6307_s6 = int_to_ptr.vmem [resolvable:$true] %s6306_s6  ;;  %s6981_s27 = int_to_ptr.hbm [resolvable:$true] %s6980_s27 }
0x34c0   :  { %s6982_s10 = scalar_lea.hbm %s6981_s27, 1  ;;  %s6984_s11 = scalar_lea.hbm %s7279_s25, 1 }
0x34c1   :  { %p6983_p5 = scmp.ne.s32.totalorder %s6981_s27, %s6982_s10  ;;  %p6985_p6 = scmp.lt.s32.totalorder %s6981_s27, %s7279_s25 }
0x34c2   :  { %p6986_p7 = scmp.lt.s32.totalorder %s6984_s11, %s6982_s10 }
0x34c4   :  { %p6987_p8 = por %p6986_p7, %p6985_p6 }
0x34c6   :  { %p6988_p9 = pnand %p6987_p8, %p6983_p5 }
0x34eb   :  { %s6599_s9 = spop %6598 }
0x34ec   :  { %v6256_v15 = vstv %s6599_s9 }
0x34ed   :  { %v6257_v46 = vmax.f32 %v6256_v15, 1.0 }
0x34ef   :  { %6928 = vrcp.f32 %v6257_v46  ;;  %vm6276_vm1 = vweird.f32 %v6257_v46  ;;  %v6282_v54 = vand.u32 2147483648, %v6257_v46  ;;  %v6280_v24 = vand.u32 2147483647, %v6257_v46 }
0x34f1   :  { %v6283_v50 = vor.u32 1.1754944e-38, %v6282_v54  ;;  %vm6281_vm8 = vcmp.eq.f32.partialorder %v6280_v24, 8.507059e+37 }
0x34f5   :  { %v6929_v0 = vpop.eup %6928 }
0x34f6   :  { %v6272_v14 = vmul.f32 %v6929_v0, %v6257_v46  ;;  %vm6277_vm6 = vweird.f32 %v6929_v0 }
0x34f7   :  { %vm6278_vm7 = vmor %vm6276_vm1, %vm6277_vm6 }
0x34f8   :  { %v6273_v47 = vsub.f32 1.0, %v6272_v14 }
0x34fa   :  { %v6274_v25 = vmul.f32 %v6929_v0, %v6273_v47 }
0x34fc   :  { %v6275_v18 = vadd.f32 %v6929_v0, %v6274_v25 }
0x34fe   :  { %v6279_v43 = vsel %vm6278_vm7, %v6929_v0, %v6275_v18 }
0x34ff   :  { %v6284_v38 = vsel %vm6281_vm8, %v6283_v50, %v6279_v43 }
0x3520   :  { %v6262_v12 = vpop.xlane.xlu2 %6261 }
0x3521   :  { %v6263_v21 = vrot.slane %v6262_v12, 4 }
0x3523   :  { %v6264_v40 = vadd.f32 %v6263_v21, %v6262_v12 }
0x3525   :  { %v6265_v42 = vrot.slane %v6264_v40, 2 }
0x3527   :  { %v6266_v30 = vadd.f32 %v6265_v42, %v6264_v40 }
0x3529   :  { %v6267_v16 = vrot.slane %v6266_v30, 1 }
0x352b   :  { %v6268_v1 = vadd.f32 %v6267_v16, %v6266_v30 }
0x352d   :  { %6600 = vpush %v6268_v1 }
0x355e   :  { %s6601_s20 = spop %6600 }
0x355f   :  { %v6270_v57 = vstv %s6601_s20 }
0x3560   :  { %v6285_v13 = vmul.f32 %v6284_v38, %v6270_v57 }
0x3562   :  { %6287 = vst.msk [vmem:[#allocation4] sm:$0x1] %vm6286_vm5, %v6285_v13 }
0x3563   :  { %6991 = shalt.err (!%p6988_p9)
}
0x3564   :  { %6311 = dma.vmem_to_hbm [thread:$0]  %s6307_s6, 16, %s6309_s12, [#allocation5]  }
0x3565   :  { %6992 = dma.done.wait [#allocation3], 256  }
0x3566   :  { %6993 = vsyncadd [#allocation3], 4294967040 }
0x3567   :  { %6994 = dma.done.wait [#allocation5], 16  }
0x3568   :  { %6995 = vsyncadd [#allocation5], 4294967280 }
0x3569   :  { %6320 = vsyncpa [#allocation3], 1 }
0x356a   :  { %6321 = vsyncpa [#allocation5], 1 }

</bundles_post_ra>
